<compile_context>
chip_gen: v5e
topology: v5e:2x2
jax: 0.10.0
libtpu: 0.0.40
codegen_flags: <defaults>
</compile_context>

<pallas_src>
import jax
import jax.numpy as jnp
from jax import lax
from jax.experimental import pallas as pl
from jax.experimental.pallas import tpu as pltpu


def _linear_kernel(x_ref, w_ref, b_ref, o_ref):
    # x_ref: (tm, K), w_ref: (N, K) torch layout, b_ref: (1, N), o_ref: (tm, N)
    y = lax.dot_general(
        x_ref[...], w_ref[...],
        dimension_numbers=(((1,), (1,)), ((), ())),   # contract K with K (W^T)
        preferred_element_type=jnp.float32,
    )
    y = y + b_ref[...]
    o_ref[...] = y.astype(o_ref.dtype)


def _linear_dropout_kernel(x_ref, w_ref, b_ref, m_ref, o_ref):
    # m_ref: (tm, N) pre-scaled keep-mask: keep * 1/(1-p)
    y = lax.dot_general(
        x_ref[...], w_ref[...],
        dimension_numbers=(((1,), (1,)), ((), ())),
        preferred_element_type=jnp.float32,
    )
    y = y + b_ref[...]
    y = y * m_ref[...]
    o_ref[...] = y.astype(o_ref.dtype)


def flatten_linear_dropout(x, weight, bias, *, p=0.1, training=True, seed=0, tm=192):
    """x: [B, S, H, W]; weight: [out, in] (PyTorch layout, NOT transposed); bias: [out]."""
    B, S, H, W = x.shape
    D = H * W
    out_features, in_features = weight.shape
    assert in_features == D

    x2 = x.reshape(B * S, D)                 # flatten(2) + merge batch/seq
    b2 = bias.reshape(1, out_features)

    M, K, N = B * S, D, out_features
    assert M % tm == 0
    grid = (M // tm,)

    in_specs = [
        pl.BlockSpec((tm, K), lambda i: (i, 0)),   # x row-band per grid step
        pl.BlockSpec((N, K), lambda i: (0, 0)),    # full weight, resident across steps
        pl.BlockSpec((1, N), lambda i: (0, 0)),    # full bias
    ]
    out_spec = pl.BlockSpec((tm, N), lambda i: (i, 0))

    use_dropout = training and p > 0.0
    if use_dropout:
        key = jax.random.PRNGKey(seed)
        keep = jax.random.bernoulli(key, 1.0 - p, (M, N))
        mask = keep.astype(x.dtype) * (1.0 / (1.0 - p))     # inverted-scale dropout
        kernel = _linear_dropout_kernel
        in_specs = in_specs + [pl.BlockSpec((tm, N), lambda i: (i, 0))]
        args = (x2, weight, b2, mask)
    else:
        kernel = _linear_kernel
        args = (x2, weight, b2)

    out2 = pl.pallas_call(
        kernel,
        out_shape=jax.ShapeDtypeStruct((M, N), x.dtype),
        grid=grid,
        in_specs=in_specs,
        out_specs=out_spec,
        compiler_params=pltpu.CompilerParams(
            dimension_semantics=("parallel",),
        ),
    )(*args)

    if use_dropout:
        return out2.reshape(B, S, N), mask
    return out2.reshape(B, S, N), None


if __name__ == "__main__":
    key = jax.random.PRNGKey(0)
    kx, kw, kb = jax.random.split(key, 3)

    B, S, H, W = 1, 384, 12, 64            # matches x167 = randn([1, 384, 12, 64])
    D = H * W                              # 768
    OUT = 768

    x = jax.random.normal(kx, (B, S, H, W), dtype=jnp.float32)
    weight = (jax.random.normal(kw, (OUT, D), dtype=jnp.float32)
              * (1.0 / jnp.sqrt(D)))
    bias = jax.random.normal(kb, (OUT,), dtype=jnp.float32) * 0.01

    # Reference: flatten(2) -> x @ W^T + b
    y_ref = x.reshape(B, S, D) @ weight.T + bias

    # Eval-mode (dropout = identity) correctness check.
    y_eval, _ = flatten_linear_dropout(x, weight, bias, p=0.1, training=False)
    jax.block_until_ready(y_eval)
    assert y_eval.shape == (B, S, OUT)
    assert jnp.allclose(y_eval, y_ref, atol=1e-4, rtol=1e-4)

    # Training-mode run (PyTorch module default is train(): dropout active,
    # inverted scaling by 1/(1-p)).  Check against reference * mask.
    y_train, mask = flatten_linear_dropout(x, weight, bias, p=0.1, training=True,
                                           seed=42)
    jax.block_until_ready(y_train)
    y_train_ref = y_ref * mask.reshape(B, S, OUT)
    assert jnp.allclose(y_train, y_train_ref, atol=1e-4, rtol=1e-4)

    print("KERNEL_OK")
</pallas_src>

<mosaic_0001>
module attributes {stable_mosaic.version = 11 : i64} {
  func.func @_linear_kernel(%arg0: i32, %arg1: memref<192x768xf32, #tpu.memory_space<vmem>>, %arg2: memref<768x768xf32, #tpu.memory_space<vmem>>, %arg3: memref<1x768xf32, #tpu.memory_space<vmem>>, %arg4: memref<192x768xf32, #tpu.memory_space<vmem>>) attributes {dimension_semantics = [#tpu.dimension_semantics<parallel>], iteration_bounds = array<i64: 2>, scalar_prefetch = 0 : i64, scratch_operands = 0 : i64, tpu.core_type = #tpu.core_type<tc>, window_params = [{transform_indices = @transform_0, window_bounds = array<i64: 192, 768>}, {pipeline_mode = #tpu.pipeline_mode<synchronous>, transform_indices = @transform_1, window_bounds = array<i64: 768, 768>}, {pipeline_mode = #tpu.pipeline_mode<synchronous>, transform_indices = @transform_2, window_bounds = array<i64: 1, 768>}, {transform_indices = @transform_3, window_bounds = array<i64: 192, 768>}]} {
    %c0 = arith.constant 0 : index
    %c0_0 = arith.constant 0 : index
    %0 = vector.load %arg1[%c0, %c0_0] : memref<192x768xf32, #tpu.memory_space<vmem>>, vector<192x768xf32>
    %c0_1 = arith.constant 0 : index
    %c0_2 = arith.constant 0 : index
    %1 = vector.load %arg2[%c0_1, %c0_2] : memref<768x768xf32, #tpu.memory_space<vmem>>, vector<768x768xf32>
    %cst = arith.constant dense<0.000000e+00> : vector<192x768xf32>
    %2 = tpu.matmul %0, %1, %cst {dimension_numbers = #tpu.dot_dimension_numbers<[1], [1], [0], [0], [0, 0, 1, 0], [], []>} : vector<192x768xf32>, vector<768x768xf32>, vector<192x768xf32> -> vector<192x768xf32>
    %c0_3 = arith.constant 0 : index
    %c0_4 = arith.constant 0 : index
    %3 = vector.load %arg3[%c0_3, %c0_4] : memref<1x768xf32, #tpu.memory_space<vmem>>, vector<1x768xf32>
    %4 = vector.broadcast %3 : vector<1x768xf32> to vector<192x768xf32>
    %5 = arith.addf %2, %4 : vector<192x768xf32>
    %c0_5 = arith.constant 0 : index
    %c0_6 = arith.constant 0 : index
    %6 = vector.load %arg4[%c0_5, %c0_6] : memref<192x768xf32, #tpu.memory_space<vmem>>, vector<192x768xf32>
    tpu.vector_store %arg4[%c0_5, %c0_6], %5 {strides = array<i32>} : memref<192x768xf32, #tpu.memory_space<vmem>>, vector<192x768xf32>,
    return
  }
  func.func @transform_0(%arg0: i32) -> (i32, i32) {
    %c0_i32 = arith.constant 0 : i32
    %c0_i32_0 = arith.constant 0 : i32
    return %arg0, %c0_i32 : i32, i32
  }
  func.func @transform_1(%arg0: i32) -> (i32, i32) {
    %c0_i32 = arith.constant 0 : i32
    %c0_i32_0 = arith.constant 0 : i32
    %c0_i32_1 = arith.constant 0 : i32
    return %c0_i32, %c0_i32_0 : i32, i32
  }
  func.func @transform_2(%arg0: i32) -> (i32, i32) {
    %c0_i32 = arith.constant 0 : i32
    %c0_i32_0 = arith.constant 0 : i32
    %c0_i32_1 = arith.constant 0 : i32
    return %c0_i32, %c0_i32_0 : i32, i32
  }
  func.func @transform_3(%arg0: i32) -> (i32, i32) {
    %c0_i32 = arith.constant 0 : i32
    %c0_i32_0 = arith.constant 0 : i32
    return %arg0, %c0_i32 : i32, i32
  }
}

</mosaic_0001>

<bundles_post_ra>
// kernel: tpu_custom_call.1
= control target key start
LH: loop header
LB: loop body
LE: loop exit
PB: predicated region body
PF: predicated region fallthrough
CT: control target
= control target key end

     0   :  { %8 = vsyncpa [#allocation3], 0  ;;  %s7947_s0 = inlined_call_operand.hbm [shape: f32[384,768], index: 0, kind: input, shape index: {}]   ;;  %s7948_s1 = inlined_call_operand.hbm [shape: f32[768,768], index: 1, kind: input, shape index: {}]   ;;  %s7949_s2 = inlined_call_operand.hbm [shape: f32[1,768], index: 2, kind: input, shape index: {}]   ;;  %s7950_s3 = inlined_call_operand.hbm [shape: f32[384,768], index: 3, kind: output, shape index: {}]  }
   0x1   :  { %10 = vsyncpa [#allocation3 + $0x1], 0 }
   0x2   :  { %11 = vsyncpa [#allocation6], 0 }
   0x3   :  { %12 = vsyncpa [#allocation4], 0 }
   0x4   :  { %14 = vsyncpa [#allocation4 + $0x1], 0  ;;  %s5031_s12 = smov 0   ;;  %s5033_s13 = smov 0  }
   0x5   :  { %s5035_s14 = smov 0   ;;  %s5037_s15 = smov 0  }
   0x6 LB: > { %s5052_s16 = sadd.s32 4294967295, %s5003_s15   ;;  %s4416_s17 = sadd.s32 4294967294, %s5003_s15   ;;  %s5003_s15 = sphi %s5037_s15, %s8309_s15   ;;  %s4999_s14 = sphi %s5035_s14, %s8308_s14   ;;  %s4995_s13 = sphi %s5033_s13, %s8307_s13   ;;  %s4991_s12 = sphi %s5031_s12, %s8306_s12  }
   0x7   : > { %p40_p0 = scmp.ne.s32.totalorder %s4995_s13, %s4991_s12  ;;  %p41_p1 = scmp.eq.s32.totalorder %s5052_s16, 0 }
   0x8   : > { %p106_p2 = scmp.eq.s32.totalorder %s5052_s16, 1  ;;  %p112_p3 = scmp.eq.s32.totalorder %s4416_s17, 1 }
   0x9   : > { %p5061_p4 = por %p41_p1, %p40_p0  ;;  %p4417_p5 = scmp.ge.s32.totalorder %s5003_s15, 1 }
   0xa   : > { %p5066_p6 = por %p112_p3, %p40_p0  ;;  %p119_p7 = scmp.lt.s32.totalorder %s5003_s15, 3 }
   0xb   : > { %s130_s22 = sshll.u32 %s7948_s1, 4  ;;  %s5005_s24 = smov [#allocation5]   ;;  %s131_s22 = int_to_ptr.hbm [resolvable:$true] %s130_s22 }
   0xc   : > { %p5074_p8 = pnand %p4417_p5, %p119_p7  ;;  %s132_s25 = sshll.u32 %s5005_s24, 4  ;;  %s133_s25 = int_to_ptr.vmem [resolvable:$true] %s132_s25 }
   0xd   : > { %s145_s28 = sshll.u32 %s7949_s2, 4  ;;  %s7951_s29 = smov 768   ;;  %s146_s28 = int_to_ptr.hbm [resolvable:$true] %s145_s28 }
   0xe   : > { %p4444_p9 = pneg %p5074_p8  ;;  %s5007_s30 = smov 48  }
   0xf   : > { %s5008_s4 = smov [#allocation7]   ;;  %s5090_s6 = sadd.s32 1, %s5003_s15  }
  0x10   : > { %p4445_p10 = pnand %p4444_p9, %p41_p1  ;;  %s147_s5 = sshll.u32 %s5008_s4, 4  ;;  %s148_s5 = int_to_ptr.vmem [resolvable:$true] %s147_s5 }
  0x11   : > { %s24_s7 = ssub.s32 %s5003_s15, %s5090_s6  ;;  %s27_s8 = sadd.s32 1, %s4999_s14 }
  0x12   : > { %4447 = dma.hbm_to_vmem [thread:$0]  (!%p4445_p10), %s131_s22, 73728, %s133_s25, [#allocation6], %s7951_s29, %s7951_s29, %s5007_s30  }
  0x13   : > { %4450 = dma.hbm_to_vmem [thread:$0]  (!%p4445_p10), %s146_s28, 96, %s148_s5, [#allocation6]  }
  0x14   : > { %p25_p12 = scmp.eq.s32.totalorder %s24_s7, 0  ;;  %p34_p13 = scmp.ne.s32.totalorder %s4999_s14, %s4995_s13 }
  0x15   : > { %p35_p0 = scmp.eq.s32.totalorder %s5003_s15, 0  ;;  %p4461_p3 = scmp.lt.s32.totalorder %s5003_s15, 2 }
  0x16   : > { %s5100_s9 = scalar_select %p25_p12, %s4999_s14, %s27_s8  }
  0x17   : > { %p36_p5 = por %p35_p0, %p34_p13  ;;  %p5104_p7 = por %p106_p2, %p34_p13 }
  0x18   : > { %s158_s11 = sand.u32 1, %s4999_s14   ;;  %s4462_s17 = smul.u32 1152, %s5003_s15 }
  0x19   : > { %s4428_s20 = smul.u32 1152, %s158_s11  ;;  %p5113_p9 = pnand %p4461_p3, %p36_p5 }
  0x1a   : > { %s168_s24 = scalar_lea.hbm %s7947_s0, %s4462_s17  ;;  %s159_s4 = scalar_lea.sflag [#allocation3], %s158_s11 }
  0x1b   : > { %s169_s26 = sshll.u32 %s168_s24, 4  ;;  %s162_s27 = scalar_lea.vmem [#allocation2], %s4428_s20  ;;  %s170_s26 = int_to_ptr.hbm [resolvable:$true] %s169_s26 }
  0x1c   : > { %s171_s28 = sshll.u32 %s162_s27, 4  ;;  %s4903_s5 = sshra.s32 %s170_s26, 4  ;;  %s172_s28 = int_to_ptr.vmem [resolvable:$true] %s171_s28  ;;  %s4904_s5 = int_to_ptr.hbm [resolvable:$true] %s4903_s5 }
  0x1d   : > { %s4905_s7 = scalar_lea.hbm %s4904_s5, 1152  ;;  %p4907_p10 = pneg %p5113_p9 }
  0x1e   : > { %p4906_p2 = scmp.ne.s32.totalorder %s4904_s5, %s4905_s7  ;;  %s4910_s21 = scalar_lea.hbm %s7947_s0, 2304 }
  0x1f   : > { %p4911_p0 = scmp.lt.s32.totalorder %s4904_s5, %s7947_s0  ;;  %p4912_p3 = scmp.lt.s32.totalorder %s4910_s21, %s4905_s7 }
  0x20   : > { %p4908_p12 = pnand %p4907_p10, %p4906_p2 }
  0x21   : > { %p4913_p5 = por %p4912_p3, %p4911_p0 }
  0x22   : > { %p4909_p13 = pneg %p4908_p12 }
  0x24   : > { %p4914_p11 = pnand %p4913_p5, %p4909_p13 }
  0x26   : > { %4917 = shalt.err (!%p4914_p11)
}
  0x27   : > { %s8072_s11 = smov 768   ;;  %183 = sbr.rel (%p5074_p8) target bundleno = 1975 (0x7b7), region = 32 }
  0x28   : > { %4454 = dma.hbm_to_vmem [thread:$0]  (!%p5113_p9), %s170_s26, 18432, %s172_s28, %s159_s4, %s8072_s11, %s8072_s11, %s5007_s30  }
  0x2c   : > { %s5133_s20 = sand.u32 1, %s4995_s13  }
  0x2d   : > { %s4430_s29 = smul.u32 1152, %s5133_s20  ;;  %s186_s24 = scalar_lea.sflag [#allocation3], %s5133_s20 }
  0x2f   : > { %s5139_s27 = scalar_lea.vmem [#allocation2], %s4430_s29 }
  0x30   : > { %4978 = dma.done.wait (%p5061_p4), %s186_s24, 18432  }
  0x31   : > { %4980 = vsyncadd (%p5061_p4), %s186_s24, 4294948864 }
  0x32   : > { %4982 = dma.done.wait (%p41_p1), [#allocation6], 73824  }
  0x33   : > { %4984 = vsyncadd (%p41_p1), [#allocation6], 4294893472  ;;  %v459_v0 = vld [vmem:[#allocation5 + $0x2d0] sm:$0xff]  ;;  %v461_v1 = vld [vmem:[#allocation5 + $0x2e0] sm:$0xff]  ;;  %s5642_s18 = scalar_lea.vmem [#allocation8], %s4430_s29  ;;  %s4465_s23 = smul.u32 1152, %s5052_s16 }
  0x34   : > { %v460_v2 = vld [vmem:[#allocation5 + $0x2d8] sm:$0xff]  ;;  %959 = vmatpush.xpose.msra.mxu0 %v459_v0  ;;  %1137 = vmatpush.xpose.msra.mxu2 %v461_v1  ;;  %v462_v3 = vld [vmem:[#allocation5 + $0x2e8] sm:$0xff]  ;;  %v453_v4 = vld [vmem:[#allocation5 + $0x2a0] sm:$0xff]  ;;  %s4321_s28 = sshll.u32 %s5642_s18, 4  ;;  %s4308_s16 = scalar_lea.sflag [#allocation4], %s5133_s20  ;;  %s4322_s28 = int_to_ptr.vmem [resolvable:$true] %s4321_s28 }
  0x35   : > { %1048 = vmatpush.xpose.msra.mxu1 %v460_v2  ;;  %1226 = vmatpush.xpose.msra.mxu3 %v462_v3  ;;  %v455_v5 = vld [vmem:[#allocation5 + $0x2b0] sm:$0xff]  ;;  %v454_v6 = vld [vmem:[#allocation5 + $0x2a8] sm:$0xff]  ;;  %v456_v7 = vld [vmem:[#allocation5 + $0x2b8] sm:$0xff]  ;;  %s4320_s26 = scalar_lea.hbm %s7950_s3, %s4465_s23  ;;  %s4953_s21 = scalar_lea.hbm %s7950_s3, 2304 }
  0x36   : > { %v447_v8 = vld [vmem:[#allocation5 + $0x270] sm:$0xff]  ;;  %v449_v9 = vld [vmem:[#allocation5 + $0x280] sm:$0xff]  ;;  %v448_v10 = vld [vmem:[#allocation5 + $0x278] sm:$0xff]  ;;  %s4323_s4 = sshll.u32 %s4320_s26, 4  ;;  %s4324_s4 = int_to_ptr.hbm [resolvable:$true] %s4323_s4 }
  0x37   : > { %v450_v11 = vld [vmem:[#allocation5 + $0x288] sm:$0xff]  ;;  %v441_v12 = vld [vmem:[#allocation5 + $0x240] sm:$0xff]  ;;  %v443_v13 = vld [vmem:[#allocation5 + $0x250] sm:$0xff]  ;;  %s4947_s5 = sshra.s32 %s4324_s4, 4  ;;  %s4948_s5 = int_to_ptr.hbm [resolvable:$true] %s4947_s5 }
  0x38   : > { %960 = vmatpush.xpose.msra.mxu0 %v453_v4  ;;  %1138 = vmatpush.xpose.msra.mxu2 %v455_v5  ;;  %v442_v14 = vld [vmem:[#allocation5 + $0x248] sm:$0xff]  ;;  %v444_v15 = vld [vmem:[#allocation5 + $0x258] sm:$0xff]  ;;  %v435_v16 = vld [vmem:[#allocation5 + $0x210] sm:$0xff]  ;;  %s4949_s7 = scalar_lea.hbm %s4948_s5, 1152  ;;  %p4954_p11 = scmp.lt.s32.totalorder %s4948_s5, %s7950_s3 }
  0x39   : > { %1049 = vmatpush.xpose.msra.mxu1 %v454_v6  ;;  %1227 = vmatpush.xpose.msra.mxu3 %v456_v7  ;;  %v437_v17 = vld [vmem:[#allocation5 + $0x220] sm:$0xff]  ;;  %v436_v18 = vld [vmem:[#allocation5 + $0x218] sm:$0xff]  ;;  %v438_v19 = vld [vmem:[#allocation5 + $0x228] sm:$0xff]  ;;  %p4950_p1 = scmp.ne.s32.totalorder %s4948_s5, %s4949_s7  ;;  %p4955_p9 = scmp.lt.s32.totalorder %s4953_s21, %s4949_s7 }
  0x3a   : > { %v429_v20 = vld [vmem:[#allocation5 + $0x1e0] sm:$0xff]  ;;  %v431_v21 = vld [vmem:[#allocation5 + $0x1f0] sm:$0xff]  ;;  %v430_v22 = vld [vmem:[#allocation5 + $0x1e8] sm:$0xff] }
  0x3b   : > { %v432_v23 = vld [vmem:[#allocation5 + $0x1f8] sm:$0xff]  ;;  %v423_v24 = vld [vmem:[#allocation5 + $0x1b0] sm:$0xff]  ;;  %v425_v25 = vld [vmem:[#allocation5 + $0x1c0] sm:$0xff]  ;;  %p4951_p4 = pnand %p4950_p1, %p5104_p7  ;;  %p4956_p2 = por %p4955_p9, %p4954_p11 }
  0x3c   : > { %961 = vmatpush.xpose.msra.mxu0 %v447_v8  ;;  %1139 = vmatpush.xpose.msra.mxu2 %v449_v9  ;;  %v424_v26 = vld [vmem:[#allocation5 + $0x1b8] sm:$0xff]  ;;  %v426_v27 = vld [vmem:[#allocation5 + $0x1c8] sm:$0xff]  ;;  %v417_v28 = vld [vmem:[#allocation5 + $0x180] sm:$0xff] }
  0x3d   : > { %1050 = vmatpush.xpose.msra.mxu1 %v448_v10  ;;  %1228 = vmatpush.xpose.msra.mxu3 %v450_v11  ;;  %v419_v29 = vld [vmem:[#allocation5 + $0x190] sm:$0xff]  ;;  %v418_v30 = vld [vmem:[#allocation5 + $0x188] sm:$0xff]  ;;  %v420_v31 = vld [vmem:[#allocation5 + $0x198] sm:$0xff]  ;;  %p4952_p8 = pneg %p4951_p4 }
  0x3e   : > { %v411_v32 = vld [vmem:[#allocation5 + $0x150] sm:$0xff]  ;;  %v413_v33 = vld [vmem:[#allocation5 + $0x160] sm:$0xff]  ;;  %v412_v34 = vld [vmem:[#allocation5 + $0x158] sm:$0xff] }
  0x3f   : > { %v414_v35 = vld [vmem:[#allocation5 + $0x168] sm:$0xff]  ;;  %v405_v36 = vld [vmem:[#allocation5 + $0x120] sm:$0xff]  ;;  %v407_v37 = vld [vmem:[#allocation5 + $0x130] sm:$0xff]  ;;  %p4957_p10 = pnand %p4956_p2, %p4952_p8 }
  0x40   : > { %962 = vmatpush.xpose.msra.mxu0 %v441_v12  ;;  %1140 = vmatpush.xpose.msra.mxu2 %v443_v13  ;;  %v406_v38 = vld [vmem:[#allocation5 + $0x128] sm:$0xff]  ;;  %v408_v39 = vld [vmem:[#allocation5 + $0x138] sm:$0xff]  ;;  %v399_v40 = vld [vmem:[#allocation5 + $0xf0] sm:$0xff] }
  0x41   : > { %1051 = vmatpush.xpose.msra.mxu1 %v442_v14  ;;  %1229 = vmatpush.xpose.msra.mxu3 %v444_v15  ;;  %v401_v41 = vld [vmem:[#allocation5 + $0x100] sm:$0xff]  ;;  %v400_v42 = vld [vmem:[#allocation5 + $0xf8] sm:$0xff]  ;;  %v402_v43 = vld [vmem:[#allocation5 + $0x108] sm:$0xff] }
  0x42   : > { %v393_v44 = vld [vmem:[#allocation5 + $0xc0] sm:$0xff]  ;;  %v395_v45 = vld [vmem:[#allocation5 + $0xd0] sm:$0xff]  ;;  %v394_v46 = vld [vmem:[#allocation5 + $0xc8] sm:$0xff] }
  0x43   : > { %v396_v47 = vld [vmem:[#allocation5 + $0xd8] sm:$0xff]  ;;  %v387_v48 = vld [vmem:[#allocation5 + $0x90] sm:$0xff]  ;;  %v389_v49 = vld [vmem:[#allocation5 + $0xa0] sm:$0xff] }
  0x44   : > { %963 = vmatpush.xpose.msra.mxu0 %v435_v16  ;;  %1141 = vmatpush.xpose.msra.mxu2 %v437_v17  ;;  %v388_v50 = vld [vmem:[#allocation5 + $0x98] sm:$0xff]  ;;  %v390_v51 = vld [vmem:[#allocation5 + $0xa8] sm:$0xff]  ;;  %v381_v52 = vld [vmem:[#allocation5 + $0x60] sm:$0xff] }
  0x45   : > { %1052 = vmatpush.xpose.msra.mxu1 %v436_v18  ;;  %1230 = vmatpush.xpose.msra.mxu3 %v438_v19  ;;  %v383_v53 = vld [vmem:[#allocation5 + $0x70] sm:$0xff]  ;;  %v382_v54 = vld [vmem:[#allocation5 + $0x68] sm:$0xff]  ;;  %v384_v55 = vld [vmem:[#allocation5 + $0x78] sm:$0xff] }
  0x46   : > { %v375_v56 = vld [vmem:[#allocation5 + $0x30] sm:$0xff]  ;;  %v377_v57 = vld [vmem:[#allocation5 + $0x40] sm:$0xff]  ;;  %v376_v58 = vld [vmem:[#allocation5 + $0x38] sm:$0xff] }
  0x47   : > { %v378_v59 = vld [vmem:[#allocation5 + $0x48] sm:$0xff]  ;;  %v369_v60 = vld [vmem:[#allocation5] sm:$0xff]  ;;  %v371_v61 = vld [vmem:[#allocation5 + $0x10] sm:$0xff] }
  0x48   : > { %964 = vmatpush.xpose.msra.mxu0 %v429_v20  ;;  %1142 = vmatpush.xpose.msra.mxu2 %v431_v21  ;;  %v370_v62 = vld [vmem:[#allocation5 + $0x8] sm:$0xff]  ;;  %v372_v63 = vld [vmem:[#allocation5 + $0x18] sm:$0xff]  ;;  %v555_v0 = vld [vmem:[#allocation5 + $0x5d0] sm:$0xff] }
  0x49   : > { %1053 = vmatpush.xpose.msra.mxu1 %v430_v22  ;;  %1231 = vmatpush.xpose.msra.mxu3 %v432_v23  ;;  %v463_v1 = vld [vmem:[#allocation5 + $0x2f0] sm:$0xff]  ;;  %v5150_v2 = vld [vmem:[%s5139_s27] sm:$0xff]  ;;  %v5154_v4 = vld [vmem:[%s5139_s27 + $0x8] sm:$0xff] }
  0x4a   : > { %v227_v3 = vld [vmem:[%s5139_s27 + $0x10] sm:$0xff]  ;;  %v228_v5 = vld [vmem:[%s5139_s27 + $0x18] sm:$0xff]  ;;  %v549_v8 = vld [vmem:[#allocation5 + $0x5a0] sm:$0xff] }
  0x4b   : > { %v556_v6 = vld [vmem:[#allocation5 + $0x5d8] sm:$0xff]  ;;  %v457_v9 = vld [vmem:[#allocation5 + $0x2c0] sm:$0xff]  ;;  %v550_v10 = vld [vmem:[#allocation5 + $0x5a8] sm:$0xff] }
  0x4c   : > { %965 = vmatpush.xpose.msra.mxu0 %v423_v24  ;;  %1143 = vmatpush.xpose.msra.mxu2 %v425_v25  ;;  %v464_v7 = vld [vmem:[#allocation5 + $0x2f8] sm:$0xff]  ;;  %v458_v11 = vld [vmem:[#allocation5 + $0x2c8] sm:$0xff]  ;;  %v543_v12 = vld [vmem:[#allocation5 + $0x570] sm:$0xff] }
  0x4d   : > { %1054 = vmatpush.xpose.msra.mxu1 %v424_v26  ;;  %1232 = vmatpush.xpose.msra.mxu3 %v426_v27  ;;  %v451_v13 = vld [vmem:[#allocation5 + $0x290] sm:$0xff]  ;;  %v233_v15 = vld [vmem:[%s5139_s27 + $0x40] sm:$0xff]  ;;  %v5164_v16 = vld [vmem:[%s5139_s27 + $0x38] sm:$0xff] }
  0x4e   : > { %v5160_v14 = vld [vmem:[%s5139_s27 + $0x30] sm:$0xff]  ;;  %v234_v17 = vld [vmem:[%s5139_s27 + $0x48] sm:$0xff]  ;;  %v544_v18 = vld [vmem:[#allocation5 + $0x578] sm:$0xff] }
  0x4f   : > { %v452_v19 = vld [vmem:[#allocation5 + $0x298] sm:$0xff]  ;;  %v537_v20 = vld [vmem:[#allocation5 + $0x540] sm:$0xff]  ;;  %v538_v22 = vld [vmem:[#allocation5 + $0x548] sm:$0xff] }
  0x50   : > { %966 = vmatpush.xpose.msra.mxu0 %v417_v28  ;;  %1144 = vmatpush.xpose.msra.mxu2 %v419_v29  ;;  %v445_v21 = vld [vmem:[#allocation5 + $0x260] sm:$0xff]  ;;  %v446_v23 = vld [vmem:[#allocation5 + $0x268] sm:$0xff]  ;;  %v239_v25 = vld [vmem:[%s5139_s27 + $0x70] sm:$0xff] }
  0x51   : > { %1055 = vmatpush.xpose.msra.mxu1 %v418_v30  ;;  %1233 = vmatpush.xpose.msra.mxu3 %v420_v31  ;;  %v5170_v24 = vld [vmem:[%s5139_s27 + $0x60] sm:$0xff]  ;;  %v5174_v26 = vld [vmem:[%s5139_s27 + $0x68] sm:$0xff]  ;;  %v240_v27 = vld [vmem:[%s5139_s27 + $0x78] sm:$0xff] }
  0x52   : > { %v531_v28 = vld [vmem:[#allocation5 + $0x510] sm:$0xff]  ;;  %v532_v30 = vld [vmem:[#allocation5 + $0x518] sm:$0xff] }
  0x53   : > { %v439_v29 = vld [vmem:[#allocation5 + $0x230] sm:$0xff]  ;;  %v440_v31 = vld [vmem:[#allocation5 + $0x238] sm:$0xff] }
  0x54   : > { %967 = vmatpush.xpose.msra.mxu0 %v411_v32  ;;  %1145 = vmatpush.xpose.msra.mxu2 %v413_v33  ;;  %v5180_v32 = vld [vmem:[%s5139_s27 + $0x90] sm:$0xff]  ;;  %v245_v33 = vld [vmem:[%s5139_s27 + $0xa0] sm:$0xff] }
  0x55   : > { %1056 = vmatpush.xpose.msra.mxu1 %v412_v34  ;;  %1234 = vmatpush.xpose.msra.mxu3 %v414_v35  ;;  %v5184_v34 = vld [vmem:[%s5139_s27 + $0x98] sm:$0xff]  ;;  %v246_v35 = vld [vmem:[%s5139_s27 + $0xa8] sm:$0xff] }
  0x58   : > { %968 = vmatpush.xpose.msra.mxu0 %v405_v36  ;;  %1146 = vmatpush.xpose.msra.mxu2 %v407_v37  ;;  %v525_v36 = vld [vmem:[#allocation5 + $0x4e0] sm:$0xff] }
  0x59   : > { %1057 = vmatpush.xpose.msra.mxu1 %v406_v38  ;;  %1235 = vmatpush.xpose.msra.mxu3 %v408_v39  ;;  %v433_v37 = vld [vmem:[#allocation5 + $0x200] sm:$0xff]  ;;  %v526_v38 = vld [vmem:[#allocation5 + $0x4e8] sm:$0xff] }
  0x5a   : > { %v5190_v39 = vld [vmem:[%s5139_s27 + $0xc0] sm:$0xff] }
  0x5c   : > { %969 = vmatpush.xpose.msra.mxu0 %v399_v40  ;;  %1147 = vmatpush.xpose.msra.mxu2 %v401_v41  ;;  %v251_v40 = vld [vmem:[%s5139_s27 + $0xd0] sm:$0xff]  ;;  %v5194_v41 = vld [vmem:[%s5139_s27 + $0xc8] sm:$0xff] }
  0x5d   : > { %1058 = vmatpush.xpose.msra.mxu1 %v400_v42  ;;  %1236 = vmatpush.xpose.msra.mxu3 %v402_v43  ;;  %v252_v42 = vld [vmem:[%s5139_s27 + $0xd8] sm:$0xff]  ;;  %v434_v43 = vld [vmem:[#allocation5 + $0x208] sm:$0xff] }
  0x60   : > { %970 = vmatpush.xpose.msra.mxu0 %v393_v44  ;;  %1148 = vmatpush.xpose.msra.mxu2 %v395_v45  ;;  %v5200_v44 = vld [vmem:[%s5139_s27 + $0xf0] sm:$0xff]  ;;  %v257_v45 = vld [vmem:[%s5139_s27 + $0x100] sm:$0xff] }
  0x61   : > { %1059 = vmatpush.xpose.msra.mxu1 %v394_v46  ;;  %1237 = vmatpush.xpose.msra.mxu3 %v396_v47  ;;  %v5204_v46 = vld [vmem:[%s5139_s27 + $0xf8] sm:$0xff]  ;;  %v258_v47 = vld [vmem:[%s5139_s27 + $0x108] sm:$0xff] }
  0x64   : > { %971 = vmatpush.xpose.msra.mxu0 %v387_v48  ;;  %1149 = vmatpush.xpose.msra.mxu2 %v389_v49  ;;  %v519_v48 = vld [vmem:[#allocation5 + $0x4b0] sm:$0xff] }
  0x65   : > { %1060 = vmatpush.xpose.msra.mxu1 %v388_v50  ;;  %1238 = vmatpush.xpose.msra.mxu3 %v390_v51  ;;  %v427_v49 = vld [vmem:[#allocation5 + $0x1d0] sm:$0xff]  ;;  %v520_v50 = vld [vmem:[#allocation5 + $0x4b8] sm:$0xff] }
  0x66   : > { %v428_v51 = vld [vmem:[#allocation5 + $0x1d8] sm:$0xff] }
  0x68   : > { %972 = vmatpush.xpose.msra.mxu0 %v381_v52  ;;  %1150 = vmatpush.xpose.msra.mxu2 %v383_v53  ;;  %v5210_v52 = vld [vmem:[%s5139_s27 + $0x120] sm:$0xff]  ;;  %v263_v53 = vld [vmem:[%s5139_s27 + $0x130] sm:$0xff] }
  0x69   : > { %1061 = vmatpush.xpose.msra.mxu1 %v382_v54  ;;  %1239 = vmatpush.xpose.msra.mxu3 %v384_v55  ;;  %v5214_v54 = vld [vmem:[%s5139_s27 + $0x128] sm:$0xff]  ;;  %v264_v55 = vld [vmem:[%s5139_s27 + $0x138] sm:$0xff] }
  0x6c   : > { %973 = vmatpush.xpose.msra.mxu0 %v375_v56  ;;  %1151 = vmatpush.xpose.msra.mxu2 %v377_v57  ;;  %v513_v56 = vld [vmem:[#allocation5 + $0x480] sm:$0xff] }
  0x6d   : > { %1062 = vmatpush.xpose.msra.mxu1 %v376_v58  ;;  %1240 = vmatpush.xpose.msra.mxu3 %v378_v59  ;;  %v421_v57 = vld [vmem:[#allocation5 + $0x1a0] sm:$0xff]  ;;  %v514_v58 = vld [vmem:[#allocation5 + $0x488] sm:$0xff]  ;;  %v5220_v59 = vld [vmem:[%s5139_s27 + $0x150] sm:$0xff] }
  0x70   : > { %974 = vmatpush.xpose.msra.mxu0 %v369_v60  ;;  %1152 = vmatpush.xpose.msra.mxu2 %v371_v61  ;;  %v269_v60 = vld [vmem:[%s5139_s27 + $0x160] sm:$0xff]  ;;  %v5224_v61 = vld [vmem:[%s5139_s27 + $0x158] sm:$0xff] }
  0x71   : > { %1063 = vmatpush.xpose.msra.mxu1 %v370_v62  ;;  %1241 = vmatpush.xpose.msra.mxu3 %v372_v63  ;;  %v270_v62 = vld [vmem:[%s5139_s27 + $0x168] sm:$0xff] }
  0x72   : > { %v422_v63 = vld [vmem:[#allocation5 + $0x1a8] sm:$0xff] }
  0x73   : > { %975 = vmatmul.f32.vlgmr.msra.gmra.mxu0 %v5150_v2  ;;  %1153 = vmatmul.f32.vlgmr.msra.gmra.mxu2 %v227_v3  ;;  %v5234_v3 = vld [vmem:[%s5139_s27 + $0x188] sm:$0xff] }
  0x74   : > { %1493 = vmatpush.xpose.msrb.mxu2 %v555_v0  ;;  %1315 = vmatpush.xpose.msrb.mxu0 %v463_v1  ;;  %v5230_v0 = vld [vmem:[%s5139_s27 + $0x180] sm:$0xff]  ;;  %v275_v1 = vld [vmem:[%s5139_s27 + $0x190] sm:$0xff] }
  0x75   : > { %1064 = vmatmul.f32.vlgmr.msra.gmra.mxu1 %v5154_v4  ;;  %1242 = vmatmul.f32.vlgmr.msra.gmra.mxu3 %v228_v5  ;;  %v276_v5 = vld [vmem:[%s5139_s27 + $0x198] sm:$0xff] }
  0x76   : > { %1582 = vmatpush.xpose.msrb.mxu3 %v556_v6  ;;  %1404 = vmatpush.xpose.msrb.mxu1 %v464_v7  ;;  %v507_v6 = vld [vmem:[#allocation5 + $0x450] sm:$0xff] }
  0x77   : > { %v415_v7 = vld [vmem:[#allocation5 + $0x170] sm:$0xff] }
  0x78   : > { %1494 = vmatpush.xpose.msrb.mxu2 %v549_v8  ;;  %1316 = vmatpush.xpose.msrb.mxu0 %v457_v9  ;;  %v508_v8 = vld [vmem:[#allocation5 + $0x458] sm:$0xff] }
  0x79   : > { %v416_v9 = vld [vmem:[#allocation5 + $0x178] sm:$0xff] }
  0x7a   : > { %1583 = vmatpush.xpose.msrb.mxu3 %v550_v10  ;;  %1405 = vmatpush.xpose.msrb.mxu1 %v458_v11  ;;  %v5240_v10 = vld [vmem:[%s5139_s27 + $0x1b0] sm:$0xff]  ;;  %v281_v11 = vld [vmem:[%s5139_s27 + $0x1c0] sm:$0xff] }
  0x7b   : > { %978 = vmatmul.f32.gmra.mxu0 %v5160_v14  ;;  %1156 = vmatmul.f32.gmra.mxu2 %v233_v15  ;;  %v501_v15 = vld [vmem:[#allocation5 + $0x420] sm:$0xff] }
  0x7c   : > { %1495 = vmatpush.xpose.msrb.mxu2 %v543_v12  ;;  %1317 = vmatpush.xpose.msrb.mxu0 %v451_v13  ;;  %v5244_v12 = vld [vmem:[%s5139_s27 + $0x1b8] sm:$0xff]  ;;  %v282_v13 = vld [vmem:[%s5139_s27 + $0x1c8] sm:$0xff] }
  0x7d   : > { %1067 = vmatmul.f32.gmra.mxu1 %v5164_v16  ;;  %1245 = vmatmul.f32.gmra.mxu3 %v234_v17  ;;  %v409_v17 = vld [vmem:[#allocation5 + $0x140] sm:$0xff] }
  0x7e   : > { %1584 = vmatpush.xpose.msrb.mxu3 %v544_v18  ;;  %1406 = vmatpush.xpose.msrb.mxu1 %v452_v19  ;;  %v502_v18 = vld [vmem:[#allocation5 + $0x428] sm:$0xff]  ;;  %v5250_v19 = vld [vmem:[%s5139_s27 + $0x1e0] sm:$0xff] }
  0x80   : > { %1496 = vmatpush.xpose.msrb.mxu2 %v537_v20  ;;  %1318 = vmatpush.xpose.msrb.mxu0 %v445_v21  ;;  %v287_v20 = vld [vmem:[%s5139_s27 + $0x1f0] sm:$0xff]  ;;  %v5254_v21 = vld [vmem:[%s5139_s27 + $0x1e8] sm:$0xff] }
  0x82   : > { %1585 = vmatpush.xpose.msrb.mxu3 %v538_v22  ;;  %1407 = vmatpush.xpose.msrb.mxu1 %v446_v23  ;;  %v288_v22 = vld [vmem:[%s5139_s27 + $0x1f8] sm:$0xff]  ;;  %v410_v23 = vld [vmem:[#allocation5 + $0x148] sm:$0xff] }
  0x83   : > { %981 = vmatmul.f32.gmra.mxu0 %v5170_v24  ;;  %1159 = vmatmul.f32.gmra.mxu2 %v239_v25  ;;  %v5260_v25 = vld [vmem:[%s5139_s27 + $0x210] sm:$0xff] }
  0x84   : > { %1497 = vmatpush.xpose.msrb.mxu2 %v531_v28  ;;  %1319 = vmatpush.xpose.msrb.mxu0 %v439_v29  ;;  %v5264_v28 = vld [vmem:[%s5139_s27 + $0x218] sm:$0xff]  ;;  %v294_v29 = vld [vmem:[%s5139_s27 + $0x228] sm:$0xff] }
  0x85   : > { %1070 = vmatmul.f32.gmra.mxu1 %v5174_v26  ;;  %1248 = vmatmul.f32.gmra.mxu3 %v240_v27  ;;  %v293_v27 = vld [vmem:[%s5139_s27 + $0x220] sm:$0xff] }
  0x86   : > { %1586 = vmatpush.xpose.msrb.mxu3 %v532_v30  ;;  %1408 = vmatpush.xpose.msrb.mxu1 %v440_v31  ;;  %v495_v30 = vld [vmem:[#allocation5 + $0x3f0] sm:$0xff] }
  0x87   : > { %v403_v31 = vld [vmem:[#allocation5 + $0x110] sm:$0xff] }
  0x88   : > { %1498 = vmatpush.xpose.msrb.mxu2 %v525_v36  ;;  %1320 = vmatpush.xpose.msrb.mxu0 %v433_v37  ;;  %v5270_v36 = vld [vmem:[%s5139_s27 + $0x240] sm:$0xff]  ;;  %v299_v37 = vld [vmem:[%s5139_s27 + $0x250] sm:$0xff] }
  0x8a   : > { %1587 = vmatpush.xpose.msrb.mxu3 %v526_v38  ;;  %1409 = vmatpush.xpose.msrb.mxu1 %v434_v43  ;;  %v5274_v38 = vld [vmem:[%s5139_s27 + $0x248] sm:$0xff]  ;;  %v5280_v43 = vld [vmem:[%s5139_s27 + $0x270] sm:$0xff] }
  0x8b   : > { %984 = vmatmul.f32.gmra.mxu0 %v5180_v32  ;;  %1162 = vmatmul.f32.gmra.mxu2 %v245_v33  ;;  %v496_v33 = vld [vmem:[#allocation5 + $0x3f8] sm:$0xff] }
  0x8c   : > { %1499 = vmatpush.xpose.msrb.mxu2 %v519_v48  ;;  %1321 = vmatpush.xpose.msrb.mxu0 %v427_v49  ;;  %v306_v48 = vld [vmem:[%s5139_s27 + $0x288] sm:$0xff]  ;;  %v397_v49 = vld [vmem:[#allocation5 + $0xe0] sm:$0xff] }
  0x8d   : > { %1073 = vmatmul.f32.gmra.mxu1 %v5184_v34  ;;  %1251 = vmatmul.f32.gmra.mxu3 %v246_v35  ;;  %v404_v35 = vld [vmem:[#allocation5 + $0x118] sm:$0xff] }
  0x8e   : > { %1588 = vmatpush.xpose.msrb.mxu3 %v520_v50  ;;  %1410 = vmatpush.xpose.msrb.mxu1 %v428_v51  ;;  %v490_v50 = vld [vmem:[#allocation5 + $0x3c8] sm:$0xff] }
  0x8f   : > { %v398_v51 = vld [vmem:[#allocation5 + $0xe8] sm:$0xff] }
  0x90   : > { %1500 = vmatpush.xpose.msrb.mxu2 %v513_v56  ;;  %1322 = vmatpush.xpose.msrb.mxu0 %v421_v57  ;;  %v5294_v56 = vld [vmem:[%s5139_s27 + $0x2a8] sm:$0xff]  ;;  %v312_v57 = vld [vmem:[%s5139_s27 + $0x2b8] sm:$0xff] }
  0x92   : > { %1589 = vmatpush.xpose.msrb.mxu3 %v514_v58  ;;  %1411 = vmatpush.xpose.msrb.mxu1 %v422_v63  ;;  %v483_v58 = vld [vmem:[#allocation5 + $0x390] sm:$0xff]  ;;  %v392_v63 = vld [vmem:[#allocation5 + $0xb8] sm:$0xff] }
  0x93   : > { %987 = vmatmul.f32.gmra.mxu0 %v5190_v39  ;;  %1165 = vmatmul.f32.gmra.mxu2 %v251_v40  ;;  %v300_v40 = vld [vmem:[%s5139_s27 + $0x258] sm:$0xff] }
  0x94   : > { %1501 = vmatpush.xpose.msrb.mxu2 %v507_v6  ;;  %1323 = vmatpush.xpose.msrb.mxu0 %v415_v7  ;;  %v5304_v6 = vld [vmem:[%s5139_s27 + $0x2d8] sm:$0xff]  ;;  %v318_v7 = vld [vmem:[%s5139_s27 + $0x2e8] sm:$0xff] }
  0x95   : > { %1076 = vmatmul.f32.gmra.mxu1 %v5194_v41  ;;  %1254 = vmatmul.f32.gmra.mxu3 %v252_v42  ;;  %v489_v42 = vld [vmem:[#allocation5 + $0x3c0] sm:$0xff] }
  0x96   : > { %1590 = vmatpush.xpose.msrb.mxu3 %v508_v8  ;;  %1412 = vmatpush.xpose.msrb.mxu1 %v416_v9  ;;  %v5307_v8 = vld [vmem:[#allocation7] sm:$0x3f] }
  0x97   : > { %v5312_v9 = vperm.slane %v5307_v8, 0 }
  0x98   : > { %1502 = vmatpush.xpose.msrb.mxu2 %v501_v15  ;;  %1324 = vmatpush.xpose.msrb.mxu0 %v409_v17  ;;  %v5315_v15 = vld [vmem:[%s5139_s27 + $0x300] sm:$0xff]  ;;  %v323_v17 = vld [vmem:[%s5139_s27 + $0x310] sm:$0xff] }
  0x9a   : > { %1591 = vmatpush.xpose.msrb.mxu3 %v502_v18  ;;  %1413 = vmatpush.xpose.msrb.mxu1 %v410_v23  ;;  %v5319_v18 = vld [vmem:[%s5139_s27 + $0x308] sm:$0xff]  ;;  %v324_v23 = vld [vmem:[%s5139_s27 + $0x318] sm:$0xff] }
  0x9b   : > { %990 = vmatmul.f32.gmra.mxu0 %v5200_v44  ;;  %1168 = vmatmul.f32.gmra.mxu2 %v257_v45  ;;  %v305_v45 = vld [vmem:[%s5139_s27 + $0x280] sm:$0xff] }
  0x9c   : > { %1503 = vmatpush.xpose.msrb.mxu2 %v495_v30  ;;  %1325 = vmatpush.xpose.msrb.mxu0 %v403_v31  ;;  %v386_v31 = vld [vmem:[#allocation5 + $0x88] sm:$0xff] }
  0x9d   : > { %1079 = vmatmul.f32.gmra.mxu1 %v5204_v46  ;;  %1257 = vmatmul.f32.gmra.mxu3 %v258_v47  ;;  %v5284_v47 = vld [vmem:[%s5139_s27 + $0x278] sm:$0xff] }
  0x9e   : > { %1592 = vmatpush.xpose.msrb.mxu3 %v496_v33  ;;  %1414 = vmatpush.xpose.msrb.mxu1 %v404_v35 }
  0xa0   : > { %1504 = vmatpush.xpose.msrb.mxu2 %v489_v42  ;;  %1326 = vmatpush.xpose.msrb.mxu0 %v397_v49  ;;  %v5326_v42 = vld [vmem:[%s5139_s27 + $0x330] sm:$0xff] }
  0xa2   : > { %1593 = vmatpush.xpose.msrb.mxu3 %v490_v50  ;;  %1415 = vmatpush.xpose.msrb.mxu1 %v398_v51  ;;  %v5333_v51 = vld [vmem:[%s5139_s27 + $0x338] sm:$0xff] }
  0xa3   : > { %993 = vmatmul.f32.gmra.mxu0 %v5210_v52  ;;  %1171 = vmatmul.f32.gmra.mxu2 %v263_v53  ;;  %v5290_v53 = vld [vmem:[%s5139_s27 + $0x2a0] sm:$0xff] }
  0xa4   : > { %1505 = vmatpush.xpose.msrb.mxu2 %v483_v58  ;;  %v471_v58 = vld [vmem:[#allocation5 + $0x330] sm:$0xff] }
  0xa5   : > { %1082 = vmatmul.f32.gmra.mxu1 %v5214_v54  ;;  %1260 = vmatmul.f32.gmra.mxu3 %v264_v55  ;;  %v311_v55 = vld [vmem:[%s5139_s27 + $0x2b0] sm:$0xff] }
  0xa6   : > { %1416 = vmatpush.xpose.msrb.mxu1 %v392_v63 }
  0xaa   : > { %1417 = vmatpush.xpose.msrb.mxu1 %v386_v31 }
  0xab   : > { %996 = vmatmul.f32.gmra.mxu0 %v5220_v59  ;;  %1174 = vmatmul.f32.gmra.mxu2 %v269_v60  ;;  %v391_v60 = vld [vmem:[#allocation5 + $0xb0] sm:$0xff] }
  0xac   : > { %1327 = vmatpush.xpose.msrb.mxu0 %v391_v60  ;;  %v379_v60 = vld [vmem:[#allocation5 + $0x50] sm:$0xff] }
  0xad   : > { %1085 = vmatmul.f32.gmra.mxu1 %v5224_v61  ;;  %1263 = vmatmul.f32.gmra.mxu3 %v270_v62  ;;  %v484_v62 = vld [vmem:[#allocation5 + $0x398] sm:$0xff] }
  0xae   : > { %1594 = vmatpush.xpose.msrb.mxu3 %v484_v62  ;;  %v472_v62 = vld [vmem:[#allocation5 + $0x338] sm:$0xff] }
  0xb3   : > { %999 = vmatmul.f32.gmra.mxu0 %v5230_v0  ;;  %1177 = vmatmul.f32.gmra.mxu2 %v275_v1  ;;  %v5300_v1 = vld [vmem:[%s5139_s27 + $0x2d0] sm:$0xff] }
  0xb5   : > { %1088 = vmatmul.f32.gmra.mxu1 %v5234_v3  ;;  %1266 = vmatmul.f32.gmra.mxu3 %v276_v5  ;;  %v317_v5 = vld [vmem:[%s5139_s27 + $0x2e0] sm:$0xff] }
  0xbb   : > { %1002 = vmatmul.f32.gmra.mxu0 %v5240_v10  ;;  %1180 = vmatmul.f32.gmra.mxu2 %v281_v11  ;;  %v477_v11 = vld [vmem:[#allocation5 + $0x360] sm:$0xff] }
  0xbc   : > { %1506 = vmatpush.xpose.msrb.mxu2 %v477_v11  ;;  %v380_v11 = vld [vmem:[#allocation5 + $0x58] sm:$0xff] }
  0xbd   : > { %1091 = vmatmul.f32.gmra.mxu1 %v5244_v12  ;;  %1269 = vmatmul.f32.gmra.mxu3 %v282_v13 }
  0xbe   : > { %1418 = vmatpush.xpose.msrb.mxu1 %v380_v11  ;;  %v374_v11 = vld [vmem:[#allocation5 + $0x28] sm:$0xff] }
  0xc0   : > { %1507 = vmatpush.xpose.msrb.mxu2 %v471_v58 }
  0xc2   : > { %1419 = vmatpush.xpose.msrb.mxu1 %v374_v11  ;;  %v558_v11 = vld [vmem:[#allocation5 + $0x5e8] sm:$0xff] }
  0xc3   : > { %1005 = vmatmul.f32.gmra.mxu0 %v5250_v19  ;;  %1183 = vmatmul.f32.gmra.mxu2 %v287_v20 }
  0xc5   : > { %1094 = vmatmul.f32.gmra.mxu1 %v5254_v21  ;;  %1272 = vmatmul.f32.gmra.mxu3 %v288_v22 }
  0xc6   : > { %1760 = vmatpush.xpose.msra.mxu1 %v558_v11 }
  0xcb   : > { %1008 = vmatmul.f32.gmra.mxu0 %v5260_v25  ;;  %1186 = vmatmul.f32.gmra.mxu2 %v293_v27  ;;  %v385_v27 = vld [vmem:[#allocation5 + $0x80] sm:$0xff] }
  0xcc   : > { %1328 = vmatpush.xpose.msrb.mxu0 %v385_v27 }
  0xcd   : > { %1097 = vmatmul.f32.gmra.mxu1 %v5264_v28  ;;  %1275 = vmatmul.f32.gmra.mxu3 %v294_v29  ;;  %v478_v29 = vld [vmem:[#allocation5 + $0x368] sm:$0xff] }
  0xce   : > { %1595 = vmatpush.xpose.msrb.mxu3 %v478_v29  ;;  %v5346_v29 = vld [vmem:[%s5139_s27 + $0x368] sm:$0xff] }
  0xd0   : > { %1329 = vmatpush.xpose.msrb.mxu0 %v379_v60 }
  0xd2   : > { %1596 = vmatpush.xpose.msrb.mxu3 %v472_v62  ;;  %v342_v62 = vld [vmem:[%s5139_s27 + $0x3a8] sm:$0xff] }
  0xd3   : > { %1011 = vmatmul.f32.gmra.mxu0 %v5270_v36  ;;  %1189 = vmatmul.f32.gmra.mxu2 %v299_v37 }
  0xd5   : > { %1100 = vmatmul.f32.gmra.mxu1 %v5274_v38  ;;  %1278 = vmatmul.f32.gmra.mxu3 %v300_v40 }
  0xdb   : > { %1014 = vmatmul.f32.gmra.mxu0 %v5280_v43  ;;  %1192 = vmatmul.f32.gmra.mxu2 %v305_v45  ;;  %v329_v45 = vld [vmem:[%s5139_s27 + $0x340] sm:$0xff] }
  0xdd   : > { %1103 = vmatmul.f32.gmra.mxu1 %v5284_v47  ;;  %1281 = vmatmul.f32.gmra.mxu3 %v306_v48 }
  0xe3   : > { %1017 = vmatmul.f32.gmra.mxu0 %v5290_v53  ;;  %1195 = vmatmul.f32.gmra.mxu2 %v311_v55  ;;  %v330_v55 = vld [vmem:[%s5139_s27 + $0x348] sm:$0xff] }
  0xe5   : > { %1106 = vmatmul.f32.gmra.mxu1 %v5294_v56  ;;  %1284 = vmatmul.f32.gmra.mxu3 %v312_v57 }
  0xeb   : > { %1020 = vmatmul.f32.gmra.mxu0 %v5300_v1  ;;  %1198 = vmatmul.f32.gmra.mxu2 %v317_v5 }
  0xed   : > { %1109 = vmatmul.f32.gmra.mxu1 %v5304_v6  ;;  %1287 = vmatmul.f32.gmra.mxu3 %v318_v7 }
  0xf0   : > { %v976_v13 = vpop.f32.mrf.mxu0 }
  0xf1   : > { %v977_v20 = vadd.f32 %v976_v13, %v5312_v9 }
  0xf2   : > { %v1065_v22 = vpop.f32.mrf.mxu1 }
  0xf3   : > { %v1066_v30 = vadd.f32 %v1065_v22, %v977_v20  ;;  %1023 = vmatmul.f32.gmra.mxu0 %v5315_v15  ;;  %1201 = vmatmul.f32.gmra.mxu2 %v323_v17  ;;  %v5339_v17 = vld [vmem:[%s5139_s27 + $0x360] sm:$0xff]  ;;  %v335_v20 = vld [vmem:[%s5139_s27 + $0x370] sm:$0xff] }
  0xf5   : > { %1112 = vmatmul.f32.gmra.mxu1 %v5319_v18  ;;  %1290 = vmatmul.f32.gmra.mxu3 %v324_v23 }
  0xf6   : > { %v1154_v33 = vpop.f32.mrf.mxu2 }
  0xf7   : > { %v1155_v35 = vadd.f32 %v1154_v33, %v1066_v30  ;;  %v336_v30 = vld [vmem:[%s5139_s27 + $0x378] sm:$0xff] }
  0xf8   : > { %v1243_v37 = vpop.f32.mrf.mxu3  ;;  %v979_v40 = vpop.f32.mrf.mxu0 }
  0xf9   : > { %v980_v48 = vadd.f32 %v979_v40, %v5312_v9  ;;  %v5330_v49 = vadd.f32 %v1243_v37, %v1155_v35  ;;  %v465_v40 = vld [vmem:[#allocation5 + $0x300] sm:$0xff] }
  0xfa   : > { %v1068_v50 = vpop.f32.mrf.mxu1  ;;  %1508 = vmatpush.xpose.msrb.mxu2 %v465_v40  ;;  %v5372_v40 = vld [vmem:[%s5139_s27 + $0x3c8] sm:$0xff] }
  0xfb   : > { %v1069_v57 = vadd.f32 %v1068_v50, %v980_v48  ;;  %1026 = vmatmul.f32.gmra.mxu0 %v5326_v42  ;;  %1204 = vmatmul.f32.gmra.mxu2 %v329_v45  ;;  %v5352_v48 = vld [vmem:[%s5139_s27 + $0x390] sm:$0xff]  ;;  %v341_v50 = vld [vmem:[%s5139_s27 + $0x3a0] sm:$0xff]  ;;  %8073 = vst [vmem:[#allocation12_spill] sm:$0xff] %v5372_v40 }
  0xfd   : > { %1115 = vmatmul.f32.gmra.mxu1 %v5333_v51  ;;  %1293 = vmatmul.f32.gmra.mxu3 %v330_v55  ;;  %v5356_v55 = vld [vmem:[%s5139_s27 + $0x398] sm:$0xff] }
  0xfe   : > { %v1157_v63 = vpop.f32.mrf.mxu2 }
  0xff   : > { %v1158_v5 = vadd.f32 %v1157_v63, %v1069_v57  ;;  %v373_v63 = vld [vmem:[#allocation5 + $0x20] sm:$0xff] }
 0x100   : > { %v1246_v7 = vpop.f32.mrf.mxu3  ;;  %v982_v13 = vpop.f32.mrf.mxu0  ;;  %1330 = vmatpush.xpose.msrb.mxu0 %v373_v63 }
 0x101   : > { %v983_v22 = vadd.f32 %v982_v13, %v5312_v9  ;;  %v5343_v23 = vadd.f32 %v1246_v7, %v1158_v5  ;;  %v466_v5 = vld [vmem:[#allocation5 + $0x308] sm:$0xff] }
 0x102   : > { %v1071_v27 = vpop.f32.mrf.mxu1  ;;  %1597 = vmatpush.xpose.msrb.mxu3 %v466_v5 }
 0x103   : > { %v1072_v31 = vadd.f32 %v1071_v27, %v983_v22  ;;  %1029 = vmatmul.f32.gmra.mxu0 %v5339_v17  ;;  %1207 = vmatmul.f32.gmra.mxu2 %v335_v20 }
 0x105   : > { %1118 = vmatmul.f32.gmra.mxu1 %v5346_v29  ;;  %1296 = vmatmul.f32.gmra.mxu3 %v336_v30  ;;  %v5365_v30 = vld [vmem:[%s5139_s27 + $0x3c0] sm:$0xff] }
 0x106   : > { %v1160_v33 = vpop.f32.mrf.mxu2 }
 0x107   : > { %v1161_v35 = vadd.f32 %v1160_v33, %v1072_v31  ;;  %v347_v31 = vld [vmem:[%s5139_s27 + $0x3d0] sm:$0xff] }
 0x108   : > { %v1249_v37 = vpop.f32.mrf.mxu3  ;;  %v985_v45 = vpop.f32.mrf.mxu0 }
 0x109   : > { %v986_v57 = vadd.f32 %v985_v45, %v5312_v9  ;;  %v5359_v58 = vadd.f32 %v1249_v37, %v1161_v35  ;;  %v348_v45 = vld [vmem:[%s5139_s27 + $0x3d8] sm:$0xff] }
 0x10a   : > { %v1074_v60 = vpop.f32.mrf.mxu1 }
 0x10b   : > { %v1075_v7 = vadd.f32 %v1074_v60, %v986_v57  ;;  %1032 = vmatmul.f32.gmra.mxu0 %v5352_v48  ;;  %1210 = vmatmul.f32.gmra.mxu2 %v341_v50  ;;  %v559_v57 = vld [vmem:[#allocation5 + $0x5f0] sm:$0xff]  ;;  %v557_v60 = vld [vmem:[#allocation5 + $0x5e0] sm:$0xff] }
 0x10c   : > { %1849 = vmatpush.xpose.msra.mxu2 %v559_v57  ;;  %1671 = vmatpush.xpose.msra.mxu0 %v557_v60 }
 0x10d   : > { %1121 = vmatmul.f32.gmra.mxu1 %v5356_v55  ;;  %1299 = vmatmul.f32.gmra.mxu3 %v342_v62  ;;  %v560_v62 = vld [vmem:[#allocation5 + $0x5f8] sm:$0xff] }
 0x10e   : > { %v1163_v13 = vpop.f32.mrf.mxu2  ;;  %1938 = vmatpush.xpose.msra.mxu3 %v560_v62 }
 0x10f   : > { %v1164_v20 = vadd.f32 %v1163_v13, %v1075_v7 }
 0x110   : > { %v1252_v22 = vpop.f32.mrf.mxu3  ;;  %v988_v27 = vpop.f32.mrf.mxu0 }
 0x111   : > { %v989_v33 = vadd.f32 %v988_v27, %v5312_v9  ;;  %v5369_v35 = vadd.f32 %v1252_v22, %v1164_v20  ;;  %v5378_v20 = vld [vmem:[%s5139_s27 + $0x3f0] sm:$0xff]  ;;  %v353_v22 = vld [vmem:[%s5139_s27 + $0x400] sm:$0xff] }
 0x112   : > { %v1077_v37 = vpop.f32.mrf.mxu1  ;;  %8074 = vst [vmem:[#allocation13_spill] sm:$0xff] %v5378_v20 }
 0x113   : > { %v1078_v50 = vadd.f32 %v1077_v37, %v989_v33  ;;  %1035 = vmatmul.f32.gmra.mxu0 %v5365_v30  ;;  %1213 = vmatmul.f32.gmra.mxu2 %v347_v31  ;;  %v5385_v37 = vld [vmem:[%s5139_s27 + $0x3f8] sm:$0xff] }
 0x114   : > { %8075 = vst [vmem:[#allocation14_spill] sm:$0xff] %v5385_v37 }
 0x115   : > { %1124 = vmatmul.f32.gmra.mxu1 %v5372_v40  ;;  %1302 = vmatmul.f32.gmra.mxu3 %v348_v45  ;;  %v354_v45 = vld [vmem:[%s5139_s27 + $0x408] sm:$0xff]  ;;  %v365_v40 = vld [vmem:[%s5139_s27 + $0x460] sm:$0xff] }
 0x116   : > { %v1166_v63 = vpop.f32.mrf.mxu2 }
 0x117   : > { %v1167_v5 = vadd.f32 %v1166_v63, %v1078_v50  ;;  %v553_v63 = vld [vmem:[#allocation5 + $0x5c0] sm:$0xff] }
 0x118   : > { %v1255_v7 = vpop.f32.mrf.mxu3  ;;  %v991_v13 = vpop.f32.mrf.mxu0  ;;  %1850 = vmatpush.xpose.msra.mxu2 %v553_v63 }
 0x119   : > { %v992_v27 = vadd.f32 %v991_v13, %v5312_v9  ;;  %v5382_v31 = vadd.f32 %v1255_v7, %v1167_v5  ;;  %v5391_v5 = vld [vmem:[%s5139_s27 + $0x420] sm:$0xff]  ;;  %v359_v7 = vld [vmem:[%s5139_s27 + $0x430] sm:$0xff]  ;;  %v5395_v13 = vld [vmem:[%s5139_s27 + $0x428] sm:$0xff] }
 0x11a   : > { %v1080_v33 = vpop.f32.mrf.mxu1  ;;  %8076 = vst [vmem:[#allocation15_spill] sm:$0xff] %v5391_v5 }
 0x11b   : > { %v1081_v57 = vadd.f32 %v1080_v33, %v992_v27  ;;  %1038 = vmatmul.f32.gmra.mxu0 %v5378_v20  ;;  %1216 = vmatmul.f32.gmra.mxu2 %v353_v22  ;;  %8077 = vst [vmem:[#allocation16_spill] sm:$0xff] %v5395_v13  ;;  %v360_v22 = vld [vmem:[%s5139_s27 + $0x438] sm:$0xff] }
 0x11d   : > { %1127 = vmatmul.f32.gmra.mxu1 %v5385_v37  ;;  %1305 = vmatmul.f32.gmra.mxu3 %v354_v45  ;;  %v551_v37 = vld [vmem:[#allocation5 + $0x5b0] sm:$0xff]  ;;  %v554_v45 = vld [vmem:[#allocation5 + $0x5c8] sm:$0xff] }
 0x11e   : > { %v1169_v50 = vpop.f32.mrf.mxu2  ;;  %1672 = vmatpush.xpose.msra.mxu0 %v551_v37  ;;  %1939 = vmatpush.xpose.msra.mxu3 %v554_v45  ;;  %v5411_v45 = vld [vmem:[%s5139_s27 + $0x458] sm:$0xff] }
 0x11f   : > { %v1170_v60 = vadd.f32 %v1169_v50, %v1081_v57  ;;  %v552_v50 = vld [vmem:[#allocation5 + $0x5b8] sm:$0xff]  ;;  %8079 = vst [vmem:[#allocation18_spill] sm:$0xff] %v5411_v45 }
 0x120   : > { %v1258_v62 = vpop.f32.mrf.mxu3  ;;  %v994_v11 = vpop.f32.mrf.mxu0  ;;  %1761 = vmatpush.xpose.msra.mxu1 %v552_v50  ;;  %v548_v50 = vld [vmem:[#allocation5 + $0x598] sm:$0xff] }
 0x121   : > { %v995_v27 = vadd.f32 %v994_v11, %v5312_v9  ;;  %v5398_v33 = vadd.f32 %v1258_v62, %v1170_v60 }
 0x122   : > { %v1083_v20 = vpop.f32.mrf.mxu1  ;;  %1940 = vmatpush.xpose.msra.mxu3 %v548_v50 }
 0x123   : > { %8078 = vst [vmem:[#allocation17_spill] sm:$0xff] %v5398_v33  ;;  %v1084_v57 = vadd.f32 %v1083_v20, %v995_v27  ;;  %1041 = vmatmul.f32.gmra.mxu0 %v5391_v5  ;;  %1219 = vmatmul.f32.gmra.mxu2 %v359_v7  ;;  %v5404_v33 = vld [vmem:[%s5139_s27 + $0x450] sm:$0xff]  ;;  %v366_v7 = vld [vmem:[%s5139_s27 + $0x468] sm:$0xff] }
 0x125   : > { %1130 = vmatmul.f32.gmra.mxu1 %v5395_v13  ;;  %1308 = vmatmul.f32.gmra.mxu3 %v360_v22  ;;  %v547_v22 = vld [vmem:[#allocation5 + $0x590] sm:$0xff] }
 0x126   : > { %v1172_v60 = vpop.f32.mrf.mxu2  ;;  %1851 = vmatpush.xpose.msra.mxu2 %v547_v22 }
 0x127   : > { %v1173_v62 = vadd.f32 %v1172_v60, %v1084_v57  ;;  %v545_v57 = vld [vmem:[#allocation5 + $0x580] sm:$0xff] }
 0x128   : > { %v1261_v63 = vpop.f32.mrf.mxu3  ;;  %v997_v11 = vpop.f32.mrf.mxu0  ;;  %1673 = vmatpush.xpose.msra.mxu0 %v545_v57 }
 0x129   : > { %v998_v37 = vadd.f32 %v997_v11, %v5312_v9  ;;  %v5408_v20 = vadd.f32 %v1261_v63, %v1173_v62  ;;  %v546_v11 = vld [vmem:[#allocation5 + $0x588] sm:$0xff] }
 0x12a   : > { %v1086_v27 = vpop.f32.mrf.mxu1  ;;  %1762 = vmatpush.xpose.msra.mxu1 %v546_v11 }
 0x12b   : > { %v1087_v5 = vadd.f32 %v1086_v27, %v998_v37  ;;  %1044 = vmatmul.f32.gmra.mxu0 %v5404_v33  ;;  %1222 = vmatmul.f32.gmra.mxu2 %v365_v40  ;;  %v5417_v37 = vld [vmem:[%s5139_s27 + $0x20] sm:$0xff] }
 0x12d   : > { %1133 = vmatmul.f32.gmra.mxu1 %v5411_v45  ;;  %1311 = vmatmul.f32.gmra.mxu3 %v366_v7  ;;  %v5423_v45 = vld [vmem:[%s5139_s27 + $0x28] sm:$0xff] }
 0x12e   : > { %v1175_v60 = vpop.f32.mrf.mxu2  ;;  %8080 = vst [vmem:[#allocation19_spill] sm:$0xff] %v5423_v45 }
 0x12f   : > { %v1176_v62 = vadd.f32 %v1175_v60, %v1087_v5  ;;  %v541_v60 = vld [vmem:[#allocation5 + $0x560] sm:$0xff] }
 0x130   : > { %v1264_v63 = vpop.f32.mrf.mxu3  ;;  %v1000_v13 = vpop.f32.mrf.mxu0  ;;  %1852 = vmatpush.xpose.msra.mxu2 %v541_v60 }
 0x131   : > { %v1001_v40 = vadd.f32 %v1000_v13, %v5312_v9  ;;  %v5420_v27 = vadd.f32 %v1264_v63, %v1176_v62  ;;  %v5430_v62 = vld [vmem:[%s5139_s27 + $0x50] sm:$0xff] }
 0x132   : > { %v1089_v7 = vpop.f32.mrf.mxu1 }
 0x133   : > { %v1090_v22 = vadd.f32 %v1089_v7, %v1001_v40  ;;  %1331 = vmatmul.f32.vlgmr.msrb.gmra.mxu0 %v5417_v37  ;;  %1509 = vmatmul.f32.vlgmr.msrb.gmra.mxu2 %v5150_v2  ;;  %v5436_v7 = vld [vmem:[%s5139_s27 + $0x58] sm:$0xff]  ;;  %v539_v2 = vld [vmem:[#allocation5 + $0x550] sm:$0xff] }
 0x134   : > { %1674 = vmatpush.xpose.msra.mxu0 %v539_v2 }
 0x135   : > { %1420 = vmatmul.f32.vlgmr.msrb.gmra.mxu1 %v5423_v45  ;;  %1598 = vmatmul.f32.vlgmr.msrb.gmra.mxu3 %v5154_v4  ;;  %v542_v45 = vld [vmem:[#allocation5 + $0x568] sm:$0xff] }
 0x136   : > { %v1178_v5 = vpop.f32.mrf.mxu2  ;;  %1941 = vmatpush.xpose.msra.mxu3 %v542_v45 }
 0x137   : > { %v1179_v57 = vadd.f32 %v1178_v5, %v1090_v22  ;;  %v540_v22 = vld [vmem:[#allocation5 + $0x558] sm:$0xff] }
 0x138   : > { %v1267_v50 = vpop.f32.mrf.mxu3  ;;  %v1003_v13 = vpop.f32.mrf.mxu0  ;;  %1763 = vmatpush.xpose.msra.mxu1 %v540_v22  ;;  %v536_v22 = vld [vmem:[#allocation5 + $0x538] sm:$0xff] }
 0x139   : > { %v1004_v63 = vadd.f32 %v1003_v13, %v5312_v9  ;;  %v5433_v11 = vadd.f32 %v1267_v50, %v1179_v57  ;;  %v5443_v13 = vld [vmem:[%s5139_s27 + $0x80] sm:$0xff] }
 0x13a   : > { %v1092_v40 = vpop.f32.mrf.mxu1  ;;  %8081 = vst [vmem:[#allocation20_spill] sm:$0xff] %v5443_v13  ;;  %1942 = vmatpush.xpose.msra.mxu3 %v536_v22 }
 0x13b   : > { %v1093_v4 = vadd.f32 %v1092_v40, %v1004_v63  ;;  %1334 = vmatmul.f32.gmra.mxu0 %v5430_v62  ;;  %1512 = vmatmul.f32.gmra.mxu2 %v5160_v14  ;;  %v5449_v40 = vld [vmem:[%s5139_s27 + $0x88] sm:$0xff] }
 0x13c   : > { %8082 = vst [vmem:[#allocation21_spill] sm:$0xff] %v5449_v40 }
 0x13d   : > { %1423 = vmatmul.f32.gmra.mxu1 %v5436_v7  ;;  %1601 = vmatmul.f32.gmra.mxu3 %v5164_v16  ;;  %v535_v16 = vld [vmem:[#allocation5 + $0x530] sm:$0xff] }
 0x13e   : > { %v1181_v5 = vpop.f32.mrf.mxu2  ;;  %1853 = vmatpush.xpose.msra.mxu2 %v535_v16 }
 0x13f   : > { %v1182_v57 = vadd.f32 %v1181_v5, %v1093_v4  ;;  %v533_v4 = vld [vmem:[#allocation5 + $0x520] sm:$0xff] }
 0x140   : > { %v1270_v50 = vpop.f32.mrf.mxu3  ;;  %v1006_v60 = vpop.f32.mrf.mxu0  ;;  %1675 = vmatpush.xpose.msra.mxu0 %v533_v4 }
 0x141   : > { %v1007_v45 = vadd.f32 %v1006_v60, %v5312_v9  ;;  %v5446_v2 = vadd.f32 %v1270_v50, %v1182_v57  ;;  %v534_v60 = vld [vmem:[#allocation5 + $0x528] sm:$0xff] }
 0x142   : > { %v1095_v63 = vpop.f32.mrf.mxu1  ;;  %1764 = vmatpush.xpose.msra.mxu1 %v534_v60 }
 0x143   : > { %v1096_v14 = vadd.f32 %v1095_v63, %v1007_v45  ;;  %1337 = vmatmul.f32.gmra.mxu0 %v5443_v13  ;;  %1515 = vmatmul.f32.gmra.mxu2 %v5170_v24  ;;  %v5456_v63 = vld [vmem:[%s5139_s27 + $0xb0] sm:$0xff]  ;;  %v5462_v13 = vld [vmem:[%s5139_s27 + $0xb8] sm:$0xff] }
 0x144   : > { %8083 = vst [vmem:[#allocation22_spill] sm:$0xff] %v5462_v13 }
 0x145   : > { %1426 = vmatmul.f32.gmra.mxu1 %v5449_v40  ;;  %1604 = vmatmul.f32.gmra.mxu3 %v5174_v26 }
 0x146   : > { %v1184_v5 = vpop.f32.mrf.mxu2 }
 0x147   : > { %v1185_v57 = vadd.f32 %v1184_v5, %v1096_v14  ;;  %v529_v5 = vld [vmem:[#allocation5 + $0x500] sm:$0xff] }
 0x148   : > { %v1273_v50 = vpop.f32.mrf.mxu3  ;;  %v1009_v45 = vpop.f32.mrf.mxu0  ;;  %1854 = vmatpush.xpose.msra.mxu2 %v529_v5 }
 0x149   : > { %v1010_v24 = vadd.f32 %v1009_v45, %v5312_v9  ;;  %v5459_v40 = vadd.f32 %v1273_v50, %v1185_v57  ;;  %v5469_v57 = vld [vmem:[%s5139_s27 + $0xe0] sm:$0xff] }
 0x14a   : > { %v1098_v26 = vpop.f32.mrf.mxu1 }
 0x14b   : > { %v1099_v16 = vadd.f32 %v1098_v26, %v1010_v24  ;;  %1340 = vmatmul.f32.gmra.mxu0 %v5456_v63  ;;  %1518 = vmatmul.f32.gmra.mxu2 %v5180_v32  ;;  %v5475_v26 = vld [vmem:[%s5139_s27 + $0xe8] sm:$0xff]  ;;  %v527_v32 = vld [vmem:[#allocation5 + $0x4f0] sm:$0xff] }
 0x14c   : > { %1676 = vmatpush.xpose.msra.mxu0 %v527_v32 }
 0x14d   : > { %1429 = vmatmul.f32.gmra.mxu1 %v5462_v13  ;;  %1607 = vmatmul.f32.gmra.mxu3 %v5184_v34  ;;  %v530_v13 = vld [vmem:[#allocation5 + $0x508] sm:$0xff] }
 0x14e   : > { %v1187_v14 = vpop.f32.mrf.mxu2  ;;  %1943 = vmatpush.xpose.msra.mxu3 %v530_v13 }
 0x14f   : > { %v1188_v4 = vadd.f32 %v1187_v14, %v1099_v16  ;;  %v528_v16 = vld [vmem:[#allocation5 + $0x4f8] sm:$0xff] }
 0x150   : > { %v1276_v22 = vpop.f32.mrf.mxu3  ;;  %v1012_v60 = vpop.f32.mrf.mxu0  ;;  %1765 = vmatpush.xpose.msra.mxu1 %v528_v16  ;;  %v524_v16 = vld [vmem:[#allocation5 + $0x4d8] sm:$0xff] }
 0x151   : > { %v1013_v50 = vadd.f32 %v1012_v60, %v5312_v9  ;;  %v5472_v45 = vadd.f32 %v1276_v22, %v1188_v4  ;;  %v5482_v60 = vld [vmem:[%s5139_s27 + $0x110] sm:$0xff] }
 0x152   : > { %v1101_v24 = vpop.f32.mrf.mxu1  ;;  %8084 = vst [vmem:[#allocation23_spill] sm:$0xff] %v5482_v60  ;;  %1944 = vmatpush.xpose.msra.mxu3 %v524_v16 }
 0x153   : > { %v1102_v34 = vadd.f32 %v1101_v24, %v1013_v50  ;;  %1343 = vmatmul.f32.gmra.mxu0 %v5469_v57  ;;  %1521 = vmatmul.f32.gmra.mxu2 %v5190_v39  ;;  %v5488_v24 = vld [vmem:[%s5139_s27 + $0x118] sm:$0xff] }
 0x154   : > { %8085 = vst [vmem:[#allocation24_spill] sm:$0xff] %v5488_v24 }
 0x155   : > { %1432 = vmatmul.f32.gmra.mxu1 %v5475_v26  ;;  %1610 = vmatmul.f32.gmra.mxu3 %v5194_v41  ;;  %v523_v41 = vld [vmem:[#allocation5 + $0x4d0] sm:$0xff] }
 0x156   : > { %v1190_v14 = vpop.f32.mrf.mxu2  ;;  %1855 = vmatpush.xpose.msra.mxu2 %v523_v41 }
 0x157   : > { %v1191_v4 = vadd.f32 %v1190_v14, %v1102_v34  ;;  %v521_v34 = vld [vmem:[#allocation5 + $0x4c0] sm:$0xff] }
 0x158   : > { %v1279_v22 = vpop.f32.mrf.mxu3  ;;  %v1015_v5 = vpop.f32.mrf.mxu0  ;;  %1677 = vmatpush.xpose.msra.mxu0 %v521_v34 }
 0x159   : > { %v1016_v13 = vadd.f32 %v1015_v5, %v5312_v9  ;;  %v5485_v32 = vadd.f32 %v1279_v22, %v1191_v4  ;;  %v522_v5 = vld [vmem:[#allocation5 + $0x4c8] sm:$0xff] }
 0x15a   : > { %v1104_v50 = vpop.f32.mrf.mxu1  ;;  %1766 = vmatpush.xpose.msra.mxu1 %v522_v5 }
 0x15b   : > { %v1105_v39 = vadd.f32 %v1104_v50, %v1016_v13  ;;  %1346 = vmatmul.f32.gmra.mxu0 %v5482_v60  ;;  %1524 = vmatmul.f32.gmra.mxu2 %v5200_v44  ;;  %v5495_v50 = vld [vmem:[%s5139_s27 + $0x140] sm:$0xff]  ;;  %v5501_v60 = vld [vmem:[%s5139_s27 + $0x148] sm:$0xff] }
 0x15c   : > { %8086 = vst [vmem:[#allocation25_spill] sm:$0xff] %v5501_v60 }
 0x15d   : > { %1435 = vmatmul.f32.gmra.mxu1 %v5488_v24  ;;  %1613 = vmatmul.f32.gmra.mxu3 %v5204_v46 }
 0x15e   : > { %v1193_v14 = vpop.f32.mrf.mxu2 }
 0x15f   : > { %v1194_v4 = vadd.f32 %v1193_v14, %v1105_v39  ;;  %v517_v14 = vld [vmem:[#allocation5 + $0x4a0] sm:$0xff] }
 0x160   : > { %v1282_v22 = vpop.f32.mrf.mxu3  ;;  %v1018_v13 = vpop.f32.mrf.mxu0  ;;  %1856 = vmatpush.xpose.msra.mxu2 %v517_v14 }
 0x161   : > { %v1019_v44 = vadd.f32 %v1018_v13, %v5312_v9  ;;  %v5498_v24 = vadd.f32 %v1282_v22, %v1194_v4  ;;  %v5508_v4 = vld [vmem:[%s5139_s27 + $0x170] sm:$0xff] }
 0x162   : > { %v1107_v46 = vpop.f32.mrf.mxu1 }
 0x163   : > { %v1108_v41 = vadd.f32 %v1107_v46, %v1019_v44  ;;  %1349 = vmatmul.f32.gmra.mxu0 %v5495_v50  ;;  %1527 = vmatmul.f32.gmra.mxu2 %v5210_v52  ;;  %v5514_v46 = vld [vmem:[%s5139_s27 + $0x178] sm:$0xff]  ;;  %v515_v52 = vld [vmem:[#allocation5 + $0x490] sm:$0xff] }
 0x164   : > { %1678 = vmatpush.xpose.msra.mxu0 %v515_v52 }
 0x165   : > { %1438 = vmatmul.f32.gmra.mxu1 %v5501_v60  ;;  %1616 = vmatmul.f32.gmra.mxu3 %v5214_v54  ;;  %v518_v60 = vld [vmem:[#allocation5 + $0x4a8] sm:$0xff] }
 0x166   : > { %v1196_v39 = vpop.f32.mrf.mxu2  ;;  %1945 = vmatpush.xpose.msra.mxu3 %v518_v60 }
 0x167   : > { %v1197_v34 = vadd.f32 %v1196_v39, %v1108_v41  ;;  %v516_v41 = vld [vmem:[#allocation5 + $0x498] sm:$0xff] }
 0x168   : > { %v1285_v16 = vpop.f32.mrf.mxu3  ;;  %v1021_v5 = vpop.f32.mrf.mxu0  ;;  %1767 = vmatpush.xpose.msra.mxu1 %v516_v41  ;;  %v512_v41 = vld [vmem:[#allocation5 + $0x478] sm:$0xff] }
 0x169   : > { %v1022_v22 = vadd.f32 %v1021_v5, %v5312_v9  ;;  %v5511_v13 = vadd.f32 %v1285_v16, %v1197_v34  ;;  %v5521_v5 = vld [vmem:[%s5139_s27 + $0x1a0] sm:$0xff] }
 0x16a   : > { %v1110_v44 = vpop.f32.mrf.mxu1  ;;  %8087 = vst [vmem:[#allocation26_spill] sm:$0xff] %v5521_v5  ;;  %1946 = vmatpush.xpose.msra.mxu3 %v512_v41 }
 0x16b   : > { %v1111_v54 = vadd.f32 %v1110_v44, %v1022_v22  ;;  %1352 = vmatmul.f32.gmra.mxu0 %v5508_v4  ;;  %1530 = vmatmul.f32.gmra.mxu2 %v5220_v59  ;;  %v5527_v44 = vld [vmem:[%s5139_s27 + $0x1a8] sm:$0xff] }
 0x16c   : > { %8088 = vst [vmem:[#allocation27_spill] sm:$0xff] %v5527_v44 }
 0x16d   : > { %1441 = vmatmul.f32.gmra.mxu1 %v5514_v46  ;;  %1619 = vmatmul.f32.gmra.mxu3 %v5224_v61  ;;  %v511_v61 = vld [vmem:[#allocation5 + $0x470] sm:$0xff] }
 0x16e   : > { %v1199_v39 = vpop.f32.mrf.mxu2  ;;  %1857 = vmatpush.xpose.msra.mxu2 %v511_v61 }
 0x16f   : > { %v1200_v34 = vadd.f32 %v1199_v39, %v1111_v54  ;;  %v509_v54 = vld [vmem:[#allocation5 + $0x460] sm:$0xff] }
 0x170   : > { %v1288_v16 = vpop.f32.mrf.mxu3  ;;  %v1024_v14 = vpop.f32.mrf.mxu0  ;;  %1679 = vmatpush.xpose.msra.mxu0 %v509_v54 }
 0x171   : > { %v1025_v60 = vadd.f32 %v1024_v14, %v5312_v9  ;;  %v5524_v52 = vadd.f32 %v1288_v16, %v1200_v34  ;;  %v510_v14 = vld [vmem:[#allocation5 + $0x468] sm:$0xff] }
 0x172   : > { %v1113_v22 = vpop.f32.mrf.mxu1  ;;  %1768 = vmatpush.xpose.msra.mxu1 %v510_v14 }
 0x173   : > { %v1114_v59 = vadd.f32 %v1113_v22, %v1025_v60  ;;  %1355 = vmatmul.f32.gmra.mxu0 %v5521_v5  ;;  %1533 = vmatmul.f32.gmra.mxu2 %v5230_v0  ;;  %v5534_v22 = vld [vmem:[%s5139_s27 + $0x1d0] sm:$0xff]  ;;  %v5540_v5 = vld [vmem:[%s5139_s27 + $0x1d8] sm:$0xff] }
 0x174   : > { %8089 = vst [vmem:[#allocation28_spill] sm:$0xff] %v5540_v5 }
 0x175   : > { %1444 = vmatmul.f32.gmra.mxu1 %v5527_v44  ;;  %1622 = vmatmul.f32.gmra.mxu3 %v5234_v3 }
 0x176   : > { %v1202_v39 = vpop.f32.mrf.mxu2 }
 0x177   : > { %v1203_v34 = vadd.f32 %v1202_v39, %v1114_v59  ;;  %v505_v39 = vld [vmem:[#allocation5 + $0x440] sm:$0xff] }
 0x178   : > { %v1291_v16 = vpop.f32.mrf.mxu3  ;;  %v1027_v60 = vpop.f32.mrf.mxu0  ;;  %1858 = vmatpush.xpose.msra.mxu2 %v505_v39 }
 0x179   : > { %v1028_v0 = vadd.f32 %v1027_v60, %v5312_v9  ;;  %v5537_v44 = vadd.f32 %v1291_v16, %v1203_v34  ;;  %v5547_v34 = vld [vmem:[%s5139_s27 + $0x200] sm:$0xff] }
 0x17a   : > { %v1116_v3 = vpop.f32.mrf.mxu1 }
 0x17b   : > { %v1117_v61 = vadd.f32 %v1116_v3, %v1028_v0  ;;  %1358 = vmatmul.f32.gmra.mxu0 %v5534_v22  ;;  %1536 = vmatmul.f32.gmra.mxu2 %v5240_v10  ;;  %v5553_v3 = vld [vmem:[%s5139_s27 + $0x208] sm:$0xff]  ;;  %v503_v10 = vld [vmem:[#allocation5 + $0x430] sm:$0xff] }
 0x17c   : > { %1680 = vmatpush.xpose.msra.mxu0 %v503_v10 }
 0x17d   : > { %1447 = vmatmul.f32.gmra.mxu1 %v5540_v5  ;;  %1625 = vmatmul.f32.gmra.mxu3 %v5244_v12  ;;  %v506_v5 = vld [vmem:[#allocation5 + $0x448] sm:$0xff] }
 0x17e   : > { %v1205_v59 = vpop.f32.mrf.mxu2  ;;  %1947 = vmatpush.xpose.msra.mxu3 %v506_v5 }
 0x17f   : > { %v1206_v54 = vadd.f32 %v1205_v59, %v1117_v61  ;;  %v504_v61 = vld [vmem:[#allocation5 + $0x438] sm:$0xff] }
 0x180   : > { %v1294_v41 = vpop.f32.mrf.mxu3  ;;  %v1030_v14 = vpop.f32.mrf.mxu0  ;;  %1769 = vmatpush.xpose.msra.mxu1 %v504_v61  ;;  %v500_v61 = vld [vmem:[#allocation5 + $0x418] sm:$0xff] }
 0x181   : > { %v1031_v16 = vadd.f32 %v1030_v14, %v5312_v9  ;;  %v5550_v60 = vadd.f32 %v1294_v41, %v1206_v54  ;;  %v5560_v14 = vld [vmem:[%s5139_s27 + $0x230] sm:$0xff] }
 0x182   : > { %v1119_v0 = vpop.f32.mrf.mxu1  ;;  %8090 = vst [vmem:[#allocation29_spill] sm:$0xff] %v5560_v14  ;;  %1948 = vmatpush.xpose.msra.mxu3 %v500_v61 }
 0x183   : > { %v1120_v12 = vadd.f32 %v1119_v0, %v1031_v16  ;;  %1361 = vmatmul.f32.gmra.mxu0 %v5547_v34  ;;  %1539 = vmatmul.f32.gmra.mxu2 %v5250_v19  ;;  %v5566_v0 = vld [vmem:[%s5139_s27 + $0x238] sm:$0xff] }
 0x184   : > { %8091 = vst [vmem:[#allocation30_spill] sm:$0xff] %v5566_v0 }
 0x185   : > { %1450 = vmatmul.f32.gmra.mxu1 %v5553_v3  ;;  %1628 = vmatmul.f32.gmra.mxu3 %v5254_v21  ;;  %v499_v21 = vld [vmem:[#allocation5 + $0x410] sm:$0xff] }
 0x186   : > { %v1208_v59 = vpop.f32.mrf.mxu2  ;;  %1859 = vmatpush.xpose.msra.mxu2 %v499_v21 }
 0x187   : > { %v1209_v54 = vadd.f32 %v1208_v59, %v1120_v12  ;;  %v497_v12 = vld [vmem:[#allocation5 + $0x400] sm:$0xff] }
 0x188   : > { %v1297_v41 = vpop.f32.mrf.mxu3  ;;  %v1033_v39 = vpop.f32.mrf.mxu0  ;;  %1681 = vmatpush.xpose.msra.mxu0 %v497_v12 }
 0x189   : > { %v1034_v5 = vadd.f32 %v1033_v39, %v5312_v9  ;;  %v5563_v10 = vadd.f32 %v1297_v41, %v1209_v54  ;;  %v498_v39 = vld [vmem:[#allocation5 + $0x408] sm:$0xff] }
 0x18a   : > { %v1122_v16 = vpop.f32.mrf.mxu1  ;;  %1770 = vmatpush.xpose.msra.mxu1 %v498_v39 }
 0x18b   : > { %v1123_v19 = vadd.f32 %v1122_v16, %v1034_v5  ;;  %1364 = vmatmul.f32.gmra.mxu0 %v5560_v14  ;;  %1542 = vmatmul.f32.gmra.mxu2 %v5260_v25  ;;  %v5573_v16 = vld [vmem:[%s5139_s27 + $0x260] sm:$0xff]  ;;  %v5579_v14 = vld [vmem:[%s5139_s27 + $0x268] sm:$0xff] }
 0x18c   : > { %8092 = vst [vmem:[#allocation31_spill] sm:$0xff] %v5579_v14 }
 0x18d   : > { %1453 = vmatmul.f32.gmra.mxu1 %v5566_v0  ;;  %1631 = vmatmul.f32.gmra.mxu3 %v5264_v28 }
 0x18e   : > { %v1211_v59 = vpop.f32.mrf.mxu2 }
 0x18f   : > { %v1212_v54 = vadd.f32 %v1211_v59, %v1123_v19  ;;  %v493_v59 = vld [vmem:[#allocation5 + $0x3e0] sm:$0xff] }
 0x190   : > { %v1300_v41 = vpop.f32.mrf.mxu3  ;;  %v1036_v5 = vpop.f32.mrf.mxu0  ;;  %1860 = vmatpush.xpose.msra.mxu2 %v493_v59 }
 0x191   : > { %v1037_v25 = vadd.f32 %v1036_v5, %v5312_v9  ;;  %v5576_v0 = vadd.f32 %v1300_v41, %v1212_v54  ;;  %v5586_v54 = vld [vmem:[%s5139_s27 + $0x290] sm:$0xff] }
 0x192   : > { %v1125_v28 = vpop.f32.mrf.mxu1 }
 0x193   : > { %v1126_v21 = vadd.f32 %v1125_v28, %v1037_v25  ;;  %1367 = vmatmul.f32.gmra.mxu0 %v5573_v16  ;;  %1545 = vmatmul.f32.gmra.mxu2 %v5270_v36  ;;  %v5592_v28 = vld [vmem:[%s5139_s27 + $0x298] sm:$0xff]  ;;  %v491_v36 = vld [vmem:[#allocation5 + $0x3d0] sm:$0xff] }
 0x194   : > { %8093 = vst [vmem:[#allocation32_spill] sm:$0xff] %v5592_v28  ;;  %1682 = vmatpush.xpose.msra.mxu0 %v491_v36 }
 0x195   : > { %1456 = vmatmul.f32.gmra.mxu1 %v5579_v14  ;;  %1634 = vmatmul.f32.gmra.mxu3 %v5274_v38  ;;  %v494_v14 = vld [vmem:[#allocation5 + $0x3e8] sm:$0xff] }
 0x196   : > { %v1214_v19 = vpop.f32.mrf.mxu2  ;;  %1949 = vmatpush.xpose.msra.mxu3 %v494_v14 }
 0x197   : > { %v1215_v12 = vadd.f32 %v1214_v19, %v1126_v21  ;;  %v492_v21 = vld [vmem:[#allocation5 + $0x3d8] sm:$0xff] }
 0x198   : > { %v1303_v61 = vpop.f32.mrf.mxu3  ;;  %v1039_v39 = vpop.f32.mrf.mxu0  ;;  %1771 = vmatpush.xpose.msra.mxu1 %v492_v21  ;;  %v488_v21 = vld [vmem:[#allocation5 + $0x3b8] sm:$0xff] }
 0x199   : > { %v1040_v41 = vadd.f32 %v1039_v39, %v5312_v9  ;;  %v5589_v5 = vadd.f32 %v1303_v61, %v1215_v12  ;;  %v5599_v39 = vld [vmem:[%s5139_s27 + $0x2c0] sm:$0xff] }
 0x19a   : > { %v1128_v25 = vpop.f32.mrf.mxu1  ;;  %8094 = vst [vmem:[#allocation33_spill] sm:$0xff] %v5599_v39  ;;  %1950 = vmatpush.xpose.msra.mxu3 %v488_v21  ;;  %v481_v21 = vld [vmem:[#allocation5 + $0x380] sm:$0xff] }
 0x19b   : > { %v1129_v38 = vadd.f32 %v1128_v25, %v1040_v41  ;;  %1370 = vmatmul.f32.gmra.mxu0 %v5586_v54  ;;  %1548 = vmatmul.f32.gmra.mxu2 %v5280_v43  ;;  %v5605_v25 = vld [vmem:[%s5139_s27 + $0x2c8] sm:$0xff] }
 0x19c   : > { %8095 = vst [vmem:[#allocation34_spill] sm:$0xff] %v5605_v25 }
 0x19d   : > { %1459 = vmatmul.f32.gmra.mxu1 %v5592_v28  ;;  %1637 = vmatmul.f32.gmra.mxu3 %v5284_v47  ;;  %v487_v47 = vld [vmem:[#allocation5 + $0x3b0] sm:$0xff] }
 0x19e   : > { %v1217_v19 = vpop.f32.mrf.mxu2  ;;  %1861 = vmatpush.xpose.msra.mxu2 %v487_v47 }
 0x19f   : > { %v1218_v12 = vadd.f32 %v1217_v19, %v1129_v38  ;;  %v485_v38 = vld [vmem:[#allocation5 + $0x3a0] sm:$0xff] }
 0x1a0   : > { %v1306_v61 = vpop.f32.mrf.mxu3  ;;  %v1042_v59 = vpop.f32.mrf.mxu0  ;;  %1683 = vmatpush.xpose.msra.mxu0 %v485_v38 }
 0x1a1   : > { %v1043_v14 = vadd.f32 %v1042_v59, %v5312_v9  ;;  %v5602_v36 = vadd.f32 %v1306_v61, %v1218_v12  ;;  %v486_v59 = vld [vmem:[#allocation5 + $0x3a8] sm:$0xff] }
 0x1a2   : > { %v1131_v41 = vpop.f32.mrf.mxu1  ;;  %1772 = vmatpush.xpose.msra.mxu1 %v486_v59  ;;  %1862 = vmatpush.xpose.msra.mxu2 %v481_v21 }
 0x1a3   : > { %v1132_v43 = vadd.f32 %v1131_v41, %v1043_v14  ;;  %1373 = vmatmul.f32.gmra.mxu0 %v5599_v39  ;;  %1551 = vmatmul.f32.gmra.mxu2 %v5290_v53  ;;  %v5612_v41 = vld [vmem:[%s5139_s27 + $0x2f0] sm:$0xff]  ;;  %v5618_v39 = vld [vmem:[%s5139_s27 + $0x2f8] sm:$0xff] }
 0x1a5   : > { %1462 = vmatmul.f32.gmra.mxu1 %v5605_v25  ;;  %1640 = vmatmul.f32.gmra.mxu3 %v5294_v56 }
 0x1a6   : > { %v1220_v19 = vpop.f32.mrf.mxu2 }
 0x1a7   : > { %v1221_v12 = vadd.f32 %v1220_v19, %v1132_v43  ;;  %v5625_v19 = vld [vmem:[%s5139_s27 + $0x320] sm:$0xff] }
 0x1a8   : > { %v1309_v61 = vpop.f32.mrf.mxu3  ;;  %v1045_v14 = vpop.f32.mrf.mxu0 }
 0x1a9   : > { %v1046_v53 = vadd.f32 %v1045_v14, %v5312_v9  ;;  %v5615_v25 = vadd.f32 %v1309_v61, %v1221_v12  ;;  %v5631_v14 = vld [vmem:[%s5139_s27 + $0x328] sm:$0xff] }
 0x1aa   : > { %v1134_v56 = vpop.f32.mrf.mxu1 }
 0x1ab   : > { %v1135_v28 = vadd.f32 %v1134_v56, %v1046_v53  ;;  %1376 = vmatmul.f32.gmra.mxu0 %v5612_v41  ;;  %1554 = vmatmul.f32.gmra.mxu2 %v5300_v1  ;;  %v479_v1 = vld [vmem:[#allocation5 + $0x370] sm:$0xff]  ;;  %v482_v53 = vld [vmem:[#allocation5 + $0x388] sm:$0xff] }
 0x1ac   : > { %1684 = vmatpush.xpose.msra.mxu0 %v479_v1  ;;  %1951 = vmatpush.xpose.msra.mxu3 %v482_v53  ;;  %v473_v1 = vld [vmem:[#allocation5 + $0x340] sm:$0xff] }
 0x1ad   : > { %1465 = vmatmul.f32.gmra.mxu1 %v5618_v39  ;;  %1643 = vmatmul.f32.gmra.mxu3 %v5304_v6 }
 0x1ae   : > { %v1223_v43 = vpop.f32.mrf.mxu2 }
 0x1af   : > { %v1224_v47 = vadd.f32 %v1223_v43, %v1135_v28  ;;  %v5636_v28 = vperm.slane %v5307_v8, 1 }
 0x1b0   : > { %v1312_v38 = vpop.f32.mrf.mxu3  ;;  %v1332_v9 = vpop.f32.mrf.mxu0  ;;  %1685 = vmatpush.xpose.msra.mxu0 %v473_v1  ;;  %v469_v1 = vld [vmem:[#allocation5 + $0x320] sm:$0xff] }
 0x1b1   : > { %v5627_v12 = vadd.f32 %v1312_v38, %v1224_v47  ;;  %v1333_v61 = vadd.f32 %v1332_v9, %v5330_v49  ;;  %v480_v49 = vld [vmem:[#allocation5 + $0x378] sm:$0xff]  ;;  %v5647_v38 = vld [vmem:[%s5139_s27 + $0x350] sm:$0xff] }
 0x1b2   : > { %v1421_v59 = vpop.f32.mrf.mxu1  ;;  %1773 = vmatpush.xpose.msra.mxu1 %v480_v49  ;;  %v5653_v9 = vld [vmem:[%s5139_s27 + $0x358] sm:$0xff] }
 0x1b3   : > { %v1422_v6 = vadd.f32 %v1421_v59, %v1333_v61  ;;  %1379 = vmatmul.f32.gmra.mxu0 %v5625_v19  ;;  %1557 = vmatmul.f32.gmra.mxu2 %v5315_v15  ;;  %v475_v59 = vld [vmem:[#allocation5 + $0x350] sm:$0xff] }
 0x1b4   : > { %1863 = vmatpush.xpose.msra.mxu2 %v475_v59 }
 0x1b5   : > { %1468 = vmatmul.f32.gmra.mxu1 %v5631_v14  ;;  %1646 = vmatmul.f32.gmra.mxu3 %v5319_v18  ;;  %4163 = vst [vmem:[%s5642_s18] sm:$0xff] %v1422_v6 }
 0x1b6   : > { %v1510_v56 = vpop.f32.mrf.mxu2 }
 0x1b7   : > { %v1511_v43 = vadd.f32 %v1510_v56, %v5636_v28  ;;  %v474_v56 = vld [vmem:[#allocation5 + $0x348] sm:$0xff] }
 0x1b8   : > { %v1599_v15 = vpop.f32.mrf.mxu3  ;;  %v1335_v47 = vpop.f32.mrf.mxu0  ;;  %1774 = vmatpush.xpose.msra.mxu1 %v474_v56  ;;  %1864 = vmatpush.xpose.msra.mxu2 %v469_v1  ;;  %v5683_v56 = vld [vmem:[%s5139_s27 + $0x3b8] sm:$0xff] }
 0x1b9   : > { %v1336_v8 = vadd.f32 %v1335_v47, %v5343_v23  ;;  %v5650_v21 = vadd.f32 %v1599_v15, %v1511_v43  ;;  %v476_v23 = vld [vmem:[#allocation5 + $0x358] sm:$0xff] }
 0x1ba   : > { %v1424_v18 = vpop.f32.mrf.mxu1  ;;  %1952 = vmatpush.xpose.msra.mxu3 %v476_v23 }
 0x1bb   : > { %v1425_v61 = vadd.f32 %v1424_v18, %v1336_v8  ;;  %1382 = vmatmul.f32.gmra.mxu0 %v5647_v38  ;;  %1560 = vmatmul.f32.gmra.mxu2 %v5326_v42  ;;  %v5662_v42 = vld [vmem:[%s5139_s27 + $0x380] sm:$0xff]  ;;  %v5668_v8 = vld [vmem:[%s5139_s27 + $0x388] sm:$0xff] }
 0x1bd   : > { %1471 = vmatmul.f32.gmra.mxu1 %v5653_v9  ;;  %1649 = vmatmul.f32.gmra.mxu3 %v5333_v51  ;;  %4169 = vst [vmem:[%s5642_s18 + $0x30] sm:$0xff] %v1425_v61 }
 0x1be   : > { %v1513_v53 = vpop.f32.mrf.mxu2 }
 0x1bf   : > { %v1514_v6 = vadd.f32 %v1513_v53, %v5636_v28  ;;  %v5677_v53 = vld [vmem:[%s5139_s27 + $0x3b0] sm:$0xff] }
 0x1c0   : > { %v1602_v49 = vpop.f32.mrf.mxu3  ;;  %v1338_v43 = vpop.f32.mrf.mxu0 }
 0x1c1   : > { %v1339_v51 = vadd.f32 %v1338_v43, %v5359_v58  ;;  %v5665_v15 = vadd.f32 %v1602_v49, %v1514_v6  ;;  %v467_v43 = vld [vmem:[#allocation5 + $0x310] sm:$0xff] }
 0x1c2   : > { %v1427_v47 = vpop.f32.mrf.mxu1  ;;  %1686 = vmatpush.xpose.msra.mxu0 %v467_v43  ;;  %v653_v43 = vld [vmem:[#allocation5 + $0x8e0] sm:$0xff] }
 0x1c3   : > { %v1428_v18 = vadd.f32 %v1427_v47, %v1339_v51  ;;  %1385 = vmatmul.f32.gmra.mxu0 %v5662_v42  ;;  %1563 = vmatmul.f32.gmra.mxu2 %v5339_v17 }
 0x1c4   : > { %2205 = vmatpush.xpose.msrb.mxu2 %v653_v43 }
 0x1c5   : > { %1474 = vmatmul.f32.gmra.mxu1 %v5668_v8  ;;  %1652 = vmatmul.f32.gmra.mxu3 %v5346_v29  ;;  %4175 = vst [vmem:[%s5642_s18 + $0x60] sm:$0xff] %v1428_v18  ;;  %v470_v29 = vld [vmem:[#allocation5 + $0x328] sm:$0xff] }
 0x1c6   : > { %v1516_v61 = vpop.f32.mrf.mxu2  ;;  %1953 = vmatpush.xpose.msra.mxu3 %v470_v29  ;;  %v651_v29 = vld [vmem:[#allocation5 + $0x8d0] sm:$0xff] }
 0x1c7   : > { %v1517_v59 = vadd.f32 %v1516_v61, %v5636_v28  ;;  %2027 = vmatpush.xpose.msrb.mxu0 %v651_v29  ;;  %v8100_v29 = vld [vmem:[#allocation13_spill] sm:$0xff] }
 0x1c8   : > { %v1605_v58 = vpop.f32.mrf.mxu3  ;;  %v1341_v23 = vpop.f32.mrf.mxu0 }
 0x1c9   : > { %v1342_v6 = vadd.f32 %v1341_v23, %v5369_v35  ;;  %v5680_v49 = vadd.f32 %v1605_v58, %v1517_v59  ;;  %v468_v35 = vld [vmem:[#allocation5 + $0x318] sm:$0xff]  ;;  %v5692_v58 = vld [vmem:[%s5139_s27 + $0x3e0] sm:$0xff] }
 0x1ca   : > { %v1430_v17 = vpop.f32.mrf.mxu1  ;;  %1775 = vmatpush.xpose.msra.mxu1 %v468_v35 }
 0x1cb   : > { %v1431_v51 = vadd.f32 %v1430_v17, %v1342_v6  ;;  %1388 = vmatmul.f32.gmra.mxu0 %v5677_v53  ;;  %1566 = vmatmul.f32.gmra.mxu2 %v5352_v48  ;;  %v5698_v6 = vld [vmem:[%s5139_s27 + $0x3e8] sm:$0xff] }
 0x1cd   : > { %1477 = vmatmul.f32.gmra.mxu1 %v5683_v56  ;;  %1655 = vmatmul.f32.gmra.mxu3 %v5356_v55  ;;  %4181 = vst [vmem:[%s5642_s18 + $0x90] sm:$0xff] %v1431_v51  ;;  %v8096_v55 = vld [vmem:[#allocation12_spill] sm:$0xff] }
 0x1ce   : > { %v1519_v47 = vpop.f32.mrf.mxu2 }
 0x1cf   : > { %v1520_v18 = vadd.f32 %v1519_v47, %v5636_v28 }
 0x1d0   : > { %v1608_v61 = vpop.f32.mrf.mxu3  ;;  %v1344_v59 = vpop.f32.mrf.mxu0 }
 0x1d1   : > { %v1345_v1 = vadd.f32 %v1344_v59, %v5382_v31  ;;  %v5695_v23 = vadd.f32 %v1608_v61, %v1520_v18  ;;  %v654_v31 = vld [vmem:[#allocation5 + $0x8e8] sm:$0xff]  ;;  %v652_v18 = vld [vmem:[#allocation5 + $0x8d8] sm:$0xff] }
 0x1d2   : > { %v1433_v48 = vpop.f32.mrf.mxu1  ;;  %2294 = vmatpush.xpose.msrb.mxu3 %v654_v31  ;;  %2116 = vmatpush.xpose.msrb.mxu1 %v652_v18  ;;  %v8098_v59 = vld [vmem:[#allocation17_spill] sm:$0xff]  ;;  %v8101_v31 = vld [vmem:[#allocation14_spill] sm:$0xff] }
 0x1d3   : > { %v1434_v17 = vadd.f32 %v1433_v48, %v1345_v1  ;;  %1391 = vmatmul.f32.gmra.mxu0 %v5692_v58  ;;  %1569 = vmatmul.f32.gmra.mxu2 %v5365_v30  ;;  %v5707_v30 = vld [vmem:[%s5139_s27 + $0x410] sm:$0xff] }
 0x1d4   : > { %8097 = vst [vmem:[#allocation12_spill] sm:$0xff] %v5707_v30 }
 0x1d5   : > { %1480 = vmatmul.f32.gmra.mxu1 %v5698_v6  ;;  %1658 = vmatmul.f32.gmra.mxu3 %v8096_v55  ;;  %4187 = vst [vmem:[%s5642_s18 + $0xc0] sm:$0xff] %v1434_v17  ;;  %v5713_v55 = vld [vmem:[%s5139_s27 + $0x418] sm:$0xff] }
 0x1d6   : > { %v1522_v51 = vpop.f32.mrf.mxu2  ;;  %8099 = vst [vmem:[#allocation17_spill] sm:$0xff] %v5713_v55 }
 0x1d7   : > { %v1523_v35 = vadd.f32 %v1522_v51, %v5636_v28 }
 0x1d8   : > { %v1611_v47 = vpop.f32.mrf.mxu3  ;;  %v1347_v61 = vpop.f32.mrf.mxu0 }
 0x1d9   : > { %v1348_v1 = vadd.f32 %v1347_v61, %v8098_v59  ;;  %v5710_v48 = vadd.f32 %v1611_v47, %v1523_v35  ;;  %v647_v35 = vld [vmem:[#allocation5 + $0x8b0] sm:$0xff]  ;;  %v5722_v59 = vld [vmem:[%s5139_s27 + $0x440] sm:$0xff] }
 0x1da   : > { %v1436_v17 = vpop.f32.mrf.mxu1  ;;  %8102 = vst [vmem:[#allocation13_spill] sm:$0xff] %v5722_v59  ;;  %2206 = vmatpush.xpose.msrb.mxu2 %v647_v35  ;;  %v8105_v35 = vld [vmem:[#allocation16_spill] sm:$0xff] }
 0x1db   : > { %v1437_v43 = vadd.f32 %v1436_v17, %v1348_v1  ;;  %1394 = vmatmul.f32.gmra.mxu0 %v5707_v30  ;;  %1572 = vmatmul.f32.gmra.mxu2 %v8100_v29  ;;  %v5728_v30 = vld [vmem:[%s5139_s27 + $0x448] sm:$0xff] }
 0x1dc   : > { %8103 = vst [vmem:[#allocation14_spill] sm:$0xff] %v5728_v30 }
 0x1dd   : > { %1483 = vmatmul.f32.gmra.mxu1 %v5713_v55  ;;  %1661 = vmatmul.f32.gmra.mxu3 %v8101_v31  ;;  %4193 = vst [vmem:[%s5642_s18 + $0xf0] sm:$0xff] %v1437_v43  ;;  %v645_v55 = vld [vmem:[#allocation5 + $0x8a0] sm:$0xff]  ;;  %v648_v43 = vld [vmem:[#allocation5 + $0x8b8] sm:$0xff] }
 0x1de   : > { %v1525_v51 = vpop.f32.mrf.mxu2  ;;  %2028 = vmatpush.xpose.msrb.mxu0 %v645_v55  ;;  %2295 = vmatpush.xpose.msrb.mxu3 %v648_v43  ;;  %v5737_v43 = vld [vmem:[%s5139_s27 + $0x470] sm:$0xff] }
 0x1df   : > { %v1526_v18 = vadd.f32 %v1525_v51, %v5636_v28  ;;  %v8104_v51 = vld [vmem:[#allocation15_spill] sm:$0xff] }
 0x1e0   : > { %v1614_v61 = vpop.f32.mrf.mxu3  ;;  %v1350_v47 = vpop.f32.mrf.mxu0 }
 0x1e1   : > { %v1351_v1 = vadd.f32 %v1350_v47, %v5408_v20  ;;  %v5725_v17 = vadd.f32 %v1614_v61, %v1526_v18  ;;  %v646_v20 = vld [vmem:[#allocation5 + $0x8a8] sm:$0xff] }
 0x1e2   : > { %v1439_v29 = vpop.f32.mrf.mxu1  ;;  %2117 = vmatpush.xpose.msrb.mxu1 %v646_v20  ;;  %v639_v20 = vld [vmem:[#allocation5 + $0x870] sm:$0xff] }
 0x1e3   : > { %v1440_v31 = vadd.f32 %v1439_v29, %v1351_v1  ;;  %1397 = vmatmul.f32.gmra.mxu0 %v5722_v59  ;;  %1575 = vmatmul.f32.gmra.mxu2 %v8104_v51  ;;  %v5743_v59 = vld [vmem:[%s5139_s27 + $0x478] sm:$0xff] }
 0x1e4   : > { %8106 = vst [vmem:[#allocation15_spill] sm:$0xff] %v5743_v59  ;;  %2029 = vmatpush.xpose.msrb.mxu0 %v639_v20  ;;  %v8108_v20 = vld [vmem:[#allocation19_spill] sm:$0xff] }
 0x1e5   : > { %1486 = vmatmul.f32.gmra.mxu1 %v5728_v30  ;;  %1664 = vmatmul.f32.gmra.mxu3 %v8105_v35  ;;  %4199 = vst [vmem:[%s5642_s18 + $0x120] sm:$0xff] %v1440_v31  ;;  %v8107_v31 = vld [vmem:[#allocation18_spill] sm:$0xff]  ;;  %v641_v35 = vld [vmem:[#allocation5 + $0x880] sm:$0xff] }
 0x1e6   : > { %v1528_v18 = vpop.f32.mrf.mxu2  ;;  %2207 = vmatpush.xpose.msrb.mxu2 %v641_v35  ;;  %v5760_v35 = vld [vmem:[%s5139_s27 + $0x18] sm:$0xff] }
 0x1e7   : > { %v1529_v61 = vadd.f32 %v1528_v18, %v5636_v28  ;;  %v642_v18 = vld [vmem:[#allocation5 + $0x888] sm:$0xff] }
 0x1e8   : > { %v1617_v47 = vpop.f32.mrf.mxu3  ;;  %v1353_v55 = vpop.f32.mrf.mxu0  ;;  %2296 = vmatpush.xpose.msrb.mxu3 %v642_v18 }
 0x1e9   : > { %v1354_v1 = vadd.f32 %v1353_v55, %v5420_v27  ;;  %v5740_v29 = vadd.f32 %v1617_v47, %v1529_v61  ;;  %v640_v55 = vld [vmem:[#allocation5 + $0x878] sm:$0xff] }
 0x1ea   : > { %v1442_v51 = vpop.f32.mrf.mxu1  ;;  %2118 = vmatpush.xpose.msrb.mxu1 %v640_v55 }
 0x1eb   : > { %v1443_v30 = vadd.f32 %v1442_v51, %v1354_v1  ;;  %1400 = vmatmul.f32.gmra.mxu0 %v5737_v43  ;;  %1578 = vmatmul.f32.gmra.mxu2 %v5404_v33 }
 0x1ed   : > { %1489 = vmatmul.f32.gmra.mxu1 %v5743_v59  ;;  %1667 = vmatmul.f32.gmra.mxu3 %v8107_v31  ;;  %4205 = vst [vmem:[%s5642_s18 + $0x150] sm:$0xff] %v1443_v30  ;;  %v5755_v59 = vld [vmem:[%s5139_s27 + $0x10] sm:$0xff] }
 0x1ee   : > { %v1531_v27 = vpop.f32.mrf.mxu2 }
 0x1ef   : > { %v1532_v61 = vadd.f32 %v1531_v27, %v5636_v28 }
 0x1f0   : > { %v1620_v47 = vpop.f32.mrf.mxu3  ;;  %v1356_v33 = vpop.f32.mrf.mxu0 }
 0x1f1   : > { %v1357_v1 = vadd.f32 %v1356_v33, %v5433_v11  ;;  %v5752_v51 = vadd.f32 %v1620_v47, %v1532_v61  ;;  %v635_v61 = vld [vmem:[#allocation5 + $0x850] sm:$0xff] }
 0x1f2   : > { %v1445_v30 = vpop.f32.mrf.mxu1  ;;  %2208 = vmatpush.xpose.msrb.mxu2 %v635_v61 }
 0x1f3   : > { %v1446_v31 = vadd.f32 %v1445_v30, %v1357_v1  ;;  %1687 = vmatmul.f32.vlgmr.msra.gmra.mxu0 %v5755_v59  ;;  %1865 = vmatmul.f32.vlgmr.msra.gmra.mxu2 %v5417_v37  ;;  %v633_v1 = vld [vmem:[#allocation5 + $0x840] sm:$0xff]  ;;  %v636_v30 = vld [vmem:[#allocation5 + $0x858] sm:$0xff] }
 0x1f4   : > { %2030 = vmatpush.xpose.msrb.mxu0 %v633_v1  ;;  %2297 = vmatpush.xpose.msrb.mxu3 %v636_v30  ;;  %v5785_v30 = vld [vmem:[%s5139_s27 + $0x70] sm:$0xff] }
 0x1f5   : > { %1776 = vmatmul.f32.vlgmr.msra.gmra.mxu1 %v5760_v35  ;;  %1954 = vmatmul.f32.vlgmr.msra.gmra.mxu3 %v8108_v20  ;;  %4211 = vst [vmem:[%s5642_s18 + $0x180] sm:$0xff] %v1446_v31  ;;  %v5770_v31 = vld [vmem:[%s5139_s27 + $0x40] sm:$0xff] }
 0x1f6   : > { %v1534_v18 = vpop.f32.mrf.mxu2  ;;  %8110 = vst [vmem:[#allocation18_spill] sm:$0xff] %v5785_v30 }
 0x1f7   : > { %v1535_v11 = vadd.f32 %v1534_v18, %v5636_v28  ;;  %v5775_v18 = vld [vmem:[%s5139_s27 + $0x48] sm:$0xff] }
 0x1f8   : > { %v1623_v27 = vpop.f32.mrf.mxu3  ;;  %v1359_v47 = vpop.f32.mrf.mxu0  ;;  %8109 = vst [vmem:[#allocation16_spill] sm:$0xff] %v5775_v18 }
 0x1f9   : > { %v1360_v55 = vadd.f32 %v1359_v47, %v5446_v2  ;;  %v5767_v37 = vadd.f32 %v1623_v27, %v1535_v11  ;;  %v634_v2 = vld [vmem:[#allocation5 + $0x848] sm:$0xff] }
 0x1fa   : > { %v1448_v33 = vpop.f32.mrf.mxu1  ;;  %2119 = vmatpush.xpose.msrb.mxu1 %v634_v2  ;;  %v8113_v2 = vld [vmem:[#allocation21_spill] sm:$0xff] }
 0x1fb   : > { %v1449_v20 = vadd.f32 %v1448_v33, %v1360_v55  ;;  %1690 = vmatmul.f32.gmra.mxu0 %v5770_v31  ;;  %1868 = vmatmul.f32.gmra.mxu2 %v5430_v62 }
 0x1fd   : > { %1779 = vmatmul.f32.gmra.mxu1 %v5775_v18  ;;  %1957 = vmatmul.f32.gmra.mxu3 %v5436_v7  ;;  %4217 = vst [vmem:[%s5642_s18 + $0x1b0] sm:$0xff] %v1449_v20  ;;  %v8111_v7 = vld [vmem:[#allocation20_spill] sm:$0xff]  ;;  %v5790_v20 = vld [vmem:[%s5139_s27 + $0x78] sm:$0xff] }
 0x1fe   : > { %v1537_v11 = vpop.f32.mrf.mxu2  ;;  %8112 = vst [vmem:[#allocation19_spill] sm:$0xff] %v5790_v20  ;;  %v5800_v18 = vld [vmem:[%s5139_s27 + $0xa0] sm:$0xff] }
 0x1ff   : > { %v1538_v27 = vadd.f32 %v1537_v11, %v5636_v28  ;;  %v629_v11 = vld [vmem:[#allocation5 + $0x820] sm:$0xff] }
 0x200   : > { %v1626_v61 = vpop.f32.mrf.mxu3  ;;  %v1362_v47 = vpop.f32.mrf.mxu0  ;;  %2209 = vmatpush.xpose.msrb.mxu2 %v629_v11  ;;  %v5805_v11 = vld [vmem:[%s5139_s27 + $0xa8] sm:$0xff] }
 0x201   : > { %v1363_v55 = vadd.f32 %v1362_v47, %v5459_v40  ;;  %v5782_v33 = vadd.f32 %v1626_v61, %v1538_v27  ;;  %v627_v40 = vld [vmem:[#allocation5 + $0x810] sm:$0xff]  ;;  %v630_v27 = vld [vmem:[#allocation5 + $0x828] sm:$0xff] }
 0x202   : > { %v1451_v62 = vpop.f32.mrf.mxu1  ;;  %2031 = vmatpush.xpose.msrb.mxu0 %v627_v40  ;;  %2298 = vmatpush.xpose.msrb.mxu3 %v630_v27  ;;  %v8114_v40 = vld [vmem:[#allocation22_spill] sm:$0xff] }
 0x203   : > { %v1452_v1 = vadd.f32 %v1451_v62, %v1363_v55  ;;  %1693 = vmatmul.f32.gmra.mxu0 %v5785_v30  ;;  %1871 = vmatmul.f32.gmra.mxu2 %v8111_v7  ;;  %v628_v62 = vld [vmem:[#allocation5 + $0x818] sm:$0xff] }
 0x204   : > { %2120 = vmatpush.xpose.msrb.mxu1 %v628_v62 }
 0x205   : > { %1782 = vmatmul.f32.gmra.mxu1 %v5790_v20  ;;  %1960 = vmatmul.f32.gmra.mxu3 %v8113_v2  ;;  %4223 = vst [vmem:[%s5642_s18 + $0x1e0] sm:$0xff] %v1452_v1 }
 0x206   : > { %v1540_v61 = vpop.f32.mrf.mxu2 }
 0x207   : > { %v1541_v47 = vadd.f32 %v1540_v61, %v5636_v28 }
 0x208   : > { %v1629_v55 = vpop.f32.mrf.mxu3  ;;  %v1365_v7 = vpop.f32.mrf.mxu0 }
 0x209   : > { %v1366_v20 = vadd.f32 %v1365_v7, %v5472_v45  ;;  %v5797_v2 = vadd.f32 %v1629_v55, %v1541_v47  ;;  %v621_v7 = vld [vmem:[#allocation5 + $0x7e0] sm:$0xff] }
 0x20a   : > { %v1454_v1 = vpop.f32.mrf.mxu1  ;;  %2032 = vmatpush.xpose.msrb.mxu0 %v621_v7 }
 0x20b   : > { %v1455_v30 = vadd.f32 %v1454_v1, %v1366_v20  ;;  %1696 = vmatmul.f32.gmra.mxu0 %v5800_v18  ;;  %1874 = vmatmul.f32.gmra.mxu2 %v5456_v63  ;;  %v623_v20 = vld [vmem:[#allocation5 + $0x7f0] sm:$0xff]  ;;  %v624_v1 = vld [vmem:[#allocation5 + $0x7f8] sm:$0xff] }
 0x20c   : > { %2210 = vmatpush.xpose.msrb.mxu2 %v623_v20  ;;  %2299 = vmatpush.xpose.msrb.mxu3 %v624_v1  ;;  %v5830_v1 = vld [vmem:[%s5139_s27 + $0x100] sm:$0xff] }
 0x20d   : > { %1785 = vmatmul.f32.gmra.mxu1 %v5805_v11  ;;  %1963 = vmatmul.f32.gmra.mxu3 %v8114_v40  ;;  %4229 = vst [vmem:[%s5642_s18 + $0x210] sm:$0xff] %v1455_v30  ;;  %v5815_v30 = vld [vmem:[%s5139_s27 + $0xd0] sm:$0xff] }
 0x20e   : > { %v1543_v27 = vpop.f32.mrf.mxu2  ;;  %8116 = vst [vmem:[#allocation21_spill] sm:$0xff] %v5830_v1 }
 0x20f   : > { %v1544_v45 = vadd.f32 %v1543_v27, %v5636_v28  ;;  %v5820_v27 = vld [vmem:[%s5139_s27 + $0xd8] sm:$0xff] }
 0x210   : > { %v1632_v61 = vpop.f32.mrf.mxu3  ;;  %v1368_v47 = vpop.f32.mrf.mxu0  ;;  %8115 = vst [vmem:[#allocation20_spill] sm:$0xff] %v5820_v27 }
 0x211   : > { %v1369_v55 = vadd.f32 %v1368_v47, %v5485_v32  ;;  %v5812_v63 = vadd.f32 %v1632_v61, %v1544_v45  ;;  %v622_v32 = vld [vmem:[#allocation5 + $0x7e8] sm:$0xff] }
 0x212   : > { %v1457_v62 = vpop.f32.mrf.mxu1  ;;  %2121 = vmatpush.xpose.msrb.mxu1 %v622_v32  ;;  %v8119_v32 = vld [vmem:[#allocation24_spill] sm:$0xff] }
 0x213   : > { %v1458_v40 = vadd.f32 %v1457_v62, %v1369_v55  ;;  %1699 = vmatmul.f32.gmra.mxu0 %v5815_v30  ;;  %1877 = vmatmul.f32.gmra.mxu2 %v5469_v57 }
 0x215   : > { %1788 = vmatmul.f32.gmra.mxu1 %v5820_v27  ;;  %1966 = vmatmul.f32.gmra.mxu3 %v5475_v26  ;;  %4235 = vst [vmem:[%s5642_s18 + $0x240] sm:$0xff] %v1458_v40  ;;  %v8117_v26 = vld [vmem:[#allocation23_spill] sm:$0xff]  ;;  %v5835_v40 = vld [vmem:[%s5139_s27 + $0x108] sm:$0xff]  ;;  %v5845_v27 = vld [vmem:[%s5139_s27 + $0x130] sm:$0xff] }
 0x216   : > { %v1546_v45 = vpop.f32.mrf.mxu2  ;;  %8118 = vst [vmem:[#allocation22_spill] sm:$0xff] %v5835_v40 }
 0x217   : > { %v1547_v61 = vadd.f32 %v1546_v45, %v5636_v28  ;;  %v617_v45 = vld [vmem:[#allocation5 + $0x7c0] sm:$0xff] }
 0x218   : > { %v1635_v20 = vpop.f32.mrf.mxu3  ;;  %v1371_v47 = vpop.f32.mrf.mxu0  ;;  %2211 = vmatpush.xpose.msrb.mxu2 %v617_v45  ;;  %v5850_v45 = vld [vmem:[%s5139_s27 + $0x138] sm:$0xff] }
 0x219   : > { %v1372_v55 = vadd.f32 %v1371_v47, %v5498_v24  ;;  %v5827_v62 = vadd.f32 %v1635_v20, %v1547_v61  ;;  %v615_v24 = vld [vmem:[#allocation5 + $0x7b0] sm:$0xff]  ;;  %v618_v61 = vld [vmem:[#allocation5 + $0x7c8] sm:$0xff] }
 0x21a   : > { %v1460_v57 = vpop.f32.mrf.mxu1  ;;  %2033 = vmatpush.xpose.msrb.mxu0 %v615_v24  ;;  %2300 = vmatpush.xpose.msrb.mxu3 %v618_v61  ;;  %v8120_v24 = vld [vmem:[#allocation25_spill] sm:$0xff] }
 0x21b   : > { %v1461_v7 = vadd.f32 %v1460_v57, %v1372_v55  ;;  %1702 = vmatmul.f32.gmra.mxu0 %v5830_v1  ;;  %1880 = vmatmul.f32.gmra.mxu2 %v8117_v26  ;;  %v616_v57 = vld [vmem:[#allocation5 + $0x7b8] sm:$0xff] }
 0x21c   : > { %2122 = vmatpush.xpose.msrb.mxu1 %v616_v57 }
 0x21d   : > { %1791 = vmatmul.f32.gmra.mxu1 %v5835_v40  ;;  %1969 = vmatmul.f32.gmra.mxu3 %v8119_v32  ;;  %4241 = vst [vmem:[%s5642_s18 + $0x270] sm:$0xff] %v1461_v7 }
 0x21e   : > { %v1549_v20 = vpop.f32.mrf.mxu2 }
 0x21f   : > { %v1550_v47 = vadd.f32 %v1549_v20, %v5636_v28 }
 0x220   : > { %v1638_v55 = vpop.f32.mrf.mxu3  ;;  %v1374_v26 = vpop.f32.mrf.mxu0 }
 0x221   : > { %v1375_v40 = vadd.f32 %v1374_v26, %v5511_v13  ;;  %v5842_v32 = vadd.f32 %v1638_v55, %v1550_v47  ;;  %v609_v26 = vld [vmem:[#allocation5 + $0x780] sm:$0xff] }
 0x222   : > { %v1463_v7 = vpop.f32.mrf.mxu1  ;;  %2034 = vmatpush.xpose.msrb.mxu0 %v609_v26 }
 0x223   : > { %v1464_v1 = vadd.f32 %v1463_v7, %v1375_v40  ;;  %1705 = vmatmul.f32.gmra.mxu0 %v5845_v27  ;;  %1883 = vmatmul.f32.gmra.mxu2 %v5495_v50  ;;  %v611_v40 = vld [vmem:[#allocation5 + $0x790] sm:$0xff]  ;;  %v612_v7 = vld [vmem:[#allocation5 + $0x798] sm:$0xff] }
 0x224   : > { %2212 = vmatpush.xpose.msrb.mxu2 %v611_v40  ;;  %2301 = vmatpush.xpose.msrb.mxu3 %v612_v7  ;;  %v5875_v7 = vld [vmem:[%s5139_s27 + $0x190] sm:$0xff] }
 0x225   : > { %1794 = vmatmul.f32.gmra.mxu1 %v5850_v45  ;;  %1972 = vmatmul.f32.gmra.mxu3 %v8120_v24  ;;  %4247 = vst [vmem:[%s5642_s18 + $0x2a0] sm:$0xff] %v1464_v1  ;;  %v5860_v1 = vld [vmem:[%s5139_s27 + $0x160] sm:$0xff] }
 0x226   : > { %v1552_v61 = vpop.f32.mrf.mxu2  ;;  %8122 = vst [vmem:[#allocation24_spill] sm:$0xff] %v5875_v7 }
 0x227   : > { %v1553_v13 = vadd.f32 %v1552_v61, %v5636_v28  ;;  %v5865_v61 = vld [vmem:[%s5139_s27 + $0x168] sm:$0xff] }
 0x228   : > { %v1641_v20 = vpop.f32.mrf.mxu3  ;;  %v1377_v47 = vpop.f32.mrf.mxu0  ;;  %8121 = vst [vmem:[#allocation23_spill] sm:$0xff] %v5865_v61 }
 0x229   : > { %v1378_v55 = vadd.f32 %v1377_v47, %v5524_v52  ;;  %v5857_v50 = vadd.f32 %v1641_v20, %v1553_v13  ;;  %v610_v52 = vld [vmem:[#allocation5 + $0x788] sm:$0xff] }
 0x22a   : > { %v1466_v57 = vpop.f32.mrf.mxu1  ;;  %2123 = vmatpush.xpose.msrb.mxu1 %v610_v52  ;;  %v8125_v52 = vld [vmem:[#allocation27_spill] sm:$0xff] }
 0x22b   : > { %v1467_v24 = vadd.f32 %v1466_v57, %v1378_v55  ;;  %1708 = vmatmul.f32.gmra.mxu0 %v5860_v1  ;;  %1886 = vmatmul.f32.gmra.mxu2 %v5508_v4 }
 0x22d   : > { %1797 = vmatmul.f32.gmra.mxu1 %v5865_v61  ;;  %1975 = vmatmul.f32.gmra.mxu3 %v5514_v46  ;;  %4253 = vst [vmem:[%s5642_s18 + $0x2d0] sm:$0xff] %v1467_v24  ;;  %v8123_v46 = vld [vmem:[#allocation26_spill] sm:$0xff]  ;;  %v5890_v61 = vld [vmem:[%s5139_s27 + $0x1c0] sm:$0xff] }
 0x22e   : > { %v1555_v13 = vpop.f32.mrf.mxu2  ;;  %v5880_v24 = vld [vmem:[%s5139_s27 + $0x198] sm:$0xff] }
 0x22f   : > { %v1556_v20 = vadd.f32 %v1555_v13, %v5636_v28  ;;  %8124 = vst [vmem:[#allocation25_spill] sm:$0xff] %v5880_v24  ;;  %v605_v13 = vld [vmem:[#allocation5 + $0x760] sm:$0xff] }
 0x230   : > { %v1644_v40 = vpop.f32.mrf.mxu3  ;;  %v1380_v47 = vpop.f32.mrf.mxu0  ;;  %2213 = vmatpush.xpose.msrb.mxu2 %v605_v13  ;;  %v5895_v13 = vld [vmem:[%s5139_s27 + $0x1c8] sm:$0xff] }
 0x231   : > { %v1381_v55 = vadd.f32 %v1380_v47, %v5537_v44  ;;  %v5872_v57 = vadd.f32 %v1644_v40, %v1556_v20  ;;  %v603_v44 = vld [vmem:[#allocation5 + $0x750] sm:$0xff]  ;;  %v606_v20 = vld [vmem:[#allocation5 + $0x768] sm:$0xff] }
 0x232   : > { %v1469_v4 = vpop.f32.mrf.mxu1  ;;  %2035 = vmatpush.xpose.msrb.mxu0 %v603_v44  ;;  %2302 = vmatpush.xpose.msrb.mxu3 %v606_v20  ;;  %v8126_v44 = vld [vmem:[#allocation28_spill] sm:$0xff] }
 0x233   : > { %v1470_v26 = vadd.f32 %v1469_v4, %v1381_v55  ;;  %1711 = vmatmul.f32.gmra.mxu0 %v5875_v7  ;;  %1889 = vmatmul.f32.gmra.mxu2 %v8123_v46  ;;  %v604_v4 = vld [vmem:[#allocation5 + $0x758] sm:$0xff] }
 0x234   : > { %2124 = vmatpush.xpose.msrb.mxu1 %v604_v4 }
 0x235   : > { %1800 = vmatmul.f32.gmra.mxu1 %v5880_v24  ;;  %1978 = vmatmul.f32.gmra.mxu3 %v8125_v52  ;;  %4259 = vst [vmem:[%s5642_s18 + $0x300] sm:$0xff] %v1470_v26 }
 0x236   : > { %v1558_v40 = vpop.f32.mrf.mxu2 }
 0x237   : > { %v1559_v47 = vadd.f32 %v1558_v40, %v5636_v28 }
 0x238   : > { %v1647_v55 = vpop.f32.mrf.mxu3  ;;  %v1383_v46 = vpop.f32.mrf.mxu0 }
 0x239   : > { %v1384_v24 = vadd.f32 %v1383_v46, %v5550_v60  ;;  %v5887_v52 = vadd.f32 %v1647_v55, %v1559_v47  ;;  %v597_v46 = vld [vmem:[#allocation5 + $0x720] sm:$0xff] }
 0x23a   : > { %v1472_v26 = vpop.f32.mrf.mxu1  ;;  %2036 = vmatpush.xpose.msrb.mxu0 %v597_v46 }
 0x23b   : > { %v1473_v7 = vadd.f32 %v1472_v26, %v1384_v24  ;;  %1714 = vmatmul.f32.gmra.mxu0 %v5890_v61  ;;  %1892 = vmatmul.f32.gmra.mxu2 %v5534_v22  ;;  %v599_v24 = vld [vmem:[#allocation5 + $0x730] sm:$0xff]  ;;  %v600_v26 = vld [vmem:[#allocation5 + $0x738] sm:$0xff] }
 0x23c   : > { %2214 = vmatpush.xpose.msrb.mxu2 %v599_v24  ;;  %2303 = vmatpush.xpose.msrb.mxu3 %v600_v26  ;;  %v5920_v26 = vld [vmem:[%s5139_s27 + $0x220] sm:$0xff] }
 0x23d   : > { %1803 = vmatmul.f32.gmra.mxu1 %v5895_v13  ;;  %1981 = vmatmul.f32.gmra.mxu3 %v8126_v44  ;;  %4265 = vst [vmem:[%s5642_s18 + $0x330] sm:$0xff] %v1473_v7  ;;  %v5905_v7 = vld [vmem:[%s5139_s27 + $0x1f0] sm:$0xff] }
 0x23e   : > { %v1561_v20 = vpop.f32.mrf.mxu2  ;;  %8128 = vst [vmem:[#allocation27_spill] sm:$0xff] %v5920_v26 }
 0x23f   : > { %v1562_v60 = vadd.f32 %v1561_v20, %v5636_v28  ;;  %v5910_v20 = vld [vmem:[%s5139_s27 + $0x1f8] sm:$0xff] }
 0x240   : > { %v1650_v40 = vpop.f32.mrf.mxu3  ;;  %v1386_v47 = vpop.f32.mrf.mxu0  ;;  %8127 = vst [vmem:[#allocation26_spill] sm:$0xff] %v5910_v20 }
 0x241   : > { %v1387_v55 = vadd.f32 %v1386_v47, %v5563_v10  ;;  %v5902_v22 = vadd.f32 %v1650_v40, %v1562_v60  ;;  %v598_v10 = vld [vmem:[#allocation5 + $0x728] sm:$0xff] }
 0x242   : > { %v1475_v4 = vpop.f32.mrf.mxu1  ;;  %2125 = vmatpush.xpose.msrb.mxu1 %v598_v10  ;;  %v8131_v10 = vld [vmem:[#allocation30_spill] sm:$0xff] }
 0x243   : > { %v1476_v44 = vadd.f32 %v1475_v4, %v1387_v55  ;;  %1717 = vmatmul.f32.gmra.mxu0 %v5905_v7  ;;  %1895 = vmatmul.f32.gmra.mxu2 %v5547_v34 }
 0x245   : > { %1806 = vmatmul.f32.gmra.mxu1 %v5910_v20  ;;  %1984 = vmatmul.f32.gmra.mxu3 %v5553_v3  ;;  %4271 = vst [vmem:[%s5642_s18 + $0x360] sm:$0xff] %v1476_v44  ;;  %v8129_v3 = vld [vmem:[#allocation29_spill] sm:$0xff] }
 0x246   : > { %v1564_v60 = vpop.f32.mrf.mxu2  ;;  %v5925_v44 = vld [vmem:[%s5139_s27 + $0x228] sm:$0xff]  ;;  %v5935_v20 = vld [vmem:[%s5139_s27 + $0x250] sm:$0xff] }
 0x247   : > { %v1565_v40 = vadd.f32 %v1564_v60, %v5636_v28  ;;  %8130 = vst [vmem:[#allocation28_spill] sm:$0xff] %v5925_v44  ;;  %v593_v60 = vld [vmem:[#allocation5 + $0x700] sm:$0xff] }
 0x248   : > { %v1653_v24 = vpop.f32.mrf.mxu3  ;;  %v1389_v47 = vpop.f32.mrf.mxu0  ;;  %2215 = vmatpush.xpose.msrb.mxu2 %v593_v60  ;;  %v5940_v60 = vld [vmem:[%s5139_s27 + $0x258] sm:$0xff] }
 0x249   : > { %v1390_v55 = vadd.f32 %v1389_v47, %v5576_v0  ;;  %v5917_v4 = vadd.f32 %v1653_v24, %v1565_v40  ;;  %v591_v0 = vld [vmem:[#allocation5 + $0x6f0] sm:$0xff]  ;;  %v594_v40 = vld [vmem:[#allocation5 + $0x708] sm:$0xff]  ;;  %8132 = vst [vmem:[#allocation29_spill] sm:$0xff] %v5940_v60 }
 0x24a   : > { %v1478_v34 = vpop.f32.mrf.mxu1  ;;  %2037 = vmatpush.xpose.msrb.mxu0 %v591_v0  ;;  %2304 = vmatpush.xpose.msrb.mxu3 %v594_v40  ;;  %v8133_v0 = vld [vmem:[#allocation31_spill] sm:$0xff] }
 0x24b   : > { %v1479_v46 = vadd.f32 %v1478_v34, %v1390_v55  ;;  %1720 = vmatmul.f32.gmra.mxu0 %v5920_v26  ;;  %1898 = vmatmul.f32.gmra.mxu2 %v8129_v3  ;;  %v592_v34 = vld [vmem:[#allocation5 + $0x6f8] sm:$0xff] }
 0x24c   : > { %2126 = vmatpush.xpose.msrb.mxu1 %v592_v34 }
 0x24d   : > { %1809 = vmatmul.f32.gmra.mxu1 %v5925_v44  ;;  %1987 = vmatmul.f32.gmra.mxu3 %v8131_v10  ;;  %4277 = vst [vmem:[%s5642_s18 + $0x390] sm:$0xff] %v1479_v46 }
 0x24e   : > { %v1567_v24 = vpop.f32.mrf.mxu2 }
 0x24f   : > { %v1568_v47 = vadd.f32 %v1567_v24, %v5636_v28 }
 0x250   : > { %v1656_v55 = vpop.f32.mrf.mxu3  ;;  %v1392_v3 = vpop.f32.mrf.mxu0 }
 0x251   : > { %v1393_v44 = vadd.f32 %v1392_v3, %v5589_v5  ;;  %v5932_v10 = vadd.f32 %v1656_v55, %v1568_v47 }
 0x252   : > { %v1481_v46 = vpop.f32.mrf.mxu1 }
 0x253   : > { %v1482_v26 = vadd.f32 %v1481_v46, %v1393_v44  ;;  %1723 = vmatmul.f32.gmra.mxu0 %v5935_v20  ;;  %1901 = vmatmul.f32.gmra.mxu2 %v5573_v16  ;;  %v587_v44 = vld [vmem:[#allocation5 + $0x6d0] sm:$0xff]  ;;  %v5950_v46 = vld [vmem:[%s5139_s27 + $0x280] sm:$0xff] }
 0x254   : > { %2216 = vmatpush.xpose.msrb.mxu2 %v587_v44  ;;  %8134 = vst [vmem:[#allocation30_spill] sm:$0xff] %v5950_v46  ;;  %v8136_v44 = vld [vmem:[#allocation32_spill] sm:$0xff] }
 0x255   : > { %1812 = vmatmul.f32.gmra.mxu1 %v5940_v60  ;;  %1990 = vmatmul.f32.gmra.mxu3 %v8133_v0  ;;  %4283 = vst [vmem:[%s5642_s18 + $0x3c0] sm:$0xff] %v1482_v26  ;;  %v585_v26 = vld [vmem:[#allocation5 + $0x6c0] sm:$0xff]  ;;  %v588_v0 = vld [vmem:[#allocation5 + $0x6d8] sm:$0xff]  ;;  %v5955_v60 = vld [vmem:[%s5139_s27 + $0x288] sm:$0xff] }
 0x256   : > { %v1570_v40 = vpop.f32.mrf.mxu2  ;;  %8135 = vst [vmem:[#allocation31_spill] sm:$0xff] %v5955_v60  ;;  %2038 = vmatpush.xpose.msrb.mxu0 %v585_v26  ;;  %2305 = vmatpush.xpose.msrb.mxu3 %v588_v0  ;;  %v581_v26 = vld [vmem:[#allocation5 + $0x6a0] sm:$0xff]  ;;  %v5970_v0 = vld [vmem:[%s5139_s27 + $0x2b8] sm:$0xff] }
 0x257   : > { %v1571_v5 = vadd.f32 %v1570_v40, %v5636_v28  ;;  %v586_v40 = vld [vmem:[#allocation5 + $0x6c8] sm:$0xff] }
 0x258   : > { %v1659_v24 = vpop.f32.mrf.mxu3  ;;  %v1395_v47 = vpop.f32.mrf.mxu0  ;;  %2127 = vmatpush.xpose.msrb.mxu1 %v586_v40  ;;  %v8140_v40 = vld [vmem:[#allocation34_spill] sm:$0xff]  ;;  %2217 = vmatpush.xpose.msrb.mxu2 %v581_v26 }
 0x259   : > { %v1396_v55 = vadd.f32 %v1395_v47, %v5602_v36  ;;  %v5947_v34 = vadd.f32 %v1659_v24, %v1571_v5 }
 0x25a   : > { %v1484_v16 = vpop.f32.mrf.mxu1 }
 0x25b   : > { %v1485_v3 = vadd.f32 %v1484_v16, %v1396_v55  ;;  %1726 = vmatmul.f32.gmra.mxu0 %v5950_v46  ;;  %1904 = vmatmul.f32.gmra.mxu2 %v5586_v54 }
 0x25d   : > { %1815 = vmatmul.f32.gmra.mxu1 %v5955_v60  ;;  %1993 = vmatmul.f32.gmra.mxu3 %v8136_v44  ;;  %4289 = vst [vmem:[%s5642_s18 + $0x3f0] sm:$0xff] %v1485_v3  ;;  %v5965_v60 = vld [vmem:[%s5139_s27 + $0x2b0] sm:$0xff] }
 0x25e   : > { %v1573_v36 = vpop.f32.mrf.mxu2  ;;  %8137 = vst [vmem:[#allocation32_spill] sm:$0xff] %v5965_v60  ;;  %v8138_v3 = vld [vmem:[#allocation33_spill] sm:$0xff] }
 0x25f   : > { %v1574_v5 = vadd.f32 %v1573_v36, %v5636_v28  ;;  %8139 = vst [vmem:[#allocation33_spill] sm:$0xff] %v5970_v0  ;;  %v579_v44 = vld [vmem:[#allocation5 + $0x690] sm:$0xff] }
 0x260   : > { %v1662_v54 = vpop.f32.mrf.mxu3  ;;  %v1398_v24 = vpop.f32.mrf.mxu0  ;;  %2039 = vmatpush.xpose.msrb.mxu0 %v579_v44 }
 0x261   : > { %v1399_v47 = vadd.f32 %v1398_v24, %v5615_v25  ;;  %v5962_v55 = vadd.f32 %v1662_v54, %v1574_v5  ;;  %v582_v25 = vld [vmem:[#allocation5 + $0x6a8] sm:$0xff]  ;;  %v580_v24 = vld [vmem:[#allocation5 + $0x698] sm:$0xff] }
 0x262   : > { %v1487_v16 = vpop.f32.mrf.mxu1  ;;  %2306 = vmatpush.xpose.msrb.mxu3 %v582_v25  ;;  %2128 = vmatpush.xpose.msrb.mxu1 %v580_v24  ;;  %v575_v25 = vld [vmem:[#allocation5 + $0x670] sm:$0xff] }
 0x263   : > { %v1488_v46 = vadd.f32 %v1487_v16, %v1399_v47  ;;  %1729 = vmatmul.f32.gmra.mxu0 %v5965_v60  ;;  %1907 = vmatmul.f32.gmra.mxu2 %v8138_v3  ;;  %v5980_v60 = vld [vmem:[%s5139_s27 + $0x2e0] sm:$0xff]  ;;  %v5995_v24 = vld [vmem:[%s5139_s27 + $0x310] sm:$0xff] }
 0x264   : > { %2218 = vmatpush.xpose.msrb.mxu2 %v575_v25 }
 0x265   : > { %1818 = vmatmul.f32.gmra.mxu1 %v5970_v0  ;;  %1996 = vmatmul.f32.gmra.mxu3 %v8140_v40  ;;  %4295 = vst [vmem:[%s5642_s18 + $0x420] sm:$0xff] %v1488_v46  ;;  %v5985_v46 = vld [vmem:[%s5139_s27 + $0x2e8] sm:$0xff] }
 0x266   : > { %v1576_v36 = vpop.f32.mrf.mxu2 }
 0x267   : > { %v1577_v5 = vadd.f32 %v1576_v36, %v5636_v28 }
 0x268   : > { %v1665_v54 = vpop.f32.mrf.mxu3  ;;  %v1401_v47 = vpop.f32.mrf.mxu0 }
 0x269   : > { %v1402_v16 = vadd.f32 %v1401_v47, %v5627_v12  ;;  %v5977_v3 = vadd.f32 %v1665_v54, %v1577_v5  ;;  %v574_v47 = vld [vmem:[#allocation5 + $0x668] sm:$0xff] }
 0x26a   : > { %v1490_v40 = vpop.f32.mrf.mxu1  ;;  %2129 = vmatpush.xpose.msrb.mxu1 %v574_v47 }
 0x26b   : > { %v1491_v0 = vadd.f32 %v1490_v40, %v1402_v16  ;;  %1732 = vmatmul.f32.gmra.mxu0 %v5980_v60  ;;  %1910 = vmatmul.f32.gmra.mxu2 %v5612_v41 }
 0x26d   : > { %1821 = vmatmul.f32.gmra.mxu1 %v5985_v46  ;;  %1999 = vmatmul.f32.gmra.mxu3 %v5618_v39  ;;  %4301 = vst [vmem:[%s5642_s18 + $0x450] sm:$0xff] %v1491_v0  ;;  %v573_v39 = vld [vmem:[#allocation5 + $0x660] sm:$0xff]  ;;  %v576_v0 = vld [vmem:[#allocation5 + $0x678] sm:$0xff] }
 0x26e   : > { %v1579_v12 = vpop.f32.mrf.mxu2  ;;  %2040 = vmatpush.xpose.msrb.mxu0 %v573_v39  ;;  %2307 = vmatpush.xpose.msrb.mxu3 %v576_v0 }
 0x26f   : > { %v1580_v26 = vadd.f32 %v1579_v12, %v5636_v28  ;;  %v6000_v28 = vld [vmem:[%s5139_s27 + $0x318] sm:$0xff] }
 0x270   : > { %v1668_v44 = vpop.f32.mrf.mxu3  ;;  %v1688_v36 = vpop.f32.mrf.mxu0 }
 0x271   : > { %v5991_v5 = vadd.f32 %v1668_v44, %v1580_v26  ;;  %v1689_v54 = vadd.f32 %v1688_v36, %v5650_v21  ;;  %v6007_v36 = vld [vmem:[%s5139_s27 + $0x340] sm:$0xff] }
 0x272   : > { %v1777_v41 = vpop.f32.mrf.mxu1 }
 0x273   : > { %1735 = vmatmul.f32.gmra.mxu0 %v5995_v24  ;;  %1913 = vmatmul.f32.gmra.mxu2 %v5625_v19  ;;  %v1778_v16 = vadd.f32 %v1777_v41, %v1689_v54  ;;  %v6012_v54 = vld [vmem:[%s5139_s27 + $0x348] sm:$0xff]  ;;  %v567_v41 = vld [vmem:[#allocation5 + $0x630] sm:$0xff] }
 0x274   : > { %2041 = vmatpush.xpose.msrb.mxu0 %v567_v41  ;;  %v563_v41 = vld [vmem:[#allocation5 + $0x610] sm:$0xff] }
 0x275   : > { %1824 = vmatmul.f32.gmra.mxu1 %v6000_v28  ;;  %2002 = vmatmul.f32.gmra.mxu3 %v5631_v14  ;;  %v569_v14 = vld [vmem:[#allocation5 + $0x640] sm:$0xff] }
 0x276   : > { %v1866_v21 = vpop.f32.mrf.mxu2  ;;  %2219 = vmatpush.xpose.msrb.mxu2 %v569_v14 }
 0x277   : > { %v1867_v40 = vadd.f32 %v1866_v21, %v1778_v16 }
 0x278   : > { %v1955_v12 = vpop.f32.mrf.mxu3  ;;  %v1691_v19 = vpop.f32.mrf.mxu0 }
 0x279   : > { %v1692_v26 = vadd.f32 %v1691_v19, %v5665_v15  ;;  %v1956_v44 = vadd.f32 %v1955_v12, %v1867_v40  ;;  %v570_v15 = vld [vmem:[#allocation5 + $0x648] sm:$0xff] }
 0x27a   : > { %v1780_v25 = vpop.f32.mrf.mxu1  ;;  %2308 = vmatpush.xpose.msrb.mxu3 %v570_v15  ;;  %2220 = vmatpush.xpose.msrb.mxu2 %v563_v41  ;;  %v6048_v41 = vld [vmem:[%s5139_s27 + $0x3d8] sm:$0xff] }
 0x27b   : > { %4164 = vst [vmem:[%s5642_s18 + $0x8] sm:$0xff] %v1956_v44  ;;  %1738 = vmatmul.f32.gmra.mxu0 %v6007_v36  ;;  %1916 = vmatmul.f32.gmra.mxu2 %v5647_v38  ;;  %v1781_v39 = vadd.f32 %v1780_v25, %v1692_v26  ;;  %v568_v38 = vld [vmem:[#allocation5 + $0x638] sm:$0xff] }
 0x27c   : > { %2130 = vmatpush.xpose.msrb.mxu1 %v568_v38  ;;  %v6024_v26 = vld [vmem:[%s5139_s27 + $0x378] sm:$0xff]  ;;  %v562_v38 = vld [vmem:[#allocation5 + $0x608] sm:$0xff] }
 0x27d   : > { %1827 = vmatmul.f32.gmra.mxu1 %v6012_v54  ;;  %2005 = vmatmul.f32.gmra.mxu3 %v5653_v9  ;;  %v6019_v9 = vld [vmem:[%s5139_s27 + $0x370] sm:$0xff] }
 0x27e   : > { %v1869_v0 = vpop.f32.mrf.mxu2 }
 0x27f   : > { %v1870_v47 = vadd.f32 %v1869_v0, %v1781_v39 }
 0x280   : > { %v1958_v16 = vpop.f32.mrf.mxu3  ;;  %v1694_v21 = vpop.f32.mrf.mxu0  ;;  %2131 = vmatpush.xpose.msrb.mxu1 %v562_v38 }
 0x281   : > { %v1695_v40 = vadd.f32 %v1694_v21, %v5680_v49  ;;  %v1959_v12 = vadd.f32 %v1958_v16, %v1870_v47  ;;  %v564_v16 = vld [vmem:[#allocation5 + $0x618] sm:$0xff]  ;;  %v6036_v21 = vld [vmem:[%s5139_s27 + $0x3a8] sm:$0xff] }
 0x282   : > { %v1783_v19 = vpop.f32.mrf.mxu1  ;;  %2309 = vmatpush.xpose.msrb.mxu3 %v564_v16 }
 0x283   : > { %4170 = vst [vmem:[%s5642_s18 + $0x38] sm:$0xff] %v1959_v12  ;;  %1741 = vmatmul.f32.gmra.mxu0 %v6019_v9  ;;  %1919 = vmatmul.f32.gmra.mxu2 %v5662_v42  ;;  %v1784_v44 = vadd.f32 %v1783_v19, %v1695_v40  ;;  %v6031_v42 = vld [vmem:[%s5139_s27 + $0x3a0] sm:$0xff] }
 0x285   : > { %1830 = vmatmul.f32.gmra.mxu1 %v6024_v26  ;;  %2008 = vmatmul.f32.gmra.mxu3 %v5668_v8  ;;  %v561_v8 = vld [vmem:[#allocation5 + $0x600] sm:$0xff] }
 0x286   : > { %v1872_v25 = vpop.f32.mrf.mxu2  ;;  %2042 = vmatpush.xpose.msrb.mxu0 %v561_v8 }
 0x287   : > { %v1873_v49 = vadd.f32 %v1872_v25, %v1784_v44 }
 0x288   : > { %v1961_v14 = vpop.f32.mrf.mxu3  ;;  %v1697_v15 = vpop.f32.mrf.mxu0 }
 0x289   : > { %v1698_v39 = vadd.f32 %v1697_v15, %v5695_v23  ;;  %v1962_v0 = vadd.f32 %v1961_v14, %v1873_v49  ;;  %v6043_v14 = vld [vmem:[%s5139_s27 + $0x3d0] sm:$0xff] }
 0x28a   : > { %v1786_v47 = vpop.f32.mrf.mxu1  ;;  %v655_v15 = vld [vmem:[#allocation5 + $0x8f0] sm:$0xff] }
 0x28b   : > { %4176 = vst [vmem:[%s5642_s18 + $0x68] sm:$0xff] %v1962_v0  ;;  %1744 = vmatmul.f32.gmra.mxu0 %v6031_v42  ;;  %1922 = vmatmul.f32.gmra.mxu2 %v5677_v53  ;;  %v1787_v23 = vadd.f32 %v1786_v47, %v1698_v39 }
 0x28c   : > { %2383 = vmatpush.xpose.msra.mxu0 %v655_v15 }
 0x28d   : > { %1833 = vmatmul.f32.gmra.mxu1 %v6036_v21  ;;  %2011 = vmatmul.f32.gmra.mxu3 %v5683_v56  ;;  %v747_v56 = vld [vmem:[#allocation5 + $0xbd0] sm:$0xff] }
 0x28e   : > { %v1875_v40 = vpop.f32.mrf.mxu2  ;;  %2561 = vmatpush.xpose.msra.mxu2 %v747_v56  ;;  %v741_v56 = vld [vmem:[#allocation5 + $0xba0] sm:$0xff] }
 0x28f   : > { %v1876_v12 = vadd.f32 %v1875_v40, %v1787_v23 }
 0x290   : > { %v1964_v19 = vpop.f32.mrf.mxu3  ;;  %v1700_v53 = vpop.f32.mrf.mxu0 }
 0x291   : > { %v1701_v44 = vadd.f32 %v1700_v53, %v5710_v48  ;;  %v1965_v25 = vadd.f32 %v1964_v19, %v1876_v12  ;;  %v748_v48 = vld [vmem:[#allocation5 + $0xbd8] sm:$0xff]  ;;  %v8141_v12 = vld [vmem:[#allocation12_spill] sm:$0xff]  ;;  %v8142_v53 = vld [vmem:[#allocation17_spill] sm:$0xff] }
 0x292   : > { %v1789_v49 = vpop.f32.mrf.mxu1  ;;  %2650 = vmatpush.xpose.msra.mxu3 %v748_v48  ;;  %v6060_v19 = vld [vmem:[%s5139_s27 + $0x408] sm:$0xff]  ;;  %2562 = vmatpush.xpose.msra.mxu2 %v741_v56 }
 0x293   : > { %4182 = vst [vmem:[%s5642_s18 + $0x98] sm:$0xff] %v1965_v25  ;;  %1747 = vmatmul.f32.gmra.mxu0 %v6043_v14  ;;  %1925 = vmatmul.f32.gmra.mxu2 %v5692_v58  ;;  %v1790_v39 = vadd.f32 %v1789_v49, %v1701_v44  ;;  %v656_v58 = vld [vmem:[#allocation5 + $0x8f8] sm:$0xff] }
 0x294   : > { %2472 = vmatpush.xpose.msra.mxu1 %v656_v58  ;;  %v649_v58 = vld [vmem:[#allocation5 + $0x8c0] sm:$0xff] }
 0x295   : > { %1836 = vmatmul.f32.gmra.mxu1 %v6048_v41  ;;  %2014 = vmatmul.f32.gmra.mxu3 %v5698_v6  ;;  %v6055_v6 = vld [vmem:[%s5139_s27 + $0x400] sm:$0xff] }
 0x296   : > { %v1878_v0 = vpop.f32.mrf.mxu2  ;;  %2384 = vmatpush.xpose.msra.mxu0 %v649_v58 }
 0x297   : > { %v1879_v47 = vadd.f32 %v1878_v0, %v1790_v39 }
 0x298   : > { %v1967_v8 = vpop.f32.mrf.mxu3  ;;  %v1703_v16 = vpop.f32.mrf.mxu0 }
 0x299   : > { %v1704_v38 = vadd.f32 %v1703_v16, %v5725_v17  ;;  %v1968_v23 = vadd.f32 %v1967_v8, %v1879_v47  ;;  %v6067_v47 = vld [vmem:[%s5139_s27 + $0x430] sm:$0xff]  ;;  %v742_v16 = vld [vmem:[#allocation5 + $0xba8] sm:$0xff] }
 0x29a   : > { %v1792_v40 = vpop.f32.mrf.mxu1  ;;  %v8143_v8 = vld [vmem:[#allocation13_spill] sm:$0xff]  ;;  %2651 = vmatpush.xpose.msra.mxu3 %v742_v16 }
 0x29b   : > { %4188 = vst [vmem:[%s5642_s18 + $0xc8] sm:$0xff] %v1968_v23  ;;  %1750 = vmatmul.f32.gmra.mxu0 %v6055_v6  ;;  %1928 = vmatmul.f32.gmra.mxu2 %v8141_v12  ;;  %v1793_v44 = vadd.f32 %v1792_v40, %v1704_v38  ;;  %v650_v38 = vld [vmem:[#allocation5 + $0x8c8] sm:$0xff]  ;;  %v6072_v23 = vld [vmem:[%s5139_s27 + $0x438] sm:$0xff] }
 0x29c   : > { %v8144_v40 = vld [vmem:[#allocation14_spill] sm:$0xff]  ;;  %2473 = vmatpush.xpose.msra.mxu1 %v650_v38 }
 0x29d   : > { %1839 = vmatmul.f32.gmra.mxu1 %v6060_v19  ;;  %2017 = vmatmul.f32.gmra.mxu3 %v8142_v53 }
 0x29e   : > { %v1881_v25 = vpop.f32.mrf.mxu2 }
 0x29f   : > { %v1882_v17 = vadd.f32 %v1881_v25, %v1793_v44 }
 0x2a0   : > { %v1970_v49 = vpop.f32.mrf.mxu3  ;;  %v1706_v15 = vpop.f32.mrf.mxu0 }
 0x2a1   : > { %v1707_v48 = vadd.f32 %v1706_v15, %v5740_v29  ;;  %v1971_v39 = vadd.f32 %v1970_v49, %v1882_v17  ;;  %v6079_v15 = vld [vmem:[%s5139_s27 + $0x460] sm:$0xff] }
 0x2a2   : > { %v1795_v0 = vpop.f32.mrf.mxu1 }
 0x2a3   : > { %4194 = vst [vmem:[%s5642_s18 + $0xf8] sm:$0xff] %v1971_v39  ;;  %1753 = vmatmul.f32.gmra.mxu0 %v6067_v47  ;;  %1931 = vmatmul.f32.gmra.mxu2 %v8143_v8  ;;  %v1796_v29 = vadd.f32 %v1795_v0, %v1707_v48  ;;  %v735_v48 = vld [vmem:[#allocation5 + $0xb70] sm:$0xff]  ;;  %v6084_v39 = vld [vmem:[%s5139_s27 + $0x468] sm:$0xff]  ;;  %v8145_v0 = vld [vmem:[#allocation15_spill] sm:$0xff] }
 0x2a4   : > { %v643_v8 = vld [vmem:[#allocation5 + $0x890] sm:$0xff]  ;;  %2563 = vmatpush.xpose.msra.mxu2 %v735_v48 }
 0x2a5   : > { %1842 = vmatmul.f32.gmra.mxu1 %v6072_v23  ;;  %2020 = vmatmul.f32.gmra.mxu3 %v8144_v40 }
 0x2a6   : > { %v1884_v12 = vpop.f32.mrf.mxu2  ;;  %2385 = vmatpush.xpose.msra.mxu0 %v643_v8 }
 0x2a7   : > { %v1885_v53 = vadd.f32 %v1884_v12, %v1796_v29 }
 0x2a8   : > { %v1973_v44 = vpop.f32.mrf.mxu3  ;;  %v1709_v25 = vpop.f32.mrf.mxu0 }
 0x2a9   : > { %v1710_v17 = vadd.f32 %v1709_v25, %v5752_v51  ;;  %v1974_v49 = vadd.f32 %v1973_v44, %v1885_v53  ;;  %v736_v51 = vld [vmem:[#allocation5 + $0xb78] sm:$0xff]  ;;  %v6091_v25 = vld [vmem:[%s5139_s27] sm:$0xff] }
 0x2aa   : > { %v1798_v56 = vpop.f32.mrf.mxu1  ;;  %2652 = vmatpush.xpose.msra.mxu3 %v736_v51 }
 0x2ab   : > { %4200 = vst [vmem:[%s5642_s18 + $0x128] sm:$0xff] %v1974_v49  ;;  %1756 = vmatmul.f32.gmra.mxu0 %v6079_v15  ;;  %1934 = vmatmul.f32.gmra.mxu2 %v5737_v43  ;;  %v1799_v58 = vadd.f32 %v1798_v56, %v1710_v17  ;;  %v644_v43 = vld [vmem:[#allocation5 + $0x898] sm:$0xff]  ;;  %v6096_v17 = vld [vmem:[%s5139_s27 + $0x8] sm:$0xff] }
 0x2ac   : > { %2474 = vmatpush.xpose.msra.mxu1 %v644_v43  ;;  %v6108_v43 = vld [vmem:[%s5139_s27 + $0x38] sm:$0xff] }
 0x2ad   : > { %1845 = vmatmul.f32.gmra.mxu1 %v6084_v39  ;;  %2023 = vmatmul.f32.gmra.mxu3 %v8145_v0  ;;  %v729_v0 = vld [vmem:[#allocation5 + $0xb40] sm:$0xff] }
 0x2ae   : > { %v1887_v16 = vpop.f32.mrf.mxu2  ;;  %2564 = vmatpush.xpose.msra.mxu2 %v729_v0  ;;  %v8147_v0 = vld [vmem:[#allocation18_spill] sm:$0xff] }
 0x2af   : > { %v1888_v38 = vadd.f32 %v1887_v16, %v1799_v58 }
 0x2b0   : > { %v1976_v40 = vpop.f32.mrf.mxu3  ;;  %v1712_v29 = vpop.f32.mrf.mxu0 }
 0x2b1   : > { %v1713_v12 = vadd.f32 %v1712_v29, %v5767_v37  ;;  %v1977_v53 = vadd.f32 %v1976_v40, %v1888_v38  ;;  %v730_v38 = vld [vmem:[#allocation5 + $0xb48] sm:$0xff] }
 0x2b2   : > { %v1801_v44 = vpop.f32.mrf.mxu1  ;;  %v638_v40 = vld [vmem:[#allocation5 + $0x868] sm:$0xff]  ;;  %2653 = vmatpush.xpose.msra.mxu3 %v730_v38 }
 0x2b3   : > { %4206 = vst [vmem:[%s5642_s18 + $0x158] sm:$0xff] %v1977_v53  ;;  %2043 = vmatmul.f32.vlgmr.msrb.gmra.mxu0 %v6091_v25  ;;  %2221 = vmatmul.f32.vlgmr.msrb.gmra.mxu2 %v5755_v59  ;;  %v1802_v49 = vadd.f32 %v1801_v44, %v1713_v12  ;;  %v6103_v59 = vld [vmem:[%s5139_s27 + $0x30] sm:$0xff]  ;;  %v8146_v29 = vld [vmem:[#allocation16_spill] sm:$0xff] }
 0x2b4   : > { %2475 = vmatpush.xpose.msra.mxu1 %v638_v40 }
 0x2b5   : > { %2132 = vmatmul.f32.vlgmr.msrb.gmra.mxu1 %v6096_v17  ;;  %2310 = vmatmul.f32.vlgmr.msrb.gmra.mxu3 %v5760_v35  ;;  %v637_v35 = vld [vmem:[#allocation5 + $0x860] sm:$0xff] }
 0x2b6   : > { %v1890_v56 = vpop.f32.mrf.mxu2  ;;  %2386 = vmatpush.xpose.msra.mxu0 %v637_v35 }
 0x2b7   : > { %v1891_v37 = vadd.f32 %v1890_v56, %v1802_v49 }
 0x2b8   : > { %v1979_v48 = vpop.f32.mrf.mxu3  ;;  %v1715_v8 = vpop.f32.mrf.mxu0 }
 0x2b9   : > { %v1716_v51 = vadd.f32 %v1715_v8, %v5782_v33  ;;  %v1980_v58 = vadd.f32 %v1979_v48, %v1891_v37  ;;  %v6115_v48 = vld [vmem:[%s5139_s27 + $0x60] sm:$0xff]  ;;  %v723_v8 = vld [vmem:[#allocation5 + $0xb10] sm:$0xff] }
 0x2ba   : > { %v1804_v16 = vpop.f32.mrf.mxu1  ;;  %2565 = vmatpush.xpose.msra.mxu2 %v723_v8 }
 0x2bb   : > { %4212 = vst [vmem:[%s5642_s18 + $0x188] sm:$0xff] %v1980_v58  ;;  %2046 = vmatmul.f32.gmra.mxu0 %v6103_v59  ;;  %2224 = vmatmul.f32.gmra.mxu2 %v5770_v31  ;;  %v1805_v33 = vadd.f32 %v1804_v16, %v1716_v51  ;;  %v6120_v51 = vld [vmem:[%s5139_s27 + $0x68] sm:$0xff]  ;;  %v8148_v58 = vld [vmem:[#allocation19_spill] sm:$0xff]  ;;  %v631_v16 = vld [vmem:[#allocation5 + $0x830] sm:$0xff] }
 0x2bc   : > { %2387 = vmatpush.xpose.msra.mxu0 %v631_v16 }
 0x2bd   : > { %2135 = vmatmul.f32.gmra.mxu1 %v6108_v43  ;;  %2313 = vmatmul.f32.gmra.mxu3 %v8146_v29 }
 0x2be   : > { %v1893_v12 = vpop.f32.mrf.mxu2 }
 0x2bf   : > { %v1894_v53 = vadd.f32 %v1893_v12, %v1805_v33  ;;  %v632_v33 = vld [vmem:[#allocation5 + $0x838] sm:$0xff] }
 0x2c0   : > { %v1982_v44 = vpop.f32.mrf.mxu3  ;;  %v1718_v31 = vpop.f32.mrf.mxu0  ;;  %2476 = vmatpush.xpose.msra.mxu1 %v632_v33  ;;  %v6144_v33 = vld [vmem:[%s5139_s27 + $0xc8] sm:$0xff] }
 0x2c1   : > { %v1719_v49 = vadd.f32 %v1718_v31, %v5797_v2  ;;  %v1983_v56 = vadd.f32 %v1982_v44, %v1894_v53  ;;  %v724_v2 = vld [vmem:[#allocation5 + $0xb18] sm:$0xff] }
 0x2c2   : > { %v1807_v37 = vpop.f32.mrf.mxu1  ;;  %2654 = vmatpush.xpose.msra.mxu3 %v724_v2 }
 0x2c3   : > { %4218 = vst [vmem:[%s5642_s18 + $0x1b8] sm:$0xff] %v1983_v56  ;;  %2049 = vmatmul.f32.gmra.mxu0 %v6115_v48  ;;  %2227 = vmatmul.f32.gmra.mxu2 %v8147_v0  ;;  %v1808_v35 = vadd.f32 %v1807_v37, %v1719_v49  ;;  %v6127_v56 = vld [vmem:[%s5139_s27 + $0x90] sm:$0xff]  ;;  %v6132_v49 = vld [vmem:[%s5139_s27 + $0x98] sm:$0xff] }
 0x2c5   : > { %2138 = vmatmul.f32.gmra.mxu1 %v6120_v51  ;;  %2316 = vmatmul.f32.gmra.mxu3 %v8148_v58  ;;  %v717_v58 = vld [vmem:[#allocation5 + $0xae0] sm:$0xff] }
 0x2c6   : > { %v1896_v38 = vpop.f32.mrf.mxu2  ;;  %2566 = vmatpush.xpose.msra.mxu2 %v717_v58  ;;  %v8150_v58 = vld [vmem:[#allocation21_spill] sm:$0xff] }
 0x2c7   : > { %v1897_v40 = vadd.f32 %v1896_v38, %v1808_v35 }
 0x2c8   : > { %v1985_v29 = vpop.f32.mrf.mxu3  ;;  %v1721_v12 = vpop.f32.mrf.mxu0 }
 0x2c9   : > { %v1722_v53 = vadd.f32 %v1721_v12, %v5812_v63  ;;  %v1986_v44 = vadd.f32 %v1985_v29, %v1897_v40  ;;  %v718_v40 = vld [vmem:[#allocation5 + $0xae8] sm:$0xff] }
 0x2ca   : > { %v1810_v31 = vpop.f32.mrf.mxu1  ;;  %v626_v29 = vld [vmem:[#allocation5 + $0x808] sm:$0xff]  ;;  %2655 = vmatpush.xpose.msra.mxu3 %v718_v40 }
 0x2cb   : > { %4224 = vst [vmem:[%s5642_s18 + $0x1e8] sm:$0xff] %v1986_v44  ;;  %2052 = vmatmul.f32.gmra.mxu0 %v6127_v56  ;;  %2230 = vmatmul.f32.gmra.mxu2 %v5800_v18  ;;  %v1811_v37 = vadd.f32 %v1810_v31, %v1722_v53  ;;  %v6139_v18 = vld [vmem:[%s5139_s27 + $0xc0] sm:$0xff] }
 0x2cc   : > { %v8149_v12 = vld [vmem:[#allocation20_spill] sm:$0xff]  ;;  %2477 = vmatpush.xpose.msra.mxu1 %v626_v29 }
 0x2cd   : > { %2141 = vmatmul.f32.gmra.mxu1 %v6132_v49  ;;  %2319 = vmatmul.f32.gmra.mxu3 %v5805_v11  ;;  %v625_v11 = vld [vmem:[#allocation5 + $0x800] sm:$0xff] }
 0x2ce   : > { %v1899_v0 = vpop.f32.mrf.mxu2  ;;  %2388 = vmatpush.xpose.msra.mxu0 %v625_v11 }
 0x2cf   : > { %v1900_v63 = vadd.f32 %v1899_v0, %v1811_v37 }
 0x2d0   : > { %v1988_v8 = vpop.f32.mrf.mxu3  ;;  %v1724_v16 = vpop.f32.mrf.mxu0 }
 0x2d1   : > { %v1725_v2 = vadd.f32 %v1724_v16, %v5827_v62  ;;  %v1989_v35 = vadd.f32 %v1988_v8, %v1900_v63  ;;  %v6151_v8 = vld [vmem:[%s5139_s27 + $0xf0] sm:$0xff] }
 0x2d2   : > { %v1813_v38 = vpop.f32.mrf.mxu1  ;;  %v711_v16 = vld [vmem:[#allocation5 + $0xab0] sm:$0xff] }
 0x2d3   : > { %4230 = vst [vmem:[%s5642_s18 + $0x218] sm:$0xff] %v1989_v35  ;;  %2055 = vmatmul.f32.gmra.mxu0 %v6139_v18  ;;  %2233 = vmatmul.f32.gmra.mxu2 %v5815_v30  ;;  %v1814_v62 = vadd.f32 %v1813_v38, %v1725_v2  ;;  %v6156_v2 = vld [vmem:[%s5139_s27 + $0xf8] sm:$0xff]  ;;  %v619_v38 = vld [vmem:[#allocation5 + $0x7d0] sm:$0xff] }
 0x2d4   : > { %v8151_v35 = vld [vmem:[#allocation22_spill] sm:$0xff]  ;;  %2567 = vmatpush.xpose.msra.mxu2 %v711_v16  ;;  %2389 = vmatpush.xpose.msra.mxu0 %v619_v38 }
 0x2d5   : > { %2144 = vmatmul.f32.gmra.mxu1 %v6144_v33  ;;  %2322 = vmatmul.f32.gmra.mxu3 %v8149_v12 }
 0x2d6   : > { %v1902_v53 = vpop.f32.mrf.mxu2 }
 0x2d7   : > { %v1903_v44 = vadd.f32 %v1902_v53, %v1814_v62  ;;  %v620_v62 = vld [vmem:[#allocation5 + $0x7d8] sm:$0xff] }
 0x2d8   : > { %v1991_v31 = vpop.f32.mrf.mxu3  ;;  %v1727_v30 = vpop.f32.mrf.mxu0  ;;  %2478 = vmatpush.xpose.msra.mxu1 %v620_v62  ;;  %v6180_v62 = vld [vmem:[%s5139_s27 + $0x158] sm:$0xff] }
 0x2d9   : > { %v1728_v37 = vadd.f32 %v1727_v30, %v5842_v32  ;;  %v1992_v0 = vadd.f32 %v1991_v31, %v1903_v44  ;;  %v712_v32 = vld [vmem:[#allocation5 + $0xab8] sm:$0xff] }
 0x2da   : > { %v1816_v63 = vpop.f32.mrf.mxu1  ;;  %2656 = vmatpush.xpose.msra.mxu3 %v712_v32 }
 0x2db   : > { %4236 = vst [vmem:[%s5642_s18 + $0x248] sm:$0xff] %v1992_v0  ;;  %2058 = vmatmul.f32.gmra.mxu0 %v6151_v8  ;;  %2236 = vmatmul.f32.gmra.mxu2 %v8150_v58  ;;  %v1817_v11 = vadd.f32 %v1816_v63, %v1728_v37  ;;  %v6163_v0 = vld [vmem:[%s5139_s27 + $0x120] sm:$0xff]  ;;  %v6168_v37 = vld [vmem:[%s5139_s27 + $0x128] sm:$0xff] }
 0x2dd   : > { %2147 = vmatmul.f32.gmra.mxu1 %v6156_v2  ;;  %2325 = vmatmul.f32.gmra.mxu3 %v8151_v35  ;;  %v705_v35 = vld [vmem:[#allocation5 + $0xa80] sm:$0xff] }
 0x2de   : > { %v1905_v40 = vpop.f32.mrf.mxu2  ;;  %2568 = vmatpush.xpose.msra.mxu2 %v705_v35  ;;  %v8153_v35 = vld [vmem:[#allocation24_spill] sm:$0xff] }
 0x2df   : > { %v1906_v29 = vadd.f32 %v1905_v40, %v1817_v11 }
 0x2e0   : > { %v1994_v12 = vpop.f32.mrf.mxu3  ;;  %v1730_v53 = vpop.f32.mrf.mxu0 }
 0x2e1   : > { %v1731_v44 = vadd.f32 %v1730_v53, %v5857_v50  ;;  %v1995_v31 = vadd.f32 %v1994_v12, %v1906_v29  ;;  %v706_v29 = vld [vmem:[#allocation5 + $0xa88] sm:$0xff]  ;;  %v8152_v53 = vld [vmem:[#allocation23_spill] sm:$0xff] }
 0x2e2   : > { %v1819_v30 = vpop.f32.mrf.mxu1  ;;  %v614_v12 = vld [vmem:[#allocation5 + $0x7a8] sm:$0xff]  ;;  %2657 = vmatpush.xpose.msra.mxu3 %v706_v29 }
 0x2e3   : > { %4242 = vst [vmem:[%s5642_s18 + $0x278] sm:$0xff] %v1995_v31  ;;  %2061 = vmatmul.f32.gmra.mxu0 %v6163_v0  ;;  %2239 = vmatmul.f32.gmra.mxu2 %v5845_v27  ;;  %v1820_v63 = vadd.f32 %v1819_v30, %v1731_v44  ;;  %v6175_v27 = vld [vmem:[%s5139_s27 + $0x150] sm:$0xff] }
 0x2e4   : > { %2479 = vmatpush.xpose.msra.mxu1 %v614_v12 }
 0x2e5   : > { %2150 = vmatmul.f32.gmra.mxu1 %v6168_v37  ;;  %2328 = vmatmul.f32.gmra.mxu3 %v5850_v45  ;;  %v613_v45 = vld [vmem:[#allocation5 + $0x7a0] sm:$0xff] }
 0x2e6   : > { %v1908_v58 = vpop.f32.mrf.mxu2  ;;  %2390 = vmatpush.xpose.msra.mxu0 %v613_v45 }
 0x2e7   : > { %v1909_v50 = vadd.f32 %v1908_v58, %v1820_v63 }
 0x2e8   : > { %v1997_v16 = vpop.f32.mrf.mxu3  ;;  %v1733_v38 = vpop.f32.mrf.mxu0 }
 0x2e9   : > { %v1734_v32 = vadd.f32 %v1733_v38, %v5872_v57  ;;  %v1998_v11 = vadd.f32 %v1997_v16, %v1909_v50  ;;  %v6187_v16 = vld [vmem:[%s5139_s27 + $0x180] sm:$0xff]  ;;  %v699_v38 = vld [vmem:[#allocation5 + $0xa50] sm:$0xff] }
 0x2ea   : > { %v1822_v40 = vpop.f32.mrf.mxu1  ;;  %2569 = vmatpush.xpose.msra.mxu2 %v699_v38 }
 0x2eb   : > { %4248 = vst [vmem:[%s5642_s18 + $0x2a8] sm:$0xff] %v1998_v11  ;;  %2064 = vmatmul.f32.gmra.mxu0 %v6175_v27  ;;  %2242 = vmatmul.f32.gmra.mxu2 %v5860_v1  ;;  %v1823_v57 = vadd.f32 %v1822_v40, %v1734_v32  ;;  %v6192_v32 = vld [vmem:[%s5139_s27 + $0x188] sm:$0xff]  ;;  %v607_v40 = vld [vmem:[#allocation5 + $0x770] sm:$0xff] }
 0x2ec   : > { %v8154_v11 = vld [vmem:[#allocation25_spill] sm:$0xff]  ;;  %2391 = vmatpush.xpose.msra.mxu0 %v607_v40 }
 0x2ed   : > { %2153 = vmatmul.f32.gmra.mxu1 %v6180_v62  ;;  %2331 = vmatmul.f32.gmra.mxu3 %v8152_v53 }
 0x2ee   : > { %v1911_v44 = vpop.f32.mrf.mxu2 }
 0x2ef   : > { %v1912_v31 = vadd.f32 %v1911_v44, %v1823_v57  ;;  %v608_v57 = vld [vmem:[#allocation5 + $0x778] sm:$0xff] }
 0x2f0   : > { %v2000_v30 = vpop.f32.mrf.mxu3  ;;  %v1736_v1 = vpop.f32.mrf.mxu0  ;;  %2480 = vmatpush.xpose.msra.mxu1 %v608_v57  ;;  %v6216_v57 = vld [vmem:[%s5139_s27 + $0x1e8] sm:$0xff] }
 0x2f1   : > { %v1737_v63 = vadd.f32 %v1736_v1, %v5887_v52  ;;  %v2001_v58 = vadd.f32 %v2000_v30, %v1912_v31  ;;  %v700_v52 = vld [vmem:[#allocation5 + $0xa58] sm:$0xff] }
 0x2f2   : > { %v1825_v50 = vpop.f32.mrf.mxu1  ;;  %2658 = vmatpush.xpose.msra.mxu3 %v700_v52 }
 0x2f3   : > { %4254 = vst [vmem:[%s5642_s18 + $0x2d8] sm:$0xff] %v2001_v58  ;;  %2067 = vmatmul.f32.gmra.mxu0 %v6187_v16  ;;  %2245 = vmatmul.f32.gmra.mxu2 %v8153_v35  ;;  %v1826_v45 = vadd.f32 %v1825_v50, %v1737_v63  ;;  %v6199_v58 = vld [vmem:[%s5139_s27 + $0x1b0] sm:$0xff]  ;;  %v6204_v63 = vld [vmem:[%s5139_s27 + $0x1b8] sm:$0xff] }
 0x2f5   : > { %2156 = vmatmul.f32.gmra.mxu1 %v6192_v32  ;;  %2334 = vmatmul.f32.gmra.mxu3 %v8154_v11  ;;  %v693_v11 = vld [vmem:[#allocation5 + $0xa20] sm:$0xff] }
 0x2f6   : > { %v1914_v29 = vpop.f32.mrf.mxu2  ;;  %2570 = vmatpush.xpose.msra.mxu2 %v693_v11  ;;  %v8156_v11 = vld [vmem:[#allocation27_spill] sm:$0xff] }
 0x2f7   : > { %v1915_v12 = vadd.f32 %v1914_v29, %v1826_v45 }
 0x2f8   : > { %v2003_v53 = vpop.f32.mrf.mxu3  ;;  %v1739_v44 = vpop.f32.mrf.mxu0 }
 0x2f9   : > { %v1740_v31 = vadd.f32 %v1739_v44, %v5902_v22  ;;  %v2004_v30 = vadd.f32 %v2003_v53, %v1915_v12  ;;  %v694_v12 = vld [vmem:[#allocation5 + $0xa28] sm:$0xff]  ;;  %v8155_v44 = vld [vmem:[#allocation26_spill] sm:$0xff] }
 0x2fa   : > { %v1828_v1 = vpop.f32.mrf.mxu1  ;;  %v602_v53 = vld [vmem:[#allocation5 + $0x748] sm:$0xff]  ;;  %2659 = vmatpush.xpose.msra.mxu3 %v694_v12 }
 0x2fb   : > { %4260 = vst [vmem:[%s5642_s18 + $0x308] sm:$0xff] %v2004_v30  ;;  %2070 = vmatmul.f32.gmra.mxu0 %v6199_v58  ;;  %2248 = vmatmul.f32.gmra.mxu2 %v5890_v61  ;;  %v1829_v50 = vadd.f32 %v1828_v1, %v1740_v31  ;;  %v6211_v61 = vld [vmem:[%s5139_s27 + $0x1e0] sm:$0xff] }
 0x2fc   : > { %2481 = vmatpush.xpose.msra.mxu1 %v602_v53 }
 0x2fd   : > { %2159 = vmatmul.f32.gmra.mxu1 %v6204_v63  ;;  %2337 = vmatmul.f32.gmra.mxu3 %v5895_v13  ;;  %v601_v13 = vld [vmem:[#allocation5 + $0x740] sm:$0xff] }
 0x2fe   : > { %v1917_v35 = vpop.f32.mrf.mxu2  ;;  %2392 = vmatpush.xpose.msra.mxu0 %v601_v13 }
 0x2ff   : > { %v1918_v22 = vadd.f32 %v1917_v35, %v1829_v50 }
 0x300   : > { %v2006_v38 = vpop.f32.mrf.mxu3  ;;  %v1742_v40 = vpop.f32.mrf.mxu0 }
 0x301   : > { %v1743_v52 = vadd.f32 %v1742_v40, %v5917_v4  ;;  %v2007_v45 = vadd.f32 %v2006_v38, %v1918_v22  ;;  %v6223_v38 = vld [vmem:[%s5139_s27 + $0x210] sm:$0xff] }
 0x302   : > { %v1831_v29 = vpop.f32.mrf.mxu1  ;;  %v687_v40 = vld [vmem:[#allocation5 + $0x9f0] sm:$0xff] }
 0x303   : > { %4266 = vst [vmem:[%s5642_s18 + $0x338] sm:$0xff] %v2007_v45  ;;  %2073 = vmatmul.f32.gmra.mxu0 %v6211_v61  ;;  %2251 = vmatmul.f32.gmra.mxu2 %v5905_v7  ;;  %v1832_v4 = vadd.f32 %v1831_v29, %v1743_v52  ;;  %v6228_v52 = vld [vmem:[%s5139_s27 + $0x218] sm:$0xff]  ;;  %v8157_v45 = vld [vmem:[#allocation28_spill] sm:$0xff]  ;;  %v595_v29 = vld [vmem:[#allocation5 + $0x710] sm:$0xff] }
 0x304   : > { %2571 = vmatpush.xpose.msra.mxu2 %v687_v40  ;;  %2393 = vmatpush.xpose.msra.mxu0 %v595_v29  ;;  %v681_v29 = vld [vmem:[#allocation5 + $0x9c0] sm:$0xff] }
 0x305   : > { %2162 = vmatmul.f32.gmra.mxu1 %v6216_v57  ;;  %2340 = vmatmul.f32.gmra.mxu3 %v8155_v44 }
 0x306   : > { %v1920_v31 = vpop.f32.mrf.mxu2 }
 0x307   : > { %v1921_v30 = vadd.f32 %v1920_v31, %v1832_v4  ;;  %v596_v4 = vld [vmem:[#allocation5 + $0x718] sm:$0xff] }
 0x308   : > { %v2009_v1 = vpop.f32.mrf.mxu3  ;;  %v1745_v7 = vpop.f32.mrf.mxu0  ;;  %2482 = vmatpush.xpose.msra.mxu1 %v596_v4  ;;  %2572 = vmatpush.xpose.msra.mxu2 %v681_v29  ;;  %v6247_v4 = vld [vmem:[%s5139_s27 + $0x270] sm:$0xff] }
 0x309   : > { %v1746_v50 = vadd.f32 %v1745_v7, %v5932_v10  ;;  %v2010_v35 = vadd.f32 %v2009_v1, %v1921_v30  ;;  %v688_v10 = vld [vmem:[#allocation5 + $0x9f8] sm:$0xff] }
 0x30a   : > { %v1834_v22 = vpop.f32.mrf.mxu1  ;;  %2660 = vmatpush.xpose.msra.mxu3 %v688_v10 }
 0x30b   : > { %4272 = vst [vmem:[%s5642_s18 + $0x368] sm:$0xff] %v2010_v35  ;;  %2076 = vmatmul.f32.gmra.mxu0 %v6223_v38  ;;  %2254 = vmatmul.f32.gmra.mxu2 %v8156_v11  ;;  %v1835_v13 = vadd.f32 %v1834_v22, %v1746_v50  ;;  %v6235_v35 = vld [vmem:[%s5139_s27 + $0x240] sm:$0xff]  ;;  %v6240_v50 = vld [vmem:[%s5139_s27 + $0x248] sm:$0xff] }
 0x30c   : > { %v8158_v22 = vld [vmem:[#allocation29_spill] sm:$0xff] }
 0x30d   : > { %2165 = vmatmul.f32.gmra.mxu1 %v6228_v52  ;;  %2343 = vmatmul.f32.gmra.mxu3 %v8157_v45 }
 0x30e   : > { %v1923_v12 = vpop.f32.mrf.mxu2 }
 0x30f   : > { %v1924_v53 = vadd.f32 %v1923_v12, %v1835_v13 }
 0x310   : > { %v2012_v44 = vpop.f32.mrf.mxu3  ;;  %v1748_v31 = vpop.f32.mrf.mxu0 }
 0x311   : > { %v1749_v30 = vadd.f32 %v1748_v31, %v5947_v34  ;;  %v2013_v1 = vadd.f32 %v2012_v44, %v1924_v53  ;;  %v589_v53 = vld [vmem:[#allocation5 + $0x6e0] sm:$0xff]  ;;  %v682_v44 = vld [vmem:[#allocation5 + $0x9c8] sm:$0xff]  ;;  %v8159_v31 = vld [vmem:[#allocation30_spill] sm:$0xff] }
 0x312   : > { %v1837_v7 = vpop.f32.mrf.mxu1  ;;  %2394 = vmatpush.xpose.msra.mxu0 %v589_v53  ;;  %2661 = vmatpush.xpose.msra.mxu3 %v682_v44  ;;  %v8161_v53 = vld [vmem:[#allocation32_spill] sm:$0xff]  ;;  %v675_v44 = vld [vmem:[#allocation5 + $0x990] sm:$0xff] }
 0x313   : > { %4278 = vst [vmem:[%s5642_s18 + $0x398] sm:$0xff] %v2013_v1  ;;  %2079 = vmatmul.f32.gmra.mxu0 %v6235_v35  ;;  %2257 = vmatmul.f32.gmra.mxu2 %v5935_v20  ;;  %v1838_v11 = vadd.f32 %v1837_v7, %v1749_v30  ;;  %v590_v30 = vld [vmem:[#allocation5 + $0x6e8] sm:$0xff]  ;;  %v6252_v1 = vld [vmem:[%s5139_s27 + $0x278] sm:$0xff] }
 0x314   : > { %2483 = vmatpush.xpose.msra.mxu1 %v590_v30  ;;  %2573 = vmatpush.xpose.msra.mxu2 %v675_v44  ;;  %v6280_v44 = vld [vmem:[#allocation7] sm:$0x3f] }
 0x315   : > { %2168 = vmatmul.f32.gmra.mxu1 %v6240_v50  ;;  %2346 = vmatmul.f32.gmra.mxu3 %v8158_v22 }
 0x316   : > { %v1926_v40 = vpop.f32.mrf.mxu2 }
 0x317   : > { %v1927_v34 = vadd.f32 %v1926_v40, %v1838_v11 }
 0x318   : > { %v2015_v45 = vpop.f32.mrf.mxu3  ;;  %v1751_v10 = vpop.f32.mrf.mxu0 }
 0x319   : > { %v1752_v13 = vadd.f32 %v1751_v10, %v5962_v55  ;;  %v2016_v12 = vadd.f32 %v2015_v45, %v1927_v34  ;;  %v8160_v55 = vld [vmem:[#allocation31_spill] sm:$0xff] }
 0x31a   : > { %v1840_v20 = vpop.f32.mrf.mxu1 }
 0x31b   : > { %4284 = vst [vmem:[%s5642_s18 + $0x3c8] sm:$0xff] %v2016_v12  ;;  %2082 = vmatmul.f32.gmra.mxu0 %v6247_v4  ;;  %2260 = vmatmul.f32.gmra.mxu2 %v8159_v31  ;;  %v1841_v7 = vadd.f32 %v1840_v20, %v1752_v13  ;;  %v6259_v12 = vld [vmem:[%s5139_s27 + $0x2a0] sm:$0xff]  ;;  %v6264_v31 = vld [vmem:[%s5139_s27 + $0x2a8] sm:$0xff]  ;;  %v583_v20 = vld [vmem:[#allocation5 + $0x6b0] sm:$0xff] }
 0x31c   : > { %v8162_v13 = vld [vmem:[#allocation33_spill] sm:$0xff]  ;;  %2395 = vmatpush.xpose.msra.mxu0 %v583_v20 }
 0x31d   : > { %2171 = vmatmul.f32.gmra.mxu1 %v6252_v1  ;;  %2349 = vmatmul.f32.gmra.mxu3 %v8160_v55 }
 0x31e   : > { %v1929_v22 = vpop.f32.mrf.mxu2 }
 0x31f   : > { %v1930_v11 = vadd.f32 %v1929_v22, %v1841_v7 }
 0x320   : > { %v2018_v40 = vpop.f32.mrf.mxu3  ;;  %v1754_v34 = vpop.f32.mrf.mxu0 }
 0x321   : > { %v1755_v45 = vadd.f32 %v1754_v34, %v5977_v3  ;;  %v2019_v29 = vadd.f32 %v2018_v40, %v1930_v11  ;;  %v676_v3 = vld [vmem:[#allocation5 + $0x998] sm:$0xff] }
 0x322   : > { %v1843_v10 = vpop.f32.mrf.mxu1  ;;  %2662 = vmatpush.xpose.msra.mxu3 %v676_v3  ;;  %v584_v11 = vld [vmem:[#allocation5 + $0x6b8] sm:$0xff] }
 0x323   : > { %4290 = vst [vmem:[%s5642_s18 + $0x3f8] sm:$0xff] %v2019_v29  ;;  %2085 = vmatmul.f32.gmra.mxu0 %v6259_v12  ;;  %2263 = vmatmul.f32.gmra.mxu2 %v8161_v53  ;;  %v1844_v30 = vadd.f32 %v1843_v10, %v1755_v45  ;;  %v6276_v45 = vld [vmem:[%s5139_s27 + $0x2d8] sm:$0xff] }
 0x324   : > { %2484 = vmatpush.xpose.msra.mxu1 %v584_v11 }
 0x325   : > { %2174 = vmatmul.f32.gmra.mxu1 %v6264_v31  ;;  %2352 = vmatmul.f32.gmra.mxu3 %v8162_v13  ;;  %v6271_v13 = vld [vmem:[%s5139_s27 + $0x2d0] sm:$0xff] }
 0x326   : > { %v1932_v55 = vpop.f32.mrf.mxu2 }
 0x327   : > { %v1933_v7 = vadd.f32 %v1932_v55, %v1844_v30  ;;  %v669_v55 = vld [vmem:[#allocation5 + $0x960] sm:$0xff] }
 0x328   : > { %v2021_v22 = vpop.f32.mrf.mxu3  ;;  %v1757_v40 = vpop.f32.mrf.mxu0  ;;  %2574 = vmatpush.xpose.msra.mxu2 %v669_v55 }
 0x329   : > { %v1758_v34 = vadd.f32 %v1757_v40, %v5991_v5  ;;  %v2022_v29 = vadd.f32 %v2021_v22, %v1933_v7  ;;  %v6283_v5 = vperm.slane %v6280_v44, 2  ;;  %v670_v40 = vld [vmem:[#allocation5 + $0x968] sm:$0xff] }
 0x32a   : > { %v1846_v53 = vpop.f32.mrf.mxu1  ;;  %2663 = vmatpush.xpose.msra.mxu3 %v670_v40  ;;  %v6306_v40 = vld [vmem:[%s5139_s27 + $0x338] sm:$0xff] }
 0x32b   : > { %4296 = vst [vmem:[%s5642_s18 + $0x428] sm:$0xff] %v2022_v29  ;;  %2088 = vmatmul.f32.gmra.mxu0 %v6271_v13  ;;  %2266 = vmatmul.f32.gmra.mxu2 %v5980_v60  ;;  %v1847_v10 = vadd.f32 %v1846_v53, %v1758_v34  ;;  %v6288_v29 = vld [vmem:[%s5139_s27 + $0x300] sm:$0xff]  ;;  %v578_v53 = vld [vmem:[#allocation5 + $0x688] sm:$0xff] }
 0x32c   : > { %2485 = vmatpush.xpose.msra.mxu1 %v578_v53  ;;  %8163 = vst [vmem:[#allocation34_spill] sm:$0xff] %v6306_v40 }
 0x32d   : > { %2177 = vmatmul.f32.gmra.mxu1 %v6276_v45  ;;  %2355 = vmatmul.f32.gmra.mxu3 %v5985_v46  ;;  %v577_v46 = vld [vmem:[#allocation5 + $0x680] sm:$0xff] }
 0x32e   : > { %v1935_v20 = vpop.f32.mrf.mxu2  ;;  %2396 = vmatpush.xpose.msra.mxu0 %v577_v46  ;;  %v663_v46 = vld [vmem:[#allocation5 + $0x930] sm:$0xff] }
 0x32f   : > { %v1936_v3 = vadd.f32 %v1935_v20, %v1847_v10  ;;  %v6293_v10 = vld [vmem:[%s5139_s27 + $0x308] sm:$0xff]  ;;  %2575 = vmatpush.xpose.msra.mxu2 %v663_v46 }
 0x330   : > { %v2024_v30 = vpop.f32.mrf.mxu3  ;;  %v2044_v60 = vpop.f32.mrf.mxu0  ;;  %v6319_v46 = vld [vmem:[%s5139_s27 + $0x368] sm:$0xff] }
 0x331   : > { %v2025_v7 = vadd.f32 %v2024_v30, %v1936_v3  ;;  %v2045_v22 = vadd.f32 %v2044_v60, %v6283_v5  ;;  %8164 = vst [vmem:[#allocation12_spill] sm:$0xff] %v6319_v46 }
 0x332   : > { %v2133_v11 = vpop.f32.mrf.mxu1 }
 0x333   : > { %4302 = vst [vmem:[%s5642_s18 + $0x458] sm:$0xff] %v2025_v7  ;;  %v2134_v34 = vadd.f32 %v2133_v11, %v2045_v22  ;;  %2091 = vmatmul.f32.gmra.mxu0 %v6288_v29  ;;  %2269 = vmatmul.f32.gmra.mxu2 %v5995_v24  ;;  %v6301_v24 = vld [vmem:[%s5139_s27 + $0x330] sm:$0xff] }
 0x335   : > { %2180 = vmatmul.f32.gmra.mxu1 %v6293_v10  ;;  %2358 = vmatmul.f32.gmra.mxu3 %v6000_v28  ;;  %v571_v28 = vld [vmem:[#allocation5 + $0x650] sm:$0xff] }
 0x336   : > { %v2222_v20 = vpop.f32.mrf.mxu2  ;;  %2397 = vmatpush.xpose.msra.mxu0 %v571_v28 }
 0x337   : > { %v2223_v3 = vadd.f32 %v2222_v20, %v2134_v34  ;;  %v664_v34 = vld [vmem:[#allocation5 + $0x938] sm:$0xff] }
 0x338   : > { %v2311_v30 = vpop.f32.mrf.mxu3  ;;  %v2047_v55 = vpop.f32.mrf.mxu0  ;;  %2664 = vmatpush.xpose.msra.mxu3 %v664_v34 }
 0x339   : > { %v2048_v60 = vadd.f32 %v2047_v55, %v6283_v5  ;;  %v6298_v7 = vadd.f32 %v2311_v30, %v2223_v3  ;;  %v572_v30 = vld [vmem:[#allocation5 + $0x658] sm:$0xff] }
 0x33a   : > { %v2136_v22 = vpop.f32.mrf.mxu1  ;;  %2486 = vmatpush.xpose.msra.mxu1 %v572_v30 }
 0x33b   : > { %v2137_v11 = vadd.f32 %v2136_v22, %v2048_v60  ;;  %2094 = vmatmul.f32.gmra.mxu0 %v6301_v24  ;;  %2272 = vmatmul.f32.gmra.mxu2 %v6007_v36 }
 0x33d   : > { %2183 = vmatmul.f32.gmra.mxu1 %v6306_v40  ;;  %2361 = vmatmul.f32.gmra.mxu3 %v6012_v54  ;;  %v6314_v54 = vld [vmem:[%s5139_s27 + $0x360] sm:$0xff] }
 0x33e   : > { %v2225_v53 = vpop.f32.mrf.mxu2 }
 0x33f   : > { %v2226_v20 = vadd.f32 %v2225_v53, %v2137_v11  ;;  %v657_v53 = vld [vmem:[#allocation5 + $0x900] sm:$0xff] }
 0x340   : > { %v2314_v3 = vpop.f32.mrf.mxu3  ;;  %v2050_v55 = vpop.f32.mrf.mxu0  ;;  %2576 = vmatpush.xpose.msra.mxu2 %v657_v53 }
 0x341   : > { %v2051_v36 = vadd.f32 %v2050_v55, %v6283_v5  ;;  %v6311_v60 = vadd.f32 %v2314_v3, %v2226_v20 }
 0x342   : > { %v2139_v22 = vpop.f32.mrf.mxu1 }
 0x343   : > { %v2140_v40 = vadd.f32 %v2139_v22, %v2051_v36  ;;  %2097 = vmatmul.f32.gmra.mxu0 %v6314_v54  ;;  %2275 = vmatmul.f32.gmra.mxu2 %v6019_v9  ;;  %v565_v9 = vld [vmem:[#allocation5 + $0x620] sm:$0xff]  ;;  %v658_v36 = vld [vmem:[#allocation5 + $0x908] sm:$0xff] }
 0x344   : > { %2398 = vmatpush.xpose.msra.mxu0 %v565_v9  ;;  %2665 = vmatpush.xpose.msra.mxu3 %v658_v36  ;;  %v751_v36 = vld [vmem:[#allocation5 + $0xbf0] sm:$0xff] }
 0x345   : > { %2186 = vmatmul.f32.gmra.mxu1 %v6319_v46  ;;  %2364 = vmatmul.f32.gmra.mxu3 %v6024_v26  ;;  %v6327_v46 = vld [vmem:[%s5139_s27 + $0x390] sm:$0xff]  ;;  %v566_v26 = vld [vmem:[#allocation5 + $0x628] sm:$0xff] }
 0x346   : > { %v2228_v11 = vpop.f32.mrf.mxu2  ;;  %2487 = vmatpush.xpose.msra.mxu1 %v566_v26  ;;  %2917 = vmatpush.xpose.msrb.mxu2 %v751_v36  ;;  %v6358_v36 = vld [vmem:[%s5139_s27 + $0x3f8] sm:$0xff] }
 0x347   : > { %v2229_v28 = vadd.f32 %v2228_v11, %v2140_v40  ;;  %v6332_v40 = vld [vmem:[%s5139_s27 + $0x398] sm:$0xff]  ;;  %8167 = vst [vmem:[#allocation14_spill] sm:$0xff] %v6358_v36 }
 0x348   : > { %v2317_v34 = vpop.f32.mrf.mxu3  ;;  %v2053_v20 = vpop.f32.mrf.mxu0  ;;  %8165 = vst [vmem:[#allocation17_spill] sm:$0xff] %v6332_v40 }
 0x349   : > { %v2054_v3 = vadd.f32 %v2053_v20, %v6283_v5  ;;  %v6324_v30 = vadd.f32 %v2317_v34, %v2229_v28 }
 0x34a   : > { %v2142_v55 = vpop.f32.mrf.mxu1 }
 0x34b   : > { %v2143_v22 = vadd.f32 %v2142_v55, %v2054_v3  ;;  %2100 = vmatmul.f32.gmra.mxu0 %v6327_v46  ;;  %2278 = vmatmul.f32.gmra.mxu2 %v6031_v42  ;;  %v6340_v42 = vld [vmem:[%s5139_s27 + $0x3c0] sm:$0xff] }
 0x34d   : > { %2189 = vmatmul.f32.gmra.mxu1 %v6332_v40  ;;  %2367 = vmatmul.f32.gmra.mxu3 %v6036_v21  ;;  %v6345_v40 = vld [vmem:[%s5139_s27 + $0x3c8] sm:$0xff]  ;;  %v749_v21 = vld [vmem:[#allocation5 + $0xbe0] sm:$0xff] }
 0x34e   : > { %v2231_v11 = vpop.f32.mrf.mxu2  ;;  %8166 = vst [vmem:[#allocation13_spill] sm:$0xff] %v6345_v40  ;;  %2739 = vmatpush.xpose.msrb.mxu0 %v749_v21 }
 0x34f   : > { %v2232_v28 = vadd.f32 %v2231_v11, %v2143_v22  ;;  %v752_v22 = vld [vmem:[#allocation5 + $0xbf8] sm:$0xff] }
 0x350   : > { %v2320_v34 = vpop.f32.mrf.mxu3  ;;  %v2056_v53 = vpop.f32.mrf.mxu0  ;;  %3006 = vmatpush.xpose.msrb.mxu3 %v752_v22 }
 0x351   : > { %v2057_v20 = vadd.f32 %v2056_v53, %v6283_v5  ;;  %v6337_v3 = vadd.f32 %v2320_v34, %v2232_v28  ;;  %v750_v34 = vld [vmem:[#allocation5 + $0xbe8] sm:$0xff] }
 0x352   : > { %v2145_v55 = vpop.f32.mrf.mxu1  ;;  %2828 = vmatpush.xpose.msrb.mxu1 %v750_v34 }
 0x353   : > { %v2146_v9 = vadd.f32 %v2145_v55, %v2057_v20  ;;  %2103 = vmatmul.f32.gmra.mxu0 %v6340_v42  ;;  %2281 = vmatmul.f32.gmra.mxu2 %v6043_v14 }
 0x355   : > { %2192 = vmatmul.f32.gmra.mxu1 %v6345_v40  ;;  %2370 = vmatmul.f32.gmra.mxu3 %v6048_v41  ;;  %v6353_v41 = vld [vmem:[%s5139_s27 + $0x3f0] sm:$0xff] }
 0x356   : > { %v2234_v26 = vpop.f32.mrf.mxu2 }
 0x357   : > { %v2235_v11 = vadd.f32 %v2234_v26, %v2146_v9  ;;  %v745_v26 = vld [vmem:[#allocation5 + $0xbc0] sm:$0xff] }
 0x358   : > { %v2323_v28 = vpop.f32.mrf.mxu3  ;;  %v2059_v53 = vpop.f32.mrf.mxu0  ;;  %2918 = vmatpush.xpose.msrb.mxu2 %v745_v26 }
 0x359   : > { %v2060_v14 = vadd.f32 %v2059_v53, %v6283_v5  ;;  %v6350_v20 = vadd.f32 %v2323_v28, %v2235_v11 }
 0x35a   : > { %v2148_v55 = vpop.f32.mrf.mxu1 }
 0x35b   : > { %v2149_v40 = vadd.f32 %v2148_v55, %v2060_v14  ;;  %2106 = vmatmul.f32.gmra.mxu0 %v6353_v41  ;;  %2284 = vmatmul.f32.gmra.mxu2 %v6055_v6  ;;  %v743_v6 = vld [vmem:[#allocation5 + $0xbb0] sm:$0xff]  ;;  %v746_v14 = vld [vmem:[#allocation5 + $0xbc8] sm:$0xff] }
 0x35c   : > { %2740 = vmatpush.xpose.msrb.mxu0 %v743_v6  ;;  %3007 = vmatpush.xpose.msrb.mxu3 %v746_v14  ;;  %v739_v14 = vld [vmem:[#allocation5 + $0xb90] sm:$0xff] }
 0x35d   : > { %2195 = vmatmul.f32.gmra.mxu1 %v6358_v36  ;;  %2373 = vmatmul.f32.gmra.mxu3 %v6060_v19  ;;  %v6366_v36 = vld [vmem:[%s5139_s27 + $0x420] sm:$0xff]  ;;  %v744_v19 = vld [vmem:[#allocation5 + $0xbb8] sm:$0xff] }
 0x35e   : > { %v2237_v9 = vpop.f32.mrf.mxu2  ;;  %2829 = vmatpush.xpose.msrb.mxu1 %v744_v19  ;;  %2919 = vmatpush.xpose.msrb.mxu2 %v739_v14  ;;  %v6397_v14 = vld [vmem:[%s5139_s27 + $0x28] sm:$0xff] }
 0x35f   : > { %v2238_v21 = vadd.f32 %v2237_v9, %v2149_v40  ;;  %v6371_v40 = vld [vmem:[%s5139_s27 + $0x428] sm:$0xff]  ;;  %8170 = vst [vmem:[#allocation18_spill] sm:$0xff] %v6397_v14 }
 0x360   : > { %v2326_v22 = vpop.f32.mrf.mxu3  ;;  %v2062_v11 = vpop.f32.mrf.mxu0  ;;  %8168 = vst [vmem:[#allocation15_spill] sm:$0xff] %v6371_v40 }
 0x361   : > { %v2063_v28 = vadd.f32 %v2062_v11, %v6283_v5  ;;  %v6363_v34 = vadd.f32 %v2326_v22, %v2238_v21 }
 0x362   : > { %v2151_v53 = vpop.f32.mrf.mxu1 }
 0x363   : > { %v2152_v55 = vadd.f32 %v2151_v53, %v2063_v28  ;;  %2109 = vmatmul.f32.gmra.mxu0 %v6366_v36  ;;  %2287 = vmatmul.f32.gmra.mxu2 %v6067_v47  ;;  %v6379_v47 = vld [vmem:[%s5139_s27 + $0x450] sm:$0xff] }
 0x365   : > { %2198 = vmatmul.f32.gmra.mxu1 %v6371_v40  ;;  %2376 = vmatmul.f32.gmra.mxu3 %v6072_v23  ;;  %v6384_v40 = vld [vmem:[%s5139_s27 + $0x458] sm:$0xff]  ;;  %v737_v23 = vld [vmem:[#allocation5 + $0xb80] sm:$0xff] }
 0x366   : > { %v2240_v9 = vpop.f32.mrf.mxu2  ;;  %8169 = vst [vmem:[#allocation16_spill] sm:$0xff] %v6384_v40  ;;  %2741 = vmatpush.xpose.msrb.mxu0 %v737_v23 }
 0x367   : > { %v2241_v21 = vadd.f32 %v2240_v9, %v2152_v55  ;;  %v740_v55 = vld [vmem:[#allocation5 + $0xb98] sm:$0xff] }
 0x368   : > { %v2329_v22 = vpop.f32.mrf.mxu3  ;;  %v2065_v26 = vpop.f32.mrf.mxu0  ;;  %3008 = vmatpush.xpose.msrb.mxu3 %v740_v55 }
 0x369   : > { %v2066_v11 = vadd.f32 %v2065_v26, %v6283_v5  ;;  %v6376_v28 = vadd.f32 %v2329_v22, %v2241_v21  ;;  %v738_v22 = vld [vmem:[#allocation5 + $0xb88] sm:$0xff] }
 0x36a   : > { %v2154_v53 = vpop.f32.mrf.mxu1  ;;  %2830 = vmatpush.xpose.msrb.mxu1 %v738_v22 }
 0x36b   : > { %v2155_v6 = vadd.f32 %v2154_v53, %v2066_v11  ;;  %2112 = vmatmul.f32.gmra.mxu0 %v6379_v47  ;;  %2290 = vmatmul.f32.gmra.mxu2 %v6079_v15 }
 0x36d   : > { %2201 = vmatmul.f32.gmra.mxu1 %v6384_v40  ;;  %2379 = vmatmul.f32.gmra.mxu3 %v6084_v39  ;;  %v6392_v39 = vld [vmem:[%s5139_s27 + $0x20] sm:$0xff] }
 0x36e   : > { %v2243_v19 = vpop.f32.mrf.mxu2 }
 0x36f   : > { %v2244_v9 = vadd.f32 %v2243_v19, %v2155_v6  ;;  %v733_v19 = vld [vmem:[#allocation5 + $0xb60] sm:$0xff] }
 0x370   : > { %v2332_v21 = vpop.f32.mrf.mxu3  ;;  %v2068_v26 = vpop.f32.mrf.mxu0  ;;  %2920 = vmatpush.xpose.msrb.mxu2 %v733_v19 }
 0x371   : > { %v2069_v15 = vadd.f32 %v2068_v26, %v6283_v5  ;;  %v6389_v11 = vadd.f32 %v2332_v21, %v2244_v9 }
 0x372   : > { %v2157_v53 = vpop.f32.mrf.mxu1 }
 0x373   : > { %v2158_v40 = vadd.f32 %v2157_v53, %v2069_v15  ;;  %2399 = vmatmul.f32.vlgmr.msra.gmra.mxu0 %v6392_v39  ;;  %2577 = vmatmul.f32.vlgmr.msra.gmra.mxu2 %v6091_v25  ;;  %v731_v25 = vld [vmem:[#allocation5 + $0xb50] sm:$0xff]  ;;  %v734_v15 = vld [vmem:[#allocation5 + $0xb68] sm:$0xff] }
 0x374   : > { %2742 = vmatpush.xpose.msrb.mxu0 %v731_v25  ;;  %3009 = vmatpush.xpose.msrb.mxu3 %v734_v15  ;;  %v727_v15 = vld [vmem:[#allocation5 + $0xb30] sm:$0xff] }
 0x375   : > { %2488 = vmatmul.f32.vlgmr.msra.gmra.mxu1 %v6397_v14  ;;  %2666 = vmatmul.f32.vlgmr.msra.gmra.mxu3 %v6096_v17  ;;  %v6405_v14 = vld [vmem:[%s5139_s27 + $0x50] sm:$0xff]  ;;  %v732_v17 = vld [vmem:[#allocation5 + $0xb58] sm:$0xff] }
 0x376   : > { %v2246_v6 = vpop.f32.mrf.mxu2  ;;  %2831 = vmatpush.xpose.msrb.mxu1 %v732_v17  ;;  %2921 = vmatpush.xpose.msrb.mxu2 %v727_v15  ;;  %v6436_v15 = vld [vmem:[%s5139_s27 + $0xb8] sm:$0xff] }
 0x377   : > { %v2247_v23 = vadd.f32 %v2246_v6, %v2158_v40  ;;  %v6410_v40 = vld [vmem:[%s5139_s27 + $0x58] sm:$0xff]  ;;  %8173 = vst [vmem:[#allocation21_spill] sm:$0xff] %v6436_v15 }
 0x378   : > { %v2335_v55 = vpop.f32.mrf.mxu3  ;;  %v2071_v9 = vpop.f32.mrf.mxu0  ;;  %8171 = vst [vmem:[#allocation19_spill] sm:$0xff] %v6410_v40 }
 0x379   : > { %v2072_v21 = vadd.f32 %v2071_v9, %v6283_v5  ;;  %v6402_v22 = vadd.f32 %v2335_v55, %v2247_v23 }
 0x37a   : > { %v2160_v26 = vpop.f32.mrf.mxu1 }
 0x37b   : > { %v2161_v53 = vadd.f32 %v2160_v26, %v2072_v21  ;;  %2402 = vmatmul.f32.gmra.mxu0 %v6405_v14  ;;  %2580 = vmatmul.f32.gmra.mxu2 %v6103_v59  ;;  %v6418_v59 = vld [vmem:[%s5139_s27 + $0x80] sm:$0xff] }
 0x37d   : > { %2491 = vmatmul.f32.gmra.mxu1 %v6410_v40  ;;  %2669 = vmatmul.f32.gmra.mxu3 %v6108_v43  ;;  %v6423_v40 = vld [vmem:[%s5139_s27 + $0x88] sm:$0xff]  ;;  %v725_v43 = vld [vmem:[#allocation5 + $0xb20] sm:$0xff] }
 0x37e   : > { %v2249_v6 = vpop.f32.mrf.mxu2  ;;  %8172 = vst [vmem:[#allocation20_spill] sm:$0xff] %v6423_v40  ;;  %2743 = vmatpush.xpose.msrb.mxu0 %v725_v43 }
 0x37f   : > { %v2250_v23 = vadd.f32 %v2249_v6, %v2161_v53  ;;  %v728_v53 = vld [vmem:[#allocation5 + $0xb38] sm:$0xff] }
 0x380   : > { %v2338_v55 = vpop.f32.mrf.mxu3  ;;  %v2074_v19 = vpop.f32.mrf.mxu0  ;;  %3010 = vmatpush.xpose.msrb.mxu3 %v728_v53 }
 0x381   : > { %v2075_v9 = vadd.f32 %v2074_v19, %v6283_v5  ;;  %v6415_v21 = vadd.f32 %v2338_v55, %v2250_v23  ;;  %v726_v55 = vld [vmem:[#allocation5 + $0xb28] sm:$0xff] }
 0x382   : > { %v2163_v26 = vpop.f32.mrf.mxu1  ;;  %2832 = vmatpush.xpose.msrb.mxu1 %v726_v55 }
 0x383   : > { %v2164_v25 = vadd.f32 %v2163_v26, %v2075_v9  ;;  %2405 = vmatmul.f32.gmra.mxu0 %v6418_v59  ;;  %2583 = vmatmul.f32.gmra.mxu2 %v6115_v48 }
 0x385   : > { %2494 = vmatmul.f32.gmra.mxu1 %v6423_v40  ;;  %2672 = vmatmul.f32.gmra.mxu3 %v6120_v51  ;;  %v6431_v51 = vld [vmem:[%s5139_s27 + $0xb0] sm:$0xff] }
 0x386   : > { %v2252_v17 = vpop.f32.mrf.mxu2 }
 0x387   : > { %v2253_v6 = vadd.f32 %v2252_v17, %v2164_v25  ;;  %v721_v17 = vld [vmem:[#allocation5 + $0xb00] sm:$0xff] }
 0x388   : > { %v2341_v23 = vpop.f32.mrf.mxu3  ;;  %v2077_v19 = vpop.f32.mrf.mxu0  ;;  %2922 = vmatpush.xpose.msrb.mxu2 %v721_v17 }
 0x389   : > { %v2078_v48 = vadd.f32 %v2077_v19, %v6283_v5  ;;  %v6428_v9 = vadd.f32 %v2341_v23, %v2253_v6 }
 0x38a   : > { %v2166_v26 = vpop.f32.mrf.mxu1 }
 0x38b   : > { %v2167_v40 = vadd.f32 %v2166_v26, %v2078_v48  ;;  %2408 = vmatmul.f32.gmra.mxu0 %v6431_v51  ;;  %2586 = vmatmul.f32.gmra.mxu2 %v6127_v56  ;;  %v719_v56 = vld [vmem:[#allocation5 + $0xaf0] sm:$0xff]  ;;  %v722_v48 = vld [vmem:[#allocation5 + $0xb08] sm:$0xff] }
 0x38c   : > { %2744 = vmatpush.xpose.msrb.mxu0 %v719_v56  ;;  %3011 = vmatpush.xpose.msrb.mxu3 %v722_v48  ;;  %v715_v48 = vld [vmem:[#allocation5 + $0xad0] sm:$0xff] }
 0x38d   : > { %2497 = vmatmul.f32.gmra.mxu1 %v6436_v15  ;;  %2675 = vmatmul.f32.gmra.mxu3 %v6132_v49  ;;  %v6444_v15 = vld [vmem:[%s5139_s27 + $0xe0] sm:$0xff]  ;;  %v720_v49 = vld [vmem:[#allocation5 + $0xaf8] sm:$0xff] }
 0x38e   : > { %v2255_v25 = vpop.f32.mrf.mxu2  ;;  %2833 = vmatpush.xpose.msrb.mxu1 %v720_v49  ;;  %2923 = vmatpush.xpose.msrb.mxu2 %v715_v48  ;;  %v6475_v48 = vld [vmem:[%s5139_s27 + $0x148] sm:$0xff] }
 0x38f   : > { %v2256_v43 = vadd.f32 %v2255_v25, %v2167_v40  ;;  %v6449_v40 = vld [vmem:[%s5139_s27 + $0xe8] sm:$0xff]  ;;  %8176 = vst [vmem:[#allocation24_spill] sm:$0xff] %v6475_v48 }
 0x390   : > { %v2344_v53 = vpop.f32.mrf.mxu3  ;;  %v2080_v6 = vpop.f32.mrf.mxu0  ;;  %8174 = vst [vmem:[#allocation22_spill] sm:$0xff] %v6449_v40 }
 0x391   : > { %v2081_v23 = vadd.f32 %v2080_v6, %v6283_v5  ;;  %v6441_v55 = vadd.f32 %v2344_v53, %v2256_v43 }
 0x392   : > { %v2169_v19 = vpop.f32.mrf.mxu1 }
 0x393   : > { %v2170_v26 = vadd.f32 %v2169_v19, %v2081_v23  ;;  %2411 = vmatmul.f32.gmra.mxu0 %v6444_v15  ;;  %2589 = vmatmul.f32.gmra.mxu2 %v6139_v18  ;;  %v6457_v18 = vld [vmem:[%s5139_s27 + $0x110] sm:$0xff] }
 0x395   : > { %2500 = vmatmul.f32.gmra.mxu1 %v6449_v40  ;;  %2678 = vmatmul.f32.gmra.mxu3 %v6144_v33  ;;  %v6462_v40 = vld [vmem:[%s5139_s27 + $0x118] sm:$0xff]  ;;  %v713_v33 = vld [vmem:[#allocation5 + $0xac0] sm:$0xff] }
 0x396   : > { %v2258_v25 = vpop.f32.mrf.mxu2  ;;  %8175 = vst [vmem:[#allocation23_spill] sm:$0xff] %v6462_v40  ;;  %2745 = vmatpush.xpose.msrb.mxu0 %v713_v33 }
 0x397   : > { %v2259_v43 = vadd.f32 %v2258_v25, %v2170_v26  ;;  %v716_v26 = vld [vmem:[#allocation5 + $0xad8] sm:$0xff] }
 0x398   : > { %v2347_v53 = vpop.f32.mrf.mxu3  ;;  %v2083_v17 = vpop.f32.mrf.mxu0  ;;  %3012 = vmatpush.xpose.msrb.mxu3 %v716_v26 }
 0x399   : > { %v2084_v6 = vadd.f32 %v2083_v17, %v6283_v5  ;;  %v6454_v23 = vadd.f32 %v2347_v53, %v2259_v43  ;;  %v714_v53 = vld [vmem:[#allocation5 + $0xac8] sm:$0xff] }
 0x39a   : > { %v2172_v19 = vpop.f32.mrf.mxu1  ;;  %2834 = vmatpush.xpose.msrb.mxu1 %v714_v53 }
 0x39b   : > { %v2173_v56 = vadd.f32 %v2172_v19, %v2084_v6  ;;  %2414 = vmatmul.f32.gmra.mxu0 %v6457_v18  ;;  %2592 = vmatmul.f32.gmra.mxu2 %v6151_v8 }
 0x39d   : > { %2503 = vmatmul.f32.gmra.mxu1 %v6462_v40  ;;  %2681 = vmatmul.f32.gmra.mxu3 %v6156_v2  ;;  %v6470_v2 = vld [vmem:[%s5139_s27 + $0x140] sm:$0xff] }
 0x39e   : > { %v2261_v49 = vpop.f32.mrf.mxu2 }
 0x39f   : > { %v2262_v25 = vadd.f32 %v2261_v49, %v2173_v56  ;;  %v709_v49 = vld [vmem:[#allocation5 + $0xaa0] sm:$0xff] }
 0x3a0   : > { %v2350_v43 = vpop.f32.mrf.mxu3  ;;  %v2086_v17 = vpop.f32.mrf.mxu0  ;;  %2924 = vmatpush.xpose.msrb.mxu2 %v709_v49 }
 0x3a1   : > { %v2087_v8 = vadd.f32 %v2086_v17, %v6283_v5  ;;  %v6467_v6 = vadd.f32 %v2350_v43, %v2262_v25 }
 0x3a2   : > { %v2175_v19 = vpop.f32.mrf.mxu1 }
 0x3a3   : > { %v2176_v40 = vadd.f32 %v2175_v19, %v2087_v8  ;;  %2417 = vmatmul.f32.gmra.mxu0 %v6470_v2  ;;  %2595 = vmatmul.f32.gmra.mxu2 %v6163_v0  ;;  %v707_v0 = vld [vmem:[#allocation5 + $0xa90] sm:$0xff]  ;;  %v710_v8 = vld [vmem:[#allocation5 + $0xaa8] sm:$0xff] }
 0x3a4   : > { %2746 = vmatpush.xpose.msrb.mxu0 %v707_v0  ;;  %3013 = vmatpush.xpose.msrb.mxu3 %v710_v8  ;;  %v703_v8 = vld [vmem:[#allocation5 + $0xa70] sm:$0xff] }
 0x3a5   : > { %2506 = vmatmul.f32.gmra.mxu1 %v6475_v48  ;;  %2684 = vmatmul.f32.gmra.mxu3 %v6168_v37  ;;  %v6483_v48 = vld [vmem:[%s5139_s27 + $0x170] sm:$0xff]  ;;  %v708_v37 = vld [vmem:[#allocation5 + $0xa98] sm:$0xff] }
 0x3a6   : > { %v2264_v56 = vpop.f32.mrf.mxu2  ;;  %2835 = vmatpush.xpose.msrb.mxu1 %v708_v37  ;;  %2925 = vmatpush.xpose.msrb.mxu2 %v703_v8  ;;  %v6514_v8 = vld [vmem:[%s5139_s27 + $0x1d8] sm:$0xff] }
 0x3a7   : > { %v2265_v33 = vadd.f32 %v2264_v56, %v2176_v40  ;;  %v6488_v40 = vld [vmem:[%s5139_s27 + $0x178] sm:$0xff]  ;;  %8179 = vst [vmem:[#allocation27_spill] sm:$0xff] %v6514_v8 }
 0x3a8   : > { %v2353_v26 = vpop.f32.mrf.mxu3  ;;  %v2089_v25 = vpop.f32.mrf.mxu0  ;;  %8177 = vst [vmem:[#allocation25_spill] sm:$0xff] %v6488_v40 }
 0x3a9   : > { %v2090_v43 = vadd.f32 %v2089_v25, %v6283_v5  ;;  %v6480_v53 = vadd.f32 %v2353_v26, %v2265_v33 }
 0x3aa   : > { %v2178_v17 = vpop.f32.mrf.mxu1 }
 0x3ab   : > { %v2179_v19 = vadd.f32 %v2178_v17, %v2090_v43  ;;  %2420 = vmatmul.f32.gmra.mxu0 %v6483_v48  ;;  %2598 = vmatmul.f32.gmra.mxu2 %v6175_v27  ;;  %v6496_v27 = vld [vmem:[%s5139_s27 + $0x1a0] sm:$0xff] }
 0x3ad   : > { %2509 = vmatmul.f32.gmra.mxu1 %v6488_v40  ;;  %2687 = vmatmul.f32.gmra.mxu3 %v6180_v62  ;;  %v6501_v40 = vld [vmem:[%s5139_s27 + $0x1a8] sm:$0xff]  ;;  %v701_v62 = vld [vmem:[#allocation5 + $0xa60] sm:$0xff] }
 0x3ae   : > { %v2267_v56 = vpop.f32.mrf.mxu2  ;;  %8178 = vst [vmem:[#allocation26_spill] sm:$0xff] %v6501_v40  ;;  %2747 = vmatpush.xpose.msrb.mxu0 %v701_v62 }
 0x3af   : > { %v2268_v33 = vadd.f32 %v2267_v56, %v2179_v19  ;;  %v704_v19 = vld [vmem:[#allocation5 + $0xa78] sm:$0xff] }
 0x3b0   : > { %v2356_v26 = vpop.f32.mrf.mxu3  ;;  %v2092_v49 = vpop.f32.mrf.mxu0  ;;  %3014 = vmatpush.xpose.msrb.mxu3 %v704_v19 }
 0x3b1   : > { %v2093_v25 = vadd.f32 %v2092_v49, %v6283_v5  ;;  %v6493_v43 = vadd.f32 %v2356_v26, %v2268_v33  ;;  %v702_v26 = vld [vmem:[#allocation5 + $0xa68] sm:$0xff] }
 0x3b2   : > { %v2181_v17 = vpop.f32.mrf.mxu1  ;;  %2836 = vmatpush.xpose.msrb.mxu1 %v702_v26 }
 0x3b3   : > { %v2182_v0 = vadd.f32 %v2181_v17, %v2093_v25  ;;  %2423 = vmatmul.f32.gmra.mxu0 %v6496_v27  ;;  %2601 = vmatmul.f32.gmra.mxu2 %v6187_v16 }
 0x3b5   : > { %2512 = vmatmul.f32.gmra.mxu1 %v6501_v40  ;;  %2690 = vmatmul.f32.gmra.mxu3 %v6192_v32  ;;  %v6509_v32 = vld [vmem:[%s5139_s27 + $0x1d0] sm:$0xff] }
 0x3b6   : > { %v2270_v37 = vpop.f32.mrf.mxu2 }
 0x3b7   : > { %v2271_v56 = vadd.f32 %v2270_v37, %v2182_v0  ;;  %v697_v37 = vld [vmem:[#allocation5 + $0xa40] sm:$0xff] }
 0x3b8   : > { %v2359_v33 = vpop.f32.mrf.mxu3  ;;  %v2095_v49 = vpop.f32.mrf.mxu0  ;;  %2926 = vmatpush.xpose.msrb.mxu2 %v697_v37 }
 0x3b9   : > { %v2096_v16 = vadd.f32 %v2095_v49, %v6283_v5  ;;  %v6506_v25 = vadd.f32 %v2359_v33, %v2271_v56 }
 0x3ba   : > { %v2184_v17 = vpop.f32.mrf.mxu1 }
 0x3bb   : > { %v2185_v40 = vadd.f32 %v2184_v17, %v2096_v16  ;;  %2426 = vmatmul.f32.gmra.mxu0 %v6509_v32  ;;  %2604 = vmatmul.f32.gmra.mxu2 %v6199_v58  ;;  %v695_v58 = vld [vmem:[#allocation5 + $0xa30] sm:$0xff]  ;;  %v698_v16 = vld [vmem:[#allocation5 + $0xa48] sm:$0xff] }
 0x3bc   : > { %2748 = vmatpush.xpose.msrb.mxu0 %v695_v58  ;;  %3015 = vmatpush.xpose.msrb.mxu3 %v698_v16  ;;  %v691_v16 = vld [vmem:[#allocation5 + $0xa10] sm:$0xff] }
 0x3bd   : > { %2515 = vmatmul.f32.gmra.mxu1 %v6514_v8  ;;  %2693 = vmatmul.f32.gmra.mxu3 %v6204_v63  ;;  %v6522_v8 = vld [vmem:[%s5139_s27 + $0x200] sm:$0xff]  ;;  %v696_v63 = vld [vmem:[#allocation5 + $0xa38] sm:$0xff] }
 0x3be   : > { %v2273_v0 = vpop.f32.mrf.mxu2  ;;  %2837 = vmatpush.xpose.msrb.mxu1 %v696_v63  ;;  %2927 = vmatpush.xpose.msrb.mxu2 %v691_v16  ;;  %v6553_v16 = vld [vmem:[%s5139_s27 + $0x268] sm:$0xff] }
 0x3bf   : > { %v2274_v62 = vadd.f32 %v2273_v0, %v2185_v40  ;;  %v6527_v40 = vld [vmem:[%s5139_s27 + $0x208] sm:$0xff]  ;;  %8182 = vst [vmem:[#allocation30_spill] sm:$0xff] %v6553_v16 }
 0x3c0   : > { %v2362_v19 = vpop.f32.mrf.mxu3  ;;  %v2098_v56 = vpop.f32.mrf.mxu0  ;;  %8180 = vst [vmem:[#allocation28_spill] sm:$0xff] %v6527_v40 }
 0x3c1   : > { %v2099_v33 = vadd.f32 %v2098_v56, %v6283_v5  ;;  %v6519_v26 = vadd.f32 %v2362_v19, %v2274_v62 }
 0x3c2   : > { %v2187_v49 = vpop.f32.mrf.mxu1 }
 0x3c3   : > { %v2188_v17 = vadd.f32 %v2187_v49, %v2099_v33  ;;  %2429 = vmatmul.f32.gmra.mxu0 %v6522_v8  ;;  %2607 = vmatmul.f32.gmra.mxu2 %v6211_v61  ;;  %v6535_v61 = vld [vmem:[%s5139_s27 + $0x230] sm:$0xff] }
 0x3c5   : > { %2518 = vmatmul.f32.gmra.mxu1 %v6527_v40  ;;  %2696 = vmatmul.f32.gmra.mxu3 %v6216_v57  ;;  %v6540_v40 = vld [vmem:[%s5139_s27 + $0x238] sm:$0xff]  ;;  %v689_v57 = vld [vmem:[#allocation5 + $0xa00] sm:$0xff] }
 0x3c6   : > { %v2276_v0 = vpop.f32.mrf.mxu2  ;;  %8181 = vst [vmem:[#allocation29_spill] sm:$0xff] %v6540_v40  ;;  %2749 = vmatpush.xpose.msrb.mxu0 %v689_v57 }
 0x3c7   : > { %v2277_v62 = vadd.f32 %v2276_v0, %v2188_v17  ;;  %v692_v17 = vld [vmem:[#allocation5 + $0xa18] sm:$0xff] }
 0x3c8   : > { %v2365_v19 = vpop.f32.mrf.mxu3  ;;  %v2101_v37 = vpop.f32.mrf.mxu0  ;;  %3016 = vmatpush.xpose.msrb.mxu3 %v692_v17 }
 0x3c9   : > { %v2102_v56 = vadd.f32 %v2101_v37, %v6283_v5  ;;  %v6532_v33 = vadd.f32 %v2365_v19, %v2277_v62  ;;  %v690_v19 = vld [vmem:[#allocation5 + $0xa08] sm:$0xff] }
 0x3ca   : > { %v2190_v49 = vpop.f32.mrf.mxu1  ;;  %2838 = vmatpush.xpose.msrb.mxu1 %v690_v19 }
 0x3cb   : > { %v2191_v58 = vadd.f32 %v2190_v49, %v2102_v56  ;;  %2432 = vmatmul.f32.gmra.mxu0 %v6535_v61  ;;  %2610 = vmatmul.f32.gmra.mxu2 %v6223_v38 }
 0x3cd   : > { %2521 = vmatmul.f32.gmra.mxu1 %v6540_v40  ;;  %2699 = vmatmul.f32.gmra.mxu3 %v6228_v52  ;;  %v6548_v52 = vld [vmem:[%s5139_s27 + $0x260] sm:$0xff] }
 0x3ce   : > { %v2279_v63 = vpop.f32.mrf.mxu2 }
 0x3cf   : > { %v2280_v0 = vadd.f32 %v2279_v63, %v2191_v58  ;;  %v685_v63 = vld [vmem:[#allocation5 + $0x9e0] sm:$0xff] }
 0x3d0   : > { %v2368_v62 = vpop.f32.mrf.mxu3  ;;  %v2104_v37 = vpop.f32.mrf.mxu0  ;;  %2928 = vmatpush.xpose.msrb.mxu2 %v685_v63 }
 0x3d1   : > { %v2105_v38 = vadd.f32 %v2104_v37, %v6283_v5  ;;  %v6545_v56 = vadd.f32 %v2368_v62, %v2280_v0 }
 0x3d2   : > { %v2193_v49 = vpop.f32.mrf.mxu1 }
 0x3d3   : > { %v2194_v40 = vadd.f32 %v2193_v49, %v2105_v38  ;;  %2435 = vmatmul.f32.gmra.mxu0 %v6548_v52  ;;  %2613 = vmatmul.f32.gmra.mxu2 %v6235_v35  ;;  %v683_v35 = vld [vmem:[#allocation5 + $0x9d0] sm:$0xff]  ;;  %v686_v38 = vld [vmem:[#allocation5 + $0x9e8] sm:$0xff] }
 0x3d4   : > { %2750 = vmatpush.xpose.msrb.mxu0 %v683_v35  ;;  %3017 = vmatpush.xpose.msrb.mxu3 %v686_v38  ;;  %v6579_v38 = vld [vmem:[%s5139_s27 + $0x2c8] sm:$0xff] }
 0x3d5   : > { %2524 = vmatmul.f32.gmra.mxu1 %v6553_v16  ;;  %2702 = vmatmul.f32.gmra.mxu3 %v6240_v50  ;;  %v6561_v16 = vld [vmem:[%s5139_s27 + $0x290] sm:$0xff]  ;;  %v6566_v50 = vld [vmem:[%s5139_s27 + $0x298] sm:$0xff]  ;;  %8184 = vst [vmem:[#allocation32_spill] sm:$0xff] %v6579_v38 }
 0x3d6   : > { %v2282_v58 = vpop.f32.mrf.mxu2 }
 0x3d7   : > { %v2283_v57 = vadd.f32 %v2282_v58, %v2194_v40  ;;  %v684_v40 = vld [vmem:[#allocation5 + $0x9d8] sm:$0xff] }
 0x3d8   : > { %v2371_v17 = vpop.f32.mrf.mxu3  ;;  %v2107_v0 = vpop.f32.mrf.mxu0  ;;  %2839 = vmatpush.xpose.msrb.mxu1 %v684_v40  ;;  %v680_v40 = vld [vmem:[#allocation5 + $0x9b8] sm:$0xff] }
 0x3d9   : > { %v2108_v62 = vadd.f32 %v2107_v0, %v6283_v5  ;;  %v6558_v19 = vadd.f32 %v2371_v17, %v2283_v57  ;;  %3018 = vmatpush.xpose.msrb.mxu3 %v680_v40  ;;  %v673_v40 = vld [vmem:[#allocation5 + $0x980] sm:$0xff] }
 0x3da   : > { %v2196_v37 = vpop.f32.mrf.mxu1 }
 0x3db   : > { %v2197_v49 = vadd.f32 %v2196_v37, %v2108_v62  ;;  %2438 = vmatmul.f32.gmra.mxu0 %v6561_v16  ;;  %2616 = vmatmul.f32.gmra.mxu2 %v6247_v4  ;;  %v6574_v4 = vld [vmem:[%s5139_s27 + $0x2c0] sm:$0xff] }
 0x3dc   : > { %8183 = vst [vmem:[#allocation31_spill] sm:$0xff] %v6574_v4 }
 0x3dd   : > { %2527 = vmatmul.f32.gmra.mxu1 %v6566_v50  ;;  %2705 = vmatmul.f32.gmra.mxu3 %v6252_v1  ;;  %v679_v1 = vld [vmem:[#allocation5 + $0x9b0] sm:$0xff] }
 0x3de   : > { %v2285_v58 = vpop.f32.mrf.mxu2  ;;  %2929 = vmatpush.xpose.msrb.mxu2 %v679_v1  ;;  %v6592_v1 = vld [vmem:[%s5139_s27 + $0x2f8] sm:$0xff] }
 0x3df   : > { %v2286_v57 = vadd.f32 %v2285_v58, %v2197_v49  ;;  %v677_v49 = vld [vmem:[#allocation5 + $0x9a0] sm:$0xff] }
 0x3e0   : > { %v2374_v17 = vpop.f32.mrf.mxu3  ;;  %v2110_v63 = vpop.f32.mrf.mxu0  ;;  %2751 = vmatpush.xpose.msrb.mxu0 %v677_v49 }
 0x3e1   : > { %v2111_v0 = vadd.f32 %v2110_v63, %v6283_v5  ;;  %v6571_v62 = vadd.f32 %v2374_v17, %v2286_v57  ;;  %v678_v63 = vld [vmem:[#allocation5 + $0x9a8] sm:$0xff] }
 0x3e2   : > { %v2199_v37 = vpop.f32.mrf.mxu1  ;;  %2840 = vmatpush.xpose.msrb.mxu1 %v678_v63  ;;  %2930 = vmatpush.xpose.msrb.mxu2 %v673_v40  ;;  %v674_v63 = vld [vmem:[#allocation5 + $0x988] sm:$0xff] }
 0x3e3   : > { %v2200_v35 = vadd.f32 %v2199_v37, %v2111_v0  ;;  %2441 = vmatmul.f32.gmra.mxu0 %v6574_v4  ;;  %2619 = vmatmul.f32.gmra.mxu2 %v6259_v12  ;;  %v6587_v4 = vld [vmem:[%s5139_s27 + $0x2f0] sm:$0xff] }
 0x3e4   : > { %3019 = vmatpush.xpose.msrb.mxu3 %v674_v63  ;;  %v667_v63 = vld [vmem:[#allocation5 + $0x950] sm:$0xff] }
 0x3e5   : > { %2530 = vmatmul.f32.gmra.mxu1 %v6579_v38  ;;  %2708 = vmatmul.f32.gmra.mxu3 %v6264_v31 }
 0x3e6   : > { %v2288_v58 = vpop.f32.mrf.mxu2  ;;  %2931 = vmatpush.xpose.msrb.mxu2 %v667_v63  ;;  %v6638_v63 = vld [vmem:[%s5139_s27 + $0x388] sm:$0xff] }
 0x3e7   : > { %v2289_v57 = vadd.f32 %v2288_v58, %v2200_v35 }
 0x3e8   : > { %v2377_v17 = vpop.f32.mrf.mxu3  ;;  %v2113_v0 = vpop.f32.mrf.mxu0 }
 0x3e9   : > { %v2114_v12 = vadd.f32 %v2113_v0, %v6283_v5  ;;  %v6584_v37 = vadd.f32 %v2377_v17, %v2289_v57  ;;  %v671_v17 = vld [vmem:[#allocation5 + $0x970] sm:$0xff] }
 0x3ea   : > { %v2202_v38 = vpop.f32.mrf.mxu1  ;;  %2752 = vmatpush.xpose.msrb.mxu0 %v671_v17  ;;  %v8185_v17 = vld [vmem:[#allocation34_spill] sm:$0xff] }
 0x3eb   : > { %v2203_v31 = vadd.f32 %v2202_v38, %v2114_v12  ;;  %2444 = vmatmul.f32.gmra.mxu0 %v6587_v4  ;;  %2622 = vmatmul.f32.gmra.mxu2 %v6271_v13  ;;  %v6600_v12 = vld [vmem:[%s5139_s27 + $0x320] sm:$0xff] }
 0x3ed   : > { %2533 = vmatmul.f32.gmra.mxu1 %v6592_v1  ;;  %2711 = vmatmul.f32.gmra.mxu3 %v6276_v45  ;;  %v6605_v45 = vperm.slane %v6280_v44, 3 }
 0x3ee   : > { %v2291_v35 = vpop.f32.mrf.mxu2 }
 0x3ef   : > { %v2292_v49 = vadd.f32 %v2291_v35, %v2203_v31  ;;  %v6608_v31 = vld [vmem:[%s5139_s27 + $0x328] sm:$0xff] }
 0x3f0   : > { %v2380_v5 = vpop.f32.mrf.mxu3  ;;  %v2400_v58 = vpop.f32.mrf.mxu0 }
 0x3f1   : > { %v6596_v38 = vadd.f32 %v2380_v5, %v2292_v49  ;;  %v2401_v57 = vadd.f32 %v2400_v58, %v6298_v7  ;;  %v672_v7 = vld [vmem:[#allocation5 + $0x978] sm:$0xff] }
 0x3f2   : > { %v2489_v13 = vpop.f32.mrf.mxu1  ;;  %2841 = vmatpush.xpose.msrb.mxu1 %v672_v7 }
 0x3f3   : > { %v2490_v0 = vadd.f32 %v2489_v13, %v2401_v57  ;;  %2447 = vmatmul.f32.gmra.mxu0 %v6600_v12  ;;  %2625 = vmatmul.f32.gmra.mxu2 %v6288_v29  ;;  %v6618_v13 = vld [vmem:[%s5139_s27 + $0x350] sm:$0xff] }
 0x3f5   : > { %2536 = vmatmul.f32.gmra.mxu1 %v6608_v31  ;;  %2714 = vmatmul.f32.gmra.mxu3 %v6293_v10  ;;  %4165 = vst [vmem:[%s5642_s18 + $0x10] sm:$0xff] %v2490_v0  ;;  %v6623_v10 = vld [vmem:[%s5139_s27 + $0x358] sm:$0xff] }
 0x3f6   : > { %v2578_v35 = vpop.f32.mrf.mxu2  ;;  %v668_v0 = vld [vmem:[#allocation5 + $0x958] sm:$0xff] }
 0x3f7   : > { %v2579_v49 = vadd.f32 %v2578_v35, %v6605_v45  ;;  %3020 = vmatpush.xpose.msrb.mxu3 %v668_v0 }
 0x3f8   : > { %v2667_v5 = vpop.f32.mrf.mxu3  ;;  %v2403_v29 = vpop.f32.mrf.mxu0 }
 0x3f9   : > { %v2404_v40 = vadd.f32 %v2403_v29, %v6311_v60  ;;  %v6615_v44 = vadd.f32 %v2667_v5, %v2579_v49  ;;  %v665_v60 = vld [vmem:[#allocation5 + $0x940] sm:$0xff] }
 0x3fa   : > { %v2492_v58 = vpop.f32.mrf.mxu1  ;;  %2753 = vmatpush.xpose.msrb.mxu0 %v665_v60  ;;  %v8186_v60 = vld [vmem:[#allocation12_spill] sm:$0xff] }
 0x3fb   : > { %v2493_v57 = vadd.f32 %v2492_v58, %v2404_v40  ;;  %2450 = vmatmul.f32.gmra.mxu0 %v6618_v13  ;;  %2628 = vmatmul.f32.gmra.mxu2 %v6301_v24  ;;  %v666_v24 = vld [vmem:[#allocation5 + $0x948] sm:$0xff] }
 0x3fc   : > { %2842 = vmatpush.xpose.msrb.mxu1 %v666_v24 }
 0x3fd   : > { %2539 = vmatmul.f32.gmra.mxu1 %v6623_v10  ;;  %2717 = vmatmul.f32.gmra.mxu3 %v8185_v17  ;;  %4171 = vst [vmem:[%s5642_s18 + $0x40] sm:$0xff] %v2493_v57  ;;  %v6633_v17 = vld [vmem:[%s5139_s27 + $0x380] sm:$0xff] }
 0x3fe   : > { %v2581_v7 = vpop.f32.mrf.mxu2 }
 0x3ff   : > { %v2582_v35 = vadd.f32 %v2581_v7, %v6605_v45 }
 0x400   : > { %v2670_v49 = vpop.f32.mrf.mxu3  ;;  %v2406_v5 = vpop.f32.mrf.mxu0 }
 0x401   : > { %v2407_v29 = vadd.f32 %v2406_v5, %v6324_v30  ;;  %v6630_v40 = vadd.f32 %v2670_v49, %v2582_v35  ;;  %v661_v35 = vld [vmem:[#allocation5 + $0x920] sm:$0xff] }
 0x402   : > { %v2495_v58 = vpop.f32.mrf.mxu1  ;;  %2932 = vmatpush.xpose.msrb.mxu2 %v661_v35 }
 0x403   : > { %v2496_v57 = vadd.f32 %v2495_v58, %v2407_v29  ;;  %2453 = vmatmul.f32.gmra.mxu0 %v6633_v17  ;;  %2631 = vmatmul.f32.gmra.mxu2 %v6314_v54  ;;  %v659_v29 = vld [vmem:[#allocation5 + $0x910] sm:$0xff]  ;;  %v662_v58 = vld [vmem:[#allocation5 + $0x928] sm:$0xff] }
 0x404   : > { %2754 = vmatpush.xpose.msrb.mxu0 %v659_v29  ;;  %3021 = vmatpush.xpose.msrb.mxu3 %v662_v58 }
 0x405   : > { %2542 = vmatmul.f32.gmra.mxu1 %v6638_v63  ;;  %2720 = vmatmul.f32.gmra.mxu3 %v8186_v60  ;;  %4177 = vst [vmem:[%s5642_s18 + $0x70] sm:$0xff] %v2496_v57  ;;  %v6648_v57 = vld [vmem:[%s5139_s27 + $0x3b0] sm:$0xff] }
 0x406   : > { %v2584_v0 = vpop.f32.mrf.mxu2  ;;  %8187 = vst [vmem:[#allocation33_spill] sm:$0xff] %v6648_v57 }
 0x407   : > { %v2585_v30 = vadd.f32 %v2584_v0, %v6605_v45  ;;  %v6653_v0 = vld [vmem:[%s5139_s27 + $0x3b8] sm:$0xff] }
 0x408   : > { %v2673_v7 = vpop.f32.mrf.mxu3  ;;  %v2409_v49 = vpop.f32.mrf.mxu0 }
 0x409   : > { %v2410_v24 = vadd.f32 %v2409_v49, %v6337_v3  ;;  %v6645_v54 = vadd.f32 %v2673_v7, %v2585_v30  ;;  %v8188_v3 = vld [vmem:[#allocation17_spill] sm:$0xff]  ;;  %v660_v30 = vld [vmem:[#allocation5 + $0x918] sm:$0xff] }
 0x40a   : > { %v2498_v5 = vpop.f32.mrf.mxu1  ;;  %2843 = vmatpush.xpose.msrb.mxu1 %v660_v30  ;;  %v845_v30 = vld [vmem:[#allocation5 + $0xee0] sm:$0xff] }
 0x40b   : > { %v2499_v60 = vadd.f32 %v2498_v5, %v2410_v24  ;;  %2456 = vmatmul.f32.gmra.mxu0 %v6648_v57  ;;  %2634 = vmatmul.f32.gmra.mxu2 %v6327_v46  ;;  %v6663_v57 = vld [vmem:[%s5139_s27 + $0x3e0] sm:$0xff] }
 0x40c   : > { %8189 = vst [vmem:[#allocation34_spill] sm:$0xff] %v6663_v57  ;;  %3273 = vmatpush.xpose.msra.mxu2 %v845_v30  ;;  %v6683_v30 = vld [vmem:[%s5139_s27 + $0x418] sm:$0xff] }
 0x40d   : > { %2545 = vmatmul.f32.gmra.mxu1 %v6653_v0  ;;  %2723 = vmatmul.f32.gmra.mxu3 %v8188_v3  ;;  %4183 = vst [vmem:[%s5642_s18 + $0xa0] sm:$0xff] %v2499_v60  ;;  %v6668_v60 = vld [vmem:[%s5139_s27 + $0x3e8] sm:$0xff] }
 0x40e   : > { %v2587_v7 = vpop.f32.mrf.mxu2  ;;  %8190 = vst [vmem:[#allocation12_spill] sm:$0xff] %v6668_v60  ;;  %v8191_v3 = vld [vmem:[#allocation13_spill] sm:$0xff] }
 0x40f   : > { %v2588_v35 = vadd.f32 %v2587_v7, %v6605_v45  ;;  %v846_v7 = vld [vmem:[#allocation5 + $0xee8] sm:$0xff] }
 0x410   : > { %v2676_v49 = vpop.f32.mrf.mxu3  ;;  %v2412_v24 = vpop.f32.mrf.mxu0  ;;  %3362 = vmatpush.xpose.msra.mxu3 %v846_v7 }
 0x411   : > { %v2413_v5 = vadd.f32 %v2412_v24, %v6350_v20  ;;  %v6660_v29 = vadd.f32 %v2676_v49, %v2588_v35  ;;  %v843_v20 = vld [vmem:[#allocation5 + $0xed0] sm:$0xff] }
 0x412   : > { %v2501_v46 = vpop.f32.mrf.mxu1  ;;  %3095 = vmatpush.xpose.msra.mxu0 %v843_v20  ;;  %v8192_v20 = vld [vmem:[#allocation14_spill] sm:$0xff] }
 0x413   : > { %v2502_v58 = vadd.f32 %v2501_v46, %v2413_v5  ;;  %2459 = vmatmul.f32.gmra.mxu0 %v6663_v57  ;;  %2637 = vmatmul.f32.gmra.mxu2 %v6340_v42  ;;  %v844_v42 = vld [vmem:[#allocation5 + $0xed8] sm:$0xff]  ;;  %v6678_v57 = vld [vmem:[%s5139_s27 + $0x410] sm:$0xff] }
 0x414   : > { %3184 = vmatpush.xpose.msra.mxu1 %v844_v42 }
 0x415   : > { %2548 = vmatmul.f32.gmra.mxu1 %v6668_v60  ;;  %2726 = vmatmul.f32.gmra.mxu3 %v8191_v3  ;;  %4189 = vst [vmem:[%s5642_s18 + $0xd0] sm:$0xff] %v2502_v58 }
 0x416   : > { %v2590_v35 = vpop.f32.mrf.mxu2 }
 0x417   : > { %v2591_v49 = vadd.f32 %v2590_v35, %v6605_v45 }
 0x418   : > { %v2679_v24 = vpop.f32.mrf.mxu3  ;;  %v2415_v5 = vpop.f32.mrf.mxu0 }
 0x419   : > { %v2416_v46 = vadd.f32 %v2415_v5, %v6363_v34  ;;  %v6675_v3 = vadd.f32 %v2679_v24, %v2591_v49  ;;  %v839_v49 = vld [vmem:[#allocation5 + $0xeb0] sm:$0xff] }
 0x41a   : > { %v2504_v58 = vpop.f32.mrf.mxu1  ;;  %3274 = vmatpush.xpose.msra.mxu2 %v839_v49 }
 0x41b   : > { %v2505_v60 = vadd.f32 %v2504_v58, %v2416_v46  ;;  %2462 = vmatmul.f32.gmra.mxu0 %v6678_v57  ;;  %2640 = vmatmul.f32.gmra.mxu2 %v6353_v41  ;;  %v837_v46 = vld [vmem:[#allocation5 + $0xea0] sm:$0xff]  ;;  %v840_v58 = vld [vmem:[#allocation5 + $0xeb8] sm:$0xff] }
 0x41c   : > { %3096 = vmatpush.xpose.msra.mxu0 %v837_v46  ;;  %3363 = vmatpush.xpose.msra.mxu3 %v840_v58 }
 0x41d   : > { %2551 = vmatmul.f32.gmra.mxu1 %v6683_v30  ;;  %2729 = vmatmul.f32.gmra.mxu3 %v8192_v20  ;;  %4195 = vst [vmem:[%s5642_s18 + $0x100] sm:$0xff] %v2505_v60  ;;  %v6693_v60 = vld [vmem:[%s5139_s27 + $0x440] sm:$0xff] }
 0x41e   : > { %v2593_v7 = vpop.f32.mrf.mxu2  ;;  %8193 = vst [vmem:[#allocation17_spill] sm:$0xff] %v6693_v60 }
 0x41f   : > { %v2594_v34 = vadd.f32 %v2593_v7, %v6605_v45  ;;  %v6698_v7 = vld [vmem:[%s5139_s27 + $0x448] sm:$0xff] }
 0x420   : > { %v2682_v35 = vpop.f32.mrf.mxu3  ;;  %v2418_v24 = vpop.f32.mrf.mxu0 }
 0x421   : > { %v2419_v42 = vadd.f32 %v2418_v24, %v6376_v28  ;;  %v6690_v41 = vadd.f32 %v2682_v35, %v2594_v34  ;;  %v8194_v28 = vld [vmem:[#allocation15_spill] sm:$0xff]  ;;  %v838_v34 = vld [vmem:[#allocation5 + $0xea8] sm:$0xff] }
 0x422   : > { %v2507_v5 = vpop.f32.mrf.mxu1  ;;  %3185 = vmatpush.xpose.msra.mxu1 %v838_v34  ;;  %v833_v34 = vld [vmem:[#allocation5 + $0xe80] sm:$0xff] }
 0x423   : > { %v2508_v20 = vadd.f32 %v2507_v5, %v2419_v42  ;;  %2465 = vmatmul.f32.gmra.mxu0 %v6693_v60  ;;  %2643 = vmatmul.f32.gmra.mxu2 %v6366_v36  ;;  %v6708_v60 = vld [vmem:[%s5139_s27 + $0x470] sm:$0xff] }
 0x424   : > { %8195 = vst [vmem:[#allocation13_spill] sm:$0xff] %v6708_v60  ;;  %3275 = vmatpush.xpose.msra.mxu2 %v833_v34  ;;  %v6728_v34 = vld [vmem:[%s5139_s27 + $0x18] sm:$0xff] }
 0x425   : > { %2554 = vmatmul.f32.gmra.mxu1 %v6698_v7  ;;  %2732 = vmatmul.f32.gmra.mxu3 %v8194_v28  ;;  %4201 = vst [vmem:[%s5642_s18 + $0x130] sm:$0xff] %v2508_v20  ;;  %v6713_v20 = vld [vmem:[%s5139_s27 + $0x478] sm:$0xff]  ;;  %v8197_v28 = vld [vmem:[#allocation16_spill] sm:$0xff] }
 0x426   : > { %v2596_v35 = vpop.f32.mrf.mxu2  ;;  %8196 = vst [vmem:[#allocation14_spill] sm:$0xff] %v6713_v20 }
 0x427   : > { %v2597_v49 = vadd.f32 %v2596_v35, %v6605_v45  ;;  %v834_v35 = vld [vmem:[#allocation5 + $0xe88] sm:$0xff] }
 0x428   : > { %v2685_v24 = vpop.f32.mrf.mxu3  ;;  %v2421_v42 = vpop.f32.mrf.mxu0  ;;  %3364 = vmatpush.xpose.msra.mxu3 %v834_v35 }
 0x429   : > { %v2422_v5 = vadd.f32 %v2421_v42, %v6389_v11  ;;  %v6705_v46 = vadd.f32 %v2685_v24, %v2597_v49  ;;  %v831_v11 = vld [vmem:[#allocation5 + $0xe70] sm:$0xff] }
 0x42a   : > { %v2510_v36 = vpop.f32.mrf.mxu1  ;;  %3097 = vmatpush.xpose.msra.mxu0 %v831_v11  ;;  %v8198_v11 = vld [vmem:[#allocation18_spill] sm:$0xff] }
 0x42b   : > { %v2511_v58 = vadd.f32 %v2510_v36, %v2422_v5  ;;  %2468 = vmatmul.f32.gmra.mxu0 %v6708_v60  ;;  %2646 = vmatmul.f32.gmra.mxu2 %v6379_v47  ;;  %v832_v47 = vld [vmem:[#allocation5 + $0xe78] sm:$0xff]  ;;  %v6723_v60 = vld [vmem:[%s5139_s27 + $0x10] sm:$0xff] }
 0x42c   : > { %3186 = vmatpush.xpose.msra.mxu1 %v832_v47 }
 0x42d   : > { %2557 = vmatmul.f32.gmra.mxu1 %v6713_v20  ;;  %2735 = vmatmul.f32.gmra.mxu3 %v8197_v28  ;;  %4207 = vst [vmem:[%s5642_s18 + $0x160] sm:$0xff] %v2511_v58 }
 0x42e   : > { %v2599_v49 = vpop.f32.mrf.mxu2 }
 0x42f   : > { %v2600_v24 = vadd.f32 %v2599_v49, %v6605_v45 }
 0x430   : > { %v2688_v42 = vpop.f32.mrf.mxu3  ;;  %v2424_v5 = vpop.f32.mrf.mxu0 }
 0x431   : > { %v2425_v36 = vadd.f32 %v2424_v5, %v6402_v22  ;;  %v6720_v28 = vadd.f32 %v2688_v42, %v2600_v24  ;;  %v827_v24 = vld [vmem:[#allocation5 + $0xe50] sm:$0xff] }
 0x432   : > { %v2513_v58 = vpop.f32.mrf.mxu1  ;;  %3276 = vmatpush.xpose.msra.mxu2 %v827_v24 }
 0x433   : > { %v2514_v20 = vadd.f32 %v2513_v58, %v2425_v36  ;;  %2755 = vmatmul.f32.vlgmr.msrb.gmra.mxu0 %v6723_v60  ;;  %2933 = vmatmul.f32.vlgmr.msrb.gmra.mxu2 %v6392_v39  ;;  %v825_v36 = vld [vmem:[#allocation5 + $0xe40] sm:$0xff]  ;;  %v828_v58 = vld [vmem:[#allocation5 + $0xe58] sm:$0xff] }
 0x434   : > { %3098 = vmatpush.xpose.msra.mxu0 %v825_v36  ;;  %3365 = vmatpush.xpose.msra.mxu3 %v828_v58 }
 0x435   : > { %2844 = vmatmul.f32.vlgmr.msrb.gmra.mxu1 %v6728_v34  ;;  %3022 = vmatmul.f32.vlgmr.msrb.gmra.mxu3 %v8198_v11  ;;  %4213 = vst [vmem:[%s5642_s18 + $0x190] sm:$0xff] %v2514_v20  ;;  %v6738_v20 = vld [vmem:[%s5139_s27 + $0x40] sm:$0xff] }
 0x436   : > { %v2602_v35 = vpop.f32.mrf.mxu2  ;;  %8199 = vst [vmem:[#allocation15_spill] sm:$0xff] %v6738_v20 }
 0x437   : > { %v2603_v22 = vadd.f32 %v2602_v35, %v6605_v45  ;;  %v6743_v35 = vld [vmem:[%s5139_s27 + $0x48] sm:$0xff] }
 0x438   : > { %v2691_v49 = vpop.f32.mrf.mxu3  ;;  %v2427_v42 = vpop.f32.mrf.mxu0 }
 0x439   : > { %v2428_v47 = vadd.f32 %v2427_v42, %v6415_v21  ;;  %v6735_v39 = vadd.f32 %v2691_v49, %v2603_v22  ;;  %v8200_v21 = vld [vmem:[#allocation19_spill] sm:$0xff]  ;;  %v826_v22 = vld [vmem:[#allocation5 + $0xe48] sm:$0xff] }
 0x43a   : > { %v2516_v5 = vpop.f32.mrf.mxu1  ;;  %3187 = vmatpush.xpose.msra.mxu1 %v826_v22  ;;  %v821_v22 = vld [vmem:[#allocation5 + $0xe20] sm:$0xff] }
 0x43b   : > { %v2517_v11 = vadd.f32 %v2516_v5, %v2428_v47  ;;  %2758 = vmatmul.f32.gmra.mxu0 %v6738_v20  ;;  %2936 = vmatmul.f32.gmra.mxu2 %v6405_v14  ;;  %v6753_v20 = vld [vmem:[%s5139_s27 + $0x70] sm:$0xff] }
 0x43c   : > { %8201 = vst [vmem:[#allocation16_spill] sm:$0xff] %v6753_v20  ;;  %3277 = vmatpush.xpose.msra.mxu2 %v821_v22  ;;  %v6773_v22 = vld [vmem:[%s5139_s27 + $0xa8] sm:$0xff] }
 0x43d   : > { %2847 = vmatmul.f32.gmra.mxu1 %v6743_v35  ;;  %3025 = vmatmul.f32.gmra.mxu3 %v8200_v21  ;;  %4219 = vst [vmem:[%s5642_s18 + $0x1c0] sm:$0xff] %v2517_v11  ;;  %v6758_v11 = vld [vmem:[%s5139_s27 + $0x78] sm:$0xff]  ;;  %v8203_v21 = vld [vmem:[#allocation20_spill] sm:$0xff] }
 0x43e   : > { %v2605_v49 = vpop.f32.mrf.mxu2  ;;  %8202 = vst [vmem:[#allocation18_spill] sm:$0xff] %v6758_v11 }
 0x43f   : > { %v2606_v24 = vadd.f32 %v2605_v49, %v6605_v45  ;;  %v822_v49 = vld [vmem:[#allocation5 + $0xe28] sm:$0xff] }
 0x440   : > { %v2694_v42 = vpop.f32.mrf.mxu3  ;;  %v2430_v47 = vpop.f32.mrf.mxu0  ;;  %3366 = vmatpush.xpose.msra.mxu3 %v822_v49 }
 0x441   : > { %v2431_v5 = vadd.f32 %v2430_v47, %v6428_v9  ;;  %v6750_v36 = vadd.f32 %v2694_v42, %v2606_v24  ;;  %v819_v9 = vld [vmem:[#allocation5 + $0xe10] sm:$0xff] }
 0x442   : > { %v2519_v14 = vpop.f32.mrf.mxu1  ;;  %3099 = vmatpush.xpose.msra.mxu0 %v819_v9  ;;  %v8204_v9 = vld [vmem:[#allocation21_spill] sm:$0xff] }
 0x443   : > { %v2520_v58 = vadd.f32 %v2519_v14, %v2431_v5  ;;  %2761 = vmatmul.f32.gmra.mxu0 %v6753_v20  ;;  %2939 = vmatmul.f32.gmra.mxu2 %v6418_v59  ;;  %v820_v59 = vld [vmem:[#allocation5 + $0xe18] sm:$0xff]  ;;  %v6768_v20 = vld [vmem:[%s5139_s27 + $0xa0] sm:$0xff] }
 0x444   : > { %3188 = vmatpush.xpose.msra.mxu1 %v820_v59 }
 0x445   : > { %2850 = vmatmul.f32.gmra.mxu1 %v6758_v11  ;;  %3028 = vmatmul.f32.gmra.mxu3 %v8203_v21  ;;  %4225 = vst [vmem:[%s5642_s18 + $0x1f0] sm:$0xff] %v2520_v58 }
 0x446   : > { %v2608_v24 = vpop.f32.mrf.mxu2 }
 0x447   : > { %v2609_v42 = vadd.f32 %v2608_v24, %v6605_v45 }
 0x448   : > { %v2697_v47 = vpop.f32.mrf.mxu3  ;;  %v2433_v5 = vpop.f32.mrf.mxu0 }
 0x449   : > { %v2434_v14 = vadd.f32 %v2433_v5, %v6441_v55  ;;  %v6765_v21 = vadd.f32 %v2697_v47, %v2609_v42  ;;  %v815_v42 = vld [vmem:[#allocation5 + $0xdf0] sm:$0xff] }
 0x44a   : > { %v2522_v58 = vpop.f32.mrf.mxu1  ;;  %3278 = vmatpush.xpose.msra.mxu2 %v815_v42 }
 0x44b   : > { %v2523_v11 = vadd.f32 %v2522_v58, %v2434_v14  ;;  %2764 = vmatmul.f32.gmra.mxu0 %v6768_v20  ;;  %2942 = vmatmul.f32.gmra.mxu2 %v6431_v51  ;;  %v813_v14 = vld [vmem:[#allocation5 + $0xde0] sm:$0xff]  ;;  %v816_v58 = vld [vmem:[#allocation5 + $0xdf8] sm:$0xff] }
 0x44c   : > { %3100 = vmatpush.xpose.msra.mxu0 %v813_v14  ;;  %3367 = vmatpush.xpose.msra.mxu3 %v816_v58 }
 0x44d   : > { %2853 = vmatmul.f32.gmra.mxu1 %v6773_v22  ;;  %3031 = vmatmul.f32.gmra.mxu3 %v8204_v9  ;;  %4231 = vst [vmem:[%s5642_s18 + $0x220] sm:$0xff] %v2523_v11  ;;  %v6783_v11 = vld [vmem:[%s5139_s27 + $0xd0] sm:$0xff] }
 0x44e   : > { %v2611_v49 = vpop.f32.mrf.mxu2  ;;  %8205 = vst [vmem:[#allocation19_spill] sm:$0xff] %v6783_v11 }
 0x44f   : > { %v2612_v55 = vadd.f32 %v2611_v49, %v6605_v45  ;;  %v6788_v49 = vld [vmem:[%s5139_s27 + $0xd8] sm:$0xff] }
 0x450   : > { %v2700_v24 = vpop.f32.mrf.mxu3  ;;  %v2436_v47 = vpop.f32.mrf.mxu0 }
 0x451   : > { %v2437_v59 = vadd.f32 %v2436_v47, %v6454_v23  ;;  %v6780_v51 = vadd.f32 %v2700_v24, %v2612_v55  ;;  %v8206_v23 = vld [vmem:[#allocation22_spill] sm:$0xff]  ;;  %v814_v55 = vld [vmem:[#allocation5 + $0xde8] sm:$0xff] }
 0x452   : > { %v2525_v5 = vpop.f32.mrf.mxu1  ;;  %3189 = vmatpush.xpose.msra.mxu1 %v814_v55  ;;  %v809_v55 = vld [vmem:[#allocation5 + $0xdc0] sm:$0xff] }
 0x453   : > { %v2526_v9 = vadd.f32 %v2525_v5, %v2437_v59  ;;  %2767 = vmatmul.f32.gmra.mxu0 %v6783_v11  ;;  %2945 = vmatmul.f32.gmra.mxu2 %v6444_v15  ;;  %v6798_v11 = vld [vmem:[%s5139_s27 + $0x100] sm:$0xff] }
 0x454   : > { %8207 = vst [vmem:[#allocation20_spill] sm:$0xff] %v6798_v11  ;;  %3279 = vmatpush.xpose.msra.mxu2 %v809_v55  ;;  %v6818_v55 = vld [vmem:[%s5139_s27 + $0x138] sm:$0xff] }
 0x455   : > { %2856 = vmatmul.f32.gmra.mxu1 %v6788_v49  ;;  %3034 = vmatmul.f32.gmra.mxu3 %v8206_v23  ;;  %4237 = vst [vmem:[%s5642_s18 + $0x250] sm:$0xff] %v2526_v9  ;;  %v6803_v9 = vld [vmem:[%s5139_s27 + $0x108] sm:$0xff]  ;;  %v8209_v23 = vld [vmem:[#allocation23_spill] sm:$0xff] }
 0x456   : > { %v2614_v24 = vpop.f32.mrf.mxu2  ;;  %8208 = vst [vmem:[#allocation21_spill] sm:$0xff] %v6803_v9 }
 0x457   : > { %v2615_v42 = vadd.f32 %v2614_v24, %v6605_v45  ;;  %v810_v24 = vld [vmem:[#allocation5 + $0xdc8] sm:$0xff] }
 0x458   : > { %v2703_v47 = vpop.f32.mrf.mxu3  ;;  %v2439_v59 = vpop.f32.mrf.mxu0  ;;  %3368 = vmatpush.xpose.msra.mxu3 %v810_v24 }
 0x459   : > { %v2440_v5 = vadd.f32 %v2439_v59, %v6467_v6  ;;  %v6795_v14 = vadd.f32 %v2703_v47, %v2615_v42  ;;  %v807_v6 = vld [vmem:[#allocation5 + $0xdb0] sm:$0xff] }
 0x45a   : > { %v2528_v15 = vpop.f32.mrf.mxu1  ;;  %3101 = vmatpush.xpose.msra.mxu0 %v807_v6  ;;  %v8210_v6 = vld [vmem:[#allocation24_spill] sm:$0xff] }
 0x45b   : > { %v2529_v58 = vadd.f32 %v2528_v15, %v2440_v5  ;;  %2770 = vmatmul.f32.gmra.mxu0 %v6798_v11  ;;  %2948 = vmatmul.f32.gmra.mxu2 %v6457_v18  ;;  %v808_v18 = vld [vmem:[#allocation5 + $0xdb8] sm:$0xff]  ;;  %v6813_v11 = vld [vmem:[%s5139_s27 + $0x130] sm:$0xff] }
 0x45c   : > { %3190 = vmatpush.xpose.msra.mxu1 %v808_v18 }
 0x45d   : > { %2859 = vmatmul.f32.gmra.mxu1 %v6803_v9  ;;  %3037 = vmatmul.f32.gmra.mxu3 %v8209_v23  ;;  %4243 = vst [vmem:[%s5642_s18 + $0x280] sm:$0xff] %v2529_v58 }
 0x45e   : > { %v2617_v42 = vpop.f32.mrf.mxu2 }
 0x45f   : > { %v2618_v47 = vadd.f32 %v2617_v42, %v6605_v45 }
 0x460   : > { %v2706_v59 = vpop.f32.mrf.mxu3  ;;  %v2442_v5 = vpop.f32.mrf.mxu0 }
 0x461   : > { %v2443_v15 = vadd.f32 %v2442_v5, %v6480_v53  ;;  %v6810_v23 = vadd.f32 %v2706_v59, %v2618_v47  ;;  %v803_v47 = vld [vmem:[#allocation5 + $0xd90] sm:$0xff] }
 0x462   : > { %v2531_v58 = vpop.f32.mrf.mxu1  ;;  %3280 = vmatpush.xpose.msra.mxu2 %v803_v47 }
 0x463   : > { %v2532_v9 = vadd.f32 %v2531_v58, %v2443_v15  ;;  %2773 = vmatmul.f32.gmra.mxu0 %v6813_v11  ;;  %2951 = vmatmul.f32.gmra.mxu2 %v6470_v2  ;;  %v801_v15 = vld [vmem:[#allocation5 + $0xd80] sm:$0xff]  ;;  %v804_v58 = vld [vmem:[#allocation5 + $0xd98] sm:$0xff] }
 0x464   : > { %3102 = vmatpush.xpose.msra.mxu0 %v801_v15  ;;  %3369 = vmatpush.xpose.msra.mxu3 %v804_v58 }
 0x465   : > { %2862 = vmatmul.f32.gmra.mxu1 %v6818_v55  ;;  %3040 = vmatmul.f32.gmra.mxu3 %v8210_v6  ;;  %4249 = vst [vmem:[%s5642_s18 + $0x2b0] sm:$0xff] %v2532_v9  ;;  %v6828_v9 = vld [vmem:[%s5139_s27 + $0x160] sm:$0xff] }
 0x466   : > { %v2620_v24 = vpop.f32.mrf.mxu2  ;;  %8211 = vst [vmem:[#allocation22_spill] sm:$0xff] %v6828_v9 }
 0x467   : > { %v2621_v53 = vadd.f32 %v2620_v24, %v6605_v45  ;;  %v6833_v24 = vld [vmem:[%s5139_s27 + $0x168] sm:$0xff] }
 0x468   : > { %v2709_v42 = vpop.f32.mrf.mxu3  ;;  %v2445_v59 = vpop.f32.mrf.mxu0 }
 0x469   : > { %v2446_v18 = vadd.f32 %v2445_v59, %v6493_v43  ;;  %v6825_v2 = vadd.f32 %v2709_v42, %v2621_v53  ;;  %v8212_v43 = vld [vmem:[#allocation25_spill] sm:$0xff] }
 0x46a   : > { %v2534_v5 = vpop.f32.mrf.mxu1  ;;  %v802_v53 = vld [vmem:[#allocation5 + $0xd88] sm:$0xff] }
 0x46b   : > { %v2535_v6 = vadd.f32 %v2534_v5, %v2446_v18  ;;  %2776 = vmatmul.f32.gmra.mxu0 %v6828_v9  ;;  %2954 = vmatmul.f32.gmra.mxu2 %v6483_v48  ;;  %v6843_v9 = vld [vmem:[%s5139_s27 + $0x190] sm:$0xff] }
 0x46c   : > { %3191 = vmatpush.xpose.msra.mxu1 %v802_v53  ;;  %8213 = vst [vmem:[#allocation23_spill] sm:$0xff] %v6843_v9  ;;  %v797_v53 = vld [vmem:[#allocation5 + $0xd60] sm:$0xff] }
 0x46d   : > { %2865 = vmatmul.f32.gmra.mxu1 %v6833_v24  ;;  %3043 = vmatmul.f32.gmra.mxu3 %v8212_v43  ;;  %4255 = vst [vmem:[%s5642_s18 + $0x2e0] sm:$0xff] %v2535_v6  ;;  %v6848_v6 = vld [vmem:[%s5139_s27 + $0x198] sm:$0xff] }
 0x46e   : > { %v2623_v42 = vpop.f32.mrf.mxu2  ;;  %8214 = vst [vmem:[#allocation24_spill] sm:$0xff] %v6848_v6  ;;  %v8215_v43 = vld [vmem:[#allocation26_spill] sm:$0xff]  ;;  %3281 = vmatpush.xpose.msra.mxu2 %v797_v53  ;;  %v6863_v53 = vld [vmem:[%s5139_s27 + $0x1c8] sm:$0xff] }
 0x46f   : > { %v2624_v47 = vadd.f32 %v2623_v42, %v6605_v45  ;;  %v798_v42 = vld [vmem:[#allocation5 + $0xd68] sm:$0xff] }
 0x470   : > { %v2712_v59 = vpop.f32.mrf.mxu3  ;;  %v2448_v18 = vpop.f32.mrf.mxu0  ;;  %3370 = vmatpush.xpose.msra.mxu3 %v798_v42 }
 0x471   : > { %v2449_v5 = vadd.f32 %v2448_v18, %v6506_v25  ;;  %v6840_v15 = vadd.f32 %v2712_v59, %v2624_v47  ;;  %v795_v25 = vld [vmem:[#allocation5 + $0xd50] sm:$0xff] }
 0x472   : > { %v2537_v48 = vpop.f32.mrf.mxu1  ;;  %3103 = vmatpush.xpose.msra.mxu0 %v795_v25  ;;  %v8216_v25 = vld [vmem:[#allocation27_spill] sm:$0xff] }
 0x473   : > { %v2538_v58 = vadd.f32 %v2537_v48, %v2449_v5  ;;  %2779 = vmatmul.f32.gmra.mxu0 %v6843_v9  ;;  %2957 = vmatmul.f32.gmra.mxu2 %v6496_v27  ;;  %v796_v27 = vld [vmem:[#allocation5 + $0xd58] sm:$0xff]  ;;  %v6858_v9 = vld [vmem:[%s5139_s27 + $0x1c0] sm:$0xff] }
 0x474   : > { %3192 = vmatpush.xpose.msra.mxu1 %v796_v27 }
 0x475   : > { %2868 = vmatmul.f32.gmra.mxu1 %v6848_v6  ;;  %3046 = vmatmul.f32.gmra.mxu3 %v8215_v43  ;;  %4261 = vst [vmem:[%s5642_s18 + $0x310] sm:$0xff] %v2538_v58 }
 0x476   : > { %v2626_v47 = vpop.f32.mrf.mxu2 }
 0x477   : > { %v2627_v59 = vadd.f32 %v2626_v47, %v6605_v45 }
 0x478   : > { %v2715_v18 = vpop.f32.mrf.mxu3  ;;  %v2451_v5 = vpop.f32.mrf.mxu0 }
 0x479   : > { %v2452_v48 = vadd.f32 %v2451_v5, %v6519_v26  ;;  %v6855_v43 = vadd.f32 %v2715_v18, %v2627_v59  ;;  %v791_v59 = vld [vmem:[#allocation5 + $0xd30] sm:$0xff] }
 0x47a   : > { %v2540_v58 = vpop.f32.mrf.mxu1  ;;  %3282 = vmatpush.xpose.msra.mxu2 %v791_v59 }
 0x47b   : > { %v2541_v6 = vadd.f32 %v2540_v58, %v2452_v48  ;;  %2782 = vmatmul.f32.gmra.mxu0 %v6858_v9  ;;  %2960 = vmatmul.f32.gmra.mxu2 %v6509_v32  ;;  %v789_v48 = vld [vmem:[#allocation5 + $0xd20] sm:$0xff]  ;;  %v792_v58 = vld [vmem:[#allocation5 + $0xd38] sm:$0xff] }
 0x47c   : > { %3104 = vmatpush.xpose.msra.mxu0 %v789_v48  ;;  %3371 = vmatpush.xpose.msra.mxu3 %v792_v58 }
 0x47d   : > { %2871 = vmatmul.f32.gmra.mxu1 %v6863_v53  ;;  %3049 = vmatmul.f32.gmra.mxu3 %v8216_v25  ;;  %4267 = vst [vmem:[%s5642_s18 + $0x340] sm:$0xff] %v2541_v6  ;;  %v6873_v6 = vld [vmem:[%s5139_s27 + $0x1f0] sm:$0xff] }
 0x47e   : > { %v2629_v42 = vpop.f32.mrf.mxu2  ;;  %8217 = vst [vmem:[#allocation25_spill] sm:$0xff] %v6873_v6 }
 0x47f   : > { %v2630_v26 = vadd.f32 %v2629_v42, %v6605_v45  ;;  %v6878_v42 = vld [vmem:[%s5139_s27 + $0x1f8] sm:$0xff] }
 0x480   : > { %v2718_v47 = vpop.f32.mrf.mxu3  ;;  %v2454_v18 = vpop.f32.mrf.mxu0 }
 0x481   : > { %v2455_v27 = vadd.f32 %v2454_v18, %v6532_v33  ;;  %v6870_v32 = vadd.f32 %v2718_v47, %v2630_v26  ;;  %v8218_v33 = vld [vmem:[#allocation28_spill] sm:$0xff] }
 0x482   : > { %v2543_v5 = vpop.f32.mrf.mxu1  ;;  %v790_v26 = vld [vmem:[#allocation5 + $0xd28] sm:$0xff] }
 0x483   : > { %v2544_v25 = vadd.f32 %v2543_v5, %v2455_v27  ;;  %2785 = vmatmul.f32.gmra.mxu0 %v6873_v6  ;;  %2963 = vmatmul.f32.gmra.mxu2 %v6522_v8  ;;  %v6888_v6 = vld [vmem:[%s5139_s27 + $0x220] sm:$0xff] }
 0x484   : > { %3193 = vmatpush.xpose.msra.mxu1 %v790_v26  ;;  %8219 = vst [vmem:[#allocation26_spill] sm:$0xff] %v6888_v6  ;;  %v785_v26 = vld [vmem:[#allocation5 + $0xd00] sm:$0xff] }
 0x485   : > { %2874 = vmatmul.f32.gmra.mxu1 %v6878_v42  ;;  %3052 = vmatmul.f32.gmra.mxu3 %v8218_v33  ;;  %4273 = vst [vmem:[%s5642_s18 + $0x370] sm:$0xff] %v2544_v25  ;;  %v6893_v25 = vld [vmem:[%s5139_s27 + $0x228] sm:$0xff] }
 0x486   : > { %v2632_v47 = vpop.f32.mrf.mxu2  ;;  %8220 = vst [vmem:[#allocation27_spill] sm:$0xff] %v6893_v25  ;;  %v8221_v33 = vld [vmem:[#allocation29_spill] sm:$0xff]  ;;  %3283 = vmatpush.xpose.msra.mxu2 %v785_v26  ;;  %v6908_v26 = vld [vmem:[%s5139_s27 + $0x258] sm:$0xff] }
 0x487   : > { %v2633_v59 = vadd.f32 %v2632_v47, %v6605_v45  ;;  %v786_v47 = vld [vmem:[#allocation5 + $0xd08] sm:$0xff]  ;;  %8222 = vst [vmem:[#allocation28_spill] sm:$0xff] %v6908_v26 }
 0x488   : > { %v2721_v18 = vpop.f32.mrf.mxu3  ;;  %v2457_v27 = vpop.f32.mrf.mxu0  ;;  %3372 = vmatpush.xpose.msra.mxu3 %v786_v47 }
 0x489   : > { %v2458_v5 = vadd.f32 %v2457_v27, %v6545_v56  ;;  %v6885_v48 = vadd.f32 %v2721_v18, %v2633_v59  ;;  %v783_v56 = vld [vmem:[#allocation5 + $0xcf0] sm:$0xff] }
 0x48a   : > { %v2546_v8 = vpop.f32.mrf.mxu1  ;;  %3105 = vmatpush.xpose.msra.mxu0 %v783_v56  ;;  %v8223_v56 = vld [vmem:[#allocation30_spill] sm:$0xff] }
 0x48b   : > { %v2547_v58 = vadd.f32 %v2546_v8, %v2458_v5  ;;  %2788 = vmatmul.f32.gmra.mxu0 %v6888_v6  ;;  %2966 = vmatmul.f32.gmra.mxu2 %v6535_v61  ;;  %v784_v61 = vld [vmem:[#allocation5 + $0xcf8] sm:$0xff]  ;;  %v6903_v6 = vld [vmem:[%s5139_s27 + $0x250] sm:$0xff] }
 0x48c   : > { %3194 = vmatpush.xpose.msra.mxu1 %v784_v61 }
 0x48d   : > { %2877 = vmatmul.f32.gmra.mxu1 %v6893_v25  ;;  %3055 = vmatmul.f32.gmra.mxu3 %v8221_v33  ;;  %4279 = vst [vmem:[%s5642_s18 + $0x3a0] sm:$0xff] %v2547_v58 }
 0x48e   : > { %v2635_v59 = vpop.f32.mrf.mxu2 }
 0x48f   : > { %v2636_v18 = vadd.f32 %v2635_v59, %v6605_v45 }
 0x490   : > { %v2724_v27 = vpop.f32.mrf.mxu3  ;;  %v2460_v5 = vpop.f32.mrf.mxu0 }
 0x491   : > { %v2461_v8 = vadd.f32 %v2460_v5, %v6558_v19  ;;  %v6900_v33 = vadd.f32 %v2724_v27, %v2636_v18  ;;  %v779_v18 = vld [vmem:[#allocation5 + $0xcd0] sm:$0xff] }
 0x492   : > { %v2549_v58 = vpop.f32.mrf.mxu1  ;;  %3284 = vmatpush.xpose.msra.mxu2 %v779_v18 }
 0x493   : > { %v2550_v25 = vadd.f32 %v2549_v58, %v2461_v8  ;;  %2791 = vmatmul.f32.gmra.mxu0 %v6903_v6  ;;  %2969 = vmatmul.f32.gmra.mxu2 %v6548_v52  ;;  %v6918_v58 = vld [vmem:[%s5139_s27 + $0x280] sm:$0xff] }
 0x495   : > { %2880 = vmatmul.f32.gmra.mxu1 %v6908_v26  ;;  %3058 = vmatmul.f32.gmra.mxu3 %v8223_v56  ;;  %4285 = vst [vmem:[%s5642_s18 + $0x3d0] sm:$0xff] %v2550_v25  ;;  %v777_v25 = vld [vmem:[#allocation5 + $0xcc0] sm:$0xff]  ;;  %v780_v56 = vld [vmem:[#allocation5 + $0xcd8] sm:$0xff]  ;;  %v6923_v26 = vld [vmem:[%s5139_s27 + $0x288] sm:$0xff] }
 0x496   : > { %v2638_v47 = vpop.f32.mrf.mxu2  ;;  %8224 = vst [vmem:[#allocation29_spill] sm:$0xff] %v6923_v26  ;;  %3106 = vmatpush.xpose.msra.mxu0 %v777_v25  ;;  %3373 = vmatpush.xpose.msra.mxu3 %v780_v56  ;;  %v6938_v25 = vld [vmem:[%s5139_s27 + $0x2b8] sm:$0xff]  ;;  %v8228_v56 = vld [vmem:[#allocation32_spill] sm:$0xff] }
 0x497   : > { %v2639_v19 = vadd.f32 %v2638_v47, %v6605_v45  ;;  %v778_v47 = vld [vmem:[#allocation5 + $0xcc8] sm:$0xff] }
 0x498   : > { %v2727_v59 = vpop.f32.mrf.mxu3  ;;  %v2463_v27 = vpop.f32.mrf.mxu0  ;;  %3195 = vmatpush.xpose.msra.mxu1 %v778_v47  ;;  %v771_v47 = vld [vmem:[#allocation5 + $0xc90] sm:$0xff] }
 0x499   : > { %v2464_v61 = vadd.f32 %v2463_v27, %v6571_v62  ;;  %v6915_v5 = vadd.f32 %v2727_v59, %v2639_v19 }
 0x49a   : > { %v2552_v52 = vpop.f32.mrf.mxu1  ;;  %3107 = vmatpush.xpose.msra.mxu0 %v771_v47 }
 0x49b   : > { %v2553_v8 = vadd.f32 %v2552_v52, %v2464_v61  ;;  %2794 = vmatmul.f32.gmra.mxu0 %v6918_v58  ;;  %2972 = vmatmul.f32.gmra.mxu2 %v6561_v16 }
 0x49d   : > { %2883 = vmatmul.f32.gmra.mxu1 %v6923_v26  ;;  %3061 = vmatmul.f32.gmra.mxu3 %v6566_v50  ;;  %4291 = vst [vmem:[%s5642_s18 + $0x400] sm:$0xff] %v2553_v8  ;;  %v6933_v26 = vld [vmem:[%s5139_s27 + $0x2b0] sm:$0xff]  ;;  %v8226_v50 = vld [vmem:[#allocation31_spill] sm:$0xff] }
 0x49e   : > { %v2641_v62 = vpop.f32.mrf.mxu2  ;;  %8225 = vst [vmem:[#allocation30_spill] sm:$0xff] %v6933_v26  ;;  %v773_v8 = vld [vmem:[#allocation5 + $0xca0] sm:$0xff] }
 0x49f   : > { %v2642_v19 = vadd.f32 %v2641_v62, %v6605_v45  ;;  %8227 = vst [vmem:[#allocation31_spill] sm:$0xff] %v6938_v25  ;;  %3285 = vmatpush.xpose.msra.mxu2 %v773_v8 }
 0x4a0   : > { %v2730_v16 = vpop.f32.mrf.mxu3  ;;  %v2466_v59 = vpop.f32.mrf.mxu0 }
 0x4a1   : > { %v2467_v18 = vadd.f32 %v2466_v59, %v6584_v37  ;;  %v6930_v27 = vadd.f32 %v2730_v16, %v2642_v19  ;;  %v774_v37 = vld [vmem:[#allocation5 + $0xca8] sm:$0xff]  ;;  %v772_v59 = vld [vmem:[#allocation5 + $0xc98] sm:$0xff] }
 0x4a2   : > { %v2555_v61 = vpop.f32.mrf.mxu1  ;;  %3374 = vmatpush.xpose.msra.mxu3 %v774_v37  ;;  %3196 = vmatpush.xpose.msra.mxu1 %v772_v59  ;;  %v767_v37 = vld [vmem:[#allocation5 + $0xc70] sm:$0xff] }
 0x4a3   : > { %v2556_v52 = vadd.f32 %v2555_v61, %v2467_v18  ;;  %2797 = vmatmul.f32.gmra.mxu0 %v6933_v26  ;;  %2975 = vmatmul.f32.gmra.mxu2 %v8226_v50  ;;  %v6948_v26 = vld [vmem:[%s5139_s27 + $0x2e0] sm:$0xff]  ;;  %v6963_v59 = vld [vmem:[%s5139_s27 + $0x310] sm:$0xff] }
 0x4a4   : > { %3286 = vmatpush.xpose.msra.mxu2 %v767_v37 }
 0x4a5   : > { %2886 = vmatmul.f32.gmra.mxu1 %v6938_v25  ;;  %3064 = vmatmul.f32.gmra.mxu3 %v8228_v56  ;;  %4297 = vst [vmem:[%s5642_s18 + $0x430] sm:$0xff] %v2556_v52  ;;  %v6953_v52 = vld [vmem:[%s5139_s27 + $0x2e8] sm:$0xff] }
 0x4a6   : > { %v2644_v62 = vpop.f32.mrf.mxu2 }
 0x4a7   : > { %v2645_v19 = vadd.f32 %v2644_v62, %v6605_v45 }
 0x4a8   : > { %v2733_v16 = vpop.f32.mrf.mxu3  ;;  %v2469_v18 = vpop.f32.mrf.mxu0 }
 0x4a9   : > { %v2470_v61 = vadd.f32 %v2469_v18, %v6596_v38  ;;  %v6945_v50 = vadd.f32 %v2733_v16, %v2645_v19  ;;  %v766_v18 = vld [vmem:[#allocation5 + $0xc68] sm:$0xff] }
 0x4aa   : > { %v2558_v56 = vpop.f32.mrf.mxu1  ;;  %3197 = vmatpush.xpose.msra.mxu1 %v766_v18 }
 0x4ab   : > { %v2559_v25 = vadd.f32 %v2558_v56, %v2470_v61  ;;  %2800 = vmatmul.f32.gmra.mxu0 %v6948_v26  ;;  %2978 = vmatmul.f32.gmra.mxu2 %v6587_v4 }
 0x4ad   : > { %2889 = vmatmul.f32.gmra.mxu1 %v6953_v52  ;;  %3067 = vmatmul.f32.gmra.mxu3 %v6592_v1  ;;  %4303 = vst [vmem:[%s5642_s18 + $0x460] sm:$0xff] %v2559_v25  ;;  %v765_v1 = vld [vmem:[#allocation5 + $0xc60] sm:$0xff]  ;;  %v768_v25 = vld [vmem:[#allocation5 + $0xc78] sm:$0xff] }
 0x4ae   : > { %v2647_v38 = vpop.f32.mrf.mxu2  ;;  %3108 = vmatpush.xpose.msra.mxu0 %v765_v1  ;;  %3375 = vmatpush.xpose.msra.mxu3 %v768_v25 }
 0x4af   : > { %v2648_v8 = vadd.f32 %v2647_v38, %v6605_v45  ;;  %v6968_v45 = vld [vmem:[%s5139_s27 + $0x318] sm:$0xff] }
 0x4b0   : > { %v2736_v47 = vpop.f32.mrf.mxu3  ;;  %v2756_v62 = vpop.f32.mrf.mxu0 }
 0x4b1   : > { %v6959_v19 = vadd.f32 %v2736_v47, %v2648_v8  ;;  %v2757_v16 = vadd.f32 %v2756_v62, %v6615_v44  ;;  %v6975_v62 = vld [vmem:[%s5139_s27 + $0x340] sm:$0xff] }
 0x4b2   : > { %v2845_v4 = vpop.f32.mrf.mxu1 }
 0x4b3   : > { %2803 = vmatmul.f32.gmra.mxu0 %v6963_v59  ;;  %2981 = vmatmul.f32.gmra.mxu2 %v6600_v12  ;;  %v2846_v61 = vadd.f32 %v2845_v4, %v2757_v16  ;;  %v6980_v16 = vld [vmem:[%s5139_s27 + $0x348] sm:$0xff]  ;;  %v759_v4 = vld [vmem:[#allocation5 + $0xc30] sm:$0xff] }
 0x4b4   : > { %3109 = vmatpush.xpose.msra.mxu0 %v759_v4  ;;  %v755_v4 = vld [vmem:[#allocation5 + $0xc10] sm:$0xff] }
 0x4b5   : > { %2892 = vmatmul.f32.gmra.mxu1 %v6968_v45  ;;  %3070 = vmatmul.f32.gmra.mxu3 %v6608_v31  ;;  %v761_v31 = vld [vmem:[#allocation5 + $0xc40] sm:$0xff] }
 0x4b6   : > { %v2934_v44 = vpop.f32.mrf.mxu2  ;;  %3287 = vmatpush.xpose.msra.mxu2 %v761_v31 }
 0x4b7   : > { %v2935_v56 = vadd.f32 %v2934_v44, %v2846_v61 }
 0x4b8   : > { %v3023_v38 = vpop.f32.mrf.mxu3  ;;  %v2759_v12 = vpop.f32.mrf.mxu0 }
 0x4b9   : > { %v2760_v8 = vadd.f32 %v2759_v12, %v6630_v40  ;;  %v3024_v47 = vadd.f32 %v3023_v38, %v2935_v56  ;;  %v762_v40 = vld [vmem:[#allocation5 + $0xc48] sm:$0xff] }
 0x4ba   : > { %v2848_v37 = vpop.f32.mrf.mxu1  ;;  %3376 = vmatpush.xpose.msra.mxu3 %v762_v40  ;;  %3288 = vmatpush.xpose.msra.mxu2 %v755_v4 }
 0x4bb   : > { %4166 = vst [vmem:[%s5642_s18 + $0x18] sm:$0xff] %v3024_v47  ;;  %2806 = vmatmul.f32.gmra.mxu0 %v6975_v62  ;;  %2984 = vmatmul.f32.gmra.mxu2 %v6618_v13  ;;  %v2849_v1 = vadd.f32 %v2848_v37, %v2760_v8  ;;  %v760_v13 = vld [vmem:[#allocation5 + $0xc38] sm:$0xff] }
 0x4bc   : > { %3198 = vmatpush.xpose.msra.mxu1 %v760_v13  ;;  %v6992_v8 = vld [vmem:[%s5139_s27 + $0x378] sm:$0xff] }
 0x4bd   : > { %2895 = vmatmul.f32.gmra.mxu1 %v6980_v16  ;;  %3073 = vmatmul.f32.gmra.mxu3 %v6623_v10  ;;  %v6987_v10 = vld [vmem:[%s5139_s27 + $0x370] sm:$0xff]  ;;  %v756_v13 = vld [vmem:[#allocation5 + $0xc18] sm:$0xff] }
 0x4be   : > { %v2937_v25 = vpop.f32.mrf.mxu2  ;;  %3377 = vmatpush.xpose.msra.mxu3 %v756_v13 }
 0x4bf   : > { %v2938_v18 = vadd.f32 %v2937_v25, %v2849_v1 }
 0x4c0   : > { %v3026_v61 = vpop.f32.mrf.mxu3  ;;  %v2762_v44 = vpop.f32.mrf.mxu0 }
 0x4c1   : > { %v2763_v56 = vadd.f32 %v2762_v44, %v6645_v54  ;;  %v3027_v38 = vadd.f32 %v3026_v61, %v2938_v18  ;;  %v8229_v61 = vld [vmem:[#allocation33_spill] sm:$0xff] }
 0x4c2   : > { %v2851_v12 = vpop.f32.mrf.mxu1  ;;  %v754_v44 = vld [vmem:[#allocation5 + $0xc08] sm:$0xff] }
 0x4c3   : > { %4172 = vst [vmem:[%s5642_s18 + $0x48] sm:$0xff] %v3027_v38  ;;  %2809 = vmatmul.f32.gmra.mxu0 %v6987_v10  ;;  %2987 = vmatmul.f32.gmra.mxu2 %v6633_v17  ;;  %v2852_v47 = vadd.f32 %v2851_v12, %v2763_v56  ;;  %v6999_v17 = vld [vmem:[%s5139_s27 + $0x3a0] sm:$0xff]  ;;  %v7004_v56 = vld [vmem:[%s5139_s27 + $0x3a8] sm:$0xff] }
 0x4c4   : > { %3199 = vmatpush.xpose.msra.mxu1 %v754_v44 }
 0x4c5   : > { %2898 = vmatmul.f32.gmra.mxu1 %v6992_v8  ;;  %3076 = vmatmul.f32.gmra.mxu3 %v6638_v63  ;;  %v753_v63 = vld [vmem:[#allocation5 + $0xc00] sm:$0xff] }
 0x4c6   : > { %v2940_v37 = vpop.f32.mrf.mxu2  ;;  %3110 = vmatpush.xpose.msra.mxu0 %v753_v63 }
 0x4c7   : > { %v2941_v54 = vadd.f32 %v2940_v37, %v2852_v47 }
 0x4c8   : > { %v3029_v31 = vpop.f32.mrf.mxu3  ;;  %v2765_v40 = vpop.f32.mrf.mxu0 }
 0x4c9   : > { %v2766_v1 = vadd.f32 %v2765_v40, %v6660_v29  ;;  %v3030_v25 = vadd.f32 %v3029_v31, %v2941_v54  ;;  %v7011_v40 = vld [vmem:[%s5139_s27 + $0x3d0] sm:$0xff] }
 0x4ca   : > { %v2854_v18 = vpop.f32.mrf.mxu1 }
 0x4cb   : > { %4178 = vst [vmem:[%s5642_s18 + $0x78] sm:$0xff] %v3030_v25  ;;  %2812 = vmatmul.f32.gmra.mxu0 %v6999_v17  ;;  %2990 = vmatmul.f32.gmra.mxu2 %v8229_v61  ;;  %v2855_v29 = vadd.f32 %v2854_v18, %v2766_v1  ;;  %v8230_v25 = vld [vmem:[#allocation34_spill] sm:$0xff]  ;;  %v8231_v18 = vld [vmem:[#allocation12_spill] sm:$0xff] }
 0x4cc   : > { %v7016_v1 = vld [vmem:[%s5139_s27 + $0x3d8] sm:$0xff]  ;;  %v847_v61 = vld [vmem:[#allocation5 + $0xef0] sm:$0xff] }
 0x4cd   : > { %2901 = vmatmul.f32.gmra.mxu1 %v7004_v56  ;;  %3079 = vmatmul.f32.gmra.mxu3 %v6653_v0  ;;  %v939_v0 = vld [vmem:[#allocation5 + $0x11d0] sm:$0xff] }
 0x4ce   : > { %v2943_v38 = vpop.f32.mrf.mxu2  ;;  %3629 = vmatpush.xpose.msrb.mxu2 %v939_v0  ;;  %3451 = vmatpush.xpose.msrb.mxu0 %v847_v61  ;;  %v933_v61 = vld [vmem:[#allocation5 + $0x11a0] sm:$0xff] }
 0x4cf   : > { %v2944_v12 = vadd.f32 %v2943_v38, %v2855_v29  ;;  %v848_v38 = vld [vmem:[#allocation5 + $0xef8] sm:$0xff] }
 0x4d0   : > { %v3032_v47 = vpop.f32.mrf.mxu3  ;;  %v2768_v37 = vpop.f32.mrf.mxu0  ;;  %3540 = vmatpush.xpose.msrb.mxu1 %v848_v38  ;;  %v934_v38 = vld [vmem:[#allocation5 + $0x11a8] sm:$0xff] }
 0x4d1   : > { %v2769_v54 = vadd.f32 %v2768_v37, %v6675_v3  ;;  %v3033_v31 = vadd.f32 %v3032_v47, %v2944_v12  ;;  %v940_v3 = vld [vmem:[#allocation5 + $0x11d8] sm:$0xff] }
 0x4d2   : > { %v2857_v4 = vpop.f32.mrf.mxu1  ;;  %3718 = vmatpush.xpose.msrb.mxu3 %v940_v3  ;;  %3630 = vmatpush.xpose.msrb.mxu2 %v933_v61 }
 0x4d3   : > { %4184 = vst [vmem:[%s5642_s18 + $0xa8] sm:$0xff] %v3033_v31  ;;  %2815 = vmatmul.f32.gmra.mxu0 %v7011_v40  ;;  %2993 = vmatmul.f32.gmra.mxu2 %v8230_v25  ;;  %v2858_v63 = vadd.f32 %v2857_v4, %v2769_v54  ;;  %v7023_v25 = vld [vmem:[%s5139_s27 + $0x400] sm:$0xff]  ;;  %v7028_v54 = vld [vmem:[%s5139_s27 + $0x408] sm:$0xff] }
 0x4d5   : > { %2904 = vmatmul.f32.gmra.mxu1 %v7016_v1  ;;  %3082 = vmatmul.f32.gmra.mxu3 %v8231_v18 }
 0x4d6   : > { %v2946_v13 = vpop.f32.mrf.mxu2  ;;  %3719 = vmatpush.xpose.msrb.mxu3 %v934_v38 }
 0x4d7   : > { %v2947_v44 = vadd.f32 %v2946_v13, %v2858_v63 }
 0x4d8   : > { %v3035_v29 = vpop.f32.mrf.mxu3  ;;  %v2771_v12 = vpop.f32.mrf.mxu0 }
 0x4d9   : > { %v2772_v47 = vadd.f32 %v2771_v12, %v6690_v41  ;;  %v3036_v37 = vadd.f32 %v3035_v29, %v2947_v44  ;;  %v8232_v29 = vld [vmem:[#allocation17_spill] sm:$0xff] }
 0x4da   : > { %v2860_v31 = vpop.f32.mrf.mxu1  ;;  %v842_v12 = vld [vmem:[#allocation5 + $0xec8] sm:$0xff] }
 0x4db   : > { %4190 = vst [vmem:[%s5642_s18 + $0xd8] sm:$0xff] %v3036_v37  ;;  %2818 = vmatmul.f32.gmra.mxu0 %v7023_v25  ;;  %2996 = vmatmul.f32.gmra.mxu2 %v6678_v57  ;;  %v2861_v4 = vadd.f32 %v2860_v31, %v2772_v47  ;;  %v7035_v57 = vld [vmem:[%s5139_s27 + $0x430] sm:$0xff]  ;;  %v7040_v47 = vld [vmem:[%s5139_s27 + $0x438] sm:$0xff] }
 0x4dc   : > { %3541 = vmatpush.xpose.msrb.mxu1 %v842_v12 }
 0x4dd   : > { %2907 = vmatmul.f32.gmra.mxu1 %v7028_v54  ;;  %3085 = vmatmul.f32.gmra.mxu3 %v6683_v30  ;;  %v841_v30 = vld [vmem:[#allocation5 + $0xec0] sm:$0xff] }
 0x4de   : > { %v2949_v0 = vpop.f32.mrf.mxu2  ;;  %3452 = vmatpush.xpose.msrb.mxu0 %v841_v30 }
 0x4df   : > { %v2950_v41 = vadd.f32 %v2949_v0, %v2861_v4 }
 0x4e0   : > { %v3038_v18 = vpop.f32.mrf.mxu3  ;;  %v2774_v3 = vpop.f32.mrf.mxu0 }
 0x4e1   : > { %v2775_v63 = vadd.f32 %v2774_v3, %v6705_v46  ;;  %v3039_v13 = vadd.f32 %v3038_v18, %v2950_v41  ;;  %v7047_v3 = vld [vmem:[%s5139_s27 + $0x460] sm:$0xff] }
 0x4e2   : > { %v2863_v44 = vpop.f32.mrf.mxu1 }
 0x4e3   : > { %4196 = vst [vmem:[%s5642_s18 + $0x108] sm:$0xff] %v3039_v13  ;;  %2821 = vmatmul.f32.gmra.mxu0 %v7035_v57  ;;  %2999 = vmatmul.f32.gmra.mxu2 %v8232_v29  ;;  %v2864_v46 = vadd.f32 %v2863_v44, %v2775_v63  ;;  %v8233_v13 = vld [vmem:[#allocation13_spill] sm:$0xff]  ;;  %v8234_v44 = vld [vmem:[#allocation14_spill] sm:$0xff] }
 0x4e4   : > { %v7052_v63 = vld [vmem:[%s5139_s27 + $0x468] sm:$0xff]  ;;  %v835_v29 = vld [vmem:[#allocation5 + $0xe90] sm:$0xff] }
 0x4e5   : > { %2910 = vmatmul.f32.gmra.mxu1 %v7040_v47  ;;  %3088 = vmatmul.f32.gmra.mxu3 %v6698_v7  ;;  %v927_v7 = vld [vmem:[#allocation5 + $0x1170] sm:$0xff] }
 0x4e6   : > { %v2952_v37 = vpop.f32.mrf.mxu2  ;;  %3631 = vmatpush.xpose.msrb.mxu2 %v927_v7  ;;  %3453 = vmatpush.xpose.msrb.mxu0 %v835_v29  ;;  %v921_v29 = vld [vmem:[#allocation5 + $0x1140] sm:$0xff] }
 0x4e7   : > { %v2953_v31 = vadd.f32 %v2952_v37, %v2864_v46  ;;  %v836_v37 = vld [vmem:[#allocation5 + $0xe98] sm:$0xff] }
 0x4e8   : > { %v3041_v4 = vpop.f32.mrf.mxu3  ;;  %v2777_v0 = vpop.f32.mrf.mxu0  ;;  %3542 = vmatpush.xpose.msrb.mxu1 %v836_v37  ;;  %v922_v37 = vld [vmem:[#allocation5 + $0x1148] sm:$0xff] }
 0x4e9   : > { %v2778_v41 = vadd.f32 %v2777_v0, %v6720_v28  ;;  %v3042_v18 = vadd.f32 %v3041_v4, %v2953_v31  ;;  %v928_v28 = vld [vmem:[#allocation5 + $0x1178] sm:$0xff] }
 0x4ea   : > { %v2866_v61 = vpop.f32.mrf.mxu1  ;;  %3720 = vmatpush.xpose.msrb.mxu3 %v928_v28  ;;  %3632 = vmatpush.xpose.msrb.mxu2 %v921_v29 }
 0x4eb   : > { %4202 = vst [vmem:[%s5642_s18 + $0x138] sm:$0xff] %v3042_v18  ;;  %2824 = vmatmul.f32.gmra.mxu0 %v7047_v3  ;;  %3002 = vmatmul.f32.gmra.mxu2 %v8233_v13  ;;  %v2867_v30 = vadd.f32 %v2866_v61, %v2778_v41  ;;  %v7059_v13 = vld [vmem:[%s5139_s27] sm:$0xff]  ;;  %v7064_v41 = vld [vmem:[%s5139_s27 + $0x8] sm:$0xff] }
 0x4ed   : > { %2913 = vmatmul.f32.gmra.mxu1 %v7052_v63  ;;  %3091 = vmatmul.f32.gmra.mxu3 %v8234_v44 }
 0x4ee   : > { %v2955_v38 = vpop.f32.mrf.mxu2  ;;  %3721 = vmatpush.xpose.msrb.mxu3 %v922_v37 }
 0x4ef   : > { %v2956_v12 = vadd.f32 %v2955_v38, %v2867_v30 }
 0x4f0   : > { %v3044_v46 = vpop.f32.mrf.mxu3  ;;  %v2780_v31 = vpop.f32.mrf.mxu0 }
 0x4f1   : > { %v2781_v4 = vadd.f32 %v2780_v31, %v6735_v39  ;;  %v3045_v0 = vadd.f32 %v3044_v46, %v2956_v12  ;;  %v8235_v46 = vld [vmem:[#allocation15_spill] sm:$0xff]  ;;  %v830_v31 = vld [vmem:[#allocation5 + $0xe68] sm:$0xff] }
 0x4f2   : > { %v2869_v18 = vpop.f32.mrf.mxu1  ;;  %3543 = vmatpush.xpose.msrb.mxu1 %v830_v31 }
 0x4f3   : > { %4208 = vst [vmem:[%s5642_s18 + $0x168] sm:$0xff] %v3045_v0  ;;  %3111 = vmatmul.f32.vlgmr.msra.gmra.mxu0 %v7059_v13  ;;  %3289 = vmatmul.f32.vlgmr.msra.gmra.mxu2 %v6723_v60  ;;  %v2870_v61 = vadd.f32 %v2869_v18, %v2781_v4  ;;  %v7071_v60 = vld [vmem:[%s5139_s27 + $0x30] sm:$0xff]  ;;  %v7076_v4 = vld [vmem:[%s5139_s27 + $0x38] sm:$0xff] }
 0x4f5   : > { %3200 = vmatmul.f32.vlgmr.msra.gmra.mxu1 %v7064_v41  ;;  %3378 = vmatmul.f32.vlgmr.msra.gmra.mxu3 %v6728_v34  ;;  %v829_v34 = vld [vmem:[#allocation5 + $0xe60] sm:$0xff] }
 0x4f6   : > { %v2958_v7 = vpop.f32.mrf.mxu2  ;;  %3454 = vmatpush.xpose.msrb.mxu0 %v829_v34 }
 0x4f7   : > { %v2959_v39 = vadd.f32 %v2958_v7, %v2870_v61 }
 0x4f8   : > { %v3047_v44 = vpop.f32.mrf.mxu3  ;;  %v2783_v28 = vpop.f32.mrf.mxu0 }
 0x4f9   : > { %v2784_v30 = vadd.f32 %v2783_v28, %v6750_v36  ;;  %v3048_v38 = vadd.f32 %v3047_v44, %v2959_v39  ;;  %v7083_v28 = vld [vmem:[%s5139_s27 + $0x60] sm:$0xff] }
 0x4fa   : > { %v2872_v12 = vpop.f32.mrf.mxu1 }
 0x4fb   : > { %4214 = vst [vmem:[%s5642_s18 + $0x198] sm:$0xff] %v3048_v38  ;;  %3114 = vmatmul.f32.gmra.mxu0 %v7071_v60  ;;  %3292 = vmatmul.f32.gmra.mxu2 %v8235_v46  ;;  %v2873_v36 = vadd.f32 %v2872_v12, %v2784_v30  ;;  %v8236_v38 = vld [vmem:[#allocation16_spill] sm:$0xff]  ;;  %v8237_v12 = vld [vmem:[#allocation18_spill] sm:$0xff] }
 0x4fc   : > { %v7088_v30 = vld [vmem:[%s5139_s27 + $0x68] sm:$0xff]  ;;  %v823_v46 = vld [vmem:[#allocation5 + $0xe30] sm:$0xff] }
 0x4fd   : > { %3203 = vmatmul.f32.gmra.mxu1 %v7076_v4  ;;  %3381 = vmatmul.f32.gmra.mxu3 %v6743_v35  ;;  %v915_v35 = vld [vmem:[#allocation5 + $0x1110] sm:$0xff] }
 0x4fe   : > { %v2961_v0 = vpop.f32.mrf.mxu2  ;;  %3633 = vmatpush.xpose.msrb.mxu2 %v915_v35  ;;  %3455 = vmatpush.xpose.msrb.mxu0 %v823_v46  ;;  %v909_v46 = vld [vmem:[#allocation5 + $0x10e0] sm:$0xff] }
 0x4ff   : > { %v2962_v18 = vadd.f32 %v2961_v0, %v2873_v36  ;;  %v824_v0 = vld [vmem:[#allocation5 + $0xe38] sm:$0xff] }
 0x500   : > { %v3050_v61 = vpop.f32.mrf.mxu3  ;;  %v2786_v7 = vpop.f32.mrf.mxu0  ;;  %3544 = vmatpush.xpose.msrb.mxu1 %v824_v0  ;;  %v910_v0 = vld [vmem:[#allocation5 + $0x10e8] sm:$0xff] }
 0x501   : > { %v2787_v39 = vadd.f32 %v2786_v7, %v6765_v21  ;;  %v3051_v44 = vadd.f32 %v3050_v61, %v2962_v18  ;;  %v916_v21 = vld [vmem:[#allocation5 + $0x1118] sm:$0xff] }
 0x502   : > { %v2875_v29 = vpop.f32.mrf.mxu1  ;;  %3722 = vmatpush.xpose.msrb.mxu3 %v916_v21  ;;  %3634 = vmatpush.xpose.msrb.mxu2 %v909_v46 }
 0x503   : > { %4220 = vst [vmem:[%s5642_s18 + $0x1c8] sm:$0xff] %v3051_v44  ;;  %3117 = vmatmul.f32.gmra.mxu0 %v7083_v28  ;;  %3295 = vmatmul.f32.gmra.mxu2 %v8236_v38  ;;  %v2876_v34 = vadd.f32 %v2875_v29, %v2787_v39  ;;  %v7095_v38 = vld [vmem:[%s5139_s27 + $0x90] sm:$0xff]  ;;  %v7100_v39 = vld [vmem:[%s5139_s27 + $0x98] sm:$0xff] }
 0x505   : > { %3206 = vmatmul.f32.gmra.mxu1 %v7088_v30  ;;  %3384 = vmatmul.f32.gmra.mxu3 %v8237_v12 }
 0x506   : > { %v2964_v37 = vpop.f32.mrf.mxu2  ;;  %3723 = vmatpush.xpose.msrb.mxu3 %v910_v0 }
 0x507   : > { %v2965_v31 = vadd.f32 %v2964_v37, %v2876_v34 }
 0x508   : > { %v3053_v36 = vpop.f32.mrf.mxu3  ;;  %v2789_v18 = vpop.f32.mrf.mxu0 }
 0x509   : > { %v2790_v61 = vadd.f32 %v2789_v18, %v6780_v51  ;;  %v3054_v7 = vadd.f32 %v3053_v36, %v2965_v31  ;;  %v8238_v36 = vld [vmem:[#allocation19_spill] sm:$0xff]  ;;  %v818_v18 = vld [vmem:[#allocation5 + $0xe08] sm:$0xff] }
 0x50a   : > { %v2878_v44 = vpop.f32.mrf.mxu1  ;;  %3545 = vmatpush.xpose.msrb.mxu1 %v818_v18 }
 0x50b   : > { %4226 = vst [vmem:[%s5642_s18 + $0x1f8] sm:$0xff] %v3054_v7  ;;  %3120 = vmatmul.f32.gmra.mxu0 %v7095_v38  ;;  %3298 = vmatmul.f32.gmra.mxu2 %v6768_v20  ;;  %v2879_v29 = vadd.f32 %v2878_v44, %v2790_v61  ;;  %v7107_v20 = vld [vmem:[%s5139_s27 + $0xc0] sm:$0xff]  ;;  %v7112_v61 = vld [vmem:[%s5139_s27 + $0xc8] sm:$0xff] }
 0x50d   : > { %3209 = vmatmul.f32.gmra.mxu1 %v7100_v39  ;;  %3387 = vmatmul.f32.gmra.mxu3 %v6773_v22  ;;  %v817_v22 = vld [vmem:[#allocation5 + $0xe00] sm:$0xff] }
 0x50e   : > { %v2967_v35 = vpop.f32.mrf.mxu2  ;;  %3456 = vmatpush.xpose.msrb.mxu0 %v817_v22 }
 0x50f   : > { %v2968_v51 = vadd.f32 %v2967_v35, %v2879_v29 }
 0x510   : > { %v3056_v12 = vpop.f32.mrf.mxu3  ;;  %v2792_v21 = vpop.f32.mrf.mxu0 }
 0x511   : > { %v2793_v34 = vadd.f32 %v2792_v21, %v6795_v14  ;;  %v3057_v37 = vadd.f32 %v3056_v12, %v2968_v51  ;;  %v7119_v21 = vld [vmem:[%s5139_s27 + $0xf0] sm:$0xff] }
 0x512   : > { %v2881_v31 = vpop.f32.mrf.mxu1 }
 0x513   : > { %4232 = vst [vmem:[%s5642_s18 + $0x228] sm:$0xff] %v3057_v37  ;;  %3123 = vmatmul.f32.gmra.mxu0 %v7107_v20  ;;  %3301 = vmatmul.f32.gmra.mxu2 %v8238_v36  ;;  %v2882_v14 = vadd.f32 %v2881_v31, %v2793_v34  ;;  %v8239_v37 = vld [vmem:[#allocation20_spill] sm:$0xff]  ;;  %v7124_v34 = vld [vmem:[%s5139_s27 + $0xf8] sm:$0xff]  ;;  %v8240_v31 = vld [vmem:[#allocation21_spill] sm:$0xff] }
 0x514   : > { %v811_v36 = vld [vmem:[#allocation5 + $0xdd0] sm:$0xff] }
 0x515   : > { %3212 = vmatmul.f32.gmra.mxu1 %v7112_v61  ;;  %3390 = vmatmul.f32.gmra.mxu3 %v6788_v49  ;;  %v903_v49 = vld [vmem:[#allocation5 + $0x10b0] sm:$0xff] }
 0x516   : > { %v2970_v7 = vpop.f32.mrf.mxu2  ;;  %3635 = vmatpush.xpose.msrb.mxu2 %v903_v49  ;;  %3457 = vmatpush.xpose.msrb.mxu0 %v811_v36  ;;  %v897_v36 = vld [vmem:[#allocation5 + $0x1080] sm:$0xff] }
 0x517   : > { %v2971_v44 = vadd.f32 %v2970_v7, %v2882_v14  ;;  %v812_v7 = vld [vmem:[#allocation5 + $0xdd8] sm:$0xff] }
 0x518   : > { %v3059_v29 = vpop.f32.mrf.mxu3  ;;  %v2795_v35 = vpop.f32.mrf.mxu0  ;;  %3546 = vmatpush.xpose.msrb.mxu1 %v812_v7  ;;  %v898_v7 = vld [vmem:[#allocation5 + $0x1088] sm:$0xff] }
 0x519   : > { %v2796_v51 = vadd.f32 %v2795_v35, %v6810_v23  ;;  %v3060_v12 = vadd.f32 %v3059_v29, %v2971_v44  ;;  %v904_v23 = vld [vmem:[#allocation5 + $0x10b8] sm:$0xff] }
 0x51a   : > { %v2884_v46 = vpop.f32.mrf.mxu1  ;;  %3724 = vmatpush.xpose.msrb.mxu3 %v904_v23  ;;  %3636 = vmatpush.xpose.msrb.mxu2 %v897_v36 }
 0x51b   : > { %4238 = vst [vmem:[%s5642_s18 + $0x258] sm:$0xff] %v3060_v12  ;;  %3126 = vmatmul.f32.gmra.mxu0 %v7119_v21  ;;  %3304 = vmatmul.f32.gmra.mxu2 %v8239_v37  ;;  %v2885_v22 = vadd.f32 %v2884_v46, %v2796_v51  ;;  %v7131_v37 = vld [vmem:[%s5139_s27 + $0x120] sm:$0xff]  ;;  %v7136_v51 = vld [vmem:[%s5139_s27 + $0x128] sm:$0xff] }
 0x51d   : > { %3215 = vmatmul.f32.gmra.mxu1 %v7124_v34  ;;  %3393 = vmatmul.f32.gmra.mxu3 %v8240_v31 }
 0x51e   : > { %v2973_v0 = vpop.f32.mrf.mxu2  ;;  %3725 = vmatpush.xpose.msrb.mxu3 %v898_v7 }
 0x51f   : > { %v2974_v18 = vadd.f32 %v2973_v0, %v2885_v22 }
 0x520   : > { %v3062_v14 = vpop.f32.mrf.mxu3  ;;  %v2798_v44 = vpop.f32.mrf.mxu0 }
 0x521   : > { %v2799_v29 = vadd.f32 %v2798_v44, %v6825_v2  ;;  %v3063_v35 = vadd.f32 %v3062_v14, %v2974_v18  ;;  %v8241_v14 = vld [vmem:[#allocation22_spill] sm:$0xff]  ;;  %v806_v44 = vld [vmem:[#allocation5 + $0xda8] sm:$0xff] }
 0x522   : > { %v2887_v12 = vpop.f32.mrf.mxu1  ;;  %3547 = vmatpush.xpose.msrb.mxu1 %v806_v44 }
 0x523   : > { %4244 = vst [vmem:[%s5642_s18 + $0x288] sm:$0xff] %v3063_v35  ;;  %3129 = vmatmul.f32.gmra.mxu0 %v7131_v37  ;;  %3307 = vmatmul.f32.gmra.mxu2 %v6813_v11  ;;  %v2888_v46 = vadd.f32 %v2887_v12, %v2799_v29  ;;  %v7143_v11 = vld [vmem:[%s5139_s27 + $0x150] sm:$0xff]  ;;  %v7148_v29 = vld [vmem:[%s5139_s27 + $0x158] sm:$0xff] }
 0x525   : > { %3218 = vmatmul.f32.gmra.mxu1 %v7136_v51  ;;  %3396 = vmatmul.f32.gmra.mxu3 %v6818_v55  ;;  %v805_v55 = vld [vmem:[#allocation5 + $0xda0] sm:$0xff] }
 0x526   : > { %v2976_v49 = vpop.f32.mrf.mxu2  ;;  %3458 = vmatpush.xpose.msrb.mxu0 %v805_v55 }
 0x527   : > { %v2977_v2 = vadd.f32 %v2976_v49, %v2888_v46 }
 0x528   : > { %v3065_v31 = vpop.f32.mrf.mxu3  ;;  %v2801_v23 = vpop.f32.mrf.mxu0 }
 0x529   : > { %v2802_v22 = vadd.f32 %v2801_v23, %v6840_v15  ;;  %v3066_v0 = vadd.f32 %v3065_v31, %v2977_v2  ;;  %v7155_v23 = vld [vmem:[%s5139_s27 + $0x180] sm:$0xff] }
 0x52a   : > { %v2890_v18 = vpop.f32.mrf.mxu1 }
 0x52b   : > { %4250 = vst [vmem:[%s5642_s18 + $0x2b8] sm:$0xff] %v3066_v0  ;;  %3132 = vmatmul.f32.gmra.mxu0 %v7143_v11  ;;  %3310 = vmatmul.f32.gmra.mxu2 %v8241_v14  ;;  %v2891_v15 = vadd.f32 %v2890_v18, %v2802_v22  ;;  %v8242_v0 = vld [vmem:[#allocation23_spill] sm:$0xff]  ;;  %v7160_v22 = vld [vmem:[%s5139_s27 + $0x188] sm:$0xff]  ;;  %v799_v14 = vld [vmem:[#allocation5 + $0xd70] sm:$0xff] }
 0x52c   : > { %v8243_v18 = vld [vmem:[#allocation24_spill] sm:$0xff]  ;;  %3459 = vmatpush.xpose.msrb.mxu0 %v799_v14 }
 0x52d   : > { %3221 = vmatmul.f32.gmra.mxu1 %v7148_v29  ;;  %3399 = vmatmul.f32.gmra.mxu3 %v6833_v24  ;;  %v891_v24 = vld [vmem:[#allocation5 + $0x1050] sm:$0xff]  ;;  %v885_v14 = vld [vmem:[#allocation5 + $0x1020] sm:$0xff] }
 0x52e   : > { %v2979_v35 = vpop.f32.mrf.mxu2  ;;  %3637 = vmatpush.xpose.msrb.mxu2 %v891_v24 }
 0x52f   : > { %v2980_v12 = vadd.f32 %v2979_v35, %v2891_v15  ;;  %v800_v35 = vld [vmem:[#allocation5 + $0xd78] sm:$0xff] }
 0x530   : > { %v3068_v46 = vpop.f32.mrf.mxu3  ;;  %v2804_v49 = vpop.f32.mrf.mxu0  ;;  %3548 = vmatpush.xpose.msrb.mxu1 %v800_v35  ;;  %v886_v35 = vld [vmem:[#allocation5 + $0x1028] sm:$0xff] }
 0x531   : > { %v2805_v2 = vadd.f32 %v2804_v49, %v6855_v43  ;;  %v3069_v31 = vadd.f32 %v3068_v46, %v2980_v12  ;;  %v892_v43 = vld [vmem:[#allocation5 + $0x1058] sm:$0xff] }
 0x532   : > { %v2893_v36 = vpop.f32.mrf.mxu1  ;;  %3726 = vmatpush.xpose.msrb.mxu3 %v892_v43  ;;  %3638 = vmatpush.xpose.msrb.mxu2 %v885_v14 }
 0x533   : > { %4256 = vst [vmem:[%s5642_s18 + $0x2e8] sm:$0xff] %v3069_v31  ;;  %3135 = vmatmul.f32.gmra.mxu0 %v7155_v23  ;;  %3313 = vmatmul.f32.gmra.mxu2 %v8242_v0  ;;  %v2894_v55 = vadd.f32 %v2893_v36, %v2805_v2  ;;  %v7167_v0 = vld [vmem:[%s5139_s27 + $0x1b0] sm:$0xff]  ;;  %v7172_v2 = vld [vmem:[%s5139_s27 + $0x1b8] sm:$0xff] }
 0x535   : > { %3224 = vmatmul.f32.gmra.mxu1 %v7160_v22  ;;  %3402 = vmatmul.f32.gmra.mxu3 %v8243_v18 }
 0x536   : > { %v2982_v7 = vpop.f32.mrf.mxu2  ;;  %3727 = vmatpush.xpose.msrb.mxu3 %v886_v35 }
 0x537   : > { %v2983_v44 = vadd.f32 %v2982_v7, %v2894_v55 }
 0x538   : > { %v3071_v15 = vpop.f32.mrf.mxu3  ;;  %v2807_v12 = vpop.f32.mrf.mxu0 }
 0x539   : > { %v2808_v46 = vadd.f32 %v2807_v12, %v6870_v32  ;;  %v3072_v49 = vadd.f32 %v3071_v15, %v2983_v44  ;;  %v8244_v15 = vld [vmem:[#allocation25_spill] sm:$0xff] }
 0x53a   : > { %v2896_v31 = vpop.f32.mrf.mxu1  ;;  %v794_v12 = vld [vmem:[#allocation5 + $0xd48] sm:$0xff] }
 0x53b   : > { %4262 = vst [vmem:[%s5642_s18 + $0x318] sm:$0xff] %v3072_v49  ;;  %3138 = vmatmul.f32.gmra.mxu0 %v7167_v0  ;;  %3316 = vmatmul.f32.gmra.mxu2 %v6858_v9  ;;  %v2897_v36 = vadd.f32 %v2896_v31, %v2808_v46  ;;  %v7179_v9 = vld [vmem:[%s5139_s27 + $0x1e0] sm:$0xff]  ;;  %v7184_v46 = vld [vmem:[%s5139_s27 + $0x1e8] sm:$0xff] }
 0x53c   : > { %3549 = vmatpush.xpose.msrb.mxu1 %v794_v12 }
 0x53d   : > { %3227 = vmatmul.f32.gmra.mxu1 %v7172_v2  ;;  %3405 = vmatmul.f32.gmra.mxu3 %v6863_v53  ;;  %v793_v53 = vld [vmem:[#allocation5 + $0xd40] sm:$0xff] }
 0x53e   : > { %v2985_v24 = vpop.f32.mrf.mxu2  ;;  %3460 = vmatpush.xpose.msrb.mxu0 %v793_v53 }
 0x53f   : > { %v2986_v32 = vadd.f32 %v2985_v24, %v2897_v36 }
 0x540   : > { %v3074_v18 = vpop.f32.mrf.mxu3  ;;  %v2810_v43 = vpop.f32.mrf.mxu0 }
 0x541   : > { %v2811_v55 = vadd.f32 %v2810_v43, %v6885_v48  ;;  %v3075_v7 = vadd.f32 %v3074_v18, %v2986_v32  ;;  %v7191_v43 = vld [vmem:[%s5139_s27 + $0x210] sm:$0xff] }
 0x542   : > { %v2899_v44 = vpop.f32.mrf.mxu1 }
 0x543   : > { %4268 = vst [vmem:[%s5642_s18 + $0x348] sm:$0xff] %v3075_v7  ;;  %3141 = vmatmul.f32.gmra.mxu0 %v7179_v9  ;;  %3319 = vmatmul.f32.gmra.mxu2 %v8244_v15  ;;  %v2900_v48 = vadd.f32 %v2899_v44, %v2811_v55  ;;  %v8245_v7 = vld [vmem:[#allocation26_spill] sm:$0xff]  ;;  %v8246_v44 = vld [vmem:[#allocation27_spill] sm:$0xff] }
 0x544   : > { %v7196_v55 = vld [vmem:[%s5139_s27 + $0x218] sm:$0xff]  ;;  %v787_v15 = vld [vmem:[#allocation5 + $0xd10] sm:$0xff] }
 0x545   : > { %3230 = vmatmul.f32.gmra.mxu1 %v7184_v46  ;;  %3408 = vmatmul.f32.gmra.mxu3 %v6878_v42  ;;  %v879_v42 = vld [vmem:[#allocation5 + $0xff0] sm:$0xff] }
 0x546   : > { %v2988_v49 = vpop.f32.mrf.mxu2  ;;  %3639 = vmatpush.xpose.msrb.mxu2 %v879_v42  ;;  %3461 = vmatpush.xpose.msrb.mxu0 %v787_v15 }
 0x547   : > { %v2989_v31 = vadd.f32 %v2988_v49, %v2900_v48  ;;  %v788_v49 = vld [vmem:[#allocation5 + $0xd18] sm:$0xff] }
 0x548   : > { %v3077_v36 = vpop.f32.mrf.mxu3  ;;  %v2813_v24 = vpop.f32.mrf.mxu0  ;;  %3550 = vmatpush.xpose.msrb.mxu1 %v788_v49  ;;  %v874_v49 = vld [vmem:[#allocation5 + $0xfc8] sm:$0xff] }
 0x549   : > { %v2814_v32 = vadd.f32 %v2813_v24, %v6900_v33  ;;  %v3078_v18 = vadd.f32 %v3077_v36, %v2989_v31  ;;  %v880_v33 = vld [vmem:[#allocation5 + $0xff8] sm:$0xff] }
 0x54a   : > { %v2902_v14 = vpop.f32.mrf.mxu1  ;;  %3728 = vmatpush.xpose.msrb.mxu3 %v880_v33  ;;  %v873_v33 = vld [vmem:[#allocation5 + $0xfc0] sm:$0xff] }
 0x54b   : > { %4274 = vst [vmem:[%s5642_s18 + $0x378] sm:$0xff] %v3078_v18  ;;  %3144 = vmatmul.f32.gmra.mxu0 %v7191_v43  ;;  %3322 = vmatmul.f32.gmra.mxu2 %v8245_v7  ;;  %v2903_v53 = vadd.f32 %v2902_v14, %v2814_v32  ;;  %v7203_v7 = vld [vmem:[%s5139_s27 + $0x240] sm:$0xff]  ;;  %v7208_v32 = vld [vmem:[%s5139_s27 + $0x248] sm:$0xff] }
 0x54c   : > { %v8247_v14 = vld [vmem:[#allocation28_spill] sm:$0xff]  ;;  %3640 = vmatpush.xpose.msrb.mxu2 %v873_v33 }
 0x54d   : > { %3233 = vmatmul.f32.gmra.mxu1 %v7196_v55  ;;  %3411 = vmatmul.f32.gmra.mxu3 %v8246_v44 }
 0x54e   : > { %v2991_v35 = vpop.f32.mrf.mxu2  ;;  %3729 = vmatpush.xpose.msrb.mxu3 %v874_v49  ;;  %v7232_v49 = vld [vmem:[%s5139_s27 + $0x2a8] sm:$0xff] }
 0x54f   : > { %v2992_v12 = vadd.f32 %v2991_v35, %v2903_v53 }
 0x550   : > { %v3080_v48 = vpop.f32.mrf.mxu3  ;;  %v2816_v31 = vpop.f32.mrf.mxu0 }
 0x551   : > { %v2817_v36 = vadd.f32 %v2816_v31, %v6915_v5  ;;  %v3081_v24 = vadd.f32 %v3080_v48, %v2992_v12  ;;  %v781_v48 = vld [vmem:[#allocation5 + $0xce0] sm:$0xff]  ;;  %v7215_v31 = vld [vmem:[%s5139_s27 + $0x270] sm:$0xff] }
 0x552   : > { %v2905_v18 = vpop.f32.mrf.mxu1  ;;  %3462 = vmatpush.xpose.msrb.mxu0 %v781_v48  ;;  %v867_v48 = vld [vmem:[#allocation5 + $0xf90] sm:$0xff] }
 0x553   : > { %4280 = vst [vmem:[%s5642_s18 + $0x3a8] sm:$0xff] %v3081_v24  ;;  %3147 = vmatmul.f32.gmra.mxu0 %v7203_v7  ;;  %3325 = vmatmul.f32.gmra.mxu2 %v6903_v6  ;;  %v2906_v42 = vadd.f32 %v2905_v18, %v2817_v36  ;;  %v782_v36 = vld [vmem:[#allocation5 + $0xce8] sm:$0xff]  ;;  %v7220_v24 = vld [vmem:[%s5139_s27 + $0x278] sm:$0xff] }
 0x554   : > { %3551 = vmatpush.xpose.msrb.mxu1 %v782_v36  ;;  %3641 = vmatpush.xpose.msrb.mxu2 %v867_v48  ;;  %v7248_v48 = vld [vmem:[#allocation7] sm:$0x3f] }
 0x555   : > { %3236 = vmatmul.f32.gmra.mxu1 %v7208_v32  ;;  %3414 = vmatmul.f32.gmra.mxu3 %v8247_v14 }
 0x556   : > { %v2994_v44 = vpop.f32.mrf.mxu2 }
 0x557   : > { %v2995_v5 = vadd.f32 %v2994_v44, %v2906_v42 }
 0x558   : > { %v3083_v15 = vpop.f32.mrf.mxu3  ;;  %v2819_v53 = vpop.f32.mrf.mxu0 }
 0x559   : > { %v2820_v35 = vadd.f32 %v2819_v53, %v6930_v27  ;;  %v3084_v12 = vadd.f32 %v3083_v15, %v2995_v5  ;;  %v8248_v27 = vld [vmem:[#allocation29_spill] sm:$0xff] }
 0x55a   : > { %v2908_v6 = vpop.f32.mrf.mxu1 }
 0x55b   : > { %4286 = vst [vmem:[%s5642_s18 + $0x3d8] sm:$0xff] %v3084_v12  ;;  %3150 = vmatmul.f32.gmra.mxu0 %v7215_v31  ;;  %3328 = vmatmul.f32.gmra.mxu2 %v6918_v58  ;;  %v2909_v18 = vadd.f32 %v2908_v6, %v2820_v35  ;;  %v7227_v58 = vld [vmem:[%s5139_s27 + $0x2a0] sm:$0xff]  ;;  %v8249_v12 = vld [vmem:[#allocation30_spill] sm:$0xff] }
 0x55c   : > { %v8250_v35 = vld [vmem:[#allocation31_spill] sm:$0xff]  ;;  %v775_v6 = vld [vmem:[#allocation5 + $0xcb0] sm:$0xff] }
 0x55d   : > { %3239 = vmatmul.f32.gmra.mxu1 %v7220_v24  ;;  %3417 = vmatmul.f32.gmra.mxu3 %v8248_v27 }
 0x55e   : > { %v2997_v14 = vpop.f32.mrf.mxu2  ;;  %3463 = vmatpush.xpose.msrb.mxu0 %v775_v6 }
 0x55f   : > { %v2998_v42 = vadd.f32 %v2997_v14, %v2909_v18 }
 0x560   : > { %v3086_v44 = vpop.f32.mrf.mxu3  ;;  %v2822_v5 = vpop.f32.mrf.mxu0 }
 0x561   : > { %v2823_v15 = vadd.f32 %v2822_v5, %v6945_v50  ;;  %v3087_v33 = vadd.f32 %v3086_v44, %v2998_v42  ;;  %v868_v50 = vld [vmem:[#allocation5 + $0xf98] sm:$0xff] }
 0x562   : > { %v2911_v53 = vpop.f32.mrf.mxu1  ;;  %3730 = vmatpush.xpose.msrb.mxu3 %v868_v50  ;;  %v776_v42 = vld [vmem:[#allocation5 + $0xcb8] sm:$0xff] }
 0x563   : > { %4292 = vst [vmem:[%s5642_s18 + $0x408] sm:$0xff] %v3087_v33  ;;  %3153 = vmatmul.f32.gmra.mxu0 %v7227_v58  ;;  %3331 = vmatmul.f32.gmra.mxu2 %v8249_v12  ;;  %v2912_v36 = vadd.f32 %v2911_v53, %v2823_v15  ;;  %v7244_v15 = vld [vmem:[%s5139_s27 + $0x2d8] sm:$0xff] }
 0x564   : > { %3552 = vmatpush.xpose.msrb.mxu1 %v776_v42 }
 0x565   : > { %3242 = vmatmul.f32.gmra.mxu1 %v7232_v49  ;;  %3420 = vmatmul.f32.gmra.mxu3 %v8250_v35  ;;  %v7239_v35 = vld [vmem:[%s5139_s27 + $0x2d0] sm:$0xff] }
 0x566   : > { %v3000_v27 = vpop.f32.mrf.mxu2 }
 0x567   : > { %v3001_v18 = vadd.f32 %v3000_v27, %v2912_v36  ;;  %v861_v27 = vld [vmem:[#allocation5 + $0xf60] sm:$0xff] }
 0x568   : > { %v3089_v14 = vpop.f32.mrf.mxu3  ;;  %v2825_v44 = vpop.f32.mrf.mxu0  ;;  %3642 = vmatpush.xpose.msrb.mxu2 %v861_v27 }
 0x569   : > { %v2826_v5 = vadd.f32 %v2825_v44, %v6959_v19  ;;  %v3090_v33 = vadd.f32 %v3089_v14, %v3001_v18  ;;  %v7251_v19 = vperm.slane %v7248_v48, 4  ;;  %v862_v44 = vld [vmem:[#allocation5 + $0xf68] sm:$0xff] }
 0x56a   : > { %v2914_v12 = vpop.f32.mrf.mxu1  ;;  %3731 = vmatpush.xpose.msrb.mxu3 %v862_v44  ;;  %v7274_v44 = vld [vmem:[%s5139_s27 + $0x338] sm:$0xff] }
 0x56b   : > { %4298 = vst [vmem:[%s5642_s18 + $0x438] sm:$0xff] %v3090_v33  ;;  %3156 = vmatmul.f32.gmra.mxu0 %v7239_v35  ;;  %3334 = vmatmul.f32.gmra.mxu2 %v6948_v26  ;;  %v2915_v53 = vadd.f32 %v2914_v12, %v2826_v5  ;;  %v7256_v33 = vld [vmem:[%s5139_s27 + $0x300] sm:$0xff]  ;;  %v770_v12 = vld [vmem:[#allocation5 + $0xc88] sm:$0xff] }
 0x56c   : > { %3553 = vmatpush.xpose.msrb.mxu1 %v770_v12  ;;  %8251 = vst [vmem:[#allocation32_spill] sm:$0xff] %v7274_v44 }
 0x56d   : > { %3245 = vmatmul.f32.gmra.mxu1 %v7244_v15  ;;  %3423 = vmatmul.f32.gmra.mxu3 %v6953_v52  ;;  %v769_v52 = vld [vmem:[#allocation5 + $0xc80] sm:$0xff] }
 0x56e   : > { %v3003_v6 = vpop.f32.mrf.mxu2  ;;  %3464 = vmatpush.xpose.msrb.mxu0 %v769_v52  ;;  %v855_v52 = vld [vmem:[#allocation5 + $0xf30] sm:$0xff] }
 0x56f   : > { %v3004_v50 = vadd.f32 %v3003_v6, %v2915_v53  ;;  %v7261_v53 = vld [vmem:[%s5139_s27 + $0x308] sm:$0xff]  ;;  %3643 = vmatpush.xpose.msrb.mxu2 %v855_v52 }
 0x570   : > { %v3092_v36 = vpop.f32.mrf.mxu3  ;;  %v3112_v26 = vpop.f32.mrf.mxu0  ;;  %v7287_v52 = vld [vmem:[%s5139_s27 + $0x368] sm:$0xff] }
 0x571   : > { %v3093_v18 = vadd.f32 %v3092_v36, %v3004_v50  ;;  %v3113_v14 = vadd.f32 %v3112_v26, %v7251_v19  ;;  %8252 = vst [vmem:[#allocation33_spill] sm:$0xff] %v7287_v52 }
 0x572   : > { %v3201_v42 = vpop.f32.mrf.mxu1 }
 0x573   : > { %4304 = vst [vmem:[%s5642_s18 + $0x468] sm:$0xff] %v3093_v18  ;;  %v3202_v5 = vadd.f32 %v3201_v42, %v3113_v14  ;;  %3159 = vmatmul.f32.gmra.mxu0 %v7256_v33  ;;  %3337 = vmatmul.f32.gmra.mxu2 %v6963_v59  ;;  %v7269_v59 = vld [vmem:[%s5139_s27 + $0x330] sm:$0xff] }
 0x575   : > { %3248 = vmatmul.f32.gmra.mxu1 %v7261_v53  ;;  %3426 = vmatmul.f32.gmra.mxu3 %v6968_v45  ;;  %v763_v45 = vld [vmem:[#allocation5 + $0xc50] sm:$0xff] }
 0x576   : > { %v3290_v6 = vpop.f32.mrf.mxu2  ;;  %3465 = vmatpush.xpose.msrb.mxu0 %v763_v45 }
 0x577   : > { %v3291_v50 = vadd.f32 %v3290_v6, %v3202_v5  ;;  %v856_v5 = vld [vmem:[#allocation5 + $0xf38] sm:$0xff] }
 0x578   : > { %v3379_v36 = vpop.f32.mrf.mxu3  ;;  %v3115_v27 = vpop.f32.mrf.mxu0  ;;  %3732 = vmatpush.xpose.msrb.mxu3 %v856_v5 }
 0x579   : > { %v3116_v26 = vadd.f32 %v3115_v27, %v7251_v19  ;;  %v7266_v18 = vadd.f32 %v3379_v36, %v3291_v50  ;;  %v764_v36 = vld [vmem:[#allocation5 + $0xc58] sm:$0xff] }
 0x57a   : > { %v3204_v14 = vpop.f32.mrf.mxu1  ;;  %3554 = vmatpush.xpose.msrb.mxu1 %v764_v36 }
 0x57b   : > { %v3205_v42 = vadd.f32 %v3204_v14, %v3116_v26  ;;  %3162 = vmatmul.f32.gmra.mxu0 %v7269_v59  ;;  %3340 = vmatmul.f32.gmra.mxu2 %v6975_v62 }
 0x57d   : > { %3251 = vmatmul.f32.gmra.mxu1 %v7274_v44  ;;  %3429 = vmatmul.f32.gmra.mxu3 %v6980_v16  ;;  %v7282_v16 = vld [vmem:[%s5139_s27 + $0x360] sm:$0xff] }
 0x57e   : > { %v3293_v12 = vpop.f32.mrf.mxu2 }
 0x57f   : > { %v3294_v6 = vadd.f32 %v3293_v12, %v3205_v42  ;;  %v849_v12 = vld [vmem:[#allocation5 + $0xf00] sm:$0xff] }
 0x580   : > { %v3382_v50 = vpop.f32.mrf.mxu3  ;;  %v3118_v27 = vpop.f32.mrf.mxu0  ;;  %3644 = vmatpush.xpose.msrb.mxu2 %v849_v12 }
 0x581   : > { %v3119_v62 = vadd.f32 %v3118_v27, %v7251_v19  ;;  %v7279_v26 = vadd.f32 %v3382_v50, %v3294_v6 }
 0x582   : > { %v3207_v14 = vpop.f32.mrf.mxu1 }
 0x583   : > { %v3208_v44 = vadd.f32 %v3207_v14, %v3119_v62  ;;  %3165 = vmatmul.f32.gmra.mxu0 %v7282_v16  ;;  %3343 = vmatmul.f32.gmra.mxu2 %v6987_v10  ;;  %v757_v10 = vld [vmem:[#allocation5 + $0xc20] sm:$0xff]  ;;  %v850_v62 = vld [vmem:[#allocation5 + $0xf08] sm:$0xff] }
 0x584   : > { %3466 = vmatpush.xpose.msrb.mxu0 %v757_v10  ;;  %3733 = vmatpush.xpose.msrb.mxu3 %v850_v62  ;;  %v943_v62 = vld [vmem:[#allocation5 + $0x11f0] sm:$0xff] }
 0x585   : > { %3254 = vmatmul.f32.gmra.mxu1 %v7287_v52  ;;  %3432 = vmatmul.f32.gmra.mxu3 %v6992_v8  ;;  %v7295_v52 = vld [vmem:[%s5139_s27 + $0x390] sm:$0xff]  ;;  %v758_v8 = vld [vmem:[#allocation5 + $0xc28] sm:$0xff] }
 0x586   : > { %v3296_v42 = vpop.f32.mrf.mxu2  ;;  %3555 = vmatpush.xpose.msrb.mxu1 %v758_v8  ;;  %3985 = vmatpush.xpose.msra.mxu2 %v943_v62  ;;  %v7326_v62 = vld [vmem:[%s5139_s27 + $0x3f8] sm:$0xff] }
 0x587   : > { %v3297_v45 = vadd.f32 %v3296_v42, %v3208_v44  ;;  %v7300_v44 = vld [vmem:[%s5139_s27 + $0x398] sm:$0xff]  ;;  %8255 = vst [vmem:[#allocation17_spill] sm:$0xff] %v7326_v62 }
 0x588   : > { %v3385_v5 = vpop.f32.mrf.mxu3  ;;  %v3121_v6 = vpop.f32.mrf.mxu0  ;;  %8253 = vst [vmem:[#allocation34_spill] sm:$0xff] %v7300_v44 }
 0x589   : > { %v3122_v50 = vadd.f32 %v3121_v6, %v7251_v19  ;;  %v7292_v36 = vadd.f32 %v3385_v5, %v3297_v45 }
 0x58a   : > { %v3210_v27 = vpop.f32.mrf.mxu1 }
 0x58b   : > { %v3211_v14 = vadd.f32 %v3210_v27, %v3122_v50  ;;  %3168 = vmatmul.f32.gmra.mxu0 %v7295_v52  ;;  %3346 = vmatmul.f32.gmra.mxu2 %v6999_v17  ;;  %v7308_v17 = vld [vmem:[%s5139_s27 + $0x3c0] sm:$0xff] }
 0x58d   : > { %3257 = vmatmul.f32.gmra.mxu1 %v7300_v44  ;;  %3435 = vmatmul.f32.gmra.mxu3 %v7004_v56  ;;  %v7313_v44 = vld [vmem:[%s5139_s27 + $0x3c8] sm:$0xff]  ;;  %v941_v56 = vld [vmem:[#allocation5 + $0x11e0] sm:$0xff] }
 0x58e   : > { %v3299_v42 = vpop.f32.mrf.mxu2  ;;  %8254 = vst [vmem:[#allocation12_spill] sm:$0xff] %v7313_v44  ;;  %3807 = vmatpush.xpose.msra.mxu0 %v941_v56 }
 0x58f   : > { %v3300_v45 = vadd.f32 %v3299_v42, %v3211_v14  ;;  %v944_v14 = vld [vmem:[#allocation5 + $0x11f8] sm:$0xff] }
 0x590   : > { %v3388_v5 = vpop.f32.mrf.mxu3  ;;  %v3124_v12 = vpop.f32.mrf.mxu0  ;;  %4074 = vmatpush.xpose.msra.mxu3 %v944_v14 }
 0x591   : > { %v3125_v6 = vadd.f32 %v3124_v12, %v7251_v19  ;;  %v7305_v50 = vadd.f32 %v3388_v5, %v3300_v45  ;;  %v942_v5 = vld [vmem:[#allocation5 + $0x11e8] sm:$0xff] }
 0x592   : > { %v3213_v27 = vpop.f32.mrf.mxu1  ;;  %3896 = vmatpush.xpose.msra.mxu1 %v942_v5 }
 0x593   : > { %v3214_v10 = vadd.f32 %v3213_v27, %v3125_v6  ;;  %3171 = vmatmul.f32.gmra.mxu0 %v7308_v17  ;;  %3349 = vmatmul.f32.gmra.mxu2 %v7011_v40 }
 0x595   : > { %3260 = vmatmul.f32.gmra.mxu1 %v7313_v44  ;;  %3438 = vmatmul.f32.gmra.mxu3 %v7016_v1  ;;  %v7321_v1 = vld [vmem:[%s5139_s27 + $0x3f0] sm:$0xff] }
 0x596   : > { %v3302_v8 = vpop.f32.mrf.mxu2 }
 0x597   : > { %v3303_v42 = vadd.f32 %v3302_v8, %v3214_v10  ;;  %v937_v8 = vld [vmem:[#allocation5 + $0x11c0] sm:$0xff] }
 0x598   : > { %v3391_v45 = vpop.f32.mrf.mxu3  ;;  %v3127_v12 = vpop.f32.mrf.mxu0  ;;  %3986 = vmatpush.xpose.msra.mxu2 %v937_v8 }
 0x599   : > { %v3128_v40 = vadd.f32 %v3127_v12, %v7251_v19  ;;  %v7318_v6 = vadd.f32 %v3391_v45, %v3303_v42 }
 0x59a   : > { %v3216_v27 = vpop.f32.mrf.mxu1 }
 0x59b   : > { %v3217_v44 = vadd.f32 %v3216_v27, %v3128_v40  ;;  %3174 = vmatmul.f32.gmra.mxu0 %v7321_v1  ;;  %3352 = vmatmul.f32.gmra.mxu2 %v7023_v25  ;;  %v935_v25 = vld [vmem:[#allocation5 + $0x11b0] sm:$0xff]  ;;  %v938_v40 = vld [vmem:[#allocation5 + $0x11c8] sm:$0xff] }
 0x59c   : > { %3808 = vmatpush.xpose.msra.mxu0 %v935_v25  ;;  %4075 = vmatpush.xpose.msra.mxu3 %v938_v40  ;;  %v931_v40 = vld [vmem:[#allocation5 + $0x1190] sm:$0xff] }
 0x59d   : > { %3263 = vmatmul.f32.gmra.mxu1 %v7326_v62  ;;  %3441 = vmatmul.f32.gmra.mxu3 %v7028_v54  ;;  %v7334_v62 = vld [vmem:[%s5139_s27 + $0x420] sm:$0xff]  ;;  %v936_v54 = vld [vmem:[#allocation5 + $0x11b8] sm:$0xff] }
 0x59e   : > { %v3305_v10 = vpop.f32.mrf.mxu2  ;;  %3897 = vmatpush.xpose.msra.mxu1 %v936_v54  ;;  %3987 = vmatpush.xpose.msra.mxu2 %v931_v40  ;;  %v7365_v40 = vld [vmem:[%s5139_s27 + $0x28] sm:$0xff] }
 0x59f   : > { %v3306_v56 = vadd.f32 %v3305_v10, %v3217_v44  ;;  %v7339_v44 = vld [vmem:[%s5139_s27 + $0x428] sm:$0xff]  ;;  %8258 = vst [vmem:[#allocation15_spill] sm:$0xff] %v7365_v40 }
 0x5a0   : > { %v3394_v14 = vpop.f32.mrf.mxu3  ;;  %v3130_v42 = vpop.f32.mrf.mxu0  ;;  %8256 = vst [vmem:[#allocation13_spill] sm:$0xff] %v7339_v44 }
 0x5a1   : > { %v3131_v45 = vadd.f32 %v3130_v42, %v7251_v19  ;;  %v7331_v5 = vadd.f32 %v3394_v14, %v3306_v56 }
 0x5a2   : > { %v3219_v12 = vpop.f32.mrf.mxu1 }
 0x5a3   : > { %v3220_v27 = vadd.f32 %v3219_v12, %v3131_v45  ;;  %3177 = vmatmul.f32.gmra.mxu0 %v7334_v62  ;;  %3355 = vmatmul.f32.gmra.mxu2 %v7035_v57  ;;  %v7347_v57 = vld [vmem:[%s5139_s27 + $0x450] sm:$0xff] }
 0x5a5   : > { %3266 = vmatmul.f32.gmra.mxu1 %v7339_v44  ;;  %3444 = vmatmul.f32.gmra.mxu3 %v7040_v47  ;;  %v7352_v44 = vld [vmem:[%s5139_s27 + $0x458] sm:$0xff]  ;;  %v929_v47 = vld [vmem:[#allocation5 + $0x1180] sm:$0xff] }
 0x5a6   : > { %v3308_v10 = vpop.f32.mrf.mxu2  ;;  %8257 = vst [vmem:[#allocation14_spill] sm:$0xff] %v7352_v44  ;;  %3809 = vmatpush.xpose.msra.mxu0 %v929_v47 }
 0x5a7   : > { %v3309_v56 = vadd.f32 %v3308_v10, %v3220_v27  ;;  %v932_v27 = vld [vmem:[#allocation5 + $0x1198] sm:$0xff] }
 0x5a8   : > { %v3397_v14 = vpop.f32.mrf.mxu3  ;;  %v3133_v8 = vpop.f32.mrf.mxu0  ;;  %4076 = vmatpush.xpose.msra.mxu3 %v932_v27 }
 0x5a9   : > { %v3134_v42 = vadd.f32 %v3133_v8, %v7251_v19  ;;  %v7344_v45 = vadd.f32 %v3397_v14, %v3309_v56  ;;  %v930_v14 = vld [vmem:[#allocation5 + $0x1188] sm:$0xff] }
 0x5aa   : > { %v3222_v12 = vpop.f32.mrf.mxu1  ;;  %3898 = vmatpush.xpose.msra.mxu1 %v930_v14 }
 0x5ab   : > { %v3223_v25 = vadd.f32 %v3222_v12, %v3134_v42  ;;  %3180 = vmatmul.f32.gmra.mxu0 %v7347_v57  ;;  %3358 = vmatmul.f32.gmra.mxu2 %v7047_v3 }
 0x5ad   : > { %3269 = vmatmul.f32.gmra.mxu1 %v7352_v44  ;;  %3447 = vmatmul.f32.gmra.mxu3 %v7052_v63  ;;  %v7360_v63 = vld [vmem:[%s5139_s27 + $0x20] sm:$0xff] }
 0x5ae   : > { %v3311_v54 = vpop.f32.mrf.mxu2 }
 0x5af   : > { %v3312_v10 = vadd.f32 %v3311_v54, %v3223_v25  ;;  %v925_v54 = vld [vmem:[#allocation5 + $0x1160] sm:$0xff] }
 0x5b0   : > { %v3400_v56 = vpop.f32.mrf.mxu3  ;;  %v3136_v8 = vpop.f32.mrf.mxu0  ;;  %3988 = vmatpush.xpose.msra.mxu2 %v925_v54 }
 0x5b1   : > { %v3137_v3 = vadd.f32 %v3136_v8, %v7251_v19  ;;  %v7357_v42 = vadd.f32 %v3400_v56, %v3312_v10 }
 0x5b2   : > { %v3225_v12 = vpop.f32.mrf.mxu1 }
 0x5b3   : > { %v3226_v44 = vadd.f32 %v3225_v12, %v3137_v3  ;;  %3467 = vmatmul.f32.vlgmr.msrb.gmra.mxu0 %v7360_v63  ;;  %3645 = vmatmul.f32.vlgmr.msrb.gmra.mxu2 %v7059_v13  ;;  %v923_v13 = vld [vmem:[#allocation5 + $0x1150] sm:$0xff]  ;;  %v926_v3 = vld [vmem:[#allocation5 + $0x1168] sm:$0xff] }
 0x5b4   : > { %3810 = vmatpush.xpose.msra.mxu0 %v923_v13  ;;  %4077 = vmatpush.xpose.msra.mxu3 %v926_v3  ;;  %v919_v3 = vld [vmem:[#allocation5 + $0x1130] sm:$0xff] }
 0x5b5   : > { %3556 = vmatmul.f32.vlgmr.msrb.gmra.mxu1 %v7365_v40  ;;  %3734 = vmatmul.f32.vlgmr.msrb.gmra.mxu3 %v7064_v41  ;;  %v7373_v40 = vld [vmem:[%s5139_s27 + $0x50] sm:$0xff]  ;;  %v924_v41 = vld [vmem:[#allocation5 + $0x1158] sm:$0xff] }
 0x5b6   : > { %v3314_v25 = vpop.f32.mrf.mxu2  ;;  %3899 = vmatpush.xpose.msra.mxu1 %v924_v41  ;;  %3989 = vmatpush.xpose.msra.mxu2 %v919_v3  ;;  %v7404_v3 = vld [vmem:[%s5139_s27 + $0xb8] sm:$0xff] }
 0x5b7   : > { %v3315_v47 = vadd.f32 %v3314_v25, %v3226_v44  ;;  %v7378_v44 = vld [vmem:[%s5139_s27 + $0x58] sm:$0xff]  ;;  %8261 = vst [vmem:[#allocation19_spill] sm:$0xff] %v7404_v3 }
 0x5b8   : > { %v3403_v27 = vpop.f32.mrf.mxu3  ;;  %v3139_v10 = vpop.f32.mrf.mxu0  ;;  %8259 = vst [vmem:[#allocation16_spill] sm:$0xff] %v7378_v44 }
 0x5b9   : > { %v3140_v56 = vadd.f32 %v3139_v10, %v7251_v19  ;;  %v7370_v14 = vadd.f32 %v3403_v27, %v3315_v47 }
 0x5ba   : > { %v3228_v8 = vpop.f32.mrf.mxu1 }
 0x5bb   : > { %v3229_v12 = vadd.f32 %v3228_v8, %v3140_v56  ;;  %3470 = vmatmul.f32.gmra.mxu0 %v7373_v40  ;;  %3648 = vmatmul.f32.gmra.mxu2 %v7071_v60  ;;  %v7386_v60 = vld [vmem:[%s5139_s27 + $0x80] sm:$0xff] }
 0x5bd   : > { %3559 = vmatmul.f32.gmra.mxu1 %v7378_v44  ;;  %3737 = vmatmul.f32.gmra.mxu3 %v7076_v4  ;;  %v7391_v44 = vld [vmem:[%s5139_s27 + $0x88] sm:$0xff]  ;;  %v917_v4 = vld [vmem:[#allocation5 + $0x1120] sm:$0xff] }
 0x5be   : > { %v3317_v25 = vpop.f32.mrf.mxu2  ;;  %8260 = vst [vmem:[#allocation18_spill] sm:$0xff] %v7391_v44  ;;  %3811 = vmatpush.xpose.msra.mxu0 %v917_v4 }
 0x5bf   : > { %v3318_v47 = vadd.f32 %v3317_v25, %v3229_v12  ;;  %v920_v12 = vld [vmem:[#allocation5 + $0x1138] sm:$0xff] }
 0x5c0   : > { %v3406_v27 = vpop.f32.mrf.mxu3  ;;  %v3142_v54 = vpop.f32.mrf.mxu0  ;;  %4078 = vmatpush.xpose.msra.mxu3 %v920_v12 }
 0x5c1   : > { %v3143_v10 = vadd.f32 %v3142_v54, %v7251_v19  ;;  %v7383_v56 = vadd.f32 %v3406_v27, %v3318_v47  ;;  %v918_v27 = vld [vmem:[#allocation5 + $0x1128] sm:$0xff] }
 0x5c2   : > { %v3231_v8 = vpop.f32.mrf.mxu1  ;;  %3900 = vmatpush.xpose.msra.mxu1 %v918_v27 }
 0x5c3   : > { %v3232_v13 = vadd.f32 %v3231_v8, %v3143_v10  ;;  %3473 = vmatmul.f32.gmra.mxu0 %v7386_v60  ;;  %3651 = vmatmul.f32.gmra.mxu2 %v7083_v28 }
 0x5c5   : > { %3562 = vmatmul.f32.gmra.mxu1 %v7391_v44  ;;  %3740 = vmatmul.f32.gmra.mxu3 %v7088_v30  ;;  %v7399_v30 = vld [vmem:[%s5139_s27 + $0xb0] sm:$0xff] }
 0x5c6   : > { %v3320_v41 = vpop.f32.mrf.mxu2 }
 0x5c7   : > { %v3321_v25 = vadd.f32 %v3320_v41, %v3232_v13  ;;  %v913_v41 = vld [vmem:[#allocation5 + $0x1100] sm:$0xff] }
 0x5c8   : > { %v3409_v47 = vpop.f32.mrf.mxu3  ;;  %v3145_v54 = vpop.f32.mrf.mxu0  ;;  %3990 = vmatpush.xpose.msra.mxu2 %v913_v41 }
 0x5c9   : > { %v3146_v28 = vadd.f32 %v3145_v54, %v7251_v19  ;;  %v7396_v10 = vadd.f32 %v3409_v47, %v3321_v25 }
 0x5ca   : > { %v3234_v8 = vpop.f32.mrf.mxu1 }
 0x5cb   : > { %v3235_v44 = vadd.f32 %v3234_v8, %v3146_v28  ;;  %3476 = vmatmul.f32.gmra.mxu0 %v7399_v30  ;;  %3654 = vmatmul.f32.gmra.mxu2 %v7095_v38  ;;  %v911_v38 = vld [vmem:[#allocation5 + $0x10f0] sm:$0xff]  ;;  %v914_v28 = vld [vmem:[#allocation5 + $0x1108] sm:$0xff] }
 0x5cc   : > { %3812 = vmatpush.xpose.msra.mxu0 %v911_v38  ;;  %4079 = vmatpush.xpose.msra.mxu3 %v914_v28  ;;  %v907_v28 = vld [vmem:[#allocation5 + $0x10d0] sm:$0xff] }
 0x5cd   : > { %3565 = vmatmul.f32.gmra.mxu1 %v7404_v3  ;;  %3743 = vmatmul.f32.gmra.mxu3 %v7100_v39  ;;  %v7412_v3 = vld [vmem:[%s5139_s27 + $0xe0] sm:$0xff]  ;;  %v912_v39 = vld [vmem:[#allocation5 + $0x10f8] sm:$0xff] }
 0x5ce   : > { %v3323_v13 = vpop.f32.mrf.mxu2  ;;  %3901 = vmatpush.xpose.msra.mxu1 %v912_v39  ;;  %3991 = vmatpush.xpose.msra.mxu2 %v907_v28  ;;  %v7443_v28 = vld [vmem:[%s5139_s27 + $0x148] sm:$0xff] }
 0x5cf   : > { %v3324_v4 = vadd.f32 %v3323_v13, %v3235_v44  ;;  %v7417_v44 = vld [vmem:[%s5139_s27 + $0xe8] sm:$0xff]  ;;  %8264 = vst [vmem:[#allocation22_spill] sm:$0xff] %v7443_v28 }
 0x5d0   : > { %v3412_v12 = vpop.f32.mrf.mxu3  ;;  %v3148_v25 = vpop.f32.mrf.mxu0  ;;  %8262 = vst [vmem:[#allocation20_spill] sm:$0xff] %v7417_v44 }
 0x5d1   : > { %v3149_v47 = vadd.f32 %v3148_v25, %v7251_v19  ;;  %v7409_v27 = vadd.f32 %v3412_v12, %v3324_v4 }
 0x5d2   : > { %v3237_v54 = vpop.f32.mrf.mxu1 }
 0x5d3   : > { %v3238_v8 = vadd.f32 %v3237_v54, %v3149_v47  ;;  %3479 = vmatmul.f32.gmra.mxu0 %v7412_v3  ;;  %3657 = vmatmul.f32.gmra.mxu2 %v7107_v20  ;;  %v7425_v20 = vld [vmem:[%s5139_s27 + $0x110] sm:$0xff] }
 0x5d5   : > { %3568 = vmatmul.f32.gmra.mxu1 %v7417_v44  ;;  %3746 = vmatmul.f32.gmra.mxu3 %v7112_v61  ;;  %v7430_v44 = vld [vmem:[%s5139_s27 + $0x118] sm:$0xff]  ;;  %v905_v61 = vld [vmem:[#allocation5 + $0x10c0] sm:$0xff] }
 0x5d6   : > { %v3326_v13 = vpop.f32.mrf.mxu2  ;;  %8263 = vst [vmem:[#allocation21_spill] sm:$0xff] %v7430_v44  ;;  %3813 = vmatpush.xpose.msra.mxu0 %v905_v61 }
 0x5d7   : > { %v3327_v4 = vadd.f32 %v3326_v13, %v3238_v8  ;;  %v908_v8 = vld [vmem:[#allocation5 + $0x10d8] sm:$0xff] }
 0x5d8   : > { %v3415_v12 = vpop.f32.mrf.mxu3  ;;  %v3151_v41 = vpop.f32.mrf.mxu0  ;;  %4080 = vmatpush.xpose.msra.mxu3 %v908_v8 }
 0x5d9   : > { %v3152_v25 = vadd.f32 %v3151_v41, %v7251_v19  ;;  %v7422_v47 = vadd.f32 %v3415_v12, %v3327_v4  ;;  %v906_v12 = vld [vmem:[#allocation5 + $0x10c8] sm:$0xff] }
 0x5da   : > { %v3240_v54 = vpop.f32.mrf.mxu1  ;;  %3902 = vmatpush.xpose.msra.mxu1 %v906_v12 }
 0x5db   : > { %v3241_v38 = vadd.f32 %v3240_v54, %v3152_v25  ;;  %3482 = vmatmul.f32.gmra.mxu0 %v7425_v20  ;;  %3660 = vmatmul.f32.gmra.mxu2 %v7119_v21 }
 0x5dd   : > { %3571 = vmatmul.f32.gmra.mxu1 %v7430_v44  ;;  %3749 = vmatmul.f32.gmra.mxu3 %v7124_v34  ;;  %v7438_v34 = vld [vmem:[%s5139_s27 + $0x140] sm:$0xff] }
 0x5de   : > { %v3329_v39 = vpop.f32.mrf.mxu2 }
 0x5df   : > { %v3330_v13 = vadd.f32 %v3329_v39, %v3241_v38  ;;  %v901_v39 = vld [vmem:[#allocation5 + $0x10a0] sm:$0xff] }
 0x5e0   : > { %v3418_v4 = vpop.f32.mrf.mxu3  ;;  %v3154_v41 = vpop.f32.mrf.mxu0  ;;  %3992 = vmatpush.xpose.msra.mxu2 %v901_v39 }
 0x5e1   : > { %v3155_v21 = vadd.f32 %v3154_v41, %v7251_v19  ;;  %v7435_v25 = vadd.f32 %v3418_v4, %v3330_v13 }
 0x5e2   : > { %v3243_v54 = vpop.f32.mrf.mxu1 }
 0x5e3   : > { %v3244_v44 = vadd.f32 %v3243_v54, %v3155_v21  ;;  %3485 = vmatmul.f32.gmra.mxu0 %v7438_v34  ;;  %3663 = vmatmul.f32.gmra.mxu2 %v7131_v37  ;;  %v899_v37 = vld [vmem:[#allocation5 + $0x1090] sm:$0xff]  ;;  %v902_v21 = vld [vmem:[#allocation5 + $0x10a8] sm:$0xff] }
 0x5e4   : > { %3814 = vmatpush.xpose.msra.mxu0 %v899_v37  ;;  %4081 = vmatpush.xpose.msra.mxu3 %v902_v21  ;;  %v895_v21 = vld [vmem:[#allocation5 + $0x1070] sm:$0xff] }
 0x5e5   : > { %3574 = vmatmul.f32.gmra.mxu1 %v7443_v28  ;;  %3752 = vmatmul.f32.gmra.mxu3 %v7136_v51  ;;  %v7451_v28 = vld [vmem:[%s5139_s27 + $0x170] sm:$0xff]  ;;  %v900_v51 = vld [vmem:[#allocation5 + $0x1098] sm:$0xff] }
 0x5e6   : > { %v3332_v38 = vpop.f32.mrf.mxu2  ;;  %3903 = vmatpush.xpose.msra.mxu1 %v900_v51  ;;  %3993 = vmatpush.xpose.msra.mxu2 %v895_v21  ;;  %v7482_v21 = vld [vmem:[%s5139_s27 + $0x1d8] sm:$0xff] }
 0x5e7   : > { %v3333_v61 = vadd.f32 %v3332_v38, %v3244_v44  ;;  %v7456_v44 = vld [vmem:[%s5139_s27 + $0x178] sm:$0xff]  ;;  %8267 = vst [vmem:[#allocation25_spill] sm:$0xff] %v7482_v21 }
 0x5e8   : > { %v3421_v8 = vpop.f32.mrf.mxu3  ;;  %v3157_v13 = vpop.f32.mrf.mxu0  ;;  %8265 = vst [vmem:[#allocation23_spill] sm:$0xff] %v7456_v44 }
 0x5e9   : > { %v3158_v4 = vadd.f32 %v3157_v13, %v7251_v19  ;;  %v7448_v12 = vadd.f32 %v3421_v8, %v3333_v61 }
 0x5ea   : > { %v3246_v41 = vpop.f32.mrf.mxu1 }
 0x5eb   : > { %v3247_v54 = vadd.f32 %v3246_v41, %v3158_v4  ;;  %3488 = vmatmul.f32.gmra.mxu0 %v7451_v28  ;;  %3666 = vmatmul.f32.gmra.mxu2 %v7143_v11  ;;  %v7464_v11 = vld [vmem:[%s5139_s27 + $0x1a0] sm:$0xff] }
 0x5ed   : > { %3577 = vmatmul.f32.gmra.mxu1 %v7456_v44  ;;  %3755 = vmatmul.f32.gmra.mxu3 %v7148_v29  ;;  %v7469_v44 = vld [vmem:[%s5139_s27 + $0x1a8] sm:$0xff]  ;;  %v893_v29 = vld [vmem:[#allocation5 + $0x1060] sm:$0xff] }
 0x5ee   : > { %v3335_v38 = vpop.f32.mrf.mxu2  ;;  %8266 = vst [vmem:[#allocation24_spill] sm:$0xff] %v7469_v44  ;;  %3815 = vmatpush.xpose.msra.mxu0 %v893_v29 }
 0x5ef   : > { %v3336_v61 = vadd.f32 %v3335_v38, %v3247_v54  ;;  %v896_v54 = vld [vmem:[#allocation5 + $0x1078] sm:$0xff] }
 0x5f0   : > { %v3424_v8 = vpop.f32.mrf.mxu3  ;;  %v3160_v39 = vpop.f32.mrf.mxu0  ;;  %4082 = vmatpush.xpose.msra.mxu3 %v896_v54 }
 0x5f1   : > { %v3161_v13 = vadd.f32 %v3160_v39, %v7251_v19  ;;  %v7461_v4 = vadd.f32 %v3424_v8, %v3336_v61  ;;  %v894_v8 = vld [vmem:[#allocation5 + $0x1068] sm:$0xff] }
 0x5f2   : > { %v3249_v41 = vpop.f32.mrf.mxu1  ;;  %3904 = vmatpush.xpose.msra.mxu1 %v894_v8 }
 0x5f3   : > { %v3250_v37 = vadd.f32 %v3249_v41, %v3161_v13  ;;  %3491 = vmatmul.f32.gmra.mxu0 %v7464_v11  ;;  %3669 = vmatmul.f32.gmra.mxu2 %v7155_v23 }
 0x5f5   : > { %3580 = vmatmul.f32.gmra.mxu1 %v7469_v44  ;;  %3758 = vmatmul.f32.gmra.mxu3 %v7160_v22  ;;  %v7477_v22 = vld [vmem:[%s5139_s27 + $0x1d0] sm:$0xff] }
 0x5f6   : > { %v3338_v51 = vpop.f32.mrf.mxu2 }
 0x5f7   : > { %v3339_v38 = vadd.f32 %v3338_v51, %v3250_v37  ;;  %v889_v51 = vld [vmem:[#allocation5 + $0x1040] sm:$0xff] }
 0x5f8   : > { %v3427_v61 = vpop.f32.mrf.mxu3  ;;  %v3163_v39 = vpop.f32.mrf.mxu0  ;;  %3994 = vmatpush.xpose.msra.mxu2 %v889_v51 }
 0x5f9   : > { %v3164_v23 = vadd.f32 %v3163_v39, %v7251_v19  ;;  %v7474_v13 = vadd.f32 %v3427_v61, %v3339_v38 }
 0x5fa   : > { %v3252_v41 = vpop.f32.mrf.mxu1 }
 0x5fb   : > { %v3253_v44 = vadd.f32 %v3252_v41, %v3164_v23  ;;  %3494 = vmatmul.f32.gmra.mxu0 %v7477_v22  ;;  %3672 = vmatmul.f32.gmra.mxu2 %v7167_v0  ;;  %v887_v0 = vld [vmem:[#allocation5 + $0x1030] sm:$0xff]  ;;  %v890_v23 = vld [vmem:[#allocation5 + $0x1048] sm:$0xff] }
 0x5fc   : > { %3816 = vmatpush.xpose.msra.mxu0 %v887_v0  ;;  %4083 = vmatpush.xpose.msra.mxu3 %v890_v23  ;;  %v883_v23 = vld [vmem:[#allocation5 + $0x1010] sm:$0xff] }
 0x5fd   : > { %3583 = vmatmul.f32.gmra.mxu1 %v7482_v21  ;;  %3761 = vmatmul.f32.gmra.mxu3 %v7172_v2  ;;  %v7490_v21 = vld [vmem:[%s5139_s27 + $0x200] sm:$0xff]  ;;  %v888_v2 = vld [vmem:[#allocation5 + $0x1038] sm:$0xff] }
 0x5fe   : > { %v3341_v37 = vpop.f32.mrf.mxu2  ;;  %3905 = vmatpush.xpose.msra.mxu1 %v888_v2  ;;  %3995 = vmatpush.xpose.msra.mxu2 %v883_v23  ;;  %v7521_v23 = vld [vmem:[%s5139_s27 + $0x268] sm:$0xff] }
 0x5ff   : > { %v3342_v29 = vadd.f32 %v3341_v37, %v3253_v44  ;;  %v7495_v44 = vld [vmem:[%s5139_s27 + $0x208] sm:$0xff]  ;;  %8270 = vst [vmem:[#allocation28_spill] sm:$0xff] %v7521_v23 }
 0x600   : > { %v3430_v54 = vpop.f32.mrf.mxu3  ;;  %v3166_v38 = vpop.f32.mrf.mxu0  ;;  %8268 = vst [vmem:[#allocation26_spill] sm:$0xff] %v7495_v44 }
 0x601   : > { %v3167_v61 = vadd.f32 %v3166_v38, %v7251_v19  ;;  %v7487_v8 = vadd.f32 %v3430_v54, %v3342_v29 }
 0x602   : > { %v3255_v39 = vpop.f32.mrf.mxu1 }
 0x603   : > { %v3256_v41 = vadd.f32 %v3255_v39, %v3167_v61  ;;  %3497 = vmatmul.f32.gmra.mxu0 %v7490_v21  ;;  %3675 = vmatmul.f32.gmra.mxu2 %v7179_v9  ;;  %v7503_v9 = vld [vmem:[%s5139_s27 + $0x230] sm:$0xff] }
 0x605   : > { %3586 = vmatmul.f32.gmra.mxu1 %v7495_v44  ;;  %3764 = vmatmul.f32.gmra.mxu3 %v7184_v46  ;;  %v7508_v44 = vld [vmem:[%s5139_s27 + $0x238] sm:$0xff]  ;;  %v881_v46 = vld [vmem:[#allocation5 + $0x1000] sm:$0xff] }
 0x606   : > { %v3344_v37 = vpop.f32.mrf.mxu2  ;;  %8269 = vst [vmem:[#allocation27_spill] sm:$0xff] %v7508_v44  ;;  %3817 = vmatpush.xpose.msra.mxu0 %v881_v46 }
 0x607   : > { %v3345_v29 = vadd.f32 %v3344_v37, %v3256_v41  ;;  %v884_v41 = vld [vmem:[#allocation5 + $0x1018] sm:$0xff] }
 0x608   : > { %v3433_v54 = vpop.f32.mrf.mxu3  ;;  %v3169_v51 = vpop.f32.mrf.mxu0  ;;  %4084 = vmatpush.xpose.msra.mxu3 %v884_v41 }
 0x609   : > { %v3170_v38 = vadd.f32 %v3169_v51, %v7251_v19  ;;  %v7500_v61 = vadd.f32 %v3433_v54, %v3345_v29  ;;  %v882_v54 = vld [vmem:[#allocation5 + $0x1008] sm:$0xff] }
 0x60a   : > { %v3258_v39 = vpop.f32.mrf.mxu1  ;;  %3906 = vmatpush.xpose.msra.mxu1 %v882_v54 }
 0x60b   : > { %v3259_v0 = vadd.f32 %v3258_v39, %v3170_v38  ;;  %3500 = vmatmul.f32.gmra.mxu0 %v7503_v9  ;;  %3678 = vmatmul.f32.gmra.mxu2 %v7191_v43 }
 0x60d   : > { %3589 = vmatmul.f32.gmra.mxu1 %v7508_v44  ;;  %3767 = vmatmul.f32.gmra.mxu3 %v7196_v55  ;;  %v7516_v55 = vld [vmem:[%s5139_s27 + $0x260] sm:$0xff] }
 0x60e   : > { %v3347_v2 = vpop.f32.mrf.mxu2 }
 0x60f   : > { %v3348_v37 = vadd.f32 %v3347_v2, %v3259_v0  ;;  %v877_v2 = vld [vmem:[#allocation5 + $0xfe0] sm:$0xff] }
 0x610   : > { %v3436_v29 = vpop.f32.mrf.mxu3  ;;  %v3172_v51 = vpop.f32.mrf.mxu0  ;;  %3996 = vmatpush.xpose.msra.mxu2 %v877_v2 }
 0x611   : > { %v3173_v43 = vadd.f32 %v3172_v51, %v7251_v19  ;;  %v7513_v38 = vadd.f32 %v3436_v29, %v3348_v37 }
 0x612   : > { %v3261_v39 = vpop.f32.mrf.mxu1 }
 0x613   : > { %v3262_v44 = vadd.f32 %v3261_v39, %v3173_v43  ;;  %3503 = vmatmul.f32.gmra.mxu0 %v7516_v55  ;;  %3681 = vmatmul.f32.gmra.mxu2 %v7203_v7  ;;  %v875_v7 = vld [vmem:[#allocation5 + $0xfd0] sm:$0xff]  ;;  %v878_v43 = vld [vmem:[#allocation5 + $0xfe8] sm:$0xff] }
 0x614   : > { %3818 = vmatpush.xpose.msra.mxu0 %v875_v7  ;;  %4085 = vmatpush.xpose.msra.mxu3 %v878_v43  ;;  %v7547_v43 = vld [vmem:[%s5139_s27 + $0x2c8] sm:$0xff] }
 0x615   : > { %3592 = vmatmul.f32.gmra.mxu1 %v7521_v23  ;;  %3770 = vmatmul.f32.gmra.mxu3 %v7208_v32  ;;  %v7529_v23 = vld [vmem:[%s5139_s27 + $0x290] sm:$0xff]  ;;  %v7534_v32 = vld [vmem:[%s5139_s27 + $0x298] sm:$0xff]  ;;  %8272 = vst [vmem:[#allocation30_spill] sm:$0xff] %v7547_v43 }
 0x616   : > { %v3350_v0 = vpop.f32.mrf.mxu2 }
 0x617   : > { %v3351_v46 = vadd.f32 %v3350_v0, %v3262_v44  ;;  %v876_v44 = vld [vmem:[#allocation5 + $0xfd8] sm:$0xff] }
 0x618   : > { %v3439_v41 = vpop.f32.mrf.mxu3  ;;  %v3175_v37 = vpop.f32.mrf.mxu0  ;;  %3907 = vmatpush.xpose.msra.mxu1 %v876_v44  ;;  %v872_v44 = vld [vmem:[#allocation5 + $0xfb8] sm:$0xff] }
 0x619   : > { %v3176_v29 = vadd.f32 %v3175_v37, %v7251_v19  ;;  %v7526_v54 = vadd.f32 %v3439_v41, %v3351_v46  ;;  %4086 = vmatpush.xpose.msra.mxu3 %v872_v44  ;;  %v865_v44 = vld [vmem:[#allocation5 + $0xf80] sm:$0xff] }
 0x61a   : > { %v3264_v51 = vpop.f32.mrf.mxu1 }
 0x61b   : > { %v3265_v39 = vadd.f32 %v3264_v51, %v3176_v29  ;;  %3506 = vmatmul.f32.gmra.mxu0 %v7529_v23  ;;  %3684 = vmatmul.f32.gmra.mxu2 %v7215_v31  ;;  %v7542_v31 = vld [vmem:[%s5139_s27 + $0x2c0] sm:$0xff] }
 0x61c   : > { %8271 = vst [vmem:[#allocation29_spill] sm:$0xff] %v7542_v31 }
 0x61d   : > { %3595 = vmatmul.f32.gmra.mxu1 %v7534_v32  ;;  %3773 = vmatmul.f32.gmra.mxu3 %v7220_v24  ;;  %v871_v24 = vld [vmem:[#allocation5 + $0xfb0] sm:$0xff] }
 0x61e   : > { %v3353_v0 = vpop.f32.mrf.mxu2  ;;  %3997 = vmatpush.xpose.msra.mxu2 %v871_v24  ;;  %v7560_v24 = vld [vmem:[%s5139_s27 + $0x2f8] sm:$0xff] }
 0x61f   : > { %v3354_v46 = vadd.f32 %v3353_v0, %v3265_v39  ;;  %v869_v39 = vld [vmem:[#allocation5 + $0xfa0] sm:$0xff] }
 0x620   : > { %v3442_v41 = vpop.f32.mrf.mxu3  ;;  %v3178_v2 = vpop.f32.mrf.mxu0  ;;  %3819 = vmatpush.xpose.msra.mxu0 %v869_v39 }
 0x621   : > { %v3179_v37 = vadd.f32 %v3178_v2, %v7251_v19  ;;  %v7539_v29 = vadd.f32 %v3442_v41, %v3354_v46  ;;  %v870_v2 = vld [vmem:[#allocation5 + $0xfa8] sm:$0xff] }
 0x622   : > { %v3267_v51 = vpop.f32.mrf.mxu1  ;;  %3908 = vmatpush.xpose.msra.mxu1 %v870_v2  ;;  %3998 = vmatpush.xpose.msra.mxu2 %v865_v44  ;;  %v866_v2 = vld [vmem:[#allocation5 + $0xf88] sm:$0xff] }
 0x623   : > { %v3268_v7 = vadd.f32 %v3267_v51, %v3179_v37  ;;  %3509 = vmatmul.f32.gmra.mxu0 %v7542_v31  ;;  %3687 = vmatmul.f32.gmra.mxu2 %v7227_v58  ;;  %v7555_v31 = vld [vmem:[%s5139_s27 + $0x2f0] sm:$0xff] }
 0x624   : > { %4087 = vmatpush.xpose.msra.mxu3 %v866_v2  ;;  %v859_v2 = vld [vmem:[#allocation5 + $0xf50] sm:$0xff] }
 0x625   : > { %3598 = vmatmul.f32.gmra.mxu1 %v7547_v43  ;;  %3776 = vmatmul.f32.gmra.mxu3 %v7232_v49 }
 0x626   : > { %v3356_v0 = vpop.f32.mrf.mxu2  ;;  %3999 = vmatpush.xpose.msra.mxu2 %v859_v2  ;;  %v7606_v2 = vld [vmem:[%s5139_s27 + $0x388] sm:$0xff] }
 0x627   : > { %v3357_v46 = vadd.f32 %v3356_v0, %v3268_v7 }
 0x628   : > { %v3445_v41 = vpop.f32.mrf.mxu3  ;;  %v3181_v37 = vpop.f32.mrf.mxu0 }
 0x629   : > { %v3182_v58 = vadd.f32 %v3181_v37, %v7251_v19  ;;  %v7552_v51 = vadd.f32 %v3445_v41, %v3357_v46  ;;  %v863_v41 = vld [vmem:[#allocation5 + $0xf70] sm:$0xff] }
 0x62a   : > { %v3270_v43 = vpop.f32.mrf.mxu1  ;;  %3820 = vmatpush.xpose.msra.mxu0 %v863_v41  ;;  %v8273_v41 = vld [vmem:[#allocation32_spill] sm:$0xff] }
 0x62b   : > { %v3271_v49 = vadd.f32 %v3270_v43, %v3182_v58  ;;  %3512 = vmatmul.f32.gmra.mxu0 %v7555_v31  ;;  %3690 = vmatmul.f32.gmra.mxu2 %v7239_v35  ;;  %v7568_v58 = vld [vmem:[%s5139_s27 + $0x320] sm:$0xff] }
 0x62d   : > { %3601 = vmatmul.f32.gmra.mxu1 %v7560_v24  ;;  %3779 = vmatmul.f32.gmra.mxu3 %v7244_v15  ;;  %v7573_v15 = vperm.slane %v7248_v48, 5 }
 0x62e   : > { %v3359_v7 = vpop.f32.mrf.mxu2 }
 0x62f   : > { %v3360_v39 = vadd.f32 %v3359_v7, %v3271_v49  ;;  %v7576_v49 = vld [vmem:[%s5139_s27 + $0x328] sm:$0xff] }
 0x630   : > { %v3448_v19 = vpop.f32.mrf.mxu3  ;;  %v3468_v0 = vpop.f32.mrf.mxu0 }
 0x631   : > { %v7564_v43 = vadd.f32 %v3448_v19, %v3360_v39  ;;  %v3469_v46 = vadd.f32 %v3468_v0, %v7266_v18  ;;  %v864_v18 = vld [vmem:[#allocation5 + $0xf78] sm:$0xff] }
 0x632   : > { %v3557_v35 = vpop.f32.mrf.mxu1  ;;  %3909 = vmatpush.xpose.msra.mxu1 %v864_v18 }
 0x633   : > { %v3558_v37 = vadd.f32 %v3557_v35, %v3469_v46  ;;  %3515 = vmatmul.f32.gmra.mxu0 %v7568_v58  ;;  %3693 = vmatmul.f32.gmra.mxu2 %v7256_v33  ;;  %v7586_v35 = vld [vmem:[%s5139_s27 + $0x350] sm:$0xff] }
 0x635   : > { %3604 = vmatmul.f32.gmra.mxu1 %v7576_v49  ;;  %3782 = vmatmul.f32.gmra.mxu3 %v7261_v53  ;;  %4167 = vst [vmem:[%s5642_s18 + $0x20] sm:$0xff] %v3558_v37  ;;  %v7591_v53 = vld [vmem:[%s5139_s27 + $0x358] sm:$0xff] }
 0x636   : > { %v3646_v7 = vpop.f32.mrf.mxu2  ;;  %v860_v37 = vld [vmem:[#allocation5 + $0xf58] sm:$0xff] }
 0x637   : > { %v3647_v39 = vadd.f32 %v3646_v7, %v7573_v15  ;;  %4088 = vmatpush.xpose.msra.mxu3 %v860_v37 }
 0x638   : > { %v3735_v19 = vpop.f32.mrf.mxu3  ;;  %v3471_v33 = vpop.f32.mrf.mxu0 }
 0x639   : > { %v3472_v44 = vadd.f32 %v3471_v33, %v7279_v26  ;;  %v7583_v48 = vadd.f32 %v3735_v19, %v3647_v39  ;;  %v857_v26 = vld [vmem:[#allocation5 + $0xf40] sm:$0xff] }
 0x63a   : > { %v3560_v0 = vpop.f32.mrf.mxu1  ;;  %3821 = vmatpush.xpose.msra.mxu0 %v857_v26  ;;  %v8274_v26 = vld [vmem:[#allocation33_spill] sm:$0xff] }
 0x63b   : > { %v3561_v46 = vadd.f32 %v3560_v0, %v3472_v44  ;;  %3518 = vmatmul.f32.gmra.mxu0 %v7586_v35  ;;  %3696 = vmatmul.f32.gmra.mxu2 %v7269_v59  ;;  %v858_v59 = vld [vmem:[#allocation5 + $0xf48] sm:$0xff] }
 0x63c   : > { %3910 = vmatpush.xpose.msra.mxu1 %v858_v59 }
 0x63d   : > { %3607 = vmatmul.f32.gmra.mxu1 %v7591_v53  ;;  %3785 = vmatmul.f32.gmra.mxu3 %v8273_v41  ;;  %4173 = vst [vmem:[%s5642_s18 + $0x50] sm:$0xff] %v3561_v46  ;;  %v7601_v41 = vld [vmem:[%s5139_s27 + $0x380] sm:$0xff] }
 0x63e   : > { %v3649_v18 = vpop.f32.mrf.mxu2 }
 0x63f   : > { %v3650_v7 = vadd.f32 %v3649_v18, %v7573_v15 }
 0x640   : > { %v3738_v39 = vpop.f32.mrf.mxu3  ;;  %v3474_v19 = vpop.f32.mrf.mxu0 }
 0x641   : > { %v3475_v33 = vadd.f32 %v3474_v19, %v7292_v36  ;;  %v7598_v44 = vadd.f32 %v3738_v39, %v3650_v7  ;;  %v853_v7 = vld [vmem:[#allocation5 + $0xf20] sm:$0xff] }
 0x642   : > { %v3563_v0 = vpop.f32.mrf.mxu1  ;;  %4000 = vmatpush.xpose.msra.mxu2 %v853_v7 }
 0x643   : > { %v3564_v46 = vadd.f32 %v3563_v0, %v3475_v33  ;;  %3521 = vmatmul.f32.gmra.mxu0 %v7601_v41  ;;  %3699 = vmatmul.f32.gmra.mxu2 %v7282_v16  ;;  %v851_v33 = vld [vmem:[#allocation5 + $0xf10] sm:$0xff]  ;;  %v854_v0 = vld [vmem:[#allocation5 + $0xf28] sm:$0xff] }
 0x644   : > { %3822 = vmatpush.xpose.msra.mxu0 %v851_v33  ;;  %4089 = vmatpush.xpose.msra.mxu3 %v854_v0 }
 0x645   : > { %3610 = vmatmul.f32.gmra.mxu1 %v7606_v2  ;;  %3788 = vmatmul.f32.gmra.mxu3 %v8274_v26  ;;  %4179 = vst [vmem:[%s5642_s18 + $0x80] sm:$0xff] %v3564_v46  ;;  %v7616_v46 = vld [vmem:[%s5139_s27 + $0x3b0] sm:$0xff] }
 0x646   : > { %v3652_v37 = vpop.f32.mrf.mxu2 }
 0x647   : > { %v3653_v36 = vadd.f32 %v3652_v37, %v7573_v15  ;;  %v7621_v37 = vld [vmem:[%s5139_s27 + $0x3b8] sm:$0xff] }
 0x648   : > { %v3741_v18 = vpop.f32.mrf.mxu3  ;;  %v3477_v39 = vpop.f32.mrf.mxu0  ;;  %8275 = vst [vmem:[#allocation31_spill] sm:$0xff] %v7621_v37 }
 0x649   : > { %v3478_v59 = vadd.f32 %v3477_v39, %v7305_v50  ;;  %v7613_v16 = vadd.f32 %v3741_v18, %v3653_v36  ;;  %v8276_v50 = vld [vmem:[#allocation34_spill] sm:$0xff] }
 0x64a   : > { %v3566_v19 = vpop.f32.mrf.mxu1  ;;  %v852_v36 = vld [vmem:[#allocation5 + $0xf18] sm:$0xff] }
 0x64b   : > { %v3567_v26 = vadd.f32 %v3566_v19, %v3478_v59  ;;  %3524 = vmatmul.f32.gmra.mxu0 %v7616_v46  ;;  %3702 = vmatmul.f32.gmra.mxu2 %v7295_v52 }
 0x64c   : > { %3911 = vmatpush.xpose.msra.mxu1 %v852_v36 }
 0x64d   : > { %3613 = vmatmul.f32.gmra.mxu1 %v7621_v37  ;;  %3791 = vmatmul.f32.gmra.mxu3 %v8276_v50  ;;  %4185 = vst [vmem:[%s5642_s18 + $0xb0] sm:$0xff] %v3567_v26  ;;  %v7631_v37 = vld [vmem:[%s5139_s27 + $0x3e0] sm:$0xff]  ;;  %v7636_v26 = vld [vmem:[%s5139_s27 + $0x3e8] sm:$0xff] }
 0x64e   : > { %v3655_v18 = vpop.f32.mrf.mxu2  ;;  %v8277_v50 = vld [vmem:[#allocation12_spill] sm:$0xff] }
 0x64f   : > { %v3656_v7 = vadd.f32 %v3655_v18, %v7573_v15 }
 0x650   : > { %v3744_v39 = vpop.f32.mrf.mxu3  ;;  %v3480_v59 = vpop.f32.mrf.mxu0 }
 0x651   : > { %v3481_v19 = vadd.f32 %v3480_v59, %v7318_v6  ;;  %v7628_v33 = vadd.f32 %v3744_v39, %v3656_v7 }
 0x652   : > { %v3569_v52 = vpop.f32.mrf.mxu1 }
 0x653   : > { %v3570_v0 = vadd.f32 %v3569_v52, %v3481_v19  ;;  %3527 = vmatmul.f32.gmra.mxu0 %v7631_v37  ;;  %3705 = vmatmul.f32.gmra.mxu2 %v7308_v17  ;;  %v7646_v52 = vld [vmem:[%s5139_s27 + $0x410] sm:$0xff] }
 0x654   : > { %8278 = vst [vmem:[#allocation32_spill] sm:$0xff] %v7646_v52 }
 0x655   : > { %3616 = vmatmul.f32.gmra.mxu1 %v7636_v26  ;;  %3794 = vmatmul.f32.gmra.mxu3 %v8277_v50  ;;  %4191 = vst [vmem:[%s5642_s18 + $0xe0] sm:$0xff] %v3570_v0  ;;  %v7651_v0 = vld [vmem:[%s5139_s27 + $0x418] sm:$0xff]  ;;  %v8279_v50 = vld [vmem:[#allocation17_spill] sm:$0xff] }
 0x656   : > { %v3658_v6 = vpop.f32.mrf.mxu2 }
 0x657   : > { %v3659_v36 = vadd.f32 %v3658_v6, %v7573_v15 }
 0x658   : > { %v3747_v18 = vpop.f32.mrf.mxu3  ;;  %v3483_v7 = vpop.f32.mrf.mxu0 }
 0x659   : > { %v3484_v39 = vadd.f32 %v3483_v7, %v7331_v5  ;;  %v7643_v59 = vadd.f32 %v3747_v18, %v3659_v36 }
 0x65a   : > { %v3572_v19 = vpop.f32.mrf.mxu1 }
 0x65b   : > { %v3573_v17 = vadd.f32 %v3572_v19, %v3484_v39  ;;  %3530 = vmatmul.f32.gmra.mxu0 %v7646_v52  ;;  %3708 = vmatmul.f32.gmra.mxu2 %v7321_v1  ;;  %v7661_v52 = vld [vmem:[%s5139_s27 + $0x440] sm:$0xff] }
 0x65c   : > { %8280 = vst [vmem:[#allocation33_spill] sm:$0xff] %v7661_v52 }
 0x65d   : > { %3619 = vmatmul.f32.gmra.mxu1 %v7651_v0  ;;  %3797 = vmatmul.f32.gmra.mxu3 %v8279_v50  ;;  %4197 = vst [vmem:[%s5642_s18 + $0x110] sm:$0xff] %v3573_v17  ;;  %v7666_v17 = vld [vmem:[%s5139_s27 + $0x448] sm:$0xff] }
 0x65e   : > { %v3661_v5 = vpop.f32.mrf.mxu2  ;;  %v8281_v50 = vld [vmem:[#allocation13_spill] sm:$0xff] }
 0x65f   : > { %v3662_v6 = vadd.f32 %v3661_v5, %v7573_v15 }
 0x660   : > { %v3750_v36 = vpop.f32.mrf.mxu3  ;;  %v3486_v18 = vpop.f32.mrf.mxu0 }
 0x661   : > { %v3487_v7 = vadd.f32 %v3486_v18, %v7344_v45  ;;  %v7658_v39 = vadd.f32 %v3750_v36, %v3662_v6 }
 0x662   : > { %v3575_v19 = vpop.f32.mrf.mxu1 }
 0x663   : > { %v3576_v1 = vadd.f32 %v3575_v19, %v3487_v7  ;;  %3533 = vmatmul.f32.gmra.mxu0 %v7661_v52  ;;  %3711 = vmatmul.f32.gmra.mxu2 %v7334_v62  ;;  %v7676_v52 = vld [vmem:[%s5139_s27 + $0x470] sm:$0xff] }
 0x664   : > { %8282 = vst [vmem:[#allocation34_spill] sm:$0xff] %v7676_v52 }
 0x665   : > { %3622 = vmatmul.f32.gmra.mxu1 %v7666_v17  ;;  %3800 = vmatmul.f32.gmra.mxu3 %v8281_v50  ;;  %4203 = vst [vmem:[%s5642_s18 + $0x140] sm:$0xff] %v3576_v1  ;;  %v7681_v1 = vld [vmem:[%s5139_s27 + $0x478] sm:$0xff] }
 0x666   : > { %v3664_v45 = vpop.f32.mrf.mxu2  ;;  %8283 = vst [vmem:[#allocation12_spill] sm:$0xff] %v7681_v1  ;;  %v8284_v50 = vld [vmem:[#allocation14_spill] sm:$0xff] }
 0x667   : > { %v3665_v5 = vadd.f32 %v3664_v45, %v7573_v15 }
 0x668   : > { %v3753_v6 = vpop.f32.mrf.mxu3  ;;  %v3489_v36 = vpop.f32.mrf.mxu0 }
 0x669   : > { %v3490_v18 = vadd.f32 %v3489_v36, %v7357_v42  ;;  %v7673_v7 = vadd.f32 %v3753_v6, %v3665_v5 }
 0x66a   : > { %v3578_v19 = vpop.f32.mrf.mxu1 }
 0x66b   : > { %v3579_v62 = vadd.f32 %v3578_v19, %v3490_v18  ;;  %3536 = vmatmul.f32.gmra.mxu0 %v7676_v52  ;;  %3714 = vmatmul.f32.gmra.mxu2 %v7347_v57  ;;  %v4795_v52 = vld [vmem:[%s5139_s27 + $0x10] sm:$0xff] }
 0x66d   : > { %3625 = vmatmul.f32.gmra.mxu1 %v7681_v1  ;;  %3803 = vmatmul.f32.gmra.mxu3 %v8284_v50  ;;  %4209 = vst [vmem:[%s5642_s18 + $0x170] sm:$0xff] %v3579_v62  ;;  %v4796_v50 = vld [vmem:[%s5139_s27 + $0x18] sm:$0xff] }
 0x66e   : > { %v3667_v42 = vpop.f32.mrf.mxu2  ;;  %v8285_v62 = vld [vmem:[#allocation15_spill] sm:$0xff] }
 0x66f   : > { %v3668_v45 = vadd.f32 %v3667_v42, %v7573_v15 }
 0x670   : > { %v3756_v5 = vpop.f32.mrf.mxu3  ;;  %v3492_v6 = vpop.f32.mrf.mxu0 }
 0x671   : > { %v3493_v36 = vadd.f32 %v3492_v6, %v7370_v14  ;;  %v7688_v18 = vadd.f32 %v3756_v5, %v3668_v45 }
 0x672   : > { %v3581_v19 = vpop.f32.mrf.mxu1 }
 0x673   : > { %v3582_v57 = vadd.f32 %v3581_v19, %v3493_v36  ;;  %3823 = vmatmul.f32.vlgmr.msra.gmra.mxu0 %v4795_v52  ;;  %4001 = vmatmul.f32.vlgmr.msra.gmra.mxu2 %v7360_v63  ;;  %v4797_v63 = vld [vmem:[%s5139_s27 + $0x40] sm:$0xff]  ;;  %v4798_v19 = vld [vmem:[%s5139_s27 + $0x48] sm:$0xff] }
 0x675   : > { %3912 = vmatmul.f32.vlgmr.msra.gmra.mxu1 %v4796_v50  ;;  %4090 = vmatmul.f32.vlgmr.msra.gmra.mxu3 %v8285_v62  ;;  %4215 = vst [vmem:[%s5642_s18 + $0x1a0] sm:$0xff] %v3582_v57  ;;  %v8286_v57 = vld [vmem:[#allocation16_spill] sm:$0xff] }
 0x676   : > { %v3670_v42 = vpop.f32.mrf.mxu2 }
 0x677   : > { %v3671_v1 = vadd.f32 %v3670_v42, %v7573_v15 }
 0x678   : > { %v3759_v14 = vpop.f32.mrf.mxu3  ;;  %v3495_v45 = vpop.f32.mrf.mxu0 }
 0x679   : > { %v3496_v5 = vadd.f32 %v3495_v45, %v7383_v56  ;;  %v7697_v6 = vadd.f32 %v3759_v14, %v3671_v1 }
 0x67a   : > { %v3584_v36 = vpop.f32.mrf.mxu1 }
 0x67b   : > { %v3585_v52 = vadd.f32 %v3584_v36, %v3496_v5  ;;  %3826 = vmatmul.f32.gmra.mxu0 %v4797_v63  ;;  %4004 = vmatmul.f32.gmra.mxu2 %v7373_v40  ;;  %v4799_v40 = vld [vmem:[%s5139_s27 + $0x70] sm:$0xff]  ;;  %v4800_v36 = vld [vmem:[%s5139_s27 + $0x78] sm:$0xff] }
 0x67d   : > { %3915 = vmatmul.f32.gmra.mxu1 %v4798_v19  ;;  %4093 = vmatmul.f32.gmra.mxu3 %v8286_v57  ;;  %4221 = vst [vmem:[%s5642_s18 + $0x1d0] sm:$0xff] %v3585_v52  ;;  %v8287_v52 = vld [vmem:[#allocation18_spill] sm:$0xff] }
 0x67e   : > { %v3673_v50 = vpop.f32.mrf.mxu2 }
 0x67f   : > { %v3674_v62 = vadd.f32 %v3673_v50, %v7573_v15 }
 0x680   : > { %v3762_v56 = vpop.f32.mrf.mxu3  ;;  %v3498_v1 = vpop.f32.mrf.mxu0 }
 0x681   : > { %v3499_v42 = vadd.f32 %v3498_v1, %v7396_v10  ;;  %v7706_v14 = vadd.f32 %v3762_v56, %v3674_v62 }
 0x682   : > { %v3587_v45 = vpop.f32.mrf.mxu1 }
 0x683   : > { %v3588_v5 = vadd.f32 %v3587_v45, %v3499_v42  ;;  %3829 = vmatmul.f32.gmra.mxu0 %v4799_v40  ;;  %4007 = vmatmul.f32.gmra.mxu2 %v7386_v60  ;;  %v4801_v60 = vld [vmem:[%s5139_s27 + $0xa0] sm:$0xff]  ;;  %v4802_v42 = vld [vmem:[%s5139_s27 + $0xa8] sm:$0xff] }
 0x684   : > { %v8288_v45 = vld [vmem:[#allocation19_spill] sm:$0xff] }
 0x685   : > { %3918 = vmatmul.f32.gmra.mxu1 %v4800_v36  ;;  %4096 = vmatmul.f32.gmra.mxu3 %v8287_v52  ;;  %4227 = vst [vmem:[%s5642_s18 + $0x200] sm:$0xff] %v3588_v5 }
 0x686   : > { %v3676_v63 = vpop.f32.mrf.mxu2 }
 0x687   : > { %v3677_v19 = vadd.f32 %v3676_v63, %v7573_v15 }
 0x688   : > { %v3765_v10 = vpop.f32.mrf.mxu3  ;;  %v3501_v57 = vpop.f32.mrf.mxu0 }
 0x689   : > { %v3502_v50 = vadd.f32 %v3501_v57, %v7409_v27  ;;  %v7715_v62 = vadd.f32 %v3765_v10, %v3677_v19  ;;  %v4804_v57 = vld [vmem:[%s5139_s27 + $0xd8] sm:$0xff] }
 0x68a   : > { %v3590_v56 = vpop.f32.mrf.mxu1 }
 0x68b   : > { %v3591_v1 = vadd.f32 %v3590_v56, %v3502_v50  ;;  %3832 = vmatmul.f32.gmra.mxu0 %v4801_v60  ;;  %4010 = vmatmul.f32.gmra.mxu2 %v7399_v30  ;;  %v4803_v30 = vld [vmem:[%s5139_s27 + $0xd0] sm:$0xff]  ;;  %v8289_v50 = vld [vmem:[#allocation20_spill] sm:$0xff] }
 0x68d   : > { %3921 = vmatmul.f32.gmra.mxu1 %v4802_v42  ;;  %4099 = vmatmul.f32.gmra.mxu3 %v8288_v45  ;;  %4233 = vst [vmem:[%s5642_s18 + $0x230] sm:$0xff] %v3591_v1 }
 0x68e   : > { %v3679_v5 = vpop.f32.mrf.mxu2 }
 0x68f   : > { %v3680_v40 = vadd.f32 %v3679_v5, %v7573_v15 }
 0x690   : > { %v3768_v27 = vpop.f32.mrf.mxu3  ;;  %v3504_v36 = vpop.f32.mrf.mxu0 }
 0x691   : > { %v3505_v52 = vadd.f32 %v3504_v36, %v7422_v47  ;;  %v7724_v63 = vadd.f32 %v3768_v27, %v3680_v40  ;;  %v4806_v27 = vld [vmem:[%s5139_s27 + $0x108] sm:$0xff] }
 0x692   : > { %v3593_v19 = vpop.f32.mrf.mxu1  ;;  %v8290_v36 = vld [vmem:[#allocation21_spill] sm:$0xff] }
 0x693   : > { %v3594_v10 = vadd.f32 %v3593_v19, %v3505_v52  ;;  %3835 = vmatmul.f32.gmra.mxu0 %v4803_v30  ;;  %4013 = vmatmul.f32.gmra.mxu2 %v7412_v3  ;;  %v4805_v3 = vld [vmem:[%s5139_s27 + $0x100] sm:$0xff] }
 0x695   : > { %3924 = vmatmul.f32.gmra.mxu1 %v4804_v57  ;;  %4102 = vmatmul.f32.gmra.mxu3 %v8289_v50  ;;  %4239 = vst [vmem:[%s5642_s18 + $0x260] sm:$0xff] %v3594_v10 }
 0x696   : > { %v3682_v56 = vpop.f32.mrf.mxu2 }
 0x697   : > { %v3683_v1 = vadd.f32 %v3682_v56, %v7573_v15 }
 0x698   : > { %v3771_v47 = vpop.f32.mrf.mxu3  ;;  %v3507_v60 = vpop.f32.mrf.mxu0 }
 0x699   : > { %v3508_v42 = vadd.f32 %v3507_v60, %v7435_v25  ;;  %v7733_v45 = vadd.f32 %v3771_v47, %v3683_v1  ;;  %v4808_v1 = vld [vmem:[%s5139_s27 + $0x138] sm:$0xff] }
 0x69a   : > { %v3596_v5 = vpop.f32.mrf.mxu1  ;;  %v8291_v47 = vld [vmem:[#allocation22_spill] sm:$0xff] }
 0x69b   : > { %v3597_v40 = vadd.f32 %v3596_v5, %v3508_v42  ;;  %3838 = vmatmul.f32.gmra.mxu0 %v4805_v3  ;;  %4016 = vmatmul.f32.gmra.mxu2 %v7425_v20  ;;  %v4807_v20 = vld [vmem:[%s5139_s27 + $0x130] sm:$0xff] }
 0x69d   : > { %3927 = vmatmul.f32.gmra.mxu1 %v4806_v27  ;;  %4105 = vmatmul.f32.gmra.mxu3 %v8290_v36  ;;  %4245 = vst [vmem:[%s5642_s18 + $0x290] sm:$0xff] %v3597_v40 }
 0x69e   : > { %v3685_v52 = vpop.f32.mrf.mxu2 }
 0x69f   : > { %v3686_v19 = vadd.f32 %v3685_v52, %v7573_v15  ;;  %v4810_v52 = vld [vmem:[%s5139_s27 + $0x168] sm:$0xff] }
 0x6a0   : > { %v3774_v25 = vpop.f32.mrf.mxu3  ;;  %v3510_v10 = vpop.f32.mrf.mxu0 }
 0x6a1   : > { %v3511_v30 = vadd.f32 %v3510_v10, %v7448_v12  ;;  %v7742_v57 = vadd.f32 %v3774_v25, %v3686_v19  ;;  %v8292_v19 = vld [vmem:[#allocation23_spill] sm:$0xff] }
 0x6a2   : > { %v3599_v50 = vpop.f32.mrf.mxu1 }
 0x6a3   : > { %v3600_v56 = vadd.f32 %v3599_v50, %v3511_v30  ;;  %3841 = vmatmul.f32.gmra.mxu0 %v4807_v20  ;;  %4019 = vmatmul.f32.gmra.mxu2 %v7438_v34  ;;  %v4809_v34 = vld [vmem:[%s5139_s27 + $0x160] sm:$0xff] }
 0x6a5   : > { %3930 = vmatmul.f32.gmra.mxu1 %v4808_v1  ;;  %4108 = vmatmul.f32.gmra.mxu3 %v8291_v47  ;;  %4251 = vst [vmem:[%s5642_s18 + $0x2c0] sm:$0xff] %v3600_v56  ;;  %v4812_v47 = vld [vmem:[%s5139_s27 + $0x198] sm:$0xff] }
 0x6a6   : > { %v3688_v60 = vpop.f32.mrf.mxu2 }
 0x6a7   : > { %v3689_v42 = vadd.f32 %v3688_v60, %v7573_v15  ;;  %v8293_v60 = vld [vmem:[#allocation24_spill] sm:$0xff] }
 0x6a8   : > { %v3777_v12 = vpop.f32.mrf.mxu3  ;;  %v3513_v5 = vpop.f32.mrf.mxu0 }
 0x6a9   : > { %v3514_v40 = vadd.f32 %v3513_v5, %v7461_v4  ;;  %v7751_v3 = vadd.f32 %v3777_v12, %v3689_v42 }
 0x6aa   : > { %v3602_v27 = vpop.f32.mrf.mxu1 }
 0x6ab   : > { %v3603_v36 = vadd.f32 %v3602_v27, %v3514_v40  ;;  %3844 = vmatmul.f32.gmra.mxu0 %v4809_v34  ;;  %4022 = vmatmul.f32.gmra.mxu2 %v7451_v28  ;;  %v4811_v28 = vld [vmem:[%s5139_s27 + $0x190] sm:$0xff] }
 0x6ad   : > { %3933 = vmatmul.f32.gmra.mxu1 %v4810_v52  ;;  %4111 = vmatmul.f32.gmra.mxu3 %v8292_v19  ;;  %4257 = vst [vmem:[%s5642_s18 + $0x2f0] sm:$0xff] %v3603_v36  ;;  %v4814_v52 = vld [vmem:[%s5139_s27 + $0x1c8] sm:$0xff] }
 0x6ae   : > { %v3691_v25 = vpop.f32.mrf.mxu2  ;;  %v8294_v19 = vld [vmem:[#allocation25_spill] sm:$0xff] }
 0x6af   : > { %v3692_v10 = vadd.f32 %v3691_v25, %v7573_v15 }
 0x6b0   : > { %v3780_v4 = vpop.f32.mrf.mxu3  ;;  %v3516_v30 = vpop.f32.mrf.mxu0 }
 0x6b1   : > { %v3517_v50 = vadd.f32 %v3516_v30, %v7474_v13  ;;  %v7760_v56 = vadd.f32 %v3780_v4, %v3692_v10 }
 0x6b2   : > { %v3605_v20 = vpop.f32.mrf.mxu1 }
 0x6b3   : > { %v3606_v1 = vadd.f32 %v3605_v20, %v3517_v50  ;;  %3847 = vmatmul.f32.gmra.mxu0 %v4811_v28  ;;  %4025 = vmatmul.f32.gmra.mxu2 %v7464_v11  ;;  %v4813_v11 = vld [vmem:[%s5139_s27 + $0x1c0] sm:$0xff]  ;;  %v4816_v28 = vld [vmem:[%s5139_s27 + $0x1f8] sm:$0xff] }
 0x6b5   : > { %3936 = vmatmul.f32.gmra.mxu1 %v4812_v47  ;;  %4114 = vmatmul.f32.gmra.mxu3 %v8293_v60  ;;  %4263 = vst [vmem:[%s5642_s18 + $0x320] sm:$0xff] %v3606_v1  ;;  %v8295_v47 = vld [vmem:[#allocation26_spill] sm:$0xff] }
 0x6b6   : > { %v3694_v42 = vpop.f32.mrf.mxu2 }
 0x6b7   : > { %v3695_v12 = vadd.f32 %v3694_v42, %v7573_v15 }
 0x6b8   : > { %v3783_v13 = vpop.f32.mrf.mxu3  ;;  %v3519_v5 = vpop.f32.mrf.mxu0 }
 0x6b9   : > { %v3520_v40 = vadd.f32 %v3519_v5, %v7487_v8  ;;  %v7769_v27 = vadd.f32 %v3783_v13, %v3695_v12 }
 0x6ba   : > { %v3608_v36 = vpop.f32.mrf.mxu1 }
 0x6bb   : > { %v3609_v34 = vadd.f32 %v3608_v36, %v3520_v40  ;;  %3850 = vmatmul.f32.gmra.mxu0 %v4813_v11  ;;  %4028 = vmatmul.f32.gmra.mxu2 %v7477_v22  ;;  %v4815_v22 = vld [vmem:[%s5139_s27 + $0x1f0] sm:$0xff]  ;;  %v8296_v11 = vld [vmem:[#allocation27_spill] sm:$0xff] }
 0x6bd   : > { %3939 = vmatmul.f32.gmra.mxu1 %v4814_v52  ;;  %4117 = vmatmul.f32.gmra.mxu3 %v8294_v19  ;;  %4269 = vst [vmem:[%s5642_s18 + $0x350] sm:$0xff] %v3609_v34  ;;  %v4818_v34 = vld [vmem:[%s5139_s27 + $0x228] sm:$0xff] }
 0x6be   : > { %v3697_v25 = vpop.f32.mrf.mxu2 }
 0x6bf   : > { %v3698_v10 = vadd.f32 %v3697_v25, %v7573_v15 }
 0x6c0   : > { %v3786_v8 = vpop.f32.mrf.mxu3  ;;  %v3522_v4 = vpop.f32.mrf.mxu0 }
 0x6c1   : > { %v3523_v30 = vadd.f32 %v3522_v4, %v7500_v61  ;;  %v7778_v50 = vadd.f32 %v3786_v8, %v3698_v10 }
 0x6c2   : > { %v3611_v20 = vpop.f32.mrf.mxu1 }
 0x6c3   : > { %v3612_v1 = vadd.f32 %v3611_v20, %v3523_v30  ;;  %3853 = vmatmul.f32.gmra.mxu0 %v4815_v22  ;;  %4031 = vmatmul.f32.gmra.mxu2 %v7490_v21  ;;  %v4817_v21 = vld [vmem:[%s5139_s27 + $0x220] sm:$0xff]  ;;  %v4820_v20 = vld [vmem:[%s5139_s27 + $0x258] sm:$0xff] }
 0x6c5   : > { %3942 = vmatmul.f32.gmra.mxu1 %v4816_v28  ;;  %4120 = vmatmul.f32.gmra.mxu3 %v8295_v47  ;;  %4275 = vst [vmem:[%s5642_s18 + $0x380] sm:$0xff] %v3612_v1  ;;  %v8297_v1 = vld [vmem:[#allocation28_spill] sm:$0xff] }
 0x6c6   : > { %v3700_v60 = vpop.f32.mrf.mxu2 }
 0x6c7   : > { %v3701_v42 = vadd.f32 %v3700_v60, %v7573_v15 }
 0x6c8   : > { %v3789_v61 = vpop.f32.mrf.mxu3  ;;  %v3525_v12 = vpop.f32.mrf.mxu0 }
 0x6c9   : > { %v3526_v13 = vadd.f32 %v3525_v12, %v7513_v38  ;;  %v7787_v5 = vadd.f32 %v3789_v61, %v3701_v42 }
 0x6ca   : > { %v3614_v40 = vpop.f32.mrf.mxu1 }
 0x6cb   : > { %v3615_v36 = vadd.f32 %v3614_v40, %v3526_v13  ;;  %3856 = vmatmul.f32.gmra.mxu0 %v4817_v21  ;;  %4034 = vmatmul.f32.gmra.mxu2 %v7503_v9  ;;  %v4819_v9 = vld [vmem:[%s5139_s27 + $0x250] sm:$0xff]  ;;  %v4822_v13 = vld [vmem:[%s5139_s27 + $0x288] sm:$0xff] }
 0x6cd   : > { %3945 = vmatmul.f32.gmra.mxu1 %v4818_v34  ;;  %4123 = vmatmul.f32.gmra.mxu3 %v8296_v11  ;;  %4281 = vst [vmem:[%s5642_s18 + $0x3b0] sm:$0xff] %v3615_v36 }
 0x6ce   : > { %v3703_v52 = vpop.f32.mrf.mxu2 }
 0x6cf   : > { %v3704_v19 = vadd.f32 %v3703_v52, %v7573_v15 }
 0x6d0   : > { %v3792_v38 = vpop.f32.mrf.mxu3  ;;  %v3528_v25 = vpop.f32.mrf.mxu0 }
 0x6d1   : > { %v3529_v10 = vadd.f32 %v3528_v25, %v7526_v54  ;;  %v7796_v8 = vadd.f32 %v3792_v38, %v3704_v19  ;;  %v8298_v38 = vld [vmem:[#allocation29_spill] sm:$0xff]  ;;  %v8299_v25 = vld [vmem:[#allocation30_spill] sm:$0xff] }
 0x6d2   : > { %v3617_v4 = vpop.f32.mrf.mxu1 }
 0x6d3   : > { %v3618_v30 = vadd.f32 %v3617_v4, %v3529_v10  ;;  %3859 = vmatmul.f32.gmra.mxu0 %v4819_v9  ;;  %4037 = vmatmul.f32.gmra.mxu2 %v7516_v55  ;;  %v4821_v55 = vld [vmem:[%s5139_s27 + $0x280] sm:$0xff] }
 0x6d5   : > { %3948 = vmatmul.f32.gmra.mxu1 %v4820_v20  ;;  %4126 = vmatmul.f32.gmra.mxu3 %v8297_v1  ;;  %4287 = vst [vmem:[%s5642_s18 + $0x3e0] sm:$0xff] %v3618_v30 }
 0x6d6   : > { %v3706_v22 = vpop.f32.mrf.mxu2 }
 0x6d7   : > { %v3707_v28 = vadd.f32 %v3706_v22, %v7573_v15 }
 0x6d8   : > { %v3795_v54 = vpop.f32.mrf.mxu3  ;;  %v3531_v47 = vpop.f32.mrf.mxu0 }
 0x6d9   : > { %v3532_v60 = vadd.f32 %v3531_v47, %v7539_v29  ;;  %v7805_v42 = vadd.f32 %v3795_v54, %v3707_v28  ;;  %v4825_v28 = vld [vmem:[%s5139_s27 + $0x2e0] sm:$0xff]  ;;  %v4826_v54 = vld [vmem:[%s5139_s27 + $0x2e8] sm:$0xff] }
 0x6da   : > { %v3620_v61 = vpop.f32.mrf.mxu1 }
 0x6db   : > { %v3621_v12 = vadd.f32 %v3620_v61, %v3532_v60  ;;  %3862 = vmatmul.f32.gmra.mxu0 %v4821_v55  ;;  %4040 = vmatmul.f32.gmra.mxu2 %v7529_v23  ;;  %v4823_v23 = vld [vmem:[%s5139_s27 + $0x2b0] sm:$0xff] }
 0x6dd   : > { %3951 = vmatmul.f32.gmra.mxu1 %v4822_v13  ;;  %4129 = vmatmul.f32.gmra.mxu3 %v7534_v32  ;;  %4293 = vst [vmem:[%s5642_s18 + $0x410] sm:$0xff] %v3621_v12  ;;  %v4824_v32 = vld [vmem:[%s5139_s27 + $0x2b8] sm:$0xff] }
 0x6de   : > { %v3709_v40 = vpop.f32.mrf.mxu2 }
 0x6df   : > { %v3710_v36 = vadd.f32 %v3709_v40, %v7573_v15  ;;  %v4827_v40 = vld [vmem:[%s5139_s27 + $0x310] sm:$0xff] }
 0x6e0   : > { %v3798_v29 = vpop.f32.mrf.mxu3  ;;  %v3534_v21 = vpop.f32.mrf.mxu0 }
 0x6e1   : > { %v3535_v34 = vadd.f32 %v3534_v21, %v7552_v51  ;;  %v7814_v11 = vadd.f32 %v3798_v29, %v3710_v36 }
 0x6e2   : > { %v3623_v52 = vpop.f32.mrf.mxu1 }
 0x6e3   : > { %v3624_v19 = vadd.f32 %v3623_v52, %v3535_v34  ;;  %3865 = vmatmul.f32.gmra.mxu0 %v4823_v23  ;;  %4043 = vmatmul.f32.gmra.mxu2 %v8298_v38 }
 0x6e5   : > { %3954 = vmatmul.f32.gmra.mxu1 %v4824_v32  ;;  %4132 = vmatmul.f32.gmra.mxu3 %v8299_v25  ;;  %4299 = vst [vmem:[%s5642_s18 + $0x440] sm:$0xff] %v3624_v19  ;;  %v4829_v19 = vld [vmem:[%s5139_s27 + $0x340] sm:$0xff] }
 0x6e6   : > { %v3712_v10 = vpop.f32.mrf.mxu2 }
 0x6e7   : > { %v3713_v4 = vadd.f32 %v3712_v10, %v7573_v15 }
 0x6e8   : > { %v3801_v51 = vpop.f32.mrf.mxu3  ;;  %v3537_v30 = vpop.f32.mrf.mxu0 }
 0x6e9   : > { %v3538_v9 = vadd.f32 %v3537_v30, %v7564_v43  ;;  %v7823_v20 = vadd.f32 %v3801_v51, %v3713_v4  ;;  %v4831_v51 = vld [vmem:[%s5139_s27 + $0x370] sm:$0xff] }
 0x6ea   : > { %v3626_v1 = vpop.f32.mrf.mxu1 }
 0x6eb   : > { %v3627_v22 = vadd.f32 %v3626_v1, %v3538_v9  ;;  %3868 = vmatmul.f32.gmra.mxu0 %v4825_v28  ;;  %4046 = vmatmul.f32.gmra.mxu2 %v7555_v31  ;;  %v4828_v31 = vld [vmem:[%s5139_s27 + $0x318] sm:$0xff] }
 0x6ed   : > { %3957 = vmatmul.f32.gmra.mxu1 %v4826_v54  ;;  %4135 = vmatmul.f32.gmra.mxu3 %v7560_v24  ;;  %4305 = vst [vmem:[%s5642_s18 + $0x470] sm:$0xff] %v3627_v22 }
 0x6ee   : > { %v3715_v47 = vpop.f32.mrf.mxu2 }
 0x6ef   : > { %v3716_v60 = vadd.f32 %v3715_v47, %v7573_v15  ;;  %v4833_v47 = vld [vmem:[%s5139_s27 + $0x3a0] sm:$0xff] }
 0x6f0   : > { %v3804_v61 = vpop.f32.mrf.mxu3  ;;  %v3824_v43 = vpop.f32.mrf.mxu0 }
 0x6f1   : > { %v7831_v12 = vadd.f32 %v3804_v61, %v3716_v60  ;;  %v3825_v55 = vadd.f32 %v3824_v43, %v7583_v48 }
 0x6f2   : > { %v3913_v13 = vpop.f32.mrf.mxu1 }
 0x6f3   : > { %3871 = vmatmul.f32.gmra.mxu0 %v4827_v40  ;;  %4049 = vmatmul.f32.gmra.mxu2 %v7568_v58  ;;  %v3914_v24 = vadd.f32 %v3913_v13, %v3825_v55  ;;  %v4830_v58 = vld [vmem:[%s5139_s27 + $0x348] sm:$0xff] }
 0x6f5   : > { %3960 = vmatmul.f32.gmra.mxu1 %v4828_v31  ;;  %4138 = vmatmul.f32.gmra.mxu3 %v7576_v49 }
 0x6f6   : > { %v4002_v15 = vpop.f32.mrf.mxu2 }
 0x6f7   : > { %v4003_v36 = vadd.f32 %v4002_v15, %v3914_v24  ;;  %v4835_v24 = vld [vmem:[%s5139_s27 + $0x3d0] sm:$0xff] }
 0x6f8   : > { %v4091_v29 = vpop.f32.mrf.mxu3  ;;  %v3827_v21 = vpop.f32.mrf.mxu0 }
 0x6f9   : > { %v3828_v34 = vadd.f32 %v3827_v21, %v7598_v44  ;;  %v4092_v48 = vadd.f32 %v4091_v29, %v4003_v36 }
 0x6fa   : > { %v3916_v52 = vpop.f32.mrf.mxu1 }
 0x6fb   : > { %4168 = vst [vmem:[%s5642_s18 + $0x28] sm:$0xff] %v4092_v48  ;;  %3874 = vmatmul.f32.gmra.mxu0 %v4829_v19  ;;  %4052 = vmatmul.f32.gmra.mxu2 %v7586_v35  ;;  %v3917_v49 = vadd.f32 %v3916_v52, %v3828_v34  ;;  %v4832_v35 = vld [vmem:[%s5139_s27 + $0x378] sm:$0xff]  ;;  %v4837_v19 = vld [vmem:[%s5139_s27 + $0x400] sm:$0xff] }
 0x6fd   : > { %3963 = vmatmul.f32.gmra.mxu1 %v4830_v58  ;;  %4141 = vmatmul.f32.gmra.mxu3 %v7591_v53  ;;  %v4838_v58 = vld [vmem:[%s5139_s27 + $0x408] sm:$0xff] }
 0x6fe   : > { %v4005_v23 = vpop.f32.mrf.mxu2 }
 0x6ff   : > { %v4006_v38 = vadd.f32 %v4005_v23, %v3917_v49 }
 0x700   : > { %v4094_v32 = vpop.f32.mrf.mxu3  ;;  %v3830_v25 = vpop.f32.mrf.mxu0 }
 0x701   : > { %v3831_v44 = vadd.f32 %v3830_v25, %v7613_v16  ;;  %v4095_v10 = vadd.f32 %v4094_v32, %v4006_v38 }
 0x702   : > { %v3919_v4 = vpop.f32.mrf.mxu1 }
 0x703   : > { %4174 = vst [vmem:[%s5642_s18 + $0x58] sm:$0xff] %v4095_v10  ;;  %3877 = vmatmul.f32.gmra.mxu0 %v4831_v51  ;;  %4055 = vmatmul.f32.gmra.mxu2 %v7601_v41  ;;  %v3920_v53 = vadd.f32 %v3919_v4, %v3831_v44  ;;  %v4834_v41 = vld [vmem:[%s5139_s27 + $0x3a8] sm:$0xff]  ;;  %v4839_v10 = vld [vmem:[%s5139_s27 + $0x430] sm:$0xff]  ;;  %v4840_v51 = vld [vmem:[%s5139_s27 + $0x438] sm:$0xff] }
 0x704   : > { %v8302_v4 = vld [vmem:[#allocation33_spill] sm:$0xff] }
 0x705   : > { %3966 = vmatmul.f32.gmra.mxu1 %v4832_v35  ;;  %4144 = vmatmul.f32.gmra.mxu3 %v7606_v2  ;;  %v8300_v2 = vld [vmem:[#allocation31_spill] sm:$0xff] }
 0x706   : > { %v4008_v30 = vpop.f32.mrf.mxu2 }
 0x707   : > { %v4009_v9 = vadd.f32 %v4008_v30, %v3920_v53 }
 0x708   : > { %v4097_v1 = vpop.f32.mrf.mxu3  ;;  %v3833_v22 = vpop.f32.mrf.mxu0 }
 0x709   : > { %v3834_v16 = vadd.f32 %v3833_v22, %v7628_v33  ;;  %v4098_v28 = vadd.f32 %v4097_v1, %v4009_v9 }
 0x70a   : > { %v3922_v54 = vpop.f32.mrf.mxu1 }
 0x70b   : > { %4180 = vst [vmem:[%s5642_s18 + $0x88] sm:$0xff] %v4098_v28  ;;  %3880 = vmatmul.f32.gmra.mxu0 %v4833_v47  ;;  %4058 = vmatmul.f32.gmra.mxu2 %v7616_v46  ;;  %v3923_v60 = vadd.f32 %v3922_v54, %v3834_v16  ;;  %v4836_v46 = vld [vmem:[%s5139_s27 + $0x3d8] sm:$0xff]  ;;  %v4841_v16 = vld [vmem:[%s5139_s27 + $0x460] sm:$0xff]  ;;  %v4842_v54 = vld [vmem:[%s5139_s27 + $0x468] sm:$0xff] }
 0x70c   : > { %v8303_v28 = vld [vmem:[#allocation34_spill] sm:$0xff]  ;;  %v8304_v47 = vld [vmem:[#allocation12_spill] sm:$0xff] }
 0x70d   : > { %3969 = vmatmul.f32.gmra.mxu1 %v4834_v41  ;;  %4147 = vmatmul.f32.gmra.mxu3 %v8300_v2 }
 0x70e   : > { %v4011_v61 = vpop.f32.mrf.mxu2 }
 0x70f   : > { %v4012_v43 = vadd.f32 %v4011_v61, %v3923_v60 }
 0x710   : > { %v4100_v55 = vpop.f32.mrf.mxu3  ;;  %v3836_v13 = vpop.f32.mrf.mxu0 }
 0x711   : > { %v3837_v33 = vadd.f32 %v3836_v13, %v7643_v59  ;;  %v4101_v40 = vadd.f32 %v4100_v55, %v4012_v43 }
 0x712   : > { %v3925_v31 = vpop.f32.mrf.mxu1 }
 0x713   : > { %4186 = vst [vmem:[%s5642_s18 + $0xb8] sm:$0xff] %v4101_v40  ;;  %3883 = vmatmul.f32.gmra.mxu0 %v4835_v24  ;;  %4061 = vmatmul.f32.gmra.mxu2 %v7631_v37  ;;  %v3926_v15 = vadd.f32 %v3925_v31, %v3837_v33  ;;  %v8301_v37 = vld [vmem:[#allocation32_spill] sm:$0xff] }
 0x715   : > { %3972 = vmatmul.f32.gmra.mxu1 %v4836_v46  ;;  %4150 = vmatmul.f32.gmra.mxu3 %v7636_v26 }
 0x716   : > { %v4014_v36 = vpop.f32.mrf.mxu2 }
 0x717   : > { %v4015_v29 = vadd.f32 %v4014_v36, %v3926_v15 }
 0x718   : > { %v4103_v21 = vpop.f32.mrf.mxu3  ;;  %v3839_v34 = vpop.f32.mrf.mxu0 }
 0x719   : > { %v3840_v59 = vadd.f32 %v3839_v34, %v7658_v39  ;;  %v4104_v48 = vadd.f32 %v4103_v21, %v4015_v29 }
 0x71a   : > { %v3928_v52 = vpop.f32.mrf.mxu1 }
 0x71b   : > { %4192 = vst [vmem:[%s5642_s18 + $0xe8] sm:$0xff] %v4104_v48  ;;  %3886 = vmatmul.f32.gmra.mxu0 %v4837_v19  ;;  %4064 = vmatmul.f32.gmra.mxu2 %v8301_v37  ;;  %v3929_v26 = vadd.f32 %v3928_v52, %v3840_v59 }
 0x71d   : > { %3975 = vmatmul.f32.gmra.mxu1 %v4838_v58  ;;  %4153 = vmatmul.f32.gmra.mxu3 %v7651_v0 }
 0x71e   : > { %v4017_v49 = vpop.f32.mrf.mxu2 }
 0x71f   : > { %v4018_v23 = vadd.f32 %v4017_v49, %v3929_v26 }
 0x720   : > { %v4106_v38 = vpop.f32.mrf.mxu3  ;;  %v3842_v32 = vpop.f32.mrf.mxu0 }
 0x721   : > { %v3843_v39 = vadd.f32 %v3842_v32, %v7673_v7  ;;  %v4107_v25 = vadd.f32 %v4106_v38, %v4018_v23 }
 0x722   : > { %v3931_v44 = vpop.f32.mrf.mxu1 }
 0x723   : > { %4198 = vst [vmem:[%s5642_s18 + $0x118] sm:$0xff] %v4107_v25  ;;  %3889 = vmatmul.f32.gmra.mxu0 %v4839_v10  ;;  %4067 = vmatmul.f32.gmra.mxu2 %v8302_v4  ;;  %v3932_v0 = vadd.f32 %v3931_v44, %v3843_v39 }
 0x725   : > { %3978 = vmatmul.f32.gmra.mxu1 %v4840_v51  ;;  %4156 = vmatmul.f32.gmra.mxu3 %v7666_v17 }
 0x726   : > { %v4020_v35 = vpop.f32.mrf.mxu2 }
 0x727   : > { %v4021_v53 = vadd.f32 %v4020_v35, %v3932_v0 }
 0x728   : > { %v4109_v30 = vpop.f32.mrf.mxu3  ;;  %v3845_v9 = vpop.f32.mrf.mxu0 }
 0x729   : > { %v3846_v7 = vadd.f32 %v3845_v9, %v7688_v18  ;;  %v4110_v1 = vadd.f32 %v4109_v30, %v4021_v53 }
 0x72a   : > { %v3934_v22 = vpop.f32.mrf.mxu1 }
 0x72b   : > { %4204 = vst [vmem:[%s5642_s18 + $0x148] sm:$0xff] %v4110_v1  ;;  %3892 = vmatmul.f32.gmra.mxu0 %v4841_v16  ;;  %4070 = vmatmul.f32.gmra.mxu2 %v8303_v28  ;;  %v3935_v17 = vadd.f32 %v3934_v22, %v3846_v7 }
 0x72d   : > { %3981 = vmatmul.f32.gmra.mxu1 %v4842_v54  ;;  %4159 = vmatmul.f32.gmra.mxu3 %v8304_v47 }
 0x72e   : > { %v4023_v41 = vpop.f32.mrf.mxu2 }
 0x72f   : > { %v4024_v2 = vadd.f32 %v4023_v41, %v3935_v17 }
 0x730   : > { %v4112_v60 = vpop.f32.mrf.mxu3  ;;  %v3848_v61 = vpop.f32.mrf.mxu0 }
 0x731   : > { %v3849_v18 = vadd.f32 %v3848_v61, %v7697_v6  ;;  %v4113_v43 = vadd.f32 %v4112_v60, %v4024_v2 }
 0x732   : > { %v3937_v55 = vpop.f32.mrf.mxu1 }
 0x733   : > { %4210 = vst [vmem:[%s5642_s18 + $0x178] sm:$0xff] %v4113_v43  ;;  %v3938_v13 = vadd.f32 %v3937_v55, %v3849_v18 }
 0x736   : > { %v4026_v33 = vpop.f32.mrf.mxu2 }
 0x737   : > { %v4027_v40 = vadd.f32 %v4026_v33, %v3938_v13 }
 0x738   : > { %v4115_v31 = vpop.f32.mrf.mxu3  ;;  %v3851_v24 = vpop.f32.mrf.mxu0 }
 0x739   : > { %v3852_v46 = vadd.f32 %v3851_v24, %v7706_v14  ;;  %v4116_v15 = vadd.f32 %v4115_v31, %v4027_v40 }
 0x73a   : > { %v3940_v36 = vpop.f32.mrf.mxu1 }
 0x73b   : > { %4216 = vst [vmem:[%s5642_s18 + $0x1a8] sm:$0xff] %v4116_v15  ;;  %v3941_v29 = vadd.f32 %v3940_v36, %v3852_v46 }
 0x73e   : > { %v4029_v21 = vpop.f32.mrf.mxu2 }
 0x73f   : > { %v4030_v34 = vadd.f32 %v4029_v21, %v3941_v29 }
 0x740   : > { %v4118_v59 = vpop.f32.mrf.mxu3  ;;  %v3854_v6 = vpop.f32.mrf.mxu0 }
 0x741   : > { %v3855_v48 = vadd.f32 %v3854_v6, %v7715_v62  ;;  %v4119_v52 = vadd.f32 %v4118_v59, %v4030_v34 }
 0x742   : > { %v3943_v19 = vpop.f32.mrf.mxu1 }
 0x743   : > { %4222 = vst [vmem:[%s5642_s18 + $0x1d8] sm:$0xff] %v4119_v52  ;;  %v3944_v37 = vadd.f32 %v3943_v19, %v3855_v48 }
 0x746   : > { %v4032_v58 = vpop.f32.mrf.mxu2 }
 0x747   : > { %v4033_v26 = vadd.f32 %v4032_v58, %v3944_v37 }
 0x748   : > { %v4121_v49 = vpop.f32.mrf.mxu3  ;;  %v3857_v14 = vpop.f32.mrf.mxu0 }
 0x749   : > { %v3858_v23 = vadd.f32 %v3857_v14, %v7724_v63  ;;  %v4122_v38 = vadd.f32 %v4121_v49, %v4033_v26 }
 0x74a   : > { %v3946_v32 = vpop.f32.mrf.mxu1 }
 0x74b   : > { %4228 = vst [vmem:[%s5642_s18 + $0x208] sm:$0xff] %v4122_v38  ;;  %v3947_v39 = vadd.f32 %v3946_v32, %v3858_v23 }
 0x74e   : > { %v4035_v25 = vpop.f32.mrf.mxu2 }
 0x74f   : > { %v4036_v44 = vadd.f32 %v4035_v25, %v3947_v39 }
 0x750   : > { %v4124_v10 = vpop.f32.mrf.mxu3  ;;  %v3860_v62 = vpop.f32.mrf.mxu0 }
 0x751   : > { %v3861_v4 = vadd.f32 %v3860_v62, %v7733_v45  ;;  %v4125_v51 = vadd.f32 %v4124_v10, %v4036_v44 }
 0x752   : > { %v3949_v0 = vpop.f32.mrf.mxu1 }
 0x753   : > { %4234 = vst [vmem:[%s5642_s18 + $0x238] sm:$0xff] %v4125_v51  ;;  %v3950_v35 = vadd.f32 %v3949_v0, %v3861_v4 }
 0x756   : > { %v4038_v53 = vpop.f32.mrf.mxu2 }
 0x757   : > { %v4039_v30 = vadd.f32 %v4038_v53, %v3950_v35 }
 0x758   : > { %v4127_v9 = vpop.f32.mrf.mxu3  ;;  %v3863_v63 = vpop.f32.mrf.mxu0 }
 0x759   : > { %v3864_v7 = vadd.f32 %v3863_v63, %v7742_v57  ;;  %v4128_v1 = vadd.f32 %v4127_v9, %v4039_v30 }
 0x75a   : > { %v3952_v22 = vpop.f32.mrf.mxu1 }
 0x75b   : > { %4240 = vst [vmem:[%s5642_s18 + $0x268] sm:$0xff] %v4128_v1  ;;  %v3953_v16 = vadd.f32 %v3952_v22, %v3864_v7 }
 0x75e   : > { %v4041_v28 = vpop.f32.mrf.mxu2 }
 0x75f   : > { %v4042_v54 = vadd.f32 %v4041_v28, %v3953_v16 }
 0x760   : > { %v4130_v47 = vpop.f32.mrf.mxu3  ;;  %v3866_v45 = vpop.f32.mrf.mxu0 }
 0x761   : > { %v3867_v17 = vadd.f32 %v3866_v45, %v7751_v3  ;;  %v4131_v41 = vadd.f32 %v4130_v47, %v4042_v54 }
 0x762   : > { %v3955_v2 = vpop.f32.mrf.mxu1 }
 0x763   : > { %4246 = vst [vmem:[%s5642_s18 + $0x298] sm:$0xff] %v4131_v41  ;;  %v3956_v60 = vadd.f32 %v3955_v2, %v3867_v17 }
 0x766   : > { %v4044_v61 = vpop.f32.mrf.mxu2 }
 0x767   : > { %v4045_v18 = vadd.f32 %v4044_v61, %v3956_v60 }
 0x768   : > { %v4133_v43 = vpop.f32.mrf.mxu3  ;;  %v3869_v57 = vpop.f32.mrf.mxu0 }
 0x769   : > { %v3870_v55 = vadd.f32 %v3869_v57, %v7760_v56  ;;  %v4134_v13 = vadd.f32 %v4133_v43, %v4045_v18 }
 0x76a   : > { %v3958_v33 = vpop.f32.mrf.mxu1 }
 0x76b   : > { %4252 = vst [vmem:[%s5642_s18 + $0x2c8] sm:$0xff] %v4134_v13  ;;  %v3959_v40 = vadd.f32 %v3958_v33, %v3870_v55 }
 0x76e   : > { %v4047_v31 = vpop.f32.mrf.mxu2 }
 0x76f   : > { %v4048_v24 = vadd.f32 %v4047_v31, %v3959_v40 }
 0x770   : > { %v4136_v46 = vpop.f32.mrf.mxu3  ;;  %v3872_v3 = vpop.f32.mrf.mxu0 }
 0x771   : > { %v3873_v15 = vadd.f32 %v3872_v3, %v7769_v27  ;;  %v4137_v36 = vadd.f32 %v4136_v46, %v4048_v24 }
 0x772   : > { %v3961_v29 = vpop.f32.mrf.mxu1 }
 0x773   : > { %4258 = vst [vmem:[%s5642_s18 + $0x2f8] sm:$0xff] %v4137_v36  ;;  %v3962_v21 = vadd.f32 %v3961_v29, %v3873_v15 }
 0x776   : > { %v4050_v34 = vpop.f32.mrf.mxu2 }
 0x777   : > { %v4051_v59 = vadd.f32 %v4050_v34, %v3962_v21 }
 0x778   : > { %v4139_v6 = vpop.f32.mrf.mxu3  ;;  %v3875_v56 = vpop.f32.mrf.mxu0 }
 0x779   : > { %v3876_v48 = vadd.f32 %v3875_v56, %v7778_v50  ;;  %v4140_v52 = vadd.f32 %v4139_v6, %v4051_v59 }
 0x77a   : > { %v3964_v19 = vpop.f32.mrf.mxu1 }
 0x77b   : > { %4264 = vst [vmem:[%s5642_s18 + $0x328] sm:$0xff] %v4140_v52  ;;  %v3965_v37 = vadd.f32 %v3964_v19, %v3876_v48 }
 0x77e   : > { %v4053_v58 = vpop.f32.mrf.mxu2 }
 0x77f   : > { %v4054_v26 = vadd.f32 %v4053_v58, %v3965_v37 }
 0x780   : > { %v4142_v49 = vpop.f32.mrf.mxu3  ;;  %v3878_v27 = vpop.f32.mrf.mxu0 }
 0x781   : > { %v3879_v14 = vadd.f32 %v3878_v27, %v7787_v5  ;;  %v4143_v23 = vadd.f32 %v4142_v49, %v4054_v26 }
 0x782   : > { %v3967_v38 = vpop.f32.mrf.mxu1 }
 0x783   : > { %4270 = vst [vmem:[%s5642_s18 + $0x358] sm:$0xff] %v4143_v23  ;;  %v3968_v32 = vadd.f32 %v3967_v38, %v3879_v14 }
 0x786   : > { %v4056_v39 = vpop.f32.mrf.mxu2 }
 0x787   : > { %v4057_v25 = vadd.f32 %v4056_v39, %v3968_v32 }
 0x788   : > { %v4145_v44 = vpop.f32.mrf.mxu3  ;;  %v3881_v50 = vpop.f32.mrf.mxu0 }
 0x789   : > { %v3882_v10 = vadd.f32 %v3881_v50, %v7796_v8  ;;  %v4146_v62 = vadd.f32 %v4145_v44, %v4057_v25 }
 0x78a   : > { %v3970_v4 = vpop.f32.mrf.mxu1 }
 0x78b   : > { %4276 = vst [vmem:[%s5642_s18 + $0x388] sm:$0xff] %v4146_v62  ;;  %v3971_v51 = vadd.f32 %v3970_v4, %v3882_v10 }
 0x78e   : > { %v4059_v0 = vpop.f32.mrf.mxu2 }
 0x78f   : > { %v4060_v35 = vadd.f32 %v4059_v0, %v3971_v51 }
 0x790   : > { %v4148_v53 = vpop.f32.mrf.mxu3  ;;  %v3884_v5 = vpop.f32.mrf.mxu0 }
 0x791   : > { %v3885_v30 = vadd.f32 %v3884_v5, %v7805_v42  ;;  %v4149_v9 = vadd.f32 %v4148_v53, %v4060_v35 }
 0x792   : > { %v3973_v63 = vpop.f32.mrf.mxu1 }
 0x793   : > { %4282 = vst [vmem:[%s5642_s18 + $0x3b8] sm:$0xff] %v4149_v9  ;;  %v3974_v7 = vadd.f32 %v3973_v63, %v3885_v30 }
 0x796   : > { %v4062_v1 = vpop.f32.mrf.mxu2 }
 0x797   : > { %v4063_v22 = vadd.f32 %v4062_v1, %v3974_v7 }
 0x798   : > { %v4151_v16 = vpop.f32.mrf.mxu3  ;;  %v3887_v8 = vpop.f32.mrf.mxu0 }
 0x799   : > { %v3888_v28 = vadd.f32 %v3887_v8, %v7814_v11  ;;  %v4152_v54 = vadd.f32 %v4151_v16, %v4063_v22 }
 0x79a   : > { %v3976_v47 = vpop.f32.mrf.mxu1 }
 0x79b   : > { %4288 = vst [vmem:[%s5642_s18 + $0x3e8] sm:$0xff] %v4152_v54  ;;  %v3977_v45 = vadd.f32 %v3976_v47, %v3888_v28 }
 0x79e   : > { %v4065_v17 = vpop.f32.mrf.mxu2 }
 0x79f   : > { %v4066_v41 = vadd.f32 %v4065_v17, %v3977_v45 }
 0x7a0   : > { %v4154_v2 = vpop.f32.mrf.mxu3  ;;  %v3890_v42 = vpop.f32.mrf.mxu0 }
 0x7a1   : > { %v3891_v60 = vadd.f32 %v3890_v42, %v7823_v20  ;;  %v4155_v61 = vadd.f32 %v4154_v2, %v4066_v41 }
 0x7a2   : > { %v3979_v18 = vpop.f32.mrf.mxu1 }
 0x7a3   : > { %4294 = vst [vmem:[%s5642_s18 + $0x418] sm:$0xff] %v4155_v61  ;;  %v3980_v43 = vadd.f32 %v3979_v18, %v3891_v60 }
 0x7a6   : > { %v4068_v57 = vpop.f32.mrf.mxu2 }
 0x7a7   : > { %v4069_v55 = vadd.f32 %v4068_v57, %v3980_v43 }
 0x7a8   : > { %v4157_v11 = vpop.f32.mrf.mxu3  ;;  %v3893_v13 = vpop.f32.mrf.mxu0 }
 0x7a9   : > { %v3894_v33 = vadd.f32 %v3893_v13, %v7831_v12  ;;  %v4158_v40 = vadd.f32 %v4157_v11, %v4069_v55 }
 0x7aa   : > { %v3982_v31 = vpop.f32.mrf.mxu1 }
 0x7ab   : > { %4300 = vst [vmem:[%s5642_s18 + $0x448] sm:$0xff] %v4158_v40  ;;  %v3983_v20 = vadd.f32 %v3982_v31, %v3894_v33 }
 0x7ae   : > { %v4071_v24 = vpop.f32.mrf.mxu2 }
 0x7af   : > { %v4072_v46 = vadd.f32 %v4071_v24, %v3983_v20 }
 0x7b0   : > { %v4160_v3 = vpop.f32.mrf.mxu3 }
 0x7b1   : > { %v4161_v15 = vadd.f32 %v4160_v3, %v4072_v46 }
 0x7b3   : > { %4306 = vst [vmem:[%s5642_s18 + $0x478] sm:$0xff] %v4161_v15 }
 0x7b4   : > { %4960 = shalt.err (!%p4957_p10)
}
 0x7b5   : > { %s5009_s20 = smov 768   ;;  %s5010_s29 = smov 48  }
 0x7b6   : > { %4442 = dma.vmem_to_hbm [thread:$0]  (%p5104_p7), %s4322_s28, 18432, %s4324_s4, %s4308_s16, %s5009_s20, %s5009_s20, %s5010_s29  }
 0x7b7 PF: > { %s4338_s24 = sand.u32 1, %s4991_s12   ;;  %p8305_p12 = scmp.ge.s32.totalorder %s5003_s15, 2 }
 0x7b8   : > { %s4339_s27 = scalar_lea.sflag [#allocation4], %s4338_s24 }
 0x7b9   : > { %p4456_p13 = pnand %p8305_p12, %p5066_p6 }
 0x7bb   : > { %p4457_p0 = pneg %p4456_p13 }
 0x7bd   : > { %4986 = dma.done.wait (%p4457_p0), %s4339_s27, 18432  }
 0x7be   : > { %4988 = vsyncadd (%p4457_p0), %s4339_s27, 4294948864  ;;  %p17_p3 = scmp.ge.s32.totalorder %s5090_s6, 4   ;;  %s8306_s12 = smov %s4995_s13 }
 0x7bf   : > { %s8307_s13 = smov %s4999_s14  ;;  %s8308_s14 = smov %s5100_s9 }
 0x7c0   : > { %s8309_s15 = smov %s5090_s6  ;;  %19 = sbr.rel (!%p17_p3) target bundleno = 6 (0x6), region = 85 }
 0x7c5   :  { %4345 = vsyncpa [#allocation3], 1 }
 0x7c6   :  { %4347 = vsyncpa [#allocation3 + $0x1], 1 }
 0x7c7   :  { %4348 = vsyncpa [#allocation6], 1 }
 0x7c8   :  { %4349 = vsyncpa [#allocation4], 1 }
 0x7c9   :  { %4351 = vsyncpa [#allocation4 + $0x1], 1 }

</bundles_post_ra>
